<compile_context>
chip_gen: v7x
topology: tpu7x:2x2x1
jax: 0.10.0
libtpu: 0.0.40
codegen_flags: <defaults>
</compile_context>

<pallas_src>
import functools

import jax
import jax.numpy as jnp
from jax import lax
from jax.experimental import pallas as pl
from jax.experimental.pallas import tpu as pltpu

VOCAB = 8                        # vocab_size
EMBED = 32                       # embed_dim
NFILT = 16                       # num_filters
KSIZES = (3, 5, 7)               # kernel_sizes (ModuleList order)
MAXP = max(KSIZES) // 2          # common left/right sequence padding = 3
KTAP = max(KSIZES)               # 7 taps cover every conv bank
VP = VOCAB + 1                   # + sentinel "padding" id (zero embedding row)
PAD_ID = VOCAB                   # sentinel token id used for conv/batch padding
FTOT = NFILT * len(KSIZES)       # 48 = concat of the three conv banks
HALO = 2 * MAXP                  # 6 extra ids each tile needs on its right


def _round_up(x, m):
    return (x + m - 1) // m * m


def _cnn_kmer_kernel(len_ref, ids_ref, halo_ref, w_ref, b_ref, fcw_ref, fcb_ref,
                     out_ref, mx_ref):
    """Grid = (batch tiles ["parallel"], sequence tiles ["arbitrary"]).

    NOTE: the sequence axis MUST stay the innermost "arbitrary" grid axis:
    mx_ref is a running max carried across it and out_ref is written only on
    its last step.  Reordering the grid would silently produce garbage.
    """
    TB, TL = ids_ref.shape
    j = pl.program_id(1)
    nl = pl.num_programs(1)
    true_len = len_ref[0]

    # First sequence tile of this batch tile: reset the running max.
    @pl.when(j == 0)
    def _init():
        mx_ref[...] = jnp.full(mx_ref.shape, -jnp.inf, dtype=mx_ref.dtype)

    # This tile's conv window: TL "main" ids + 6 halo ids from the next tile.
    ids = jnp.concatenate([ids_ref[...], halo_ref[...]], axis=1)   # (TB, TL+6)

    # One-hot of the whole window with a SINGLE compare (+cast).  The 0/1
    # one-hot is exact in bf16.
    voc = lax.broadcasted_iota(jnp.int32, (TB, TL + HALO, VP), 2)
    oh = (ids[:, :, None] == voc).astype(jnp.bfloat16)             # (TB, TLW, 9)

    # conv(embed(ids)) for all three banks at once: the embedding table is
    # folded into w_ref (KTAP, VP, FTOT), so each tap is a tiny matmul on a
    # shifted one-hot slice, accumulated in f32 (MXU has plenty of slack).
    def tap(t):
        lhs = oh[:, t:t + TL, :].reshape(TB * TL, VP)
        return jnp.dot(lhs, w_ref[t], preferred_element_type=jnp.float32)

    acc = tap(0)
    for t in range(1, KTAP):                                       # static unroll
        acc = acc + tap(t)
    acc = jnp.maximum(acc + b_ref[...], 0.0)                       # bias + ReLU
    acc = acc.reshape(TB, TL, FTOT)

    # Running global max pool.  Only a partial tile (runtime check against the
    # true length) pays for the -inf position mask; interior tiles skip it.
    tile_full = (j + 1) * TL <= true_len

    @pl.when(tile_full)
    def _full():
        mx_ref[...] = jnp.maximum(mx_ref[...], jnp.max(acc, axis=1))

    @pl.when(jnp.logical_not(tile_full))
    def _partial():
        pos = j * TL + lax.broadcasted_iota(jnp.int32, acc.shape, 1)
        masked = jnp.where(pos < true_len, acc, -jnp.inf)
        mx_ref[...] = jnp.maximum(mx_ref[...], jnp.max(masked, axis=1))

    # Last sequence tile: fc head + store this batch tile's output block.
    @pl.when(j == nl - 1)
    def _finish():
        feat = mx_ref[...].astype(jnp.bfloat16)                    # (TB, 48)
        out_ref[...] = (jnp.dot(feat, fcw_ref[...],
                                preferred_element_type=jnp.float32)
                        + fcb_ref[...])


@functools.partial(jax.jit, static_argnames=("batch_tile", "seq_tile"))
def cnn_kmer_branch(seqs, emb_table, conv_ws, conv_bs, fc_w, fc_b,
                    true_len=None, *, batch_tile=64, seq_tile=128):
    """Forward pass of CNNKmerBranch.

    seqs:       (B, L) int token ids.
    emb_table:  (VOCAB, EMBED)
    conv_ws[i]: (k_i, EMBED, NFILT)   (torch Conv1d weight (F, E, k) transposed)
    conv_bs[i]: (NFILT,)
    fc_w:       (FTOT, EMBED)         (torch Linear weight (EMBED, FTOT) transposed)
    fc_b:       (EMBED,)
    true_len:   optional dynamic scalar (<= L).  Default None == L reproduces
                the module exactly (max pool over all L positions).  A smaller
                dynamic value (serving with bucketed padding, trailing slots
                filled with the padding token) excludes those slots from the
                max WITHOUT recompiling.
    Returns (B, EMBED) float32.
    """
    if batch_tile % 8 != 0 or batch_tile < 8:
        raise ValueError("batch_tile must be a positive multiple of 8")
    if seq_tile % 16 != 0 or seq_tile < 16:
        raise ValueError("seq_tile must be a positive multiple of 16")
    B, L = seqs.shape

    # ---- tiling ------------------------------------------------------------
    Bp0 = _round_up(B, 8)
    # Keep nb >= 2 when possible so the "parallel" batch axis can split across
    # the two TensorCores on v7x (one extra cheap step on v5e/v6e at worst).
    TB = min(batch_tile, Bp0, max(8, _round_up(Bp0 // 2, 8)))
    nb = -(-Bp0 // TB)
    Bp = nb * TB

    Lr = _round_up(L, 16)            # 16 keeps the bf16 one-hot reshape clean
    if Lr <= seq_tile:
        TL, nl = Lr, 1               # whole sequence in one step
    else:
        if seq_tile % 128 != 0:
            raise ValueError("seq_tile must be a multiple of 128 when L > seq_tile")
        TL = seq_tile
        nl = -(-L // TL)
    Ltot = nl * TL

    # ---- id padding + halo side input (no per-tile window stacking) --------
    ids = jnp.pad(seqs.astype(jnp.int32),
                  ((0, Bp - B), (MAXP, (Ltot - L) + MAXP)),
                  constant_values=PAD_ID)                          # (Bp, Ltot+6)
    ids_main = ids[:, :Ltot]                                       # (Bp, Ltot)
    ext = jnp.pad(ids, ((0, 0), (0, TL - HALO)), constant_values=PAD_ID)
    halo = ext[:, TL:].reshape(Bp, nl, TL)[:, :, :HALO]            # ids[:, (j+1)*TL:+6]
    halo = jnp.transpose(halo, (1, 0, 2))                          # (nl, Bp, 6)

    # ---- fold the embedding table into the conv weights, stack the 3 banks --
    emb_ext = jnp.concatenate(
        [emb_table.astype(jnp.float32), jnp.zeros((1, EMBED), jnp.float32)],
        axis=0)                                                    # (VP, E)
    w_fold = jnp.zeros((KTAP, VP, FTOT), jnp.float32)
    for bank, (k, w) in enumerate(zip(KSIZES, conv_ws)):
        off = MAXP - k // 2
        folded = jnp.einsum("ve,kef->kvf", emb_ext, w.astype(jnp.float32))
        w_fold = w_fold.at[off:off + k, :, bank * NFILT:(bank + 1) * NFILT].set(folded)
    # bf16 operands: one-hot LHS is exact; folded weights lose ~0.4% relative.
    # TODO(synk): keep weights f32 + Precision.HIGHEST if bit-tighter parity
    # with the f32 PyTorch module is ever required.
    w_fold = w_fold.astype(jnp.bfloat16)                           # (7, 9, 48)
    b_cat = jnp.concatenate([b.astype(jnp.float32) for b in conv_bs]).reshape(1, FTOT)
    fc_wt = fc_w.astype(jnp.bfloat16)                              # (48, 32)
    fc_bt = fc_b.astype(jnp.float32).reshape(1, EMBED)

    tl_val = L if true_len is None else true_len
    tl_arr = jnp.asarray(tl_val, jnp.int32).reshape((1,))

    grid_spec = pltpu.PrefetchScalarGridSpec(
        num_scalar_prefetch=1,                                     # true length
        grid=(nb, nl),
        in_specs=[
            pl.BlockSpec((TB, TL), lambda i, j, ln: (i, j)),            # main ids
            pl.BlockSpec((None, TB, HALO), lambda i, j, ln: (j, i, 0)), # halo ids
            pl.BlockSpec((KTAP, VP, FTOT), lambda i, j, ln: (0, 0, 0)), # folded conv W
            pl.BlockSpec((1, FTOT), lambda i, j, ln: (0, 0)),           # conv biases
            pl.BlockSpec((FTOT, EMBED), lambda i, j, ln: (0, 0)),       # fc weight
            pl.BlockSpec((1, EMBED), lambda i, j, ln: (0, 0)),          # fc bias
        ],
        out_specs=pl.BlockSpec((TB, EMBED), lambda i, j, ln: (i, 0)),
        scratch_shapes=[pltpu.VMEM((TB, FTOT), jnp.float32)],           # running max
    )
    out = pl.pallas_call(
        _cnn_kmer_kernel,
        out_shape=jax.ShapeDtypeStruct((Bp, EMBED), jnp.float32),
        grid_spec=grid_spec,
        compiler_params=pltpu.CompilerParams(
            # Sequence axis must stay innermost + "arbitrary" (accumulator);
            # batch axis is safe to shard across cores.
            dimension_semantics=("parallel", "arbitrary"),
            vmem_limit_bytes=32 * 1024 * 1024),
    )(tl_arr, ids_main, halo, w_fold, b_cat, fc_wt, fc_bt)
    return out[:B]


if __name__ == "__main__":
    key = jax.random.PRNGKey(0)
    keys = jax.random.split(key, 10)
    # Small shapes that still exercise: batch padding (10 -> 16), nb=2 batch
    # tiles, nl=2 sequence tiles (one full + one partial/masked), and the
    # cross-tile halo.
    B, L = 10, 200

    emb_table = jax.random.normal(keys[0], (VOCAB, EMBED), jnp.float32) * 0.1
    emb_table = emb_table.at[VOCAB - 1].set(0.0)     # nn.Embedding padding_idx row

    conv_ws, conv_bs = [], []
    for i, k in enumerate(KSIZES):
        # torch Conv1d weight (F, E, k) stored pre-transposed as (k, E, F)
        conv_ws.append(jax.random.normal(keys[1 + i], (k, EMBED, NFILT), jnp.float32) * 0.1)
        conv_bs.append(jax.random.normal(keys[4 + i], (NFILT,), jnp.float32) * 0.1)

    # torch Linear weight (EMBED, 3F) stored pre-transposed as (3F, EMBED)
    fc_w = jax.random.normal(keys[7], (FTOT, EMBED), jnp.float32) * 0.1
    fc_b = jax.random.normal(keys[8], (EMBED,), jnp.float32) * 0.1

    seqs = jax.random.randint(keys[9], (B, L), 0, VOCAB, dtype=jnp.int32)

    out = cnn_kmer_branch(seqs, emb_table, conv_ws, conv_bs, fc_w, fc_b)
    jax.block_until_ready(out)
    assert out.shape == (B, EMBED) and out.dtype == jnp.float32

    # Pure-JAX f32 reference of the original module's forward pass.
    def reference(seqs, emb_table, conv_ws, conv_bs, fc_w, fc_b):
        x = jnp.take(emb_table, seqs, axis=0)                        # (B, L, E)
        pooled = []
        for k, w, b in zip(KSIZES, conv_ws, conv_bs):
            p = k // 2
            xp = jnp.pad(x, ((0, 0), (p, p), (0, 0)))
            o = sum(jnp.einsum("ble,ef->blf", xp[:, t:t + L, :], w[t])
                    for t in range(k)) + b
            pooled.append(jnp.max(jnp.maximum(o, 0.0), axis=1))      # (B, F)
        feat = jnp.concatenate(pooled, axis=-1)                      # (B, 3F)
        return feat @ fc_w + fc_b

    ref = reference(seqs, emb_table, conv_ws, conv_bs, fc_w, fc_b)
    err = float(jnp.max(jnp.abs(out - ref)))
    assert err < 5e-2, f"max abs err {err}"   # bf16 matmul operands, f32 accum
    print("KERNEL_OK")
</pallas_src>

<mosaic_0001>
module attributes {stable_mosaic.version = 11 : i64} {
  func.func @_cnn_kmer_kernel(%arg0: i32, %arg1: i32, %arg2: memref<1xi32, #tpu.memory_space<smem>>, %arg3: memref<8x128xi32, #tpu.memory_space<vmem>>, %arg4: memref<1x8x6xi32, #tpu.memory_space<vmem>>, %arg5: memref<7x9x48xbf16, #tpu.memory_space<vmem>>, %arg6: memref<1x48xf32, #tpu.memory_space<vmem>>, %arg7: memref<48x32xbf16, #tpu.memory_space<vmem>>, %arg8: memref<1x32xf32, #tpu.memory_space<vmem>>, %arg9: memref<8x32xf32, #tpu.memory_space<vmem>>, %arg10: memref<8x48xf32, #tpu.memory_space<vmem>>) attributes {dimension_semantics = [#tpu.dimension_semantics<parallel>, #tpu.dimension_semantics<arbitrary>], iteration_bounds = array<i64: 2, 2>, scalar_prefetch = 1 : i64, scratch_operands = 1 : i64, tpu.core_type = #tpu.core_type<tc>, window_params = [{transform_indices = @transform_0, window_bounds = array<i64: 8, 128>}, {transform_indices = @transform_1, window_bounds = array<i64: 1, 8, 6>}, {pipeline_mode = #tpu.pipeline_mode<synchronous>, transform_indices = @transform_2, window_bounds = array<i64: 7, 9, 48>}, {pipeline_mode = #tpu.pipeline_mode<synchronous>, transform_indices = @transform_3, window_bounds = array<i64: 1, 48>}, {pipeline_mode = #tpu.pipeline_mode<synchronous>, transform_indices = @transform_4, window_bounds = array<i64: 48, 32>}, {pipeline_mode = #tpu.pipeline_mode<synchronous>, transform_indices = @transform_5, window_bounds = array<i64: 1, 32>}, {transform_indices = @transform_6, window_bounds = array<i64: 8, 32>}]} {
    %c0 = arith.constant 0 : index
    %0 = memref.load %arg2[%c0] : memref<1xi32, #tpu.memory_space<smem>>
    %c0_i32 = arith.constant 0 : i32
    %1 = arith.cmpi eq, %arg1, %c0_i32 : i32
    %2 = arith.extui %1 : i1 to i32
    %c0_i32_0 = arith.constant 0 : i32
    %3 = arith.cmpi ne, %2, %c0_i32_0 : i32
    scf.if %3 {
      %cst_34 = arith.constant 0xFF800000 : f32
      %73 = vector.broadcast %cst_34 : f32 to vector<8x48xf32>
      %c0_35 = arith.constant 0 : index
      %c0_36 = arith.constant 0 : index
      %74 = vector.load %arg10[%c0_35, %c0_36] : memref<8x48xf32, #tpu.memory_space<vmem>>, vector<8x48xf32>
      tpu.vector_store %arg10[%c0_35, %c0_36], %73 {strides = array<i32>} : memref<8x48xf32, #tpu.memory_space<vmem>>, vector<8x48xf32>,
    } else {
    }
    %c0_1 = arith.constant 0 : index
    %c0_2 = arith.constant 0 : index
    %4 = vector.load %arg3[%c0_1, %c0_2] : memref<8x128xi32, #tpu.memory_space<vmem>>, vector<8x128xi32>
    %c0_3 = arith.constant 0 : index
    %c0_4 = arith.constant 0 : index
    %c0_5 = arith.constant 0 : index
    %5 = vector.load %arg4[%c0_3, %c0_4, %c0_5] : memref<1x8x6xi32, #tpu.memory_space<vmem>>, vector<1x8x6xi32>
    %6 = vector.shape_cast %5 : vector<1x8x6xi32> to vector<8x6xi32>
    %7 = tpu.concatenate %4, %6 in 1 : vector<8x128xi32>, vector<8x6xi32> -> vector<8x134xi32>
    %8 = tpu.iota {dimensions = array<i32: 2>} : vector<8x134x9xi32>
    %9 = vector.shape_cast %7 : vector<8x134xi32> to vector<8x134x1xi32>
    %10 = vector.broadcast %9 : vector<8x134x1xi32> to vector<8x134x9xi32>
    %11 = arith.cmpi eq, %10, %8 : vector<8x134x9xi32>
    %12 = arith.extui %11 : vector<8x134x9xi1> to vector<8x134x9xi32>
    %13 = arith.sitofp %12 : vector<8x134x9xi32> to vector<8x134x9xf32>
    %14 = arith.truncf %13 : vector<8x134x9xf32> to vector<8x134x9xbf16>
    %15 = vector.extract_strided_slice %14 {offsets = [0, 0, 0], sizes = [8, 128, 9], strides = [1, 1, 1]} : vector<8x134x9xbf16> to vector<8x128x9xbf16>
    %16 = vector.shape_cast %15 : vector<8x128x9xbf16> to vector<1024x9xbf16>
    %c0_6 = arith.constant 0 : index
    %c0_7 = arith.constant 0 : index
    %c0_8 = arith.constant 0 : index
    %17 = vector.load %arg5[%c0_6, %c0_7, %c0_8] : memref<7x9x48xbf16, #tpu.memory_space<vmem>>, vector<1x9x48xbf16>
    %18 = vector.shape_cast %17 : vector<1x9x48xbf16> to vector<9x48xbf16>
    %cst = arith.constant dense<0.000000e+00> : vector<1024x48xf32>
    %19 = tpu.matmul %16, %18, %cst {dimension_numbers = #tpu.dot_dimension_numbers<[1], [0], [0], [1], [0, 0, 1, 1], [], []>} : vector<1024x9xbf16>, vector<9x48xbf16>, vector<1024x48xf32> -> vector<1024x48xf32>
    %20 = vector.extract_strided_slice %14 {offsets = [0, 1, 0], sizes = [8, 128, 9], strides = [1, 1, 1]} : vector<8x134x9xbf16> to vector<8x128x9xbf16>
    %21 = vector.shape_cast %20 : vector<8x128x9xbf16> to vector<1024x9xbf16>
    %c1 = arith.constant 1 : index
    %c0_9 = arith.constant 0 : index
    %c0_10 = arith.constant 0 : index
    %22 = vector.load %arg5[%c1, %c0_9, %c0_10] : memref<7x9x48xbf16, #tpu.memory_space<vmem>>, vector<1x9x48xbf16>
    %23 = vector.shape_cast %22 : vector<1x9x48xbf16> to vector<9x48xbf16>
    %cst_11 = arith.constant dense<0.000000e+00> : vector<1024x48xf32>
    %24 = tpu.matmul %21, %23, %cst_11 {dimension_numbers = #tpu.dot_dimension_numbers<[1], [0], [0], [1], [0, 0, 1, 1], [], []>} : vector<1024x9xbf16>, vector<9x48xbf16>, vector<1024x48xf32> -> vector<1024x48xf32>
    %25 = arith.addf %19, %24 : vector<1024x48xf32>
    %26 = vector.extract_strided_slice %14 {offsets = [0, 2, 0], sizes = [8, 128, 9], strides = [1, 1, 1]} : vector<8x134x9xbf16> to vector<8x128x9xbf16>
    %27 = vector.shape_cast %26 : vector<8x128x9xbf16> to vector<1024x9xbf16>
    %c2 = arith.constant 2 : index
    %c0_12 = arith.constant 0 : index
    %c0_13 = arith.constant 0 : index
    %28 = vector.load %arg5[%c2, %c0_12, %c0_13] : memref<7x9x48xbf16, #tpu.memory_space<vmem>>, vector<1x9x48xbf16>
    %29 = vector.shape_cast %28 : vector<1x9x48xbf16> to vector<9x48xbf16>
    %cst_14 = arith.constant dense<0.000000e+00> : vector<1024x48xf32>
    %30 = tpu.matmul %27, %29, %cst_14 {dimension_numbers = #tpu.dot_dimension_numbers<[1], [0], [0], [1], [0, 0, 1, 1], [], []>} : vector<1024x9xbf16>, vector<9x48xbf16>, vector<1024x48xf32> -> vector<1024x48xf32>
    %31 = arith.addf %25, %30 : vector<1024x48xf32>
    %32 = vector.extract_strided_slice %14 {offsets = [0, 3, 0], sizes = [8, 128, 9], strides = [1, 1, 1]} : vector<8x134x9xbf16> to vector<8x128x9xbf16>
    %33 = vector.shape_cast %32 : vector<8x128x9xbf16> to vector<1024x9xbf16>
    %c3 = arith.constant 3 : index
    %c0_15 = arith.constant 0 : index
    %c0_16 = arith.constant 0 : index
    %34 = vector.load %arg5[%c3, %c0_15, %c0_16] : memref<7x9x48xbf16, #tpu.memory_space<vmem>>, vector<1x9x48xbf16>
    %35 = vector.shape_cast %34 : vector<1x9x48xbf16> to vector<9x48xbf16>
    %cst_17 = arith.constant dense<0.000000e+00> : vector<1024x48xf32>
    %36 = tpu.matmul %33, %35, %cst_17 {dimension_numbers = #tpu.dot_dimension_numbers<[1], [0], [0], [1], [0, 0, 1, 1], [], []>} : vector<1024x9xbf16>, vector<9x48xbf16>, vector<1024x48xf32> -> vector<1024x48xf32>
    %37 = arith.addf %31, %36 : vector<1024x48xf32>
    %38 = vector.extract_strided_slice %14 {offsets = [0, 4, 0], sizes = [8, 128, 9], strides = [1, 1, 1]} : vector<8x134x9xbf16> to vector<8x128x9xbf16>
    %39 = vector.shape_cast %38 : vector<8x128x9xbf16> to vector<1024x9xbf16>
    %c4 = arith.constant 4 : index
    %c0_18 = arith.constant 0 : index
    %c0_19 = arith.constant 0 : index
    %40 = vector.load %arg5[%c4, %c0_18, %c0_19] : memref<7x9x48xbf16, #tpu.memory_space<vmem>>, vector<1x9x48xbf16>
    %41 = vector.shape_cast %40 : vector<1x9x48xbf16> to vector<9x48xbf16>
    %cst_20 = arith.constant dense<0.000000e+00> : vector<1024x48xf32>
    %42 = tpu.matmul %39, %41, %cst_20 {dimension_numbers = #tpu.dot_dimension_numbers<[1], [0], [0], [1], [0, 0, 1, 1], [], []>} : vector<1024x9xbf16>, vector<9x48xbf16>, vector<1024x48xf32> -> vector<1024x48xf32>
    %43 = arith.addf %37, %42 : vector<1024x48xf32>
    %44 = vector.extract_strided_slice %14 {offsets = [0, 5, 0], sizes = [8, 128, 9], strides = [1, 1, 1]} : vector<8x134x9xbf16> to vector<8x128x9xbf16>
    %45 = vector.shape_cast %44 : vector<8x128x9xbf16> to vector<1024x9xbf16>
    %c5 = arith.constant 5 : index
    %c0_21 = arith.constant 0 : index
    %c0_22 = arith.constant 0 : index
    %46 = vector.load %arg5[%c5, %c0_21, %c0_22] : memref<7x9x48xbf16, #tpu.memory_space<vmem>>, vector<1x9x48xbf16>
    %47 = vector.shape_cast %46 : vector<1x9x48xbf16> to vector<9x48xbf16>
    %cst_23 = arith.constant dense<0.000000e+00> : vector<1024x48xf32>
    %48 = tpu.matmul %45, %47, %cst_23 {dimension_numbers = #tpu.dot_dimension_numbers<[1], [0], [0], [1], [0, 0, 1, 1], [], []>} : vector<1024x9xbf16>, vector<9x48xbf16>, vector<1024x48xf32> -> vector<1024x48xf32>
    %49 = arith.addf %43, %48 : vector<1024x48xf32>
    %50 = vector.extract_strided_slice %14 {offsets = [0, 6, 0], sizes = [8, 128, 9], strides = [1, 1, 1]} : vector<8x134x9xbf16> to vector<8x128x9xbf16>
    %51 = vector.shape_cast %50 : vector<8x128x9xbf16> to vector<1024x9xbf16>
    %c6 = arith.constant 6 : index
    %c0_24 = arith.constant 0 : index
    %c0_25 = arith.constant 0 : index
    %52 = vector.load %arg5[%c6, %c0_24, %c0_25] : memref<7x9x48xbf16, #tpu.memory_space<vmem>>, vector<1x9x48xbf16>
    %53 = vector.shape_cast %52 : vector<1x9x48xbf16> to vector<9x48xbf16>
    %cst_26 = arith.constant dense<0.000000e+00> : vector<1024x48xf32>
    %54 = tpu.matmul %51, %53, %cst_26 {dimension_numbers = #tpu.dot_dimension_numbers<[1], [0], [0], [1], [0, 0, 1, 1], [], []>} : vector<1024x9xbf16>, vector<9x48xbf16>, vector<1024x48xf32> -> vector<1024x48xf32>
    %55 = arith.addf %49, %54 : vector<1024x48xf32>
    %c0_27 = arith.constant 0 : index
    %c0_28 = arith.constant 0 : index
    %56 = vector.load %arg6[%c0_27, %c0_28] : memref<1x48xf32, #tpu.memory_space<vmem>>, vector<1x48xf32>
    %57 = vector.broadcast %56 : vector<1x48xf32> to vector<1024x48xf32>
    %58 = arith.addf %55, %57 : vector<1024x48xf32>
    %cst_29 = arith.constant 0.000000e+00 : f32
    %59 = vector.broadcast %cst_29 : f32 to vector<1024x48xf32>
    %60 = arith.maximumf %58, %59 : vector<1024x48xf32>
    %61 = vector.shape_cast %60 : vector<1024x48xf32> to vector<8x128x48xf32>
    %c1_i32 = arith.constant 1 : i32
    %62 = arith.addi %arg1, %c1_i32 : i32
    %c128_i32 = arith.constant 128 : i32
    %63 = arith.muli %62, %c128_i32 : i32
    %64 = arith.cmpi sle, %63, %0 : i32
    %65 = arith.extui %64 : i1 to i32
    %c0_i32_30 = arith.constant 0 : i32
    %66 = arith.cmpi ne, %65, %c0_i32_30 : i32
    scf.if %66 {
      %c0_34 = arith.constant 0 : index
      %c0_35 = arith.constant 0 : index
      %73 = vector.load %arg10[%c0_34, %c0_35] : memref<8x48xf32, #tpu.memory_space<vmem>>, vector<8x48xf32>
      %cst_36 = arith.constant dense<0xFF800000> : vector<8x48xf32>
      %74 = vector.multi_reduction <maximumf>, %61, %cst_36 [1] : vector<8x128x48xf32> to vector<8x48xf32>
      %75 = arith.maximumf %73, %74 : vector<8x48xf32>
      %c0_37 = arith.constant 0 : index
      %c0_38 = arith.constant 0 : index
      %76 = vector.load %arg10[%c0_37, %c0_38] : memref<8x48xf32, #tpu.memory_space<vmem>>, vector<8x48xf32>
      tpu.vector_store %arg10[%c0_37, %c0_38], %75 {strides = array<i32>} : memref<8x48xf32, #tpu.memory_space<vmem>>, vector<8x48xf32>,
    } else {
    }
    %true = arith.constant true
    %67 = arith.xori %64, %true : i1
    %68 = arith.extui %67 : i1 to i32
    %c0_i32_31 = arith.constant 0 : i32
    %69 = arith.cmpi ne, %68, %c0_i32_31 : i32
    scf.if %69 {
      %c128_i32_34 = arith.constant 128 : i32
      %73 = arith.muli %arg1, %c128_i32_34 : i32
      %74 = tpu.iota {dimensions = array<i32: 1>} : vector<8x128x48xi32>
      %75 = vector.broadcast %73 : i32 to vector<8x128x48xi32>
      %76 = arith.addi %75, %74 : vector<8x128x48xi32>
      %77 = vector.broadcast %0 : i32 to vector<8x128x48xi32>
      %78 = arith.cmpi slt, %76, %77 : vector<8x128x48xi32>
      %cst_35 = arith.constant 0xFF800000 : f32
      %79 = vector.broadcast %cst_35 : f32 to vector<8x128x48xf32>
      %80 = arith.select %78, %61, %79 : vector<8x128x48xi1>, vector<8x128x48xf32>
      %c0_36 = arith.constant 0 : index
      %c0_37 = arith.constant 0 : index
      %81 = vector.load %arg10[%c0_36, %c0_37] : memref<8x48xf32, #tpu.memory_space<vmem>>, vector<8x48xf32>
      %cst_38 = arith.constant dense<0xFF800000> : vector<8x48xf32>
      %82 = vector.multi_reduction <maximumf>, %80, %cst_38 [1] : vector<8x128x48xf32> to vector<8x48xf32>
      %83 = arith.maximumf %81, %82 : vector<8x48xf32>
      %c0_39 = arith.constant 0 : index
      %c0_40 = arith.constant 0 : index
      %84 = vector.load %arg10[%c0_39, %c0_40] : memref<8x48xf32, #tpu.memory_space<vmem>>, vector<8x48xf32>
      tpu.vector_store %arg10[%c0_39, %c0_40], %83 {strides = array<i32>} : memref<8x48xf32, #tpu.memory_space<vmem>>, vector<8x48xf32>,
    } else {
    }
    %c1_i32_32 = arith.constant 1 : i32
    %70 = arith.cmpi eq, %arg1, %c1_i32_32 : i32
    %71 = arith.extui %70 : i1 to i32
    %c0_i32_33 = arith.constant 0 : i32
    %72 = arith.cmpi ne, %71, %c0_i32_33 : i32
    scf.if %72 {
      %c0_34 = arith.constant 0 : index
      %c0_35 = arith.constant 0 : index
      %73 = vector.load %arg10[%c0_34, %c0_35] : memref<8x48xf32, #tpu.memory_space<vmem>>, vector<8x48xf32>
      %74 = arith.truncf %73 : vector<8x48xf32> to vector<8x48xbf16>
      %c0_36 = arith.constant 0 : index
      %c0_37 = arith.constant 0 : index
      %75 = vector.load %arg7[%c0_36, %c0_37] : memref<48x32xbf16, #tpu.memory_space<vmem>>, vector<48x32xbf16>
      %cst_38 = arith.constant dense<0.000000e+00> : vector<8x32xf32>
      %76 = tpu.matmul %74, %75, %cst_38 {dimension_numbers = #tpu.dot_dimension_numbers<[1], [0], [0], [1], [0, 0, 1, 1], [], []>} : vector<8x48xbf16>, vector<48x32xbf16>, vector<8x32xf32> -> vector<8x32xf32>
      %c0_39 = arith.constant 0 : index
      %c0_40 = arith.constant 0 : index
      %77 = vector.load %arg8[%c0_39, %c0_40] : memref<1x32xf32, #tpu.memory_space<vmem>>, vector<1x32xf32>
      %78 = vector.broadcast %77 : vector<1x32xf32> to vector<8x32xf32>
      %79 = arith.addf %76, %78 : vector<8x32xf32>
      %c0_41 = arith.constant 0 : index
      %c0_42 = arith.constant 0 : index
      %80 = vector.load %arg9[%c0_41, %c0_42] : memref<8x32xf32, #tpu.memory_space<vmem>>, vector<8x32xf32>
      tpu.vector_store %arg9[%c0_41, %c0_42], %79 {strides = array<i32>} : memref<8x32xf32, #tpu.memory_space<vmem>>, vector<8x32xf32>,
    } else {
    }
    return
  }
  func.func @transform_0(%arg0: i32, %arg1: i32, %arg2: memref<1xi32, #tpu.memory_space<smem>>) -> (i32, i32) {
    %c0_i32 = arith.constant 0 : i32
    return %arg0, %arg1 : i32, i32
  }
  func.func @transform_1(%arg0: i32, %arg1: i32, %arg2: memref<1xi32, #tpu.memory_space<smem>>) -> (i32, i32, i32) {
    %c0_i32 = arith.constant 0 : i32
    %c0_i32_0 = arith.constant 0 : i32
    return %arg1, %arg0, %c0_i32 : i32, i32, i32
  }
  func.func @transform_2(%arg0: i32, %arg1: i32, %arg2: memref<1xi32, #tpu.memory_space<smem>>) -> (i32, i32, i32) {
    %c0_i32 = arith.constant 0 : i32
    %c0_i32_0 = arith.constant 0 : i32
    %c0_i32_1 = arith.constant 0 : i32
    %c0_i32_2 = arith.constant 0 : i32
    return %c0_i32, %c0_i32_0, %c0_i32_1 : i32, i32, i32
  }
  func.func @transform_3(%arg0: i32, %arg1: i32, %arg2: memref<1xi32, #tpu.memory_space<smem>>) -> (i32, i32) {
    %c0_i32 = arith.constant 0 : i32
    %c0_i32_0 = arith.constant 0 : i32
    %c0_i32_1 = arith.constant 0 : i32
    return %c0_i32, %c0_i32_0 : i32, i32
  }
  func.func @transform_4(%arg0: i32, %arg1: i32, %arg2: memref<1xi32, #tpu.memory_space<smem>>) -> (i32, i32) {
    %c0_i32 = arith.constant 0 : i32
    %c0_i32_0 = arith.constant 0 : i32
    %c0_i32_1 = arith.constant 0 : i32
    return %c0_i32, %c0_i32_0 : i32, i32
  }
  func.func @transform_5(%arg0: i32, %arg1: i32, %arg2: memref<1xi32, #tpu.memory_space<smem>>) -> (i32, i32) {
    %c0_i32 = arith.constant 0 : i32
    %c0_i32_0 = arith.constant 0 : i32
    %c0_i32_1 = arith.constant 0 : i32
    return %c0_i32, %c0_i32_0 : i32, i32
  }
  func.func @transform_6(%arg0: i32, %arg1: i32, %arg2: memref<1xi32, #tpu.memory_space<smem>>) -> (i32, i32) {
    %c0_i32 = arith.constant 0 : i32
    %c0_i32_0 = arith.constant 0 : i32
    return %arg0, %c0_i32 : i32, i32
  }
}

</mosaic_0001>

<bundles_post_ra>
// kernel: cnn_kmer_branch.1
= control target key start
LH: loop header
LB: loop body
LE: loop exit
PB: predicated region body
PF: predicated region fallthrough
CT: control target
= control target key end

     0   :  { %s18081_s0 = inlined_call_operand.<no memory space> [shape: s32[1], index: 0, kind: input, shape index: {}]   ;;  %s18082_s1 = inlined_call_operand.vmem [shape: s32[16,256], index: 1, kind: input, shape index: {}]   ;;  %s18083_s2 = inlined_call_operand.vmem [shape: s32[2,16,6], index: 2, kind: input, shape index: {}]   ;;  %s18084_s3 = inlined_call_operand.vmem [shape: bf16[7,9,48], index: 3, kind: input, shape index: {}]   ;;  %s18085_s4 = inlined_call_operand.vmem [shape: f32[1,48], index: 4, kind: input, shape index: {}]   ;;  %s18086_s5 = inlined_call_operand.vmem [shape: bf16[48,32], index: 5, kind: input, shape index: {}]   ;;  %s18087_s6 = inlined_call_operand.vmem [shape: f32[1,32], index: 6, kind: input, shape index: {}]   ;;  %s18088_s7 = inlined_call_operand.hbm [shape: f32[16,32], index: 7, kind: output, shape index: {}]  }
   0x1   :  { %12 = sst [smem:[#allocation4]] %s18081_s0 }
   0x2   :  { %13 = vsyncpa [#allocation6], 0 }
   0x3   :  { %15 = vsyncpa [#allocation6 + $0x1], 0  ;;  %s13116_s26 = smov 0   ;;  %s13118_s27 = smov 0  }
   0x4   :  { %s13120_s28 = smov 0   ;;  %s13122_s29 = smov 0  }
   0x5   :  { %s13124_s30 = smov 0   ;;  %s13126_s8 = smov 0  }
   0x6   :  { %s13128_s9 = smov 0   ;;  %s13130_s10 = smov 0  }
   0x7 LB: > { %18529 = sst [smem:[#allocation8_spill]] %s13045_s28  ;;  %s10102_s0 = sadd.s32 4294967295, %s13065_s10   ;;  %s13065_s10 = sphi %s13130_s10, %s21_s10   ;;  %s13061_s9 = sphi %s13128_s9, %s19907_s9   ;;  %s13057_s8 = sphi %s13126_s8, %s19906_s8   ;;  %s13053_s30 = sphi %s13124_s30, %s19905_s30   ;;  %s13049_s29 = sphi %s13122_s29, %s19904_s29   ;;  %s13045_s28 = sphi %s13120_s28, %s19903_s28   ;;  %s13041_s27 = sphi %s13118_s27, %s19909_s27   ;;  %s13037_s26 = sphi %s13116_s26, %s19908_s26  }
   0x8   : > { %18530 = sst [smem:[#allocation9_spill]] %s13057_s8  ;;  %s10103_s11 = sadd.s32 4294967294, %s13065_s10  }
   0x9   : > { %18531 = sst [smem:[#allocation10_spill]] %s13061_s9  ;;  %s30_s12 = sadd.s32 1, %s13057_s8 }
   0xa   : > { %p31_p0 = scmp.ge.s32.totalorder %s30_s12, 2  ;;  %s33_s13 = sadd.s32 1, %s13061_s9 }
   0xb   : > { %p190_p1 = scmp.ne.s32.totalorder %s13045_s28, %s13041_s27  ;;  %p191_p2 = scmp.eq.s32.totalorder %s10102_s0, 3 }
   0xc   : > { %s19911_s12 = smov (%p31_p0, %s30_s12), 0  ;;  %s19913_s13 = smov (!%p31_p0, %s33_s13), %s13061_s9 }
   0xd   : > { %18532 = sst [smem:[#allocation11_spill]] %s19911_s12  ;;  %p13165_p3 = por %p191_p2, %p190_p1 }
   0xe   : > { %p196_p4 = scmp.ne.s32.totalorder %s13041_s27, %s13037_s26  ;;  %p35_p5 = scmp.ge.s32.totalorder %s19913_s13, 2 }
   0xf   : > { %p197_p6 = scmp.eq.s32.totalorder %s10103_s11, 3  ;;  %p10106_p7 = scmp.ge.s32.totalorder %s13065_s10, 1 }
  0x10   : > { %p249_p8 = scmp.lt.s32.totalorder %s13065_s10, 5  ;;  %s19915_s13 = smov (%p35_p5, %s19913_s13), 0 }
  0x11   : > { %18534 = sst [smem:[#allocation12_spill]] %s19915_s13  ;;  %p13175_p9 = por %p197_p6, %p196_p4 }
  0x12   : > { %p250_p10 = pnand %p10106_p7, %p249_p8  ;;  %s177_s16 = ssub.s32 %s13061_s9, %s19915_s13 }
  0x13   : > { %s180_s17 = sadd.s32 1, %s13045_s28  ;;  %p178_p11 = scmp.eq.s32.totalorder %s177_s16, 0 }
  0x14   : > { %253 = sbr.rel (%p250_p10) target bundleno = 1906 (0x772), region = 44 }
  0x15   : > { %s13183_s18 = scalar_select %p178_p11, %s13045_s28, %s180_s17  }
  0x17   : > { %18536 = sst [smem:[#allocation13_spill]] %s13183_s18 }
  0x1b   : > { %s18092_s19 = sand.u32 1, %s13041_s27   ;;  %p290_p12 = scmp.lt.s32.totalorder %s13053_s30, 1 }
  0x1c   : > { %s13189_s20 = sshll.u32 %s18092_s19, 3  ;;  %p292_p13 = scmp.lt.s32.totalorder %s13049_s29, 1 }
  0x1d   : > { %s13192_s21 = sld [smem:[#allocation4]]  ;;  %s289_s28 = scalar_lea.vmem [#allocation5], %s13189_s20 }
  0x1e   : > { %s291_s22 = scalar_select %p290_p12, %s13053_s30, 1 }
  0x1f   : > { %s293_s23 = scalar_select %p292_p13, %s13049_s29, 1 }
  0x20   : > { %s10108_s24 = sshll.u32 %s291_s22, 1  ;;  %p10112_p0 = scmp.ne.s32.totalorder %s13049_s29, 0 }
  0x21   : > { %s295_s25 = sadd.s32 %s10108_s24, %s293_s23  ;;  %s10110_s0 = sshll.u32 %s293_s23, 1  ;;  %vm312_vm0 = vcmask (!%p10112_p0), 392192   ;;  %v13067_v0 = vmov (!%p10112_p0), -inf  }
  0x22   : > { %s10109_s11 = sshll.u32 %s295_s25, 3  ;;  %s303_s16 = sadd.s32 %s10110_s0, %s291_s22  ;;  %313 = vst.msk [vmem:[#allocation2] sm:$0xff] (!%p10112_p0), %vm312_vm0, %v13067_v0 }
  0x23   : > { %s13199_s12 = scalar_lea.vmem %s18082_s1, %s10109_s11  ;;  %s10111_s9 = sshll.u32 %s303_s16, 3 }
  0x24   : > { %s13204_s18 = scalar_lea.vmem %s18083_s2, %s10111_s9  ;;  %311 = sbr.rel (%p10112_p0) target bundleno = 43 (0x2b), region = 48 }
  0x2b PF: > { %v316_v1 = vlaneseq  ;;  %v13209_v2 = vld [vmem:[%s13199_s12] sm:$0xff]  ;;  %vm2138_vm1 = vcmask 1043456   ;;  %v12958_v5 = vld [vmem:[%s18084_s3 + $0x8] sm:$0x1f]   ;;  %vm2139_vm2 = vcmask 1044480   ;;  %v13068_v6 = vmov 65535  }
  0x2c   : > { %v2140_v7 = vsel %vm2138_vm1, 4294967295, %v13068_v6  ;;  %v12959_v9 = vld [vmem:[%s18084_s3 + $0x18] sm:$0x1f]   ;;  %v12960_v13 = vld [vmem:[%s18084_s3] sm:$0x1f]   ;;  %v18100_v30 = vmov 0.0  }
  0x2d   : > { %v13212_v3 = vshrl.u32 %v316_v1, 7  ;;  %v13223_v10 = vsel %vm2139_vm2, %v2140_v7, 0  ;;  %v12961_v14 = vld [vmem:[%s18084_s3 + $0x20] sm:$0x1f]   ;;  %v13269_v27 = vand.u32 127, %v316_v1  ;;  %vm1945_vm8 = vcmask 72704  }
  0x2e   : > { %v2143_v11 = vand.u32 %v12958_v5, %v13223_v10  ;;  %v13227_v12 = vand.u32 %v12959_v9, %v13223_v10  ;;  %v13238_v15 = vand.u32 %v12960_v13, %v13223_v10  ;;  %v13241_v16 = vand.u32 %v12961_v14, %v13223_v10  ;;  %v13245_v18 = vld [vmem:[%s13204_s18] sm:$0xff]  ;;  %s10731_s13 = sshll.u32 %s13049_s29, 7 }
  0x2f   : > { %18537 = vst [vmem:[#allocation14_spill] sm:$0xff] %v13212_v3  ;;  %v320_v4 = vsub.s32 0, %v13212_v3  ;;  %v394_v17 = vsub.s32 1, %v13212_v3  ;;  %v468_v22 = vsub.s32 2, %v13212_v3  ;;  %v542_v24 = vsub.s32 3, %v13212_v3  ;;  %s16269_s19 = sadd.s32 128, %s10731_s13 }
  0x30   : > { %18538 = vst [vmem:[#allocation15_spill] sm:$0xff] %v13227_v12  ;;  %11192 = vmatprep.subr.bf16.mxu1 %v2143_v11  ;;  %11582 = vmatprep.subr.bf16.mxu0 %v13227_v12  ;;  %vm1392_vm7 = vsmask.f32 7424  ;;  %vm4456_vm9 = vsmask.f32 6400  ;;  %v616_v56 = vsub.s32 4, %v13212_v3  ;;  %p10718_p1 = scmp.gt.s32.totalorder %s16269_s19, %s13192_s21 }
  0x31   : > { %v321_v8 = vrot.slane %v13209_v2, %v320_v4  ;;  %11193 = vmatpush3.bf16.msra.mxu1 %v2143_v11  ;;  %11583 = vmatpush3.bf16.msra.mxu0 %v13227_v12  ;;  %v395_v19 = vrot.slane %v13209_v2, %v394_v17  ;;  %v388_v20 = vrot.slane %v13245_v18, %v320_v4 }
  0x32   : > { %11322 = vmatprep.subr.bf16.mxu1 %v13238_v15  ;;  %11712 = vmatprep.subr.bf16.mxu0 %v13241_v16  ;;  %v462_v21 = vrot.slane %v13245_v18, %v394_v17  ;;  %v469_v23 = vrot.slane %v13209_v2, %v468_v22  ;;  %v13258_v25 = vrot.slane %v13209_v2, %v542_v24 }
  0x33   : > { %331 = vbcast.lane.b32.xlu1 %v321_v8, 272  ;;  %323 = vbcast.lane.b32.xlu0 %v321_v8, 256  ;;  %v536_v26 = vrot.slane %v13245_v18, %v468_v22  ;;  %v610_v62 = vrot.slane %v13245_v18, %v542_v24  ;;  %v13339_v9 = vrot.slane %v13209_v2, %v616_v56 }
  0x37   : > { %335 = vbcast.lane.b32.xlu1 %v321_v8, 280  ;;  %327 = vbcast.lane.b32.xlu0 %v321_v8, 264 }
  0x3b   : > { %343 = vbcast.lane.b32.xlu1 %v321_v8, 296  ;;  %339 = vbcast.lane.b32.xlu0 %v321_v8, 288 }
  0x3f   : > { %351 = vbcast.lane.b32.xlu1 %v321_v8, 312  ;;  %347 = vbcast.lane.b32.xlu0 %v321_v8, 304 }
  0x43   : > { %359 = vbcast.lane.b32.xlu1 %v321_v8, 328  ;;  %355 = vbcast.lane.b32.xlu0 %v321_v8, 320 }
  0x47   : > { %367 = vbcast.lane.b32.xlu1 %v321_v8, 344  ;;  %363 = vbcast.lane.b32.xlu0 %v321_v8, 336 }
  0x4b   : > { %375 = vbcast.lane.b32.xlu1 %v321_v8, 360  ;;  %371 = vbcast.lane.b32.xlu0 %v321_v8, 352 }
  0x4f   : > { %383 = vbcast.lane.b32.xlu1 %v321_v8, 376  ;;  %379 = vbcast.lane.b32.xlu0 %v321_v8, 368 }
  0x53   : > { %397 = vbcast.lane.b32.xlu1 %v395_v19, 256  ;;  %390 = vbcast.lane.b32.xlu0 %v388_v20, 256 }
  0x57   : > { %405 = vbcast.lane.b32.xlu1 %v395_v19, 272  ;;  %401 = vbcast.lane.b32.xlu0 %v395_v19, 264 }
  0x5b   : > { %413 = vbcast.lane.b32.xlu1 %v395_v19, 288  ;;  %409 = vbcast.lane.b32.xlu0 %v395_v19, 280 }
  0x5f   : > { %421 = vbcast.lane.b32.xlu1 %v395_v19, 304  ;;  %417 = vbcast.lane.b32.xlu0 %v395_v19, 296 }
  0x63   : > { %429 = vbcast.lane.b32.xlu1 %v395_v19, 320  ;;  %425 = vbcast.lane.b32.xlu0 %v395_v19, 312 }
  0x67   : > { %437 = vbcast.lane.b32.xlu1 %v395_v19, 336  ;;  %433 = vbcast.lane.b32.xlu0 %v395_v19, 328 }
  0x6b   : > { %445 = vbcast.lane.b32.xlu1 %v395_v19, 352  ;;  %441 = vbcast.lane.b32.xlu0 %v395_v19, 344 }
  0x6f   : > { %453 = vbcast.lane.b32.xlu1 %v395_v19, 368  ;;  %449 = vbcast.lane.b32.xlu0 %v395_v19, 360 }
  0x73   : > { %464 = vbcast.lane.b32.xlu1 %v462_v21, 256  ;;  %457 = vbcast.lane.b32.xlu0 %v395_v19, 376 }
  0x77   : > { %475 = vbcast.lane.b32.xlu1 %v469_v23, 264  ;;  %471 = vbcast.lane.b32.xlu0 %v469_v23, 256 }
  0x7b   : > { %483 = vbcast.lane.b32.xlu1 %v469_v23, 280  ;;  %479 = vbcast.lane.b32.xlu0 %v469_v23, 272 }
  0x7f   : > { %491 = vbcast.lane.b32.xlu1 %v469_v23, 296  ;;  %487 = vbcast.lane.b32.xlu0 %v469_v23, 288 }
  0x83   : > { %499 = vbcast.lane.b32.xlu1 %v469_v23, 312  ;;  %495 = vbcast.lane.b32.xlu0 %v469_v23, 304 }
  0x87   : > { %507 = vbcast.lane.b32.xlu1 %v469_v23, 328  ;;  %503 = vbcast.lane.b32.xlu0 %v469_v23, 320 }
  0x8b   : > { %515 = vbcast.lane.b32.xlu1 %v469_v23, 344  ;;  %511 = vbcast.lane.b32.xlu0 %v469_v23, 336 }
  0x8f   : > { %523 = vbcast.lane.b32.xlu1 %v469_v23, 360  ;;  %519 = vbcast.lane.b32.xlu0 %v469_v23, 352 }
  0x93   : > { %531 = vbcast.lane.b32.xlu1 %v469_v23, 376  ;;  %527 = vbcast.lane.b32.xlu0 %v469_v23, 368 }
  0x97   : > { %545 = vbcast.lane.b32.xlu1 %v13258_v25, 256  ;;  %538 = vbcast.lane.b32.xlu0 %v536_v26, 256 }
  0x9b   : > { %553 = vbcast.lane.b32.xlu1 %v13258_v25, 272  ;;  %549 = vbcast.lane.b32.xlu0 %v13258_v25, 264 }
  0x9f   : > { %561 = vbcast.lane.b32.xlu1 %v13258_v25, 288  ;;  %557 = vbcast.lane.b32.xlu0 %v13258_v25, 280 }
  0xa3   : > { %569 = vbcast.lane.b32.xlu1 %v13258_v25, 304  ;;  %565 = vbcast.lane.b32.xlu0 %v13258_v25, 296 }
  0xa5   : > { %v332_v28 = vpop.permute.xlu1 %331  ;;  %v324_v29 = vpop.permute.xlu0 %323 }
  0xa6   : > { %vm912_vm3 = vcmp.eq.s32.totalorder %v332_v28, %v13269_v27  ;;  %vm910_vm4 = vcmp.eq.s32.totalorder %v324_v29, %v13269_v27 }
  0xa7   : > { %577 = vbcast.lane.b32.xlu1 %v13258_v25, 320  ;;  %573 = vbcast.lane.b32.xlu0 %v13258_v25, 312  ;;  %v10115_v31 = vsel %vm912_vm3, 1.0, %v18100_v30  ;;  %v10113_v34 = vsel %vm910_vm4, 1.0, %v18100_v30 }
  0xa9   : > { %v336_v32 = vpop.permute.xlu1 %335  ;;  %v328_v33 = vpop.permute.xlu0 %327 }
  0xaa   : > { %vm913_vm5 = vcmp.eq.s32.totalorder %v336_v32, %v13269_v27  ;;  %vm911_vm6 = vcmp.eq.s32.totalorder %v328_v33, %v13269_v27 }
  0xab   : > { %v10116_v35 = vsel %vm913_vm5, 1.0, %v18100_v30  ;;  %v10114_v36 = vsel %vm911_vm6, 1.0, %v18100_v30  ;;  %585 = vbcast.lane.b32.xlu1 %v13258_v25, 336  ;;  %581 = vbcast.lane.b32.xlu0 %v13258_v25, 328 }
  0xac   : > { %v13283_v37 = vpack.c.bf16 %v10116_v35, %v10115_v31  ;;  %v13285_v38 = vpack.c.bf16 %v10114_v36, %v10113_v34 }
  0xad   : > { %v344_v39 = vpop.permute.xlu1 %343  ;;  %v340_v40 = vpop.permute.xlu0 %339 }
  0xae   : > { %vm915_vm10 = vcmp.eq.s32.totalorder %v344_v39, %v13269_v27  ;;  %vm914_vm11 = vcmp.eq.s32.totalorder %v340_v40, %v13269_v27  ;;  %v13290_v41 = vshrl.u32 %v13285_v38, 16  ;;  %v13293_v42 = vshll.u32 %v13285_v38, 16 }
  0xaf   : > { %v10118_v43 = vsel %vm915_vm10, 1.0, %v18100_v30  ;;  %v10117_v44 = vsel %vm914_vm11, 1.0, %v18100_v30  ;;  %593 = vbcast.lane.b32.xlu1 %v13258_v25, 352  ;;  %589 = vbcast.lane.b32.xlu0 %v13258_v25, 344  ;;  %v13300_v45 = vshll.u32 %v13283_v37, 16  ;;  %v13303_v46 = vshrl.u32 %v13283_v37, 16 }
  0xb0   : > { %v13305_v47 = vpack.c.bf16 %v10118_v43, %v10117_v44  ;;  %v1398_v48 = vrot.slane %v13293_v42, 1  ;;  %v4457_v49 = vrot.slane %v13290_v41, 1  ;;  %v4458_v50 = vrot.slane %v13293_v42, 2 }
  0xb1   : > { %v352_v51 = vpop.permute.xlu1 %351  ;;  %v348_v52 = vpop.permute.xlu0 %347  ;;  %v1403_v53 = vrot.slane %v13300_v45, 1  ;;  %v4460_v54 = vrot.slane %v13303_v46, 1  ;;  %v4461_v55 = vrot.slane %v13300_v45, 2 }
  0xb2   : > { %vm917_vm12 = vcmp.eq.s32.totalorder %v352_v51, %v13269_v27  ;;  %vm916_vm13 = vcmp.eq.s32.totalorder %v348_v52, %v13269_v27  ;;  %v1399_v57 = vor.u32 %v1398_v48, %v13290_v41  ;;  %v4459_v58 = vor.u32 %v4458_v50, %v4457_v49 }
  0xb3   : > { %v10120_v59 = vsel %vm917_vm12, 1.0, %v18100_v30  ;;  %v10119_v60 = vsel %vm916_vm13, 1.0, %v18100_v30  ;;  %601 = vbcast.lane.b32.xlu1 %v13258_v25, 368  ;;  %597 = vbcast.lane.b32.xlu0 %v13258_v25, 360  ;;  %v4462_v61 = vor.u32 %v4461_v55, %v4460_v54  ;;  %v13328_v1 = vshll.u32 %v13305_v47, 16 }
  0xb4   : > { %v13324_v63 = vpack.c.bf16 %v10120_v59, %v10119_v60  ;;  %v1404_v0 = vsel %vm1392_vm7, %v1399_v57, %v1403_v53  ;;  %v13331_v4 = vshrl.u32 %v13305_v47, 16  ;;  %v1407_v6 = vor.u32 %v13303_v46, %v1403_v53 }
  0xb5   : > { %18539 = vst [vmem:[#allocation16_spill] sm:$0xff] %v13328_v1  ;;  %v360_v5 = vpop.permute.xlu1 %359  ;;  %11194 = vmatprep.mubr.msk.bf16.mxu1 %vm1945_vm8, %v1404_v0  ;;  %v4463_v7 = vsel %vm4456_vm9, %v4459_v58, %v4462_v61  ;;  %v356_v8 = vpop.permute.xlu0 %355  ;;  %v1411_v11 = vrot.slane %v13328_v1, 1  ;;  %v4465_v19 = vrot.slane %v13328_v1, 2 }
  0xb6   : > { %18540 = vst [vmem:[#allocation17_spill] sm:$0xff] %v13331_v4  ;;  %vm919_vm14 = vcmp.eq.s32.totalorder %v360_v5, %v13269_v27  ;;  %11584 = vmatprep.mubr.msk.bf16.mxu0 %vm1945_vm8, %v4463_v7  ;;  %vm918_vm15 = vcmp.eq.s32.totalorder %v356_v8, %v13269_v27  ;;  %v4464_v13 = vrot.slane %v13331_v4, 1  ;;  %v13351_v20 = vshll.u32 %v13324_v63, 16 }
  0xb7   : > { %v10122_v14 = vsel %vm919_vm14, 1.0, %v18100_v30  ;;  %v10121_v17 = vsel %vm918_vm15, 1.0, %v18100_v30  ;;  %612 = vbcast.lane.b32.xlu1 %v610_v62, 256  ;;  %605 = vbcast.lane.b32.xlu0 %v13258_v25, 376  ;;  %v1412_v22 = vsel %vm1392_vm7, %v1407_v6, %v1411_v11  ;;  %v13357_v23 = vshrl.u32 %v13324_v63, 16 }
  0xb8   : > { %18541 = vst [vmem:[#allocation18_spill] sm:$0xff] %v13351_v20  ;;  %v13353_v21 = vpack.c.bf16 %v10122_v14, %v10121_v17  ;;  %11195 = vmatmul.mubr.msk.bf16.vlgmr.msra.gmra.mrb[0].mxu1 %vm1945_vm8, %v1412_v22  ;;  %v4466_v26 = vor.u32 %v4465_v19, %v4464_v13  ;;  %v1415_v29 = vor.u32 %v13331_v4, %v1411_v11  ;;  %v1419_v25 = vrot.slane %v13351_v20, 1 }
  0xb9   : > { %18542 = vst [vmem:[#allocation19_spill] sm:$0xff] %v13357_v23  ;;  %v368_v24 = vpop.permute.xlu1 %367  ;;  %v364_v28 = vpop.permute.xlu0 %363  ;;  %v4469_v31 = vrot.slane %v13351_v20, 2  ;;  %v4468_v32 = vrot.slane %v13357_v23, 1  ;;  %11323 = vmatpush3.bf16.msra.mxu1 %v13238_v15 }
  0xba   : > { %vm921_vm0 = vcmp.eq.s32.totalorder %v368_v24, %v13269_v27  ;;  %vm920_vm1 = vcmp.eq.s32.totalorder %v364_v28, %v13269_v27  ;;  %v13367_v33 = vshll.u32 %v13353_v21, 16  ;;  %v4467_v35 = vsel %vm4456_vm9, %v4462_v61, %v4466_v26 }
  0xbb   : > { %v10124_v34 = vsel %vm921_vm0, 1.0, %v18100_v30  ;;  %v10123_v36 = vsel %vm920_vm1, 1.0, %v18100_v30  ;;  %623 = vbcast.lane.b32.xlu1 %v13339_v9, 264  ;;  %619 = vbcast.lane.b32.xlu0 %v13339_v9, 256  ;;  %v1420_v39 = vsel %vm1392_vm7, %v1415_v29, %v1419_v25  ;;  %v4470_v43 = vor.u32 %v4469_v31, %v4468_v32 }
  0xbc   : > { %18543 = vst [vmem:[#allocation20_spill] sm:$0xff] %v13367_v33  ;;  %11585 = vmatmul.mubr.msk.bf16.vlgmr.msra.gmra.mrb[0].mxu0 %vm1945_vm8, %v4467_v35  ;;  %v13377_v40 = vpack.c.bf16 %v10124_v34, %v10123_v36  ;;  %11198 = vmatprep.mubr.msk.bf16.mxu1 %vm1945_vm8, %v1420_v39  ;;  %v1423_v15 = vor.u32 %v13357_v23, %v1419_v25  ;;  %v1427_v44 = vrot.slane %v13367_v33, 1  ;;  %v13383_v50 = vshrl.u32 %v13353_v21, 16 }
  0xbd   : > { %v376_v48 = vpop.permute.xlu1 %375  ;;  %v372_v49 = vpop.permute.xlu0 %371  ;;  %v4473_v51 = vrot.slane %v13367_v33, 2  ;;  %11713 = vmatpush3.bf16.msra.mxu0 %v13241_v16  ;;  %v4471_v52 = vsel %vm4456_vm9, %v4466_v26, %v4470_v43 }
  0xbe   : > { %18544 = vst [vmem:[#allocation21_spill] sm:$0xff] %v13383_v50  ;;  %vm923_vm3 = vcmp.eq.s32.totalorder %v376_v48, %v13269_v27  ;;  %vm922_vm4 = vcmp.eq.s32.totalorder %v372_v49, %v13269_v27  ;;  %v1428_v53 = vsel %vm1392_vm7, %v1423_v15, %v1427_v44  ;;  %11588 = vmatprep.mubr.msk.bf16.mxu0 %vm1945_vm8, %v4471_v52  ;;  %v4472_v57 = vrot.slane %v13383_v50, 1 }
  0xbf   : > { %v10126_v54 = vsel %vm923_vm3, 1.0, %v18100_v30  ;;  %v10125_v55 = vsel %vm922_vm4, 1.0, %v18100_v30  ;;  %631 = vbcast.lane.b32.xlu1 %v13339_v9, 280  ;;  %627 = vbcast.lane.b32.xlu0 %v13339_v9, 272  ;;  %v13400_v16 = vshll.u32 %v13377_v40, 16  ;;  %v13403_v59 = vshrl.u32 %v13377_v40, 16 }
  0xc0   : > { %v13396_v58 = vpack.c.bf16 %v10126_v54, %v10125_v55  ;;  %11199 = vmatmul.mubr.msk.bf16.gmra.mrb[4].mxu1 %vm1945_vm8, %v1428_v53  ;;  %v4474_v61 = vor.u32 %v4473_v51, %v4472_v57  ;;  %v1431_v0 = vor.u32 %v13383_v50, %v1427_v44  ;;  %v12962_v53 = vld [vmem:[%s18084_s3 + $0x28] sm:$0x1f]  }
  0xc1   : > { %18545 = vst [vmem:[#allocation22_spill] sm:$0xff] %v13400_v16  ;;  %18546 = vst [vmem:[#allocation23_spill] sm:$0xff] %v13403_v59  ;;  %v384_v60 = vpop.permute.xlu1 %383  ;;  %v380_v62 = vpop.permute.xlu0 %379  ;;  %v1435_v5 = vrot.slane %v13400_v16, 1  ;;  %v4476_v6 = vrot.slane %v13403_v59, 1  ;;  %v4477_v13 = vrot.slane %v13400_v16, 2 }
  0xc2   : > { %vm925_vm5 = vcmp.eq.s32.totalorder %v384_v60, %v13269_v27  ;;  %vm924_vm6 = vcmp.eq.s32.totalorder %v380_v62, %v13269_v27  ;;  %v4475_v8 = vsel %vm4456_vm9, %v4470_v43, %v4474_v61  ;;  %v13422_v19 = vshll.u32 %v13396_v58, 16 }
  0xc3   : > { %v10128_v7 = vsel %vm925_vm5, 1.0, %v18100_v30  ;;  %v10127_v11 = vsel %vm924_vm6, 1.0, %v18100_v30  ;;  %639 = vbcast.lane.b32.xlu1 %v13339_v9, 296  ;;  %635 = vbcast.lane.b32.xlu0 %v13339_v9, 288  ;;  %v1436_v17 = vsel %vm1392_vm7, %v1431_v0, %v1435_v5  ;;  %v4478_v24 = vor.u32 %v4477_v13, %v4476_v6 }
  0xc4   : > { %11589 = vmatmul.mubr.msk.bf16.gmra.mrb[4].mxu0 %vm1945_vm8, %v4475_v8  ;;  %v13417_v14 = vpack.c.bf16 %v10128_v7, %v10127_v11  ;;  %18547 = vst [vmem:[#allocation24_spill] sm:$0xff] %v13422_v19  ;;  %11202 = vmatprep.mubr.msk.bf16.mxu1 %vm1945_vm8, %v1436_v17  ;;  %v1439_v28 = vor.u32 %v13403_v59, %v1435_v5  ;;  %v13427_v29 = vshrl.u32 %v13396_v58, 16  ;;  %v1443_v25 = vrot.slane %v13422_v19, 1 }
  0xc5   : > { %v398_v22 = vpop.permute.xlu1 %397  ;;  %v391_v26 = vpop.permute.xlu0 %390  ;;  %v4481_v31 = vrot.slane %v13422_v19, 2  ;;  %v4479_v32 = vsel %vm4456_vm9, %v4474_v61, %v4478_v24 }
  0xc6   : > { %18548 = vst [vmem:[#allocation25_spill] sm:$0xff] %v13427_v29  ;;  %vm927_vm10 = vcmp.eq.s32.totalorder %v398_v22, %v13269_v27  ;;  %vm926_vm11 = vcmp.eq.s32.totalorder %v391_v26, %v13269_v27  ;;  %v4480_v35 = vrot.slane %v13427_v29, 1  ;;  %11592 = vmatprep.mubr.msk.bf16.mxu0 %vm1945_vm8, %v4479_v32  ;;  %v1444_v39 = vsel %vm1392_vm7, %v1439_v28, %v1443_v25 }
  0xc7   : > { %v10129_v34 = vsel %vm926_vm11, 1.0, %v18100_v30  ;;  %647 = vbcast.lane.b32.xlu1 %v13339_v9, 312  ;;  %643 = vbcast.lane.b32.xlu0 %v13339_v9, 304  ;;  %v13443_v43 = vshll.u32 %v13417_v14, 16  ;;  %v10130_v15 = vsel %vm927_vm10, 1.0, %v18100_v30  ;;  %v1447_v51 = vor.u32 %v13427_v29, %v1443_v25 }
  0xc8   : > { %v13438_v36 = vpack.c.bf16 %v10129_v34, %v10129_v34  ;;  %11203 = vmatmul.mubr.msk.bf16.gmra.mrb[8].mxu1 %vm1945_vm8, %v1444_v39  ;;  %v4482_v48 = vor.u32 %v4481_v31, %v4480_v35  ;;  %v13449_v52 = vshrl.u32 %v13417_v14, 16  ;;  %v13475_v22 = vand.u32 %v12962_v53, %v13223_v10 }
  0xc9   : > { %18550 = vst [vmem:[#allocation27_spill] sm:$0xff] %v13443_v43  ;;  %v406_v44 = vpop.permute.xlu1 %405  ;;  %v402_v49 = vpop.permute.xlu0 %401  ;;  %v1451_v54 = vrot.slane %v13443_v43, 1  ;;  %v4485_v55 = vrot.slane %v13443_v43, 2 }
  0xca   : > { %18549 = vst [vmem:[#allocation26_spill] sm:$0xff] %v13438_v36  ;;  %18551 = vst [vmem:[#allocation28_spill] sm:$0xff] %v13449_v52  ;;  %vm929_vm12 = vcmp.eq.s32.totalorder %v406_v44, %v13269_v27  ;;  %vm928_vm13 = vcmp.eq.s32.totalorder %v402_v49, %v13269_v27  ;;  %v4483_v57 = vsel %vm4456_vm9, %v4478_v24, %v4482_v48  ;;  %v4484_v61 = vrot.slane %v13449_v52, 1 }
  0xcb   : > { %v10131_v60 = vsel %vm928_vm13, 1.0, %v18100_v30  ;;  %655 = vbcast.lane.b32.xlu1 %v13339_v9, 328  ;;  %v10132_v62 = vsel %vm929_vm12, 1.0, %v18100_v30  ;;  %651 = vbcast.lane.b32.xlu0 %v13339_v9, 320  ;;  %v1452_v5 = vsel %vm1392_vm7, %v1447_v51, %v1451_v54  ;;  %v13469_v6 = vshll.u32 %v13438_v36, 16 }
  0xcc   : > { %11593 = vmatmul.mubr.msk.bf16.gmra.mrb[8].mxu0 %vm1945_vm8, %v4483_v57  ;;  %v13464_v0 = vpack.c.bf16 %v10131_v60, %v10130_v15  ;;  %11206 = vmatprep.mubr.msk.bf16.mxu1 %vm1945_vm8, %v1452_v5  ;;  %v4486_v8 = vor.u32 %v4485_v55, %v4484_v61  ;;  %v1455_v13 = vor.u32 %v13449_v52, %v1451_v54  ;;  %v18094_v17 = vshrl.u32 %v13438_v36, 16 }
  0xcd   : > { %18552 = vst [vmem:[#allocation29_spill] sm:$0xff] %v13469_v6  ;;  %v414_v7 = vpop.permute.xlu1 %413  ;;  %v410_v11 = vpop.permute.xlu0 %409  ;;  %v1459_v24 = vrot.slane %v13469_v6, 1  ;;  %v4491_v26 = vrot.slane %v13469_v6, 2  ;;  %11842 = vmatprep.subr.bf16.mxu0 %v13475_v22  ;;  %v18095_v60 = vsub.s32 5, %v13212_v3 }
  0xce   : > { %vm931_vm14 = vcmp.eq.s32.totalorder %v414_v7, %v13269_v27  ;;  %vm930_vm15 = vcmp.eq.s32.totalorder %v410_v11, %v13269_v27  ;;  %v4487_v28 = vsel %vm4456_vm9, %v4482_v48, %v4486_v8  ;;  %v4490_v31 = vrot.slane %v18094_v17, 1 }
  0xcf   : > { %v10133_v25 = vsel %vm930_vm15, 1.0, %v18100_v30  ;;  %663 = vbcast.lane.b32.xlu1 %v13339_v9, 344  ;;  %11596 = vmatprep.mubr.msk.bf16.mxu0 %vm1945_vm8, %v4487_v28  ;;  %v1460_v34 = vsel %vm1392_vm7, %v1455_v13, %v1459_v24  ;;  %v13493_v35 = vshrl.u32 %v13464_v0, 16  ;;  %v13496_v39 = vshll.u32 %v13464_v0, 16 }
  0xd0   : > { %v13488_v32 = vpack.c.bf16 %v10133_v25, %v10132_v62  ;;  %659 = vbcast.lane.b32.xlu0 %v13339_v9, 336  ;;  %v10134_v15 = vsel %vm931_vm14, 1.0, %v18100_v30  ;;  %11207 = vmatmul.mubr.msk.bf16.gmra.mrb[12].mxu1 %vm1945_vm8, %v1460_v34  ;;  %v4492_v48 = vor.u32 %v4491_v26, %v4490_v31 }
  0xd1   : > { %18554 = vst [vmem:[#allocation31_spill] sm:$0xff] %v13493_v35  ;;  %18555 = vst [vmem:[#allocation32_spill] sm:$0xff] %v13496_v39  ;;  %v422_v44 = vpop.permute.xlu1 %421  ;;  %v418_v49 = vpop.permute.xlu0 %417  ;;  %v1466_v51 = vrot.slane %v13496_v39, 1  ;;  %v4494_v7 = vrot.slane %v13493_v35, 1  ;;  %v4495_v24 = vrot.slane %v13496_v39, 2 }
  0xd2   : > { %18553 = vst [vmem:[#allocation30_spill] sm:$0xff] %v13488_v32  ;;  %vm933_vm0 = vcmp.eq.s32.totalorder %v422_v44, %v13269_v27  ;;  %vm932_vm1 = vcmp.eq.s32.totalorder %v418_v49, %v13269_v27  ;;  %v13504_v53 = vshll.u32 %v13488_v32, 16  ;;  %v4493_v54 = vsel %vm4456_vm9, %v4486_v8, %v4492_v48 }
  0xd3   : > { %v10135_v55 = vsel %vm932_vm1, 1.0, %v18100_v30  ;;  %671 = vbcast.lane.b32.xlu1 %v13339_v9, 360  ;;  %v13510_v57 = vshrl.u32 %v13488_v32, 16  ;;  %v1467_v62 = vor.u32 %v1466_v51, %v13493_v35  ;;  %v10136_v8 = vsel %vm933_vm0, 1.0, %v18100_v30 }
  0xd4   : > { %18556 = vst [vmem:[#allocation33_spill] sm:$0xff] %v13504_v53  ;;  %11597 = vmatmul.mubr.msk.bf16.gmra.mrb[12].mxu0 %vm1945_vm8, %v4493_v54  ;;  %v13514_v61 = vpack.c.bf16 %v10135_v55, %v10134_v15  ;;  %667 = vbcast.lane.b32.xlu0 %v13339_v9, 352  ;;  %v1471_v5 = vrot.slane %v13504_v53, 1  ;;  %v4498_v28 = vrot.slane %v13504_v53, 2  ;;  %v4496_v34 = vor.u32 %v4495_v24, %v4494_v7 }
  0xd5   : > { %18557 = vst [vmem:[#allocation34_spill] sm:$0xff] %v13510_v57  ;;  %v430_v11 = vpop.permute.xlu1 %429  ;;  %v426_v13 = vpop.permute.xlu0 %425  ;;  %v4497_v26 = vrot.slane %v13510_v57, 1  ;;  %v13533_v44 = vrot.slane %v13209_v2, %v18095_v60  ;;  %v684_v49 = vrot.slane %v13245_v18, %v616_v56 }
  0xd6   : > { %18558 = vst [vmem:[#allocation35_spill] sm:$0xff] %v13514_v61  ;;  %vm935_vm3 = vcmp.eq.s32.totalorder %v430_v11, %v13269_v27  ;;  %vm934_vm4 = vcmp.eq.s32.totalorder %v426_v13, %v13269_v27  ;;  %v1472_v25 = vsel %vm1392_vm7, %v1467_v62, %v1471_v5  ;;  %v13542_v51 = vshll.u32 %v13514_v61, 16 }
  0xd7   : > { %v10137_v31 = vsel %vm934_vm4, 1.0, %v18100_v30  ;;  %679 = vbcast.lane.b32.xlu1 %v13339_v9, 376  ;;  %11210 = vmatprep.mubr.msk.bf16.mxu1 %vm1945_vm8, %v1472_v25  ;;  %v4499_v15 = vor.u32 %v4498_v28, %v4497_v26  ;;  %v13545_v54 = vshrl.u32 %v13514_v61, 16  ;;  %v10138_v55 = vsel %vm935_vm3, 1.0, %v18100_v30 }
  0xd8   : > { %v13535_v48 = vpack.c.bf16 %v10137_v31, %v10136_v8  ;;  %675 = vbcast.lane.b32.xlu0 %v13339_v9, 368  ;;  %18560 = vst [vmem:[#allocation37_spill] sm:$0xff] %v13542_v51  ;;  %v1475_v8 = vor.u32 %v13510_v57, %v1471_v5  ;;  %v1479_v56 = vrot.slane %v13542_v51, 1  ;;  %v4502_v13 = vrot.slane %v13542_v51, 2 }
  0xd9   : > { %18561 = vst [vmem:[#allocation38_spill] sm:$0xff] %v13545_v54  ;;  %v438_v62 = vpop.permute.xlu1 %437  ;;  %v4500_v2 = vsel %vm4456_vm9, %v4496_v34, %v4499_v15  ;;  %v434_v7 = vpop.permute.xlu0 %433  ;;  %v4501_v9 = vrot.slane %v13545_v54, 1 }
  0xda   : > { %18559 = vst [vmem:[#allocation36_spill] sm:$0xff] %v13535_v48  ;;  %vm937_vm5 = vcmp.eq.s32.totalorder %v438_v62, %v13269_v27  ;;  %11600 = vmatprep.mubr.msk.bf16.mxu0 %vm1945_vm8, %v4500_v2  ;;  %vm936_vm6 = vcmp.eq.s32.totalorder %v434_v7, %v13269_v27  ;;  %v13559_v24 = vshll.u32 %v13535_v48, 16  ;;  %v1480_v28 = vsel %vm1392_vm7, %v1475_v8, %v1479_v56 }
  0xdb   : > { %v10139_v11 = vsel %vm936_vm6, 1.0, %v18100_v30  ;;  %693 = vbcast.lane.b32.xlu1 %v13533_v44, 256  ;;  %v10140_v5 = vsel %vm937_vm5, 1.0, %v18100_v30  ;;  %v13566_v25 = vshrl.u32 %v13535_v48, 16  ;;  %11211 = vmatmul.mubr.msk.bf16.gmra.mrb[16].mxu1 %vm1945_vm8, %v1480_v28  ;;  %v4503_v34 = vor.u32 %v4502_v13, %v4501_v9 }
  0xdc   : > { %18562 = vst [vmem:[#allocation39_spill] sm:$0xff] %v13559_v24  ;;  %v13562_v26 = vpack.c.bf16 %v10139_v11, %v10138_v55  ;;  %686 = vbcast.lane.b32.xlu0 %v684_v49, 256  ;;  %v1483_v2 = vor.u32 %v13545_v54, %v1479_v56  ;;  %v1487_v7 = vrot.slane %v13559_v24, 1  ;;  %v4506_v17 = vrot.slane %v13559_v24, 2 }
  0xdd   : > { %18564 = vst [vmem:[#allocation41_spill] sm:$0xff] %v13566_v25  ;;  %v446_v31 = vpop.permute.xlu1 %445  ;;  %v442_v62 = vpop.permute.xlu0 %441  ;;  %v4505_v49 = vrot.slane %v13566_v25, 1  ;;  %v4504_v8 = vsel %vm4456_vm9, %v4499_v15, %v4503_v34  ;;  %v6643_v11 = vrot.slane %v13290_v41, 2 }
  0xde   : > { %18563 = vst [vmem:[#allocation40_spill] sm:$0xff] %v13562_v26  ;;  %vm939_vm10 = vcmp.eq.s32.totalorder %v446_v31, %v13269_v27  ;;  %vm938_vm11 = vcmp.eq.s32.totalorder %v442_v62, %v13269_v27  ;;  %v13576_v55 = vshll.u32 %v13562_v26, 16  ;;  %v1488_v56 = vsel %vm1392_vm7, %v1483_v2, %v1487_v7  ;;  %11601 = vmatmul.mubr.msk.bf16.gmra.mrb[16].mxu0 %vm1945_vm8, %v4504_v8 }
  0xdf   : > { %v10141_v9 = vsel %vm938_vm11, 1.0, %v18100_v30  ;;  %701 = vbcast.lane.b32.xlu1 %v13533_v44, 272  ;;  %v4507_v28 = vor.u32 %v4506_v17, %v4505_v49  ;;  %v1491_v31 = vor.u32 %v13566_v25, %v1487_v7  ;;  %v10142_v15 = vsel %vm939_vm10, 1.0, %v18100_v30  ;;  %11214 = vmatprep.mubr.msk.bf16.mxu1 %vm1945_vm8, %v1488_v56 }
  0xe0   : > { %18565 = vst [vmem:[#allocation42_spill] sm:$0xff] %v13576_v55  ;;  %v13584_v13 = vpack.c.bf16 %v10141_v9, %v10140_v5  ;;  %697 = vbcast.lane.b32.xlu0 %v13533_v44, 264  ;;  %v1495_v62 = vrot.slane %v13576_v55, 1  ;;  %v13592_v2 = vshrl.u32 %v13562_v26, 16  ;;  %v4510_v41 = vrot.slane %v13576_v55, 2 }
  0xe1   : > { %v454_v60 = vpop.permute.xlu1 %453  ;;  %v450_v24 = vpop.permute.xlu0 %449  ;;  %v6644_v5 = vrot.slane %v13293_v42, 3  ;;  %v4508_v17 = vsel %vm4456_vm9, %v4503_v34, %v4507_v28 }
  0xe2   : > { %18566 = vst [vmem:[#allocation43_spill] sm:$0xff] %v13584_v13  ;;  %18567 = vst [vmem:[#allocation44_spill] sm:$0xff] %v13592_v2  ;;  %vm941_vm12 = vcmp.eq.s32.totalorder %v454_v60, %v13269_v27  ;;  %vm940_vm13 = vcmp.eq.s32.totalorder %v450_v24, %v13269_v27  ;;  %v1496_v7 = vsel %vm1392_vm7, %v1491_v31, %v1495_v62  ;;  %11604 = vmatprep.mubr.msk.bf16.mxu0 %vm1945_vm8, %v4508_v17 }
  0xe3   : > { %v10143_v49 = vsel %vm940_vm13, 1.0, %v18100_v30  ;;  %709 = vbcast.lane.b32.xlu1 %v13533_v44, 288  ;;  %v4509_v8 = vrot.slane %v13592_v2, 1  ;;  %v13608_v42 = vshll.u32 %v13584_v13, 16  ;;  %v13611_v60 = vshrl.u32 %v13584_v13, 16  ;;  %11215 = vmatmul.mubr.msk.bf16.gmra.mrb[20].mxu1 %vm1945_vm8, %v1496_v7 }
  0xe4   : > { %v13604_v9 = vpack.c.bf16 %v10143_v49, %v10142_v15  ;;  %705 = vbcast.lane.b32.xlu0 %v13533_v44, 280  ;;  %v10144_v24 = vsel %vm941_vm12, 1.0, %v18100_v30  ;;  %v1499_v17 = vor.u32 %v13592_v2, %v1495_v62  ;;  %v13616_v55 = vor.u32 %v6644_v5, %v6643_v11 }
  0xe5   : > { %18569 = vst [vmem:[#allocation46_spill] sm:$0xff] %v13608_v42  ;;  %18570 = vst [vmem:[#allocation47_spill] sm:$0xff] %v13611_v60  ;;  %v465_v34 = vpop.permute.xlu1 %464  ;;  %v4511_v56 = vor.u32 %v4510_v41, %v4509_v8  ;;  %v458_v31 = vpop.permute.xlu0 %457  ;;  %v1503_v15 = vrot.slane %v13608_v42, 1  ;;  %v4513_v49 = vrot.slane %v13611_v60, 1  ;;  %v4514_v62 = vrot.slane %v13608_v42, 2 }
  0xe6   : > { %18568 = vst [vmem:[#allocation45_spill] sm:$0xff] %v13604_v9  ;;  %vm943_vm14 = vcmp.eq.s32.totalorder %v465_v34, %v13269_v27  ;;  %vm942_vm15 = vcmp.eq.s32.totalorder %v458_v31, %v13269_v27  ;;  %v13633_v5 = vshll.u32 %v13604_v9, 16 }
  0xe7   : > { %v10146_v25 = vsel %vm943_vm14, 1.0, %v18100_v30  ;;  %v4512_v51 = vsel %vm4456_vm9, %v4507_v28, %v4511_v56  ;;  %v10145_v7 = vsel %vm942_vm15, 1.0, %v18100_v30  ;;  %717 = vbcast.lane.b32.xlu1 %v13533_v44, 304  ;;  %v1504_v41 = vsel %vm1392_vm7, %v1499_v17, %v1503_v15 }
  0xe8   : > { %11605 = vmatmul.mubr.msk.bf16.gmra.mrb[20].mxu0 %vm1945_vm8, %v4512_v51  ;;  %v13628_v11 = vpack.c.bf16 %v10145_v7, %v10144_v24  ;;  %713 = vbcast.lane.b32.xlu0 %v13533_v44, 296  ;;  %18572 = vst [vmem:[#allocation49_spill] sm:$0xff] %v13633_v5  ;;  %v13635_v8 = vpack.c.bf16 %v10146_v25, %v10146_v25  ;;  %v13640_v51 = vshrl.u32 %v13604_v9, 16  ;;  %v1511_v24 = vrot.slane %v13633_v5, 1 }
  0xe9   : > { %11218 = vmatprep.mubr.msk.bf16.mxu1 %vm1945_vm8, %v1504_v41  ;;  %v476_v28 = vpop.permute.xlu1 %475  ;;  %v4515_v34 = vor.u32 %v4514_v62, %v4513_v49  ;;  %v472_v31 = vpop.permute.xlu0 %471  ;;  %v1507_v30 = vor.u32 %v13611_v60, %v1503_v15  ;;  %v4518_v17 = vrot.slane %v13633_v5, 2  ;;  %v18575_v25 = vmov 0.0  }
  0xea   : > { %18571 = vst [vmem:[#allocation48_spill] sm:$0xff] %v13628_v11  ;;  %18573 = vst [vmem:[#allocation50_spill] sm:$0xff] %v13635_v8  ;;  %vm945_vm0 = vcmp.eq.s32.totalorder %v476_v28, %v13269_v27  ;;  %vm944_vm1 = vcmp.eq.s32.totalorder %v472_v31, %v13269_v27  ;;  %v4517_v15 = vrot.slane %v13640_v51, 1  ;;  %v1515_v31 = vor.u32 %v13640_v51, %v1511_v24 }
  0xeb   : > { %18574 = vst [vmem:[#allocation51_spill] sm:$0xff] %v13640_v51  ;;  %v10148_v7 = vsel %vm945_vm0, 1.0, %v18575_v25  ;;  %v4516_v41 = vsel %vm4456_vm9, %v4511_v56, %v4515_v34  ;;  %v10147_v49 = vsel %vm944_vm1, 1.0, %v18575_v25  ;;  %725 = vbcast.lane.b32.xlu1 %v13533_v44, 320  ;;  %v1512_v28 = vsel %vm1392_vm7, %v1507_v30, %v1511_v24 }
  0xec   : > { %11608 = vmatprep.mubr.msk.bf16.mxu0 %vm1945_vm8, %v4516_v41  ;;  %v13652_v62 = vpack.c.bf16 %v10148_v7, %v10147_v49  ;;  %721 = vbcast.lane.b32.xlu0 %v13533_v44, 312  ;;  %v13658_v5 = vshll.u32 %v13628_v11, 16  ;;  %v4519_v42 = vor.u32 %v4518_v17, %v4517_v15  ;;  %v13662_v2 = vshrl.u32 %v13628_v11, 16 }
  0xed   : > { %11219 = vmatmul.mubr.msk.bf16.gmra.mrb[24].mxu1 %vm1945_vm8, %v1512_v28  ;;  %v484_v56 = vpop.permute.xlu1 %483  ;;  %v480_v60 = vpop.permute.xlu0 %479  ;;  %v13665_v7 = vshll.u32 %v13635_v8, 16  ;;  %v18581_v39 = vshrl.u32 %v13635_v8, 16 }
  0xee   : > { %18576 = vst [vmem:[#allocation52_spill] sm:$0xff] %v13652_v62  ;;  %18577 = vst [vmem:[#allocation53_spill] sm:$0xff] %v13658_v5  ;;  %vm947_vm3 = vcmp.eq.s32.totalorder %v484_v56, %v13269_v27  ;;  %vm946_vm4 = vcmp.eq.s32.totalorder %v480_v60, %v13269_v27  ;;  %v1519_v30 = vrot.slane %v13658_v5, 1  ;;  %v4522_v24 = vrot.slane %v13658_v5, 2 }
  0xef   : > { %18578 = vst [vmem:[#allocation54_spill] sm:$0xff] %v13662_v2  ;;  %18579 = vst [vmem:[#allocation55_spill] sm:$0xff] %v13665_v7  ;;  %v10150_v49 = vsel %vm947_vm3, 1.0, %v18575_v25  ;;  %v4520_v17 = vsel %vm4456_vm9, %v4515_v34, %v4519_v42  ;;  %v10149_v15 = vsel %vm946_vm4, 1.0, %v18575_v25  ;;  %733 = vbcast.lane.b32.xlu1 %v13533_v44, 336  ;;  %v4521_v28 = vrot.slane %v13662_v2, 1 }
  0xf0   : > { %11609 = vmatmul.mubr.msk.bf16.gmra.mrb[24].mxu0 %vm1945_vm8, %v4520_v17  ;;  %v13678_v41 = vpack.c.bf16 %v10150_v49, %v10149_v15  ;;  %729 = vbcast.lane.b32.xlu0 %v13533_v44, 328  ;;  %v1520_v60 = vsel %vm1392_vm7, %v1515_v31, %v1519_v30  ;;  %v1523_v56 = vor.u32 %v13662_v2, %v1519_v30  ;;  %v1527_v5 = vrot.slane %v13665_v7, 1 }
  0xf1   : > { %11222 = vmatprep.mubr.msk.bf16.mxu1 %vm1945_vm8, %v1520_v60  ;;  %v492_v34 = vpop.permute.xlu1 %491  ;;  %v4523_v51 = vor.u32 %v4522_v24, %v4521_v28  ;;  %v488_v54 = vpop.permute.xlu0 %487  ;;  %v4527_v35 = vrot.slane %v18581_v39, 1  ;;  %v4528_v17 = vrot.slane %v13665_v7, 2  ;;  %v13689_v49 = vshrl.u32 %v13652_v62, 16 }
  0xf2   : > { %18580 = vst [vmem:[#allocation56_spill] sm:$0xff] %v13678_v41  ;;  %vm949_vm5 = vcmp.eq.s32.totalorder %v492_v34, %v13269_v27  ;;  %vm948_vm6 = vcmp.eq.s32.totalorder %v488_v54, %v13269_v27  ;;  %v13694_v31 = vshll.u32 %v13652_v62, 16  ;;  %v1528_v54 = vsel %vm1392_vm7, %v1523_v56, %v1527_v5 }
  0xf3   : > { %18582 = vst [vmem:[#allocation57_spill] sm:$0xff] %v13689_v49  ;;  %v10152_v24 = vsel %vm949_vm5, 1.0, %v18575_v25  ;;  %v4524_v15 = vsel %vm4456_vm9, %v4519_v42, %v4523_v51  ;;  %v10151_v39 = vsel %vm948_vm6, 1.0, %v18575_v25  ;;  %741 = vbcast.lane.b32.xlu1 %v13533_v44, 352  ;;  %v4529_v28 = vor.u32 %v4528_v17, %v4527_v35 }
  0xf4   : > { %18583 = vst [vmem:[#allocation58_spill] sm:$0xff] %v13694_v31  ;;  %11612 = vmatprep.mubr.msk.bf16.mxu0 %vm1945_vm8, %v4524_v15  ;;  %737 = vbcast.lane.b32.xlu0 %v13533_v44, 344  ;;  %v1534_v60 = vrot.slane %v13694_v31, 1  ;;  %v13706_v34 = vshll.u32 %v13678_v41, 16  ;;  %v13709_v30 = vshrl.u32 %v13678_v41, 16  ;;  %v13711_v42 = vpack.c.bf16 %v10152_v24, %v10151_v39 }
  0xf5   : > { %11223 = vmatmul.mubr.msk.bf16.gmra.mrb[28].mxu1 %vm1945_vm8, %v1528_v54  ;;  %v500_v7 = vpop.permute.xlu1 %499  ;;  %v496_v35 = vpop.permute.xlu0 %495  ;;  %v4531_v17 = vrot.slane %v13689_v49, 1  ;;  %v4532_v15 = vrot.slane %v13694_v31, 2  ;;  %v18587_v5 = vsub.s32 5, %v13212_v3  ;;  %v4530_v2 = vsel %vm4456_vm9, %v4523_v51, %v4529_v28 }
  0xf6   : > { %18584 = vst [vmem:[#allocation59_spill] sm:$0xff] %v13706_v34  ;;  %18585 = vst [vmem:[#allocation60_spill] sm:$0xff] %v13709_v30  ;;  %vm951_vm10 = vcmp.eq.s32.totalorder %v500_v7, %v13269_v27  ;;  %vm950_vm11 = vcmp.eq.s32.totalorder %v496_v35, %v13269_v27  ;;  %v1535_v24 = vor.u32 %v1534_v60, %v13689_v49  ;;  %v1539_v39 = vrot.slane %v13706_v34, 1  ;;  %v13735_v35 = vld [vmem:[%s13199_s12] sm:$0xff] }
  0xf7   : > { %18586 = vst [vmem:[#allocation61_spill] sm:$0xff] %v13711_v42  ;;  %v758_v56 = vrot.slane %v13245_v18, %v18587_v5  ;;  %v10154_v54 = vsel %vm951_vm10, 1.0, %v18575_v25  ;;  %v10153_v53 = vsel %vm950_vm11, 1.0, %v18575_v25  ;;  %749 = vbcast.lane.b32.xlu1 %v13533_v44, 368  ;;  %v4534_v31 = vrot.slane %v13709_v30, 1 }
  0xf8   : > { %11613 = vmatmul.mubr.msk.bf16.gmra.mrb[28].mxu0 %vm1945_vm8, %v4530_v2  ;;  %v13729_v18 = vpack.c.bf16 %v10154_v54, %v10153_v53  ;;  %745 = vbcast.lane.b32.xlu0 %v13533_v44, 360  ;;  %v1540_v7 = vsel %vm1392_vm7, %v1535_v24, %v1539_v39  ;;  %v4535_v60 = vrot.slane %v13706_v34, 2  ;;  %v18589_v51 = vsub.s32 6, %v13212_v3 }
  0xf9   : > { %11226 = vmatprep.mubr.msk.bf16.mxu1 %vm1945_vm8, %v1540_v7  ;;  %v508_v5 = vpop.permute.xlu1 %507  ;;  %v4533_v49 = vor.u32 %v4532_v15, %v4531_v17  ;;  %v504_v2 = vpop.permute.xlu0 %503  ;;  %v1543_v53 = vor.u32 %v13709_v30, %v1539_v39  ;;  %v13745_v54 = vshll.u32 %v13711_v42, 16  ;;  %v13748_v24 = vshrl.u32 %v13711_v42, 16 }
  0xfa   : > { %18588 = vst [vmem:[#allocation62_spill] sm:$0xff] %v13729_v18  ;;  %v13740_v28 = vrot.slane %v13735_v35, %v18589_v51  ;;  %vm953_vm12 = vcmp.eq.s32.totalorder %v508_v5, %v13269_v27  ;;  %v4536_v34 = vor.u32 %v4535_v60, %v4534_v31  ;;  %vm952_vm13 = vcmp.eq.s32.totalorder %v504_v2, %v13269_v27 }
  0xfb   : > { %18590 = vst [vmem:[#allocation63_spill] sm:$0xff] %v13745_v54  ;;  %18591 = vst [vmem:[#allocation64_spill] sm:$0xff] %v13748_v24  ;;  %v13753_v51 = vshll.u32 %v13729_v18, 16  ;;  %v10156_v7 = vsel %vm953_vm12, 1.0, %v18575_v25  ;;  %v10155_v17 = vsel %vm952_vm13, 1.0, %v18575_v25  ;;  %760 = vbcast.lane.b32.xlu1 %v758_v56, 256 }
  0xfc   : > { %v1547_v15 = vrot.slane %v13745_v54, 1  ;;  %v4538_v39 = vrot.slane %v13748_v24, 1  ;;  %v4537_v30 = vsel %vm4456_vm9, %v4533_v49, %v4536_v34  ;;  %v13760_v57 = vpack.c.bf16 %v10156_v7, %v10155_v17  ;;  %753 = vbcast.lane.b32.xlu0 %v13533_v44, 376 }
  0xfd   : > { %18592 = vst [vmem:[#allocation65_spill] sm:$0xff] %v13753_v51  ;;  %v4539_v31 = vrot.slane %v13745_v54, 2  ;;  %v1555_v60 = vrot.slane %v13753_v51, 1  ;;  %11616 = vmatprep.mubr.msk.bf16.mxu0 %vm1945_vm8, %v4537_v30  ;;  %v516_v2 = vpop.permute.xlu1 %515  ;;  %v512_v56 = vpop.permute.xlu0 %511  ;;  %v13769_v43 = vshrl.u32 %v13729_v18, 16  ;;  %v4543_v49 = vrot.slane %v13753_v51, 2 }
  0xfe   : > { %18593 = vst [vmem:[#allocation66_spill] sm:$0xff] %v13760_v57  ;;  %v1548_v5 = vsel %vm1392_vm7, %v1543_v53, %v1547_v15  ;;  %v1551_v6 = vor.u32 %v13748_v24, %v1547_v15  ;;  %vm955_vm14 = vcmp.eq.s32.totalorder %v516_v2, %v13269_v27  ;;  %vm954_vm15 = vcmp.eq.s32.totalorder %v512_v56, %v13269_v27 }
  0xff   : > { %18594 = vst [vmem:[#allocation67_spill] sm:$0xff] %v13769_v43  ;;  %11227 = vmatmul.mubr.msk.bf16.gmra.mrb[32].mxu1 %vm1945_vm8, %v1548_v5  ;;  %v4540_v44 = vor.u32 %v4539_v31, %v4538_v39  ;;  %v13776_v30 = vshll.u32 %v13760_v57, 16  ;;  %v10158_v53 = vsel %vm955_vm14, 1.0, %v18575_v25  ;;  %v10157_v7 = vsel %vm954_vm15, 1.0, %v18575_v25  ;;  %771 = vbcast.lane.b32.xlu1 %v13740_v28, 264 }
 0x100   : > { %v1556_v17 = vsel %vm1392_vm7, %v1551_v6, %v1555_v60  ;;  %v4542_v15 = vrot.slane %v13769_v43, 1  ;;  %v13784_v51 = vpack.c.bf16 %v10158_v53, %v10157_v7  ;;  %767 = vbcast.lane.b32.xlu0 %v13740_v28, 256  ;;  %v1559_v39 = vor.u32 %v13769_v43, %v1555_v60 }
 0x101   : > { %18595 = vst [vmem:[#allocation68_spill] sm:$0xff] %v13776_v30  ;;  %v4541_v5 = vsel %vm4456_vm9, %v4536_v34, %v4540_v44  ;;  %11230 = vmatprep.mubr.msk.bf16.mxu1 %vm1945_vm8, %v1556_v17  ;;  %v1563_v31 = vrot.slane %v13776_v30, 1  ;;  %v524_v2 = vpop.permute.xlu1 %523  ;;  %v520_v54 = vpop.permute.xlu0 %519  ;;  %v13792_v6 = vshrl.u32 %v13760_v57, 16  ;;  %v4547_v34 = vrot.slane %v13776_v30, 2 }
 0x102   : > { %18596 = vst [vmem:[#allocation69_spill] sm:$0xff] %v13784_v51  ;;  %11617 = vmatmul.mubr.msk.bf16.gmra.mrb[32].mxu0 %vm1945_vm8, %v4541_v5  ;;  %v4544_v56 = vor.u32 %v4543_v49, %v4542_v15  ;;  %vm957_vm0 = vcmp.eq.s32.totalorder %v524_v2, %v13269_v27  ;;  %vm956_vm1 = vcmp.eq.s32.totalorder %v520_v54, %v13269_v27  ;;  %v13799_v60 = vshll.u32 %v13784_v51, 16 }
 0x103   : > { %18597 = vst [vmem:[#allocation70_spill] sm:$0xff] %v13792_v6  ;;  %v1564_v53 = vsel %vm1392_vm7, %v1559_v39, %v1563_v31  ;;  %v10160_v7 = vsel %vm957_vm0, 1.0, %v18575_v25  ;;  %v10159_v49 = vsel %vm956_vm1, 1.0, %v18575_v25  ;;  %779 = vbcast.lane.b32.xlu1 %v13740_v28, 280  ;;  %v4546_v15 = vrot.slane %v13792_v6, 1 }
 0x104   : > { %18598 = vst [vmem:[#allocation71_spill] sm:$0xff] %v13799_v60  ;;  %v4545_v17 = vsel %vm4456_vm9, %v4540_v44, %v4544_v56  ;;  %v13807_v5 = vpack.c.bf16 %v10160_v7, %v10159_v49  ;;  %775 = vbcast.lane.b32.xlu0 %v13740_v28, 272  ;;  %v1567_v54 = vor.u32 %v13792_v6, %v1563_v31  ;;  %v1571_v39 = vrot.slane %v13799_v60, 1 }
 0x105   : > { %11620 = vmatprep.mubr.msk.bf16.mxu0 %vm1945_vm8, %v4545_v17  ;;  %v13813_v2 = vshrl.u32 %v13784_v51, 16  ;;  %v532_v44 = vpop.permute.xlu1 %531  ;;  %v4548_v30 = vor.u32 %v4547_v34, %v4546_v15  ;;  %v528_v43 = vpop.permute.xlu0 %527  ;;  %v4551_v24 = vrot.slane %v13799_v60, 2 }
 0x106   : > { %18599 = vst [vmem:[#allocation72_spill] sm:$0xff] %v13807_v5  ;;  %vm959_vm3 = vcmp.eq.s32.totalorder %v532_v44, %v13269_v27  ;;  %vm958_vm4 = vcmp.eq.s32.totalorder %v528_v43, %v13269_v27  ;;  %v1572_v7 = vsel %vm1392_vm7, %v1567_v54, %v1571_v39  ;;  %v13830_v43 = vshll.u32 %v13807_v5, 16 }
 0x107   : > { %18600 = vst [vmem:[#allocation73_spill] sm:$0xff] %v13813_v2  ;;  %11231 = vmatmul.mubr.msk.bf16.gmra.mrb[36].mxu1 %vm1945_vm8, %v1564_v53  ;;  %v4550_v31 = vrot.slane %v13813_v2, 1  ;;  %v10162_v17 = vsel %vm959_vm3, 1.0, %v18575_v25  ;;  %v4549_v49 = vsel %vm4456_vm9, %v4544_v56, %v4548_v30  ;;  %v10161_v6 = vsel %vm958_vm4, 1.0, %v18575_v25  ;;  %787 = vbcast.lane.b32.xlu1 %v13740_v28, 296 }
 0x108   : > { %11234 = vmatprep.mubr.msk.bf16.mxu1 %vm1945_vm8, %v1572_v7  ;;  %v13826_v34 = vpack.c.bf16 %v10162_v17, %v10161_v6  ;;  %783 = vbcast.lane.b32.xlu0 %v13740_v28, 288  ;;  %18602 = vst [vmem:[#allocation75_spill] sm:$0xff] %v13830_v43  ;;  %v13833_v15 = vshrl.u32 %v13807_v5, 16  ;;  %v1575_v44 = vor.u32 %v13813_v2, %v1571_v39  ;;  %v4555_v17 = vrot.slane %v13830_v43, 2 }
 0x109   : > { %v4552_v53 = vor.u32 %v4551_v24, %v4550_v31  ;;  %v546_v56 = vpop.permute.xlu1 %545  ;;  %v539_v54 = vpop.permute.xlu0 %538  ;;  %v1579_v24 = vrot.slane %v13830_v43, 1 }
 0x10a   : > { %18601 = vst [vmem:[#allocation74_spill] sm:$0xff] %v13826_v34  ;;  %18603 = vst [vmem:[#allocation76_spill] sm:$0xff] %v13833_v15  ;;  %11621 = vmatmul.mubr.msk.bf16.gmra.mrb[36].mxu0 %vm1945_vm8, %v4549_v49  ;;  %vm961_vm5 = vcmp.eq.s32.totalorder %v546_v56, %v13269_v27  ;;  %vm960_vm6 = vcmp.eq.s32.totalorder %v539_v54, %v13269_v27  ;;  %v4554_v31 = vrot.slane %v13833_v15, 1  ;;  %v13851_v39 = vshll.u32 %v13826_v34, 16 }
 0x10b   : > { %v4553_v6 = vsel %vm4456_vm9, %v4548_v30, %v4552_v53  ;;  %v10163_v7 = vsel %vm960_vm6, 1.0, %v18575_v25  ;;  %795 = vbcast.lane.b32.xlu1 %v13740_v28, 312  ;;  %v1580_v30 = vsel %vm1392_vm7, %v1575_v44, %v1579_v24  ;;  %v10164_v56 = vsel %vm961_vm5, 1.0, %v18575_v25 }
 0x10c   : > { %11624 = vmatprep.mubr.msk.bf16.mxu0 %vm1945_vm8, %v4553_v6  ;;  %v13846_v49 = vpack.c.bf16 %v10163_v7, %v10163_v7  ;;  %791 = vbcast.lane.b32.xlu0 %v13740_v28, 304  ;;  %18605 = vst [vmem:[#allocation78_spill] sm:$0xff] %v13851_v39  ;;  %v4556_v6 = vor.u32 %v4555_v17, %v4554_v31  ;;  %v13856_v52 = vshrl.u32 %v13826_v34, 16  ;;  %v1587_v44 = vrot.slane %v13851_v39, 1 }
 0x10d   : > { %v554_v54 = vpop.permute.xlu1 %553  ;;  %v550_v60 = vpop.permute.xlu0 %549  ;;  %v1583_v2 = vor.u32 %v13833_v15, %v1579_v24  ;;  %v4559_v7 = vrot.slane %v13851_v39, 2 }
 0x10e   : > { %18604 = vst [vmem:[#allocation77_spill] sm:$0xff] %v13846_v49  ;;  %18606 = vst [vmem:[#allocation79_spill] sm:$0xff] %v13856_v52  ;;  %vm963_vm10 = vcmp.eq.s32.totalorder %v554_v54, %v13269_v27  ;;  %vm962_vm11 = vcmp.eq.s32.totalorder %v550_v60, %v13269_v27  ;;  %v4557_v43 = vsel %vm4456_vm9, %v4552_v53, %v4556_v6  ;;  %v4558_v24 = vrot.slane %v13856_v52, 1 }
 0x10f   : > { %11235 = vmatmul.mubr.msk.bf16.gmra.mrb[40].mxu1 %vm1945_vm8, %v1580_v30  ;;  %v10165_v31 = vsel %vm962_vm11, 1.0, %v18575_v25  ;;  %803 = vbcast.lane.b32.xlu1 %v13740_v28, 328  ;;  %v1588_v30 = vsel %vm1392_vm7, %v1583_v2, %v1587_v44  ;;  %v13872_v60 = vshll.u32 %v13846_v49, 16  ;;  %v10166_v54 = vsel %vm963_vm10, 1.0, %v18575_v25 }
 0x110   : > { %v13867_v17 = vpack.c.bf16 %v10165_v31, %v10164_v56  ;;  %799 = vbcast.lane.b32.xlu0 %v13740_v28, 320  ;;  %11238 = vmatprep.mubr.msk.bf16.mxu1 %vm1945_vm8, %v1588_v30  ;;  %v4560_v39 = vor.u32 %v4559_v7, %v4558_v24  ;;  %v1591_v19 = vor.u32 %v13856_v52, %v1587_v44  ;;  %v18137_v56 = vshrl.u32 %v13846_v49, 16 }
 0x111   : > { %18608 = vst [vmem:[#allocation81_spill] sm:$0xff] %v13872_v60  ;;  %v562_v53 = vpop.permute.xlu1 %561  ;;  %v558_v15 = vpop.permute.xlu0 %557  ;;  %v1595_v2 = vrot.slane %v13872_v60, 1  ;;  %v4565_v31 = vrot.slane %v13872_v60, 2 }
 0x112   : > { %18607 = vst [vmem:[#allocation80_spill] sm:$0xff] %v13867_v17  ;;  %11625 = vmatmul.mubr.msk.bf16.gmra.mrb[40].mxu0 %vm1945_vm8, %v4557_v43  ;;  %vm965_vm12 = vcmp.eq.s32.totalorder %v562_v53, %v13269_v27  ;;  %vm964_vm13 = vcmp.eq.s32.totalorder %v558_v15, %v13269_v27  ;;  %v4561_v29 = vsel %vm4456_vm9, %v4556_v6, %v4560_v39  ;;  %v4564_v7 = vrot.slane %v18137_v56, 1 }
 0x113   : > { %v10167_v43 = vsel %vm964_vm13, 1.0, %v18575_v25  ;;  %811 = vbcast.lane.b32.xlu1 %v13740_v28, 344  ;;  %11628 = vmatprep.mubr.msk.bf16.mxu0 %vm1945_vm8, %v4561_v29  ;;  %v1596_v15 = vsel %vm1392_vm7, %v1591_v19, %v1595_v2  ;;  %v13894_v24 = vshrl.u32 %v13867_v17, 16  ;;  %v13897_v6 = vshll.u32 %v13867_v17, 16 }
 0x114   : > { %v13889_v44 = vpack.c.bf16 %v10167_v43, %v10166_v54  ;;  %807 = vbcast.lane.b32.xlu0 %v13740_v28, 336  ;;  %v10168_v30 = vsel %vm965_vm12, 1.0, %v18575_v25  ;;  %v4566_v60 = vor.u32 %v4565_v31, %v4564_v7 }
 0x115   : > { %18610 = vst [vmem:[#allocation83_spill] sm:$0xff] %v13894_v24  ;;  %18611 = vst [vmem:[#allocation84_spill] sm:$0xff] %v13897_v6  ;;  %v570_v53 = vpop.permute.xlu1 %569  ;;  %v566_v52 = vpop.permute.xlu0 %565  ;;  %v1602_v29 = vrot.slane %v13897_v6, 1  ;;  %v4569_v16 = vrot.slane %v13897_v6, 2  ;;  %v18615_v6 = vsub.s32 7, %v13212_v3 }
 0x116   : > { %18609 = vst [vmem:[#allocation82_spill] sm:$0xff] %v13889_v44  ;;  %vm967_vm14 = vcmp.eq.s32.totalorder %v570_v53, %v13269_v27  ;;  %vm966_vm15 = vcmp.eq.s32.totalorder %v566_v52, %v13269_v27  ;;  %v13905_v19 = vshll.u32 %v13889_v44, 16  ;;  %v4567_v54 = vsel %vm4456_vm9, %v4560_v39, %v4566_v60 }
 0x117   : > { %11239 = vmatmul.mubr.msk.bf16.gmra.mrb[44].mxu1 %vm1945_vm8, %v1596_v15  ;;  %v10169_v2 = vsel %vm966_vm15, 1.0, %v18575_v25  ;;  %819 = vbcast.lane.b32.xlu1 %v13740_v28, 360  ;;  %v13911_v31 = vshrl.u32 %v13889_v44, 16  ;;  %v1603_v52 = vor.u32 %v1602_v29, %v13894_v24  ;;  %v4568_v53 = vrot.slane %v13894_v24, 1 }
 0x118   : > { %18612 = vst [vmem:[#allocation85_spill] sm:$0xff] %v13905_v19  ;;  %v13914_v7 = vpack.c.bf16 %v10169_v2, %v10168_v30  ;;  %815 = vbcast.lane.b32.xlu0 %v13740_v28, 352  ;;  %v1607_v15 = vrot.slane %v13905_v19, 1  ;;  %v10170_v39 = vsel %vm967_vm14, 1.0, %v18575_v25  ;;  %v4572_v2 = vrot.slane %v13905_v19, 2 }
 0x119   : > { %18613 = vst [vmem:[#allocation86_spill] sm:$0xff] %v13911_v31  ;;  %v578_v60 = vpop.permute.xlu1 %577  ;;  %v574_v56 = vpop.permute.xlu0 %573  ;;  %v4571_v30 = vrot.slane %v13911_v31, 1  ;;  %v13934_v59 = vrot.slane %v13735_v35, %v18615_v6 }
 0x11a   : > { %18614 = vst [vmem:[#allocation87_spill] sm:$0xff] %v13914_v7  ;;  %11629 = vmatmul.mubr.msk.bf16.gmra.mrb[44].mxu0 %vm1945_vm8, %v4567_v54  ;;  %vm969_vm0 = vcmp.eq.s32.totalorder %v578_v60, %v13269_v27  ;;  %vm968_vm1 = vcmp.eq.s32.totalorder %v574_v56, %v13269_v27  ;;  %v1608_v29 = vsel %vm1392_vm7, %v1603_v52, %v1607_v15  ;;  %v13940_v56 = vld [vmem:[%s13204_s18] sm:$0xff]  ;;  %v18617_v52 = vsub.s32 6, %v13212_v3 }
 0x11b   : > { %v10171_v43 = vsel %vm968_vm1, 1.0, %v18575_v25  ;;  %827 = vbcast.lane.b32.xlu1 %v13740_v28, 376  ;;  %11242 = vmatprep.mubr.msk.bf16.mxu1 %vm1945_vm8, %v1608_v29  ;;  %v4570_v54 = vor.u32 %v4569_v16, %v4568_v53  ;;  %v4573_v24 = vor.u32 %v4572_v2, %v4571_v30  ;;  %v13946_v33 = vshll.u32 %v13914_v7, 16 }
 0x11c   : > { %v13936_v19 = vpack.c.bf16 %v10171_v43, %v10170_v39  ;;  %823 = vbcast.lane.b32.xlu0 %v13740_v28, 368  ;;  %v832_v60 = vrot.slane %v13940_v56, %v18617_v52  ;;  %v13949_v16 = vshrl.u32 %v13914_v7, 16  ;;  %v10172_v53 = vsel %vm969_vm0, 1.0, %v18575_v25 }
 0x11d   : > { %18618 = vst [vmem:[#allocation89_spill] sm:$0xff] %v13946_v33  ;;  %v586_v35 = vpop.permute.xlu1 %585  ;;  %v4574_v6 = vsel %vm4456_vm9, %v4570_v54, %v4573_v24  ;;  %v582_v43 = vpop.permute.xlu0 %581  ;;  %v1611_v28 = vor.u32 %v13911_v31, %v1607_v15  ;;  %v1615_v39 = vrot.slane %v13946_v33, 1  ;;  %v4576_v29 = vrot.slane %v13946_v33, 2 }
 0x11e   : > { %18616 = vst [vmem:[#allocation88_spill] sm:$0xff] %v13936_v19  ;;  %18619 = vst [vmem:[#allocation90_spill] sm:$0xff] %v13949_v16  ;;  %vm971_vm3 = vcmp.eq.s32.totalorder %v586_v35, %v13269_v27  ;;  %11632 = vmatprep.mubr.msk.bf16.mxu0 %vm1945_vm8, %v4574_v6  ;;  %vm970_vm4 = vcmp.eq.s32.totalorder %v582_v43, %v13269_v27  ;;  %v4575_v30 = vrot.slane %v13949_v16, 1  ;;  %v13963_v54 = vshll.u32 %v13936_v19, 16 }
 0x11f   : > { %v10173_v2 = vsel %vm970_vm4, 1.0, %v18575_v25  ;;  %841 = vbcast.lane.b32.xlu1 %v13934_v59, 256  ;;  %v10174_v15 = vsel %vm971_vm3, 1.0, %v18575_v25  ;;  %v1616_v35 = vsel %vm1392_vm7, %v1611_v28, %v1615_v39  ;;  %v13970_v6 = vshrl.u32 %v13936_v19, 16 }
 0x120   : > { %18620 = vst [vmem:[#allocation91_spill] sm:$0xff] %v13963_v54  ;;  %v13966_v52 = vpack.c.bf16 %v10173_v2, %v10172_v53  ;;  %834 = vbcast.lane.b32.xlu0 %v832_v60, 256  ;;  %11243 = vmatmul.mubr.msk.bf16.gmra.mrb[48].mxu1 %vm1945_vm8, %v1616_v35  ;;  %v4577_v31 = vor.u32 %v4576_v29, %v4575_v30  ;;  %v1623_v20 = vrot.slane %v13963_v54, 1  ;;  %v4580_v23 = vrot.slane %v13963_v54, 2 }
 0x121   : > { %18622 = vst [vmem:[#allocation93_spill] sm:$0xff] %v13970_v6  ;;  %v594_v43 = vpop.permute.xlu1 %593  ;;  %v590_v50 = vpop.permute.xlu0 %589  ;;  %v1619_v33 = vor.u32 %v13949_v16, %v1615_v39  ;;  %v4579_v60 = vrot.slane %v13970_v6, 1 }
 0x122   : > { %18621 = vst [vmem:[#allocation92_spill] sm:$0xff] %v13966_v52  ;;  %vm973_vm5 = vcmp.eq.s32.totalorder %v594_v43, %v13269_v27  ;;  %vm972_vm6 = vcmp.eq.s32.totalorder %v590_v50, %v13269_v27  ;;  %v13980_v53 = vshll.u32 %v13966_v52, 16  ;;  %v4578_v28 = vsel %vm4456_vm9, %v4573_v24, %v4577_v31 }
 0x123   : > { %v10175_v30 = vsel %vm972_vm6, 1.0, %v18575_v25  ;;  %849 = vbcast.lane.b32.xlu1 %v13934_v59, 272  ;;  %v1624_v39 = vsel %vm1392_vm7, %v1619_v33, %v1623_v20  ;;  %11633 = vmatmul.mubr.msk.bf16.gmra.mrb[48].mxu0 %vm1945_vm8, %v4578_v28  ;;  %v4581_v50 = vor.u32 %v4580_v23, %v4579_v60  ;;  %v1627_v29 = vor.u32 %v13970_v6, %v1623_v20 }
 0x124   : > { %18623 = vst [vmem:[#allocation94_spill] sm:$0xff] %v13980_v53  ;;  %v13987_v2 = vpack.c.bf16 %v10175_v30, %v10174_v15  ;;  %845 = vbcast.lane.b32.xlu0 %v13934_v59, 264  ;;  %v1631_v35 = vrot.slane %v13980_v53, 1  ;;  %v10176_v43 = vsel %vm973_vm5, 1.0, %v18575_v25  ;;  %11246 = vmatprep.mubr.msk.bf16.mxu1 %vm1945_vm8, %v1624_v39  ;;  %v13995_v16 = vshrl.u32 %v13966_v52, 16 }
 0x125   : > { %v602_v24 = vpop.permute.xlu1 %601  ;;  %v598_v54 = vpop.permute.xlu0 %597  ;;  %v4584_v33 = vrot.slane %v13980_v53, 2  ;;  %v4582_v15 = vsel %vm4456_vm9, %v4577_v31, %v4581_v50  ;;  %vm5629_vm5 = vcmask 1045504  }
 0x126   : > { %18624 = vst [vmem:[#allocation95_spill] sm:$0xff] %v13987_v2  ;;  %18625 = vst [vmem:[#allocation96_spill] sm:$0xff] %v13995_v16  ;;  %vm975_vm10 = vcmp.eq.s32.totalorder %v602_v24, %v13269_v27  ;;  %vm974_vm11 = vcmp.eq.s32.totalorder %v598_v54, %v13269_v27  ;;  %v1632_v20 = vsel %vm1392_vm7, %v1627_v29, %v1631_v35  ;;  %11636 = vmatprep.mubr.msk.bf16.mxu0 %vm1945_vm8, %v4582_v15 }
 0x127   : > { %v10177_v23 = vsel %vm974_vm11, 1.0, %v18575_v25  ;;  %857 = vbcast.lane.b32.xlu1 %v13934_v59, 288  ;;  %v4583_v60 = vrot.slane %v13995_v16, 1  ;;  %v14010_v30 = vshll.u32 %v13987_v2, 16  ;;  %v14013_v31 = vshrl.u32 %v13987_v2, 16 }
 0x128   : > { %v14006_v28 = vpack.c.bf16 %v10177_v23, %v10176_v43  ;;  %853 = vbcast.lane.b32.xlu0 %v13934_v59, 280  ;;  %v10178_v54 = vsel %vm975_vm10, 1.0, %v18575_v25  ;;  %11247 = vmatmul.mubr.msk.bf16.gmra.mrb[52].mxu1 %vm1945_vm8, %v1632_v20  ;;  %v1635_v15 = vor.u32 %v13995_v16, %v1631_v35 }
 0x129   : > { %18627 = vst [vmem:[#allocation98_spill] sm:$0xff] %v14010_v30  ;;  %18628 = vst [vmem:[#allocation99_spill] sm:$0xff] %v14013_v31  ;;  %v613_v39 = vpop.permute.xlu1 %612  ;;  %v4585_v29 = vor.u32 %v4584_v33, %v4583_v60  ;;  %v606_v24 = vpop.permute.xlu0 %605  ;;  %v1639_v43 = vrot.slane %v14010_v30, 1  ;;  %v4587_v23 = vrot.slane %v14013_v31, 1  ;;  %v4588_v33 = vrot.slane %v14010_v30, 2 }
 0x12a   : > { %18626 = vst [vmem:[#allocation97_spill] sm:$0xff] %v14006_v28  ;;  %vm977_vm12 = vcmp.eq.s32.totalorder %v613_v39, %v13269_v27  ;;  %vm976_vm13 = vcmp.eq.s32.totalorder %v606_v24, %v13269_v27  ;;  %v14033_v60 = vshll.u32 %v14006_v28, 16 }
 0x12b   : > { %v10180_v53 = vsel %vm977_vm12, 1.0, %v18575_v25  ;;  %v4586_v6 = vsel %vm4456_vm9, %v4581_v50, %v4585_v29  ;;  %v10179_v1 = vsel %vm976_vm13, 1.0, %v18575_v25  ;;  %865 = vbcast.lane.b32.xlu1 %v13934_v59, 304  ;;  %v1640_v20 = vsel %vm1392_vm7, %v1635_v15, %v1639_v43 }
 0x12c   : > { %11637 = vmatmul.mubr.msk.bf16.gmra.mrb[52].mxu0 %vm1945_vm8, %v4586_v6  ;;  %v14028_v35 = vpack.c.bf16 %v10179_v1, %v10178_v54  ;;  %861 = vbcast.lane.b32.xlu0 %v13934_v59, 296  ;;  %18630 = vst [vmem:[#allocation101_spill] sm:$0xff] %v14033_v60  ;;  %v14035_v39 = vpack.c.bf16 %v10180_v53, %v10180_v53  ;;  %v14040_v6 = vshrl.u32 %v14006_v28, 16  ;;  %v1647_v1 = vrot.slane %v14033_v60, 1 }
 0x12d   : > { %11250 = vmatprep.mubr.msk.bf16.mxu1 %vm1945_vm8, %v1640_v20  ;;  %v624_v50 = vpop.permute.xlu1 %623  ;;  %v4589_v24 = vor.u32 %v4588_v33, %v4587_v23  ;;  %v620_v16 = vpop.permute.xlu0 %619  ;;  %v1643_v30 = vor.u32 %v14013_v31, %v1639_v43  ;;  %v4592_v54 = vrot.slane %v14033_v60, 2 }
 0x12e   : > { %18629 = vst [vmem:[#allocation100_spill] sm:$0xff] %v14028_v35  ;;  %18631 = vst [vmem:[#allocation102_spill] sm:$0xff] %v14040_v6  ;;  %vm979_vm14 = vcmp.eq.s32.totalorder %v624_v50, %v13269_v27  ;;  %vm978_vm15 = vcmp.eq.s32.totalorder %v620_v16, %v13269_v27  ;;  %v4591_v43 = vrot.slane %v14040_v6, 1  ;;  %v14057_v20 = vshll.u32 %v14028_v35, 16 }
 0x12f   : > { %v10182_v53 = vsel %vm979_vm14, 1.0, %v18575_v25  ;;  %v4590_v15 = vsel %vm4456_vm9, %v4585_v29, %v4589_v24  ;;  %v10181_v23 = vsel %vm978_vm15, 1.0, %v18575_v25  ;;  %873 = vbcast.lane.b32.xlu1 %v13934_v59, 320  ;;  %v1648_v16 = vsel %vm1392_vm7, %v1643_v30, %v1647_v1 }
 0x130   : > { %11640 = vmatprep.mubr.msk.bf16.mxu0 %vm1945_vm8, %v4590_v15  ;;  %v14052_v33 = vpack.c.bf16 %v10182_v53, %v10181_v23  ;;  %869 = vbcast.lane.b32.xlu0 %v13934_v59, 312  ;;  %18633 = vst [vmem:[#allocation104_spill] sm:$0xff] %v14057_v20  ;;  %v4593_v60 = vor.u32 %v4592_v54, %v4591_v43  ;;  %v14062_v31 = vshrl.u32 %v14028_v35, 16  ;;  %v14065_v15 = vshll.u32 %v14035_v39, 16 }
 0x131   : > { %11251 = vmatmul.mubr.msk.bf16.gmra.mrb[56].mxu1 %vm1945_vm8, %v1648_v16  ;;  %v632_v29 = vpop.permute.xlu1 %631  ;;  %v628_v30 = vpop.permute.xlu0 %627  ;;  %v1651_v23 = vor.u32 %v14040_v6, %v1647_v1  ;;  %v1655_v4 = vrot.slane %v14057_v20, 1  ;;  %v4596_v50 = vrot.slane %v14057_v20, 2  ;;  %v18636_v12 = vshrl.u32 %v14035_v39, 16 }
 0x132   : > { %18632 = vst [vmem:[#allocation103_spill] sm:$0xff] %v14052_v33  ;;  %18634 = vst [vmem:[#allocation105_spill] sm:$0xff] %v14062_v31  ;;  %vm981_vm0 = vcmp.eq.s32.totalorder %v632_v29, %v13269_v27  ;;  %v4594_v54 = vsel %vm4456_vm9, %v4589_v24, %v4593_v60  ;;  %vm980_vm1 = vcmp.eq.s32.totalorder %v628_v30, %v13269_v27  ;;  %v4595_v43 = vrot.slane %v14062_v31, 1 }
 0x133   : > { %18635 = vst [vmem:[#allocation106_spill] sm:$0xff] %v14065_v15  ;;  %v10184_v16 = vsel %vm981_vm0, 1.0, %v18575_v25  ;;  %881 = vbcast.lane.b32.xlu1 %v13934_v59, 336  ;;  %v10183_v29 = vsel %vm980_vm1, 1.0, %v18575_v25  ;;  %v1656_v1 = vsel %vm1392_vm7, %v1651_v23, %v1655_v4  ;;  %v1659_v53 = vor.u32 %v14062_v31, %v1655_v4 }
 0x134   : > { %11641 = vmatmul.mubr.msk.bf16.gmra.mrb[56].mxu0 %vm1945_vm8, %v4594_v54  ;;  %877 = vbcast.lane.b32.xlu0 %v13934_v59, 328  ;;  %v1663_v20 = vrot.slane %v14065_v15, 1  ;;  %v14083_v6 = vpack.c.bf16 %v10184_v16, %v10183_v29  ;;  %v4597_v30 = vor.u32 %v4596_v50, %v4595_v43  ;;  %v4601_v35 = vrot.slane %v18636_v12, 1 }
 0x135   : > { %11254 = vmatprep.mubr.msk.bf16.mxu1 %vm1945_vm8, %v1656_v1  ;;  %v640_v24 = vpop.permute.xlu1 %639  ;;  %v4602_v54 = vrot.slane %v14065_v15, 2  ;;  %v636_v28 = vpop.permute.xlu0 %635  ;;  %v5631_v23 = vrot.slane %v13283_v37, 2  ;;  %v14092_v4 = vshrl.u32 %v14052_v33, 16  ;;  %v14095_v16 = vshll.u32 %v14052_v33, 16 }
 0x136   : > { %vm983_vm3 = vcmp.eq.s32.totalorder %v640_v24, %v13269_v27  ;;  %v4598_v50 = vsel %vm4456_vm9, %v4593_v60, %v4597_v30  ;;  %vm982_vm4 = vcmp.eq.s32.totalorder %v636_v28, %v13269_v27  ;;  %v1664_v1 = vsel %vm1392_vm7, %v1659_v53, %v1663_v20 }
 0x137   : > { %18637 = vst [vmem:[#allocation107_spill] sm:$0xff] %v14092_v4  ;;  %18638 = vst [vmem:[#allocation108_spill] sm:$0xff] %v14095_v16  ;;  %v10186_v29 = vsel %vm983_vm3, 1.0, %v18575_v25  ;;  %889 = vbcast.lane.b32.xlu1 %v13934_v59, 352  ;;  %v4603_v12 = vor.u32 %v4602_v54, %v4601_v35  ;;  %11644 = vmatprep.mubr.msk.bf16.mxu0 %vm1945_vm8, %v4598_v50  ;;  %v10185_v43 = vsel %vm982_vm4, 1.0, %v18575_v25  ;;  %v1670_v24 = vrot.slane %v14095_v16, 1 }
 0x138   : > { %885 = vbcast.lane.b32.xlu0 %v13934_v59, 344  ;;  %v14107_v15 = vshll.u32 %v14083_v6, 16  ;;  %v14109_v31 = vpack.c.bf16 %v10186_v29, %v10185_v43  ;;  %v18641_v35 = vsub.s32 7, %v13212_v3  ;;  %v14119_v50 = vshrl.u32 %v14083_v6, 16 }
 0x139   : > { %11255 = vmatmul.mubr.msk.bf16.gmra.mrb[60].mxu1 %vm1945_vm8, %v1664_v1  ;;  %v648_v28 = vpop.permute.xlu1 %647  ;;  %v644_v54 = vpop.permute.xlu0 %643  ;;  %v1671_v20 = vor.u32 %v1670_v24, %v14092_v4  ;;  %v4604_v43 = vsel %vm4456_vm9, %v4597_v30, %v4603_v12  ;;  %v18644_v24 = vrot.slane %v13285_v38, 2  ;;  %vm6642_vm1 = vsmask.f32 5376 }
 0x13a   : > { %18639 = vst [vmem:[#allocation109_spill] sm:$0xff] %v14107_v15  ;;  %18640 = vst [vmem:[#allocation110_spill] sm:$0xff] %v14109_v31  ;;  %v906_v60 = vrot.slane %v13940_v56, %v18641_v35  ;;  %vm985_vm6 = vcmp.eq.s32.totalorder %v648_v28, %v13269_v27  ;;  %v1675_v53 = vrot.slane %v14107_v15, 1  ;;  %vm984_vm10 = vcmp.eq.s32.totalorder %v644_v54, %v13269_v27 }
 0x13b   : > { %18642 = vst [vmem:[#allocation111_spill] sm:$0xff] %v14119_v50  ;;  %v10188_v29 = vsel %vm985_vm6, 1.0, %v18575_v25  ;;  %897 = vbcast.lane.b32.xlu1 %v13934_v59, 368  ;;  %v14126_v56 = vshll.u32 %v14109_v31, 16  ;;  %v10187_v1 = vsel %vm984_vm10, 1.0, %v18575_v25  ;;  %v5632_v28 = vsel %vm5629_vm5, %v18644_v24, %v5631_v23 }
 0x13c   : > { %11645 = vmatmul.mubr.msk.bf16.gmra.mrb[60].mxu0 %vm1945_vm8, %v4604_v43  ;;  %893 = vbcast.lane.b32.xlu0 %v13934_v59, 360  ;;  %v1676_v35 = vsel %vm1392_vm7, %v1671_v20, %v1675_v53  ;;  %v14135_v30 = vpack.c.bf16 %v10188_v29, %v10187_v1  ;;  %v1679_v54 = vor.u32 %v14119_v50, %v1675_v53  ;;  %v5633_v24 = vrot.slane %v13305_v47, 2 }
 0x13d   : > { %18643 = vst [vmem:[#allocation112_spill] sm:$0xff] %v14126_v56  ;;  %11714 = vmatprep.mubr.msk.bf16.mxu0 %vm1945_vm8, %v5632_v28  ;;  %11258 = vmatprep.mubr.msk.bf16.mxu1 %vm1945_vm8, %v1676_v35  ;;  %v656_v12 = vpop.permute.xlu1 %655  ;;  %v1683_v43 = vrot.slane %v14126_v56, 1  ;;  %v652_v3 = vpop.permute.xlu0 %651  ;;  %v5635_v53 = vrot.slane %v13324_v63, 2  ;;  %v14150_v1 = vshrl.u32 %v14109_v31, 16 }
 0x13e   : > { %18645 = vst [vmem:[#allocation113_spill] sm:$0xff] %v14135_v30  ;;  %vm987_vm11 = vcmp.eq.s32.totalorder %v656_v12, %v13269_v27  ;;  %vm986_vm12 = vcmp.eq.s32.totalorder %v652_v3, %v13269_v27  ;;  %v14153_v28 = vshll.u32 %v14135_v30, 16  ;;  %v14165_v4 = vshrl.u32 %v14135_v30, 16 }
 0x13f   : > { %v10190_v16 = vsel %vm987_vm11, 1.0, %v18575_v25  ;;  %908 = vbcast.lane.b32.xlu1 %v906_v60, 256  ;;  %v1684_v20 = vsel %vm1392_vm7, %v1679_v54, %v1683_v43  ;;  %v10189_v29 = vsel %vm986_vm12, 1.0, %v18575_v25  ;;  %18646 = vst [vmem:[#allocation114_spill] sm:$0xff] %v14150_v1  ;;  %v5634_v60 = vsel %vm5629_vm5, %v5631_v23, %v5633_v24 }
 0x140   : > { %901 = vbcast.lane.b32.xlu0 %v13934_v59, 376  ;;  %18647 = vst [vmem:[#allocation115_spill] sm:$0xff] %v14153_v28  ;;  %v14155_v35 = vpack.c.bf16 %v10190_v16, %v10189_v29  ;;  %v1687_v59 = vor.u32 %v14150_v1, %v1683_v43  ;;  %v1691_v54 = vrot.slane %v14153_v28, 1  ;;  %18649 = vst [vmem:[#allocation117_spill] sm:$0xff] %v14165_v4  ;;  %v6646_v1 = vrot.slane %v13303_v46, 2 }
 0x141   : > { %11259 = vmatmul.mubr.msk.bf16.gmra.mrb[64].mxu1 %vm1945_vm8, %v1684_v20  ;;  %v664_v3 = vpop.permute.xlu1 %663  ;;  %v5636_v23 = vsel %vm5629_vm5, %v5633_v24, %v5635_v53 }
 0x142   : > { %18648 = vst [vmem:[#allocation116_spill] sm:$0xff] %v14155_v35  ;;  %vm989_vm13 = vcmp.eq.s32.totalorder %v664_v3, %v13269_v27  ;;  %v660_v12 = vpop.permute.xlu0 %659  ;;  %v14168_v16 = vshll.u32 %v14155_v35, 16  ;;  %v1692_v43 = vsel %vm1392_vm7, %v1687_v59, %v1691_v54  ;;  %v6647_v59 = vrot.slane %v13300_v45, 3 }
 0x143   : > { %v10192_v56 = vsel %vm989_vm13, 1.0, %v18575_v25  ;;  %vm988_vm14 = vcmp.eq.s32.totalorder %v660_v12, %v13269_v27  ;;  %11262 = vmatprep.mubr.msk.bf16.mxu1 %vm1945_vm8, %v1692_v43  ;;  %v1695_v12 = vor.u32 %v14165_v4, %v1691_v54  ;;  %v14194_v46 = vshrl.u32 %v14155_v35, 16 }
 0x144   : > { %18650 = vst [vmem:[#allocation118_spill] sm:$0xff] %v14168_v16  ;;  %11715 = vmatmul.mubr.msk.bf16.vlgmr.msra.gmra.mrb[0].mxu0 %vm1945_vm8, %v5634_v60  ;;  %v10191_v20 = vsel %vm988_vm14, 1.0, %v18575_v25  ;;  %v1699_v28 = vrot.slane %v14168_v16, 1  ;;  %v12963_v60 = vld [vmem:[%s18084_s3 + $0x10] sm:$0x1f]  }
 0x145   : > { %v14174_v29 = vpack.c.bf16 %v10192_v56, %v10191_v20  ;;  %11718 = vmatprep.mubr.msk.bf16.mxu0 %vm1945_vm8, %v5636_v23  ;;  %v672_v3 = vpop.permute.xlu1 %671  ;;  %11843 = vmatpush3.bf16.msra.mxu0 %v13475_v22  ;;  %v5637_v56 = vrot.slane %v13353_v21, 2  ;;  %v5639_v23 = vrot.slane %v13377_v40, 2  ;;  %18651 = vst [vmem:[#allocation119_spill] sm:$0xff] %v14194_v46  ;;  %v14200_v22 = vand.u32 %v12963_v60, %v13223_v10 }
 0x146   : > { %vm991_vm15 = vcmp.eq.s32.totalorder %v672_v3, %v13269_v27  ;;  %v668_v24 = vpop.permute.xlu0 %667  ;;  %v1700_v54 = vsel %vm1392_vm7, %v1695_v12, %v1699_v28  ;;  %v14205_v12 = vor.u32 %v6647_v59, %v6646_v1  ;;  %v1703_v15 = vor.u32 %v14194_v46, %v1699_v28 }
 0x147   : > { %v10194_v20 = vsel %vm991_vm15, 1.0, %v18575_v25  ;;  %vm990_vm0 = vcmp.eq.s32.totalorder %v668_v24, %v13269_v27  ;;  %v14197_v3 = vshll.u32 %v14174_v29, 16  ;;  %v5638_v16 = vsel %vm5629_vm5, %v5635_v53, %v5637_v56  ;;  %11452 = vmatprep.subr.bf16.mxu1 %v14200_v22 }
 0x148   : > { %v10193_v43 = vsel %vm990_vm0, 1.0, %v18575_v25  ;;  %18653 = vst [vmem:[#allocation121_spill] sm:$0xff] %v14205_v12  ;;  %v5640_v28 = vsel %vm5629_vm5, %v5637_v56, %v5639_v23  ;;  %v5641_v56 = vrot.slane %v13396_v58, 2 }
 0x149   : > { %18652 = vst [vmem:[#allocation120_spill] sm:$0xff] %v14197_v3  ;;  %v14202_v45 = vpack.c.bf16 %v10194_v20, %v10193_v43  ;;  %11263 = vmatmul.mubr.msk.bf16.gmra.mrb[68].mxu1 %vm1945_vm8, %v1700_v54  ;;  %v680_v24 = vpop.permute.xlu1 %679  ;;  %v1707_v50 = vrot.slane %v14197_v3, 1  ;;  %v14215_v20 = vshrl.u32 %v14174_v29, 16 }
 0x14a   : > { %vm993_vm3 = vcmp.eq.s32.totalorder %v680_v24, %v13269_v27  ;;  %v676_v4 = vpop.permute.xlu0 %675 }
 0x14b   : > { %v10196_v60 = vsel %vm993_vm3, 1.0, %v18575_v25  ;;  %vm992_vm4 = vcmp.eq.s32.totalorder %v676_v4, %v13269_v27  ;;  %18654 = vst [vmem:[#allocation122_spill] sm:$0xff] %v14215_v20  ;;  %v14218_v1 = vshll.u32 %v14202_v45, 16  ;;  %v1708_v59 = vsel %vm1392_vm7, %v1703_v15, %v1707_v50 }
 0x14c   : > { %11719 = vmatmul.mubr.msk.bf16.gmra.mrb[4].mxu0 %vm1945_vm8, %v5638_v16  ;;  %v10195_v53 = vsel %vm992_vm4, 1.0, %v18575_v25  ;;  %11266 = vmatprep.mubr.msk.bf16.mxu1 %vm1945_vm8, %v1708_v59  ;;  %v1711_v43 = vor.u32 %v14215_v20, %v1707_v50  ;;  %v14233_v16 = vsel %vm6642_vm1, %v13616_v55, %v14205_v12  ;;  %v5643_v50 = vrot.slane %v13417_v14, 2 }
 0x14d   : > { %18655 = vst [vmem:[#allocation123_spill] sm:$0xff] %v14218_v1  ;;  %v14224_v54 = vpack.c.bf16 %v10196_v60, %v10195_v53  ;;  %11722 = vmatprep.mubr.msk.bf16.mxu0 %vm1945_vm8, %v5640_v28  ;;  %v694_v4 = vpop.permute.xlu1 %693  ;;  %v1715_v24 = vrot.slane %v14218_v1, 1  ;;  %18656 = vst [vmem:[#allocation124_spill] sm:$0xff] %v14233_v16  ;;  %v14242_v53 = vshrl.u32 %v14202_v45, 16  ;;  %v5645_v16 = vrot.slane %v13438_v36, 2 }
 0x14e   : > { %v687_v3 = vpop.permute.xlu0 %686  ;;  %vm995_vm6 = vcmp.eq.s32.totalorder %v694_v4, %v13269_v27  ;;  %v5650_v36 = vrot.slane %v13514_v61, 2 }
 0x14f   : > { %vm994_vm10 = vcmp.eq.s32.totalorder %v687_v3, %v13269_v27  ;;  %v1716_v15 = vsel %vm1392_vm7, %v1711_v43, %v1715_v24  ;;  %18657 = vst [vmem:[#allocation125_spill] sm:$0xff] %v14242_v53  ;;  %v14245_v28 = vshll.u32 %v14224_v54, 16  ;;  %v10198_v4 = vsel %vm995_vm6, 1.0, %v18575_v25 }
 0x150   : > { %v10197_v60 = vsel %vm994_vm10, 1.0, %v18575_v25  ;;  %v5642_v3 = vsel %vm5629_vm5, %v5639_v23, %v5641_v56  ;;  %v1719_v1 = vor.u32 %v14242_v53, %v1715_v24  ;;  %v14257_v46 = vshrl.u32 %v14224_v54, 16 }
 0x151   : > { %18658 = vst [vmem:[#allocation126_spill] sm:$0xff] %v14245_v28  ;;  %v14247_v55 = vpack.c.bf16 %v10197_v60, %v10197_v60  ;;  %11267 = vmatmul.mubr.msk.bf16.gmra.mrb[72].mxu1 %vm1945_vm8, %v1716_v15  ;;  %v702_v59 = vpop.permute.xlu1 %701  ;;  %v1723_v20 = vrot.slane %v14245_v28, 1  ;;  %v5644_v23 = vsel %vm5629_vm5, %v5641_v56, %v5643_v50 }
 0x152   : > { %v698_v43 = vpop.permute.xlu0 %697  ;;  %vm997_vm11 = vcmp.eq.s32.totalorder %v702_v59, %v13269_v27  ;;  %18659 = vst [vmem:[#allocation127_spill] sm:$0xff] %v14257_v46 }
 0x153   : > { %vm996_vm12 = vcmp.eq.s32.totalorder %v698_v43, %v13269_v27  ;;  %v14260_v60 = vshll.u32 %v14247_v55, 16  ;;  %v1724_v24 = vsel %vm1392_vm7, %v1719_v1, %v1723_v20  ;;  %v1727_v43 = vor.u32 %v14257_v46, %v1723_v20 }
 0x154   : > { %11723 = vmatmul.mubr.msk.bf16.gmra.mrb[8].mxu0 %vm1945_vm8, %v5642_v3  ;;  %v10199_v15 = vsel %vm996_vm12, 1.0, %v18575_v25  ;;  %11270 = vmatprep.mubr.msk.bf16.mxu1 %vm1945_vm8, %v1724_v24  ;;  %v10200_v12 = vsel %vm997_vm11, 1.0, %v18575_v25 }
 0x155   : > { %18660 = vst [vmem:[#allocation128_spill] sm:$0xff] %v14260_v60  ;;  %v14266_v53 = vpack.c.bf16 %v10199_v15, %v10198_v4  ;;  %11726 = vmatprep.mubr.msk.bf16.mxu0 %vm1945_vm8, %v5644_v23  ;;  %v710_v59 = vpop.permute.xlu1 %709  ;;  %v1731_v28 = vrot.slane %v14260_v60, 1  ;;  %v5648_v4 = vrot.slane %v13488_v32, 2  ;;  %v5654_v32 = vrot.slane %v13562_v26, 2 }
 0x156   : > { %v706_v3 = vpop.permute.xlu0 %705  ;;  %vm999_vm13 = vcmp.eq.s32.totalorder %v710_v59, %v13269_v27  ;;  %v5646_v59 = vsel %vm5629_vm5, %v5643_v50, %v5645_v16 }
 0x157   : > { %vm998_vm14 = vcmp.eq.s32.totalorder %v706_v3, %v13269_v27  ;;  %v1732_v1 = vsel %vm1392_vm7, %v1727_v43, %v1731_v28  ;;  %v14280_v15 = vshll.u32 %v14266_v53, 16  ;;  %v10202_v24 = vsel %vm999_vm13, 1.0, %v18575_v25 }
 0x158   : > { %v10201_v56 = vsel %vm998_vm14, 1.0, %v18575_v25  ;;  %v5647_v3 = vrot.slane %v13464_v0, 2  ;;  %v14292_v43 = vshrl.u32 %v14266_v53, 16 }
 0x159   : > { %18661 = vst [vmem:[#allocation129_spill] sm:$0xff] %v14280_v15  ;;  %v14282_v20 = vpack.c.bf16 %v10201_v56, %v10200_v12  ;;  %11271 = vmatmul.mubr.msk.bf16.gmra.mrb[76].mxu1 %vm1945_vm8, %v1732_v1  ;;  %v718_v23 = vpop.permute.xlu1 %717  ;;  %v1738_v28 = vrot.slane %v14280_v15, 1 }
 0x15a   : > { %v714_v60 = vpop.permute.xlu0 %713  ;;  %vm1001_vm15 = vcmp.eq.s32.totalorder %v718_v23, %v13269_v27  ;;  %18662 = vst [vmem:[#allocation130_spill] sm:$0xff] %v14292_v43  ;;  %v5649_v16 = vsel %vm5629_vm5, %v5647_v3, %v5648_v4  ;;  %v5652_v3 = vrot.slane %v13535_v48, 2 }
 0x15b   : > { %vm1000_vm0 = vcmp.eq.s32.totalorder %v714_v60, %v13269_v27  ;;  %v14295_v12 = vshll.u32 %v14282_v20, 16  ;;  %v1739_v23 = vor.u32 %v1738_v28, %v14292_v43  ;;  %v10204_v15 = vsel %vm1001_vm15, 1.0, %v18575_v25 }
 0x15c   : > { %11727 = vmatmul.mubr.msk.bf16.gmra.mrb[12].mxu0 %vm1945_vm8, %v5646_v59  ;;  %v10203_v1 = vsel %vm1000_vm0, 1.0, %v18575_v25  ;;  %v14314_v28 = vshrl.u32 %v14282_v20, 16 }
 0x15d   : > { %18663 = vst [vmem:[#allocation131_spill] sm:$0xff] %v14295_v12  ;;  %v14300_v50 = vpack.c.bf16 %v10203_v1, %v10202_v24  ;;  %11730 = vmatprep.mubr.msk.bf16.mxu0 %vm1945_vm8, %v5649_v16  ;;  %v726_v56 = vpop.permute.xlu1 %725  ;;  %v1743_v60 = vrot.slane %v14295_v12, 1 }
 0x15e   : > { %v722_v46 = vpop.permute.xlu0 %721  ;;  %vm1003_vm3 = vcmp.eq.s32.totalorder %v726_v56, %v13269_v27  ;;  %18664 = vst [vmem:[#allocation132_spill] sm:$0xff] %v14314_v28 }
 0x15f   : > { %vm1002_vm4 = vcmp.eq.s32.totalorder %v722_v46, %v13269_v27  ;;  %v1744_v59 = vsel %vm1392_vm7, %v1739_v23, %v1743_v60  ;;  %v14317_v1 = vshll.u32 %v14300_v50, 16  ;;  %v10206_v56 = vsel %vm1003_vm3, 1.0, %v18575_v25 }
 0x160   : > { %v10205_v24 = vsel %vm1002_vm4, 1.0, %v18575_v25  ;;  %11274 = vmatprep.mubr.msk.bf16.mxu1 %vm1945_vm8, %v1744_v59  ;;  %v5651_v46 = vsel %vm5629_vm5, %v5648_v4, %v5650_v36  ;;  %v1747_v12 = vor.u32 %v14314_v28, %v1743_v60  ;;  %v14328_v48 = vshrl.u32 %v14300_v50, 16 }
 0x161   : > { %18665 = vst [vmem:[#allocation133_spill] sm:$0xff] %v14317_v1  ;;  %v14319_v16 = vpack.c.bf16 %v10205_v24, %v10204_v15  ;;  %v734_v43 = vpop.permute.xlu1 %733  ;;  %v1751_v59 = vrot.slane %v14317_v1, 1  ;;  %v5653_v4 = vsel %vm5629_vm5, %v5650_v36, %v5652_v3 }
 0x162   : > { %v730_v23 = vpop.permute.xlu0 %729  ;;  %vm1005_vm6 = vcmp.eq.s32.totalorder %v734_v43, %v13269_v27  ;;  %18666 = vst [vmem:[#allocation134_spill] sm:$0xff] %v14328_v48 }
 0x163   : > { %vm1004_vm10 = vcmp.eq.s32.totalorder %v730_v23, %v13269_v27  ;;  %v14331_v15 = vshll.u32 %v14319_v16, 16  ;;  %v1752_v60 = vsel %vm1392_vm7, %v1747_v12, %v1751_v59  ;;  %v1755_v23 = vor.u32 %v14328_v48, %v1751_v59 }
 0x164   : > { %11731 = vmatmul.mubr.msk.bf16.gmra.mrb[16].mxu0 %vm1945_vm8, %v5651_v46  ;;  %v10207_v24 = vsel %vm1004_vm10, 1.0, %v18575_v25  ;;  %11275 = vmatmul.mubr.msk.bf16.gmra.mrb[80].mxu1 %vm1945_vm8, %v1752_v60  ;;  %v10208_v61 = vsel %vm1005_vm6, 1.0, %v18575_v25  ;;  %v14352_v59 = vshrl.u32 %v14319_v16, 16 }
 0x165   : > { %18667 = vst [vmem:[#allocation135_spill] sm:$0xff] %v14331_v15  ;;  %v14337_v28 = vpack.c.bf16 %v10207_v24, %v10206_v56  ;;  %11734 = vmatprep.mubr.msk.bf16.mxu0 %vm1945_vm8, %v5653_v4  ;;  %v742_v43 = vpop.permute.xlu1 %741  ;;  %v1759_v1 = vrot.slane %v14331_v15, 1  ;;  %v5656_v56 = vrot.slane %v13584_v13, 2  ;;  %v5658_v13 = vrot.slane %v13604_v9, 2 }
 0x166   : > { %v738_v46 = vpop.permute.xlu0 %737  ;;  %vm1007_vm11 = vcmp.eq.s32.totalorder %v742_v43, %v13269_v27  ;;  %18669 = vst [vmem:[#allocation137_spill] sm:$0xff] %v14352_v59 }
 0x167   : > { %18668 = vst [vmem:[#allocation136_spill] sm:$0xff] %v14337_v28  ;;  %vm1006_vm12 = vcmp.eq.s32.totalorder %v738_v46, %v13269_v27  ;;  %v1760_v36 = vsel %vm1392_vm7, %v1755_v23, %v1759_v1  ;;  %v14355_v24 = vshll.u32 %v14337_v28, 16  ;;  %v10210_v43 = vsel %vm1007_vm11, 1.0, %v18575_v25 }
 0x168   : > { %v10209_v12 = vsel %vm1006_vm12, 1.0, %v18575_v25  ;;  %11278 = vmatprep.mubr.msk.bf16.mxu1 %vm1945_vm8, %v1760_v36  ;;  %v5655_v46 = vsel %vm5629_vm5, %v5652_v3, %v5654_v32  ;;  %v1763_v15 = vor.u32 %v14352_v59, %v1759_v1  ;;  %v14366_v48 = vshrl.u32 %v14337_v28, 16 }
 0x169   : > { %18670 = vst [vmem:[#allocation138_spill] sm:$0xff] %v14355_v24  ;;  %v14357_v4 = vpack.c.bf16 %v10209_v12, %v10208_v61  ;;  %v750_v60 = vpop.permute.xlu1 %749  ;;  %v1767_v36 = vrot.slane %v14355_v24, 1  ;;  %v5657_v3 = vsel %vm5629_vm5, %v5654_v32, %v5656_v56 }
 0x16a   : > { %v746_v23 = vpop.permute.xlu0 %745  ;;  %vm1009_vm13 = vcmp.eq.s32.totalorder %v750_v60, %v13269_v27  ;;  %18671 = vst [vmem:[#allocation139_spill] sm:$0xff] %v14366_v48 }
 0x16b   : > { %vm1008_vm14 = vcmp.eq.s32.totalorder %v746_v23, %v13269_v27  ;;  %v14369_v61 = vshll.u32 %v14357_v4, 16  ;;  %v1768_v1 = vsel %vm1392_vm7, %v1763_v15, %v1767_v36  ;;  %v1771_v23 = vor.u32 %v14366_v48, %v1767_v36 }
 0x16c   : > { %11735 = vmatmul.mubr.msk.bf16.gmra.mrb[20].mxu0 %vm1945_vm8, %v5655_v46  ;;  %v10211_v12 = vsel %vm1008_vm14, 1.0, %v18575_v25  ;;  %11279 = vmatmul.mubr.msk.bf16.gmra.mrb[84].mxu1 %vm1945_vm8, %v1768_v1  ;;  %v10212_v46 = vsel %vm1009_vm13, 1.0, %v18575_v25  ;;  %v5660_v36 = vrot.slane %v13628_v11, 2  ;;  %v5659_v48 = vsel %vm5629_vm5, %v5656_v56, %v5658_v13 }
 0x16d   : > { %18672 = vst [vmem:[#allocation140_spill] sm:$0xff] %v14369_v61  ;;  %v14375_v59 = vpack.c.bf16 %v10211_v12, %v10210_v43  ;;  %11738 = vmatprep.mubr.msk.bf16.mxu0 %vm1945_vm8, %v5657_v3  ;;  %v761_v60 = vpop.permute.xlu1 %760  ;;  %v1775_v24 = vrot.slane %v14369_v61, 1  ;;  %v14391_v3 = vshrl.u32 %v14357_v4, 16 }
 0x16e   : > { %vm1011_vm15 = vcmp.eq.s32.totalorder %v761_v60, %v13269_v27  ;;  %v754_v32 = vpop.permute.xlu0 %753 }
 0x16f   : > { %v10214_v15 = vsel %vm1011_vm15, 1.0, %v18575_v25  ;;  %vm1010_vm0 = vcmp.eq.s32.totalorder %v754_v32, %v13269_v27  ;;  %v1776_v43 = vsel %vm1392_vm7, %v1771_v23, %v1775_v24  ;;  %18673 = vst [vmem:[#allocation141_spill] sm:$0xff] %v14391_v3  ;;  %v14394_v1 = vshll.u32 %v14375_v59, 16 }
 0x170   : > { %v10213_v12 = vsel %vm1010_vm0, 1.0, %v18575_v25  ;;  %11282 = vmatprep.mubr.msk.bf16.mxu1 %vm1945_vm8, %v1776_v43  ;;  %v14399_v32 = vpack.c.bf16 %v10214_v15, %v10214_v15  ;;  %v1779_v43 = vor.u32 %v14391_v3, %v1775_v24  ;;  %v14407_v26 = vshrl.u32 %v14375_v59, 16 }
 0x171   : > { %18674 = vst [vmem:[#allocation142_spill] sm:$0xff] %v14394_v1  ;;  %v14396_v60 = vpack.c.bf16 %v10213_v12, %v10212_v46  ;;  %v772_v61 = vpop.permute.xlu1 %771  ;;  %v1783_v11 = vrot.slane %v14394_v1, 1  ;;  %v5662_v3 = vrot.slane %v13635_v8, 2 }
 0x172   : > { %18675 = vst [vmem:[#allocation143_spill] sm:$0xff] %v14399_v32  ;;  %vm1013_vm3 = vcmp.eq.s32.totalorder %v772_v61, %v13269_v27  ;;  %v768_v23 = vpop.permute.xlu0 %767  ;;  %18676 = vst [vmem:[#allocation144_spill] sm:$0xff] %v14407_v26  ;;  %v5661_v61 = vsel %vm5629_vm5, %v5658_v13, %v5660_v36 }
 0x173   : > { %v10216_v9 = vsel %vm1013_vm3, 1.0, %v18575_v25  ;;  %vm1012_vm4 = vcmp.eq.s32.totalorder %v768_v23, %v13269_v27  ;;  %v14410_v46 = vshll.u32 %v14396_v60, 16  ;;  %v1784_v24 = vsel %vm1392_vm7, %v1779_v43, %v1783_v11 }
 0x174   : > { %11739 = vmatmul.mubr.msk.bf16.gmra.mrb[24].mxu0 %vm1945_vm8, %v5659_v48  ;;  %v10215_v56 = vsel %vm1012_vm4, 1.0, %v18575_v25  ;;  %11283 = vmatmul.mubr.msk.bf16.gmra.mrb[88].mxu1 %vm1945_vm8, %v1784_v24  ;;  %v1787_v23 = vor.u32 %v14407_v26, %v1783_v11  ;;  %v14425_v13 = vshrl.u32 %v14396_v60, 16  ;;  %v5665_v11 = vrot.slane %v13678_v41, 2 }
 0x175   : > { %18677 = vst [vmem:[#allocation145_spill] sm:$0xff] %v14410_v46  ;;  %v14416_v15 = vpack.c.bf16 %v10216_v9, %v10215_v56  ;;  %11742 = vmatprep.mubr.msk.bf16.mxu0 %vm1945_vm8, %v5661_v61  ;;  %v780_v12 = vpop.permute.xlu1 %779  ;;  %v1791_v1 = vrot.slane %v14410_v46, 1  ;;  %v14428_v9 = vshll.u32 %v14399_v32, 16  ;;  %v5664_v41 = vrot.slane %v13652_v62, 2 }
 0x176   : > { %vm1015_vm6 = vcmp.eq.s32.totalorder %v780_v12, %v13269_v27  ;;  %v776_v48 = vpop.permute.xlu0 %775  ;;  %18678 = vst [vmem:[#allocation146_spill] sm:$0xff] %v14425_v13 }
 0x177   : > { %18679 = vst [vmem:[#allocation147_spill] sm:$0xff] %v14428_v9  ;;  %v10218_v43 = vsel %vm1015_vm6, 1.0, %v18575_v25  ;;  %vm1014_vm10 = vcmp.eq.s32.totalorder %v776_v48, %v13269_v27  ;;  %v1792_v56 = vsel %vm1392_vm7, %v1787_v23, %v1791_v1  ;;  %v1795_v24 = vor.u32 %v14425_v13, %v1791_v1 }
 0x178   : > { %v10217_v61 = vsel %vm1014_vm10, 1.0, %v18575_v25  ;;  %11286 = vmatprep.mubr.msk.bf16.mxu1 %vm1945_vm8, %v1792_v56  ;;  %v1799_v12 = vrot.slane %v14428_v9, 1  ;;  %v14439_v46 = vshll.u32 %v14416_v15, 16  ;;  %v5663_v23 = vsel %vm5629_vm5, %v5660_v36, %v5662_v3 }
 0x179   : > { %v14441_v26 = vpack.c.bf16 %v10218_v43, %v10217_v61  ;;  %v788_v8 = vpop.permute.xlu1 %787  ;;  %v14450_v1 = vshrl.u32 %v14416_v15, 16  ;;  %v5666_v36 = vsel %vm5629_vm5, %v5664_v41, %v5665_v11  ;;  %v5667_v13 = vrot.slane %v13711_v42, 2 }
 0x17a   : > { %18680 = vst [vmem:[#allocation148_spill] sm:$0xff] %v14439_v46  ;;  %vm1017_vm11 = vcmp.eq.s32.totalorder %v788_v8, %v13269_v27  ;;  %v784_v48 = vpop.permute.xlu0 %783  ;;  %v1806_v32 = vrot.slane %v14439_v46, 1  ;;  %v1800_v3 = vsel %vm1392_vm7, %v1795_v24, %v1799_v12 }
 0x17b   : > { %v10220_v56 = vsel %vm1017_vm11, 1.0, %v18575_v25  ;;  %vm1016_vm12 = vcmp.eq.s32.totalorder %v784_v48, %v13269_v27  ;;  %18681 = vst [vmem:[#allocation149_spill] sm:$0xff] %v14450_v1  ;;  %v14453_v43 = vshll.u32 %v14441_v26, 16 }
 0x17c   : > { %11743 = vmatmul.mubr.msk.bf16.gmra.mrb[28].mxu0 %vm1945_vm8, %v5663_v23  ;;  %v10219_v8 = vsel %vm1016_vm12, 1.0, %v18575_v25  ;;  %11287 = vmatmul.mubr.msk.bf16.gmra.mrb[92].mxu1 %vm1945_vm8, %v1800_v3  ;;  %v1807_v46 = vor.u32 %v1806_v32, %v14450_v1  ;;  %v14474_v32 = vshrl.u32 %v14441_v26, 16 }
 0x17d   : > { %18682 = vst [vmem:[#allocation150_spill] sm:$0xff] %v14453_v43  ;;  %v14459_v61 = vpack.c.bf16 %v10220_v56, %v10219_v8  ;;  %11746 = vmatprep.mubr.msk.bf16.mxu0 %vm1945_vm8, %v5666_v36  ;;  %v796_v48 = vpop.permute.xlu1 %795  ;;  %v1811_v9 = vrot.slane %v14453_v43, 1  ;;  %v5669_v56 = vrot.slane %v13729_v18, 2  ;;  %v5671_v18 = vrot.slane %v13760_v57, 2 }
 0x17e   : > { %vm1019_vm13 = vcmp.eq.s32.totalorder %v796_v48, %v13269_v27  ;;  %v792_v23 = vpop.permute.xlu0 %791  ;;  %18683 = vst [vmem:[#allocation151_spill] sm:$0xff] %v14474_v32  ;;  %v5668_v48 = vsel %vm5629_vm5, %v5665_v11, %v5667_v13  ;;  %v5675_v57 = vrot.slane %v13807_v5, 2 }
 0x17f   : > { %v10222_v41 = vsel %vm1019_vm13, 1.0, %v18575_v25  ;;  %vm1018_vm14 = vcmp.eq.s32.totalorder %v792_v23, %v13269_v27  ;;  %v1812_v24 = vsel %vm1392_vm7, %v1807_v46, %v1811_v9  ;;  %v14477_v8 = vshll.u32 %v14459_v61, 16 }
 0x180   : > { %v10221_v12 = vsel %vm1018_vm14, 1.0, %v18575_v25  ;;  %11290 = vmatprep.mubr.msk.bf16.mxu1 %vm1945_vm8, %v1812_v24  ;;  %v1815_v23 = vor.u32 %v14474_v32, %v1811_v9  ;;  %v14488_v43 = vshrl.u32 %v14459_v61, 16  ;;  %v5670_v11 = vsel %vm5629_vm5, %v5667_v13, %v5669_v56 }
 0x181   : > { %18684 = vst [vmem:[#allocation152_spill] sm:$0xff] %v14477_v8  ;;  %v14479_v36 = vpack.c.bf16 %v10222_v41, %v10221_v12  ;;  %v804_v3 = vpop.permute.xlu1 %803  ;;  %v1819_v24 = vrot.slane %v14477_v8, 1 }
 0x182   : > { %vm1021_vm15 = vcmp.eq.s32.totalorder %v804_v3, %v13269_v27  ;;  %v800_v46 = vpop.permute.xlu0 %799  ;;  %18686 = vst [vmem:[#allocation154_spill] sm:$0xff] %v14488_v43 }
 0x183   : > { %18685 = vst [vmem:[#allocation153_spill] sm:$0xff] %v14479_v36  ;;  %v10224_v1 = vsel %vm1021_vm15, 1.0, %v18575_v25  ;;  %vm1020_vm0 = vcmp.eq.s32.totalorder %v800_v46, %v13269_v27  ;;  %v14491_v41 = vshll.u32 %v14479_v36, 16  ;;  %v1820_v9 = vsel %vm1392_vm7, %v1815_v23, %v1819_v24 }
 0x184   : > { %11747 = vmatmul.mubr.msk.bf16.gmra.mrb[32].mxu0 %vm1945_vm8, %v5668_v48  ;;  %v10223_v12 = vsel %vm1020_vm0, 1.0, %v18575_v25  ;;  %11291 = vmatmul.mubr.msk.bf16.gmra.mrb[96].mxu1 %vm1945_vm8, %v1820_v9  ;;  %v1823_v8 = vor.u32 %v14488_v43, %v1819_v24  ;;  %v14512_v24 = vshrl.u32 %v14479_v36, 16 }
 0x185   : > { %18687 = vst [vmem:[#allocation155_spill] sm:$0xff] %v14491_v41  ;;  %v14497_v3 = vpack.c.bf16 %v10224_v1, %v10223_v12  ;;  %11750 = vmatprep.mubr.msk.bf16.mxu0 %vm1945_vm8, %v5670_v11  ;;  %v812_v46 = vpop.permute.xlu1 %811  ;;  %v1827_v32 = vrot.slane %v14491_v41, 1  ;;  %v5673_v12 = vrot.slane %v13784_v51, 2 }
 0x186   : > { %vm1023_vm3 = vcmp.eq.s32.totalorder %v812_v46, %v13269_v27  ;;  %v808_v48 = vpop.permute.xlu0 %807  ;;  %18689 = vst [vmem:[#allocation157_spill] sm:$0xff] %v14512_v24 }
 0x187   : > { %18688 = vst [vmem:[#allocation156_spill] sm:$0xff] %v14497_v3  ;;  %v10226_v13 = vsel %vm1023_vm3, 1.0, %v18575_v25  ;;  %vm1022_vm4 = vcmp.eq.s32.totalorder %v808_v48, %v13269_v27  ;;  %v1828_v1 = vsel %vm1392_vm7, %v1823_v8, %v1827_v32  ;;  %v14515_v11 = vshll.u32 %v14497_v3, 16 }
 0x188   : > { %v10225_v23 = vsel %vm1022_vm4, 1.0, %v18575_v25  ;;  %11294 = vmatprep.mubr.msk.bf16.mxu1 %vm1945_vm8, %v1828_v1  ;;  %v5672_v48 = vsel %vm5629_vm5, %v5669_v56, %v5671_v18  ;;  %v1831_v41 = vor.u32 %v14512_v24, %v1827_v32  ;;  %v14526_v51 = vshrl.u32 %v14497_v3, 16 }
 0x189   : > { %18690 = vst [vmem:[#allocation158_spill] sm:$0xff] %v14515_v11  ;;  %v14517_v9 = vpack.c.bf16 %v10226_v13, %v10225_v23  ;;  %v820_v46 = vpop.permute.xlu1 %819  ;;  %v1835_v1 = vrot.slane %v14515_v11, 1  ;;  %v5674_v56 = vsel %vm5629_vm5, %v5671_v18, %v5673_v12 }
 0x18a   : > { %vm1025_vm6 = vcmp.eq.s32.totalorder %v820_v46, %v13269_v27  ;;  %v816_v8 = vpop.permute.xlu0 %815  ;;  %18692 = vst [vmem:[#allocation160_spill] sm:$0xff] %v14526_v51 }
 0x18b   : > { %18691 = vst [vmem:[#allocation159_spill] sm:$0xff] %v14517_v9  ;;  %v10228_v43 = vsel %vm1025_vm6, 1.0, %v18575_v25  ;;  %vm1024_vm10 = vcmp.eq.s32.totalorder %v816_v8, %v13269_v27  ;;  %v14529_v13 = vshll.u32 %v14517_v9, 16  ;;  %v1836_v32 = vsel %vm1392_vm7, %v1831_v41, %v1835_v1 }
 0x18c   : > { %11751 = vmatmul.mubr.msk.bf16.gmra.mrb[36].mxu0 %vm1945_vm8, %v5672_v48  ;;  %v10227_v23 = vsel %vm1024_vm10, 1.0, %v18575_v25  ;;  %11295 = vmatmul.mubr.msk.bf16.gmra.mrb[100].mxu1 %vm1945_vm8, %v1836_v32  ;;  %v1839_v11 = vor.u32 %v14526_v51, %v1835_v1  ;;  %v14550_v1 = vshrl.u32 %v14517_v9, 16 }
 0x18d   : > { %18693 = vst [vmem:[#allocation161_spill] sm:$0xff] %v14529_v13  ;;  %v14535_v46 = vpack.c.bf16 %v10228_v43, %v10227_v23  ;;  %11754 = vmatprep.mubr.msk.bf16.mxu0 %vm1945_vm8, %v5674_v56  ;;  %v828_v8 = vpop.permute.xlu1 %827  ;;  %v1843_v24 = vrot.slane %v14529_v13, 1  ;;  %v5677_v23 = vrot.slane %v13826_v34, 2  ;;  %v5676_v13 = vsel %vm5629_vm5, %v5673_v12, %v5675_v57 }
 0x18e   : > { %vm1027_vm11 = vcmp.eq.s32.totalorder %v828_v8, %v13269_v27  ;;  %v824_v48 = vpop.permute.xlu0 %823  ;;  %18695 = vst [vmem:[#allocation163_spill] sm:$0xff] %v14550_v1 }
 0x18f   : > { %18694 = vst [vmem:[#allocation162_spill] sm:$0xff] %v14535_v46  ;;  %v10230_v18 = vsel %vm1027_vm11, 1.0, %v18575_v25  ;;  %vm1026_vm12 = vcmp.eq.s32.totalorder %v824_v48, %v13269_v27  ;;  %v1844_v43 = vsel %vm1392_vm7, %v1839_v11, %v1843_v24  ;;  %v14553_v56 = vshll.u32 %v14535_v46, 16 }
 0x190   : > { %v10229_v41 = vsel %vm1026_vm12, 1.0, %v18575_v25  ;;  %11298 = vmatprep.mubr.msk.bf16.mxu1 %vm1945_vm8, %v1844_v43  ;;  %v1847_v11 = vor.u32 %v14550_v1, %v1843_v24  ;;  %v14563_v43 = vshrl.u32 %v14535_v46, 16  ;;  %v5678_v12 = vsel %vm5629_vm5, %v5675_v57, %v5677_v23 }
 0x191   : > { %18696 = vst [vmem:[#allocation164_spill] sm:$0xff] %v14553_v56  ;;  %v14555_v32 = vpack.c.bf16 %v10230_v18, %v10229_v41  ;;  %v842_v8 = vpop.permute.xlu1 %841  ;;  %v1851_v51 = vrot.slane %v14553_v56, 1 }
 0x192   : > { %v835_v48 = vpop.permute.xlu0 %834  ;;  %vm1029_vm13 = vcmp.eq.s32.totalorder %v842_v8, %v13269_v27  ;;  %18698 = vst [vmem:[#allocation166_spill] sm:$0xff] %v14563_v43 }
 0x193   : > { %18697 = vst [vmem:[#allocation165_spill] sm:$0xff] %v14555_v32  ;;  %vm1028_vm14 = vcmp.eq.s32.totalorder %v835_v48, %v13269_v27  ;;  %v14566_v34 = vshll.u32 %v14555_v32, 16  ;;  %v1852_v24 = vsel %vm1392_vm7, %v1847_v11, %v1851_v51  ;;  %v1855_v48 = vor.u32 %v14563_v43, %v1851_v51 }
 0x194   : > { %11755 = vmatmul.mubr.msk.bf16.gmra.mrb[40].mxu0 %vm1945_vm8, %v5676_v13  ;;  %v10231_v18 = vsel %vm1028_vm14, 1.0, %v18575_v25  ;;  %11299 = vmatmul.mubr.msk.bf16.gmra.mrb[104].mxu1 %vm1945_vm8, %v1852_v24  ;;  %v10232_v1 = vsel %vm1029_vm13, 1.0, %v18575_v25  ;;  %v5679_v11 = vrot.slane %v13846_v49, 2  ;;  %v14587_v51 = vshrl.u32 %v14555_v32, 16 }
 0x195   : > { %18699 = vst [vmem:[#allocation167_spill] sm:$0xff] %v14566_v34  ;;  %v14572_v41 = vpack.c.bf16 %v10231_v18, %v10231_v18  ;;  %11758 = vmatprep.mubr.msk.bf16.mxu0 %vm1945_vm8, %v5678_v12  ;;  %v850_v8 = vpop.permute.xlu1 %849  ;;  %v1859_v56 = vrot.slane %v14566_v34, 1  ;;  %v5682_v12 = vrot.slane %v13889_v44, 2  ;;  %v5681_v43 = vrot.slane %v13867_v17, 2 }
 0x196   : > { %v846_v13 = vpop.permute.xlu0 %845  ;;  %vm1031_vm15 = vcmp.eq.s32.totalorder %v850_v8, %v13269_v27  ;;  %18701 = vst [vmem:[#allocation169_spill] sm:$0xff] %v14587_v51  ;;  %v5680_v44 = vsel %vm5629_vm5, %v5677_v23, %v5679_v11 }
 0x197   : > { %18700 = vst [vmem:[#allocation168_spill] sm:$0xff] %v14572_v41  ;;  %vm1030_vm0 = vcmp.eq.s32.totalorder %v846_v13, %v13269_v27  ;;  %v1860_v57 = vsel %vm1392_vm7, %v1855_v48, %v1859_v56  ;;  %v14590_v24 = vshll.u32 %v14572_v41, 16  ;;  %v10234_v13 = vsel %vm1031_vm15, 1.0, %v18575_v25 }
 0x198   : > { %v10233_v18 = vsel %vm1030_vm0, 1.0, %v18575_v25  ;;  %11302 = vmatprep.mubr.msk.bf16.mxu1 %vm1945_vm8, %v1860_v57  ;;  %v1863_v49 = vor.u32 %v14587_v51, %v1859_v56 }
 0x199   : > { %18702 = vst [vmem:[#allocation170_spill] sm:$0xff] %v14590_v24  ;;  %v14592_v34 = vpack.c.bf16 %v10233_v18, %v10232_v1  ;;  %v858_v8 = vpop.permute.xlu1 %857  ;;  %v1867_v57 = vrot.slane %v14590_v24, 1  ;;  %v5683_v18 = vsel %vm5629_vm5, %v5681_v43, %v5682_v12 }
 0x19a   : > { %v854_v48 = vpop.permute.xlu0 %853  ;;  %vm1033_vm3 = vcmp.eq.s32.totalorder %v858_v8, %v13269_v27 }
 0x19b   : > { %18703 = vst [vmem:[#allocation171_spill] sm:$0xff] %v14592_v34  ;;  %vm1032_vm4 = vcmp.eq.s32.totalorder %v854_v48, %v13269_v27  ;;  %v14602_v5 = vshll.u32 %v14592_v34, 16  ;;  %v1868_v17 = vsel %vm1392_vm7, %v1863_v49, %v1867_v57  ;;  %v10236_v8 = vsel %vm1033_vm3, 1.0, %v18575_v25 }
 0x19c   : > { %11759 = vmatmul.mubr.msk.bf16.gmra.mrb[44].mxu0 %vm1945_vm8, %v5680_v44  ;;  %v10235_v1 = vsel %vm1032_vm4, 1.0, %v18575_v25  ;;  %11303 = vmatmul.mubr.msk.bf16.gmra.mrb[108].mxu1 %vm1945_vm8, %v1868_v17  ;;  %v5684_v44 = vrot.slane %v13914_v7, 2  ;;  %v14618_v49 = vshrl.u32 %v14592_v34, 16 }
 0x19d   : > { %18704 = vst [vmem:[#allocation172_spill] sm:$0xff] %v14602_v5  ;;  %v14608_v56 = vpack.c.bf16 %v10235_v1, %v10234_v13  ;;  %11762 = vmatprep.mubr.msk.bf16.mxu0 %vm1945_vm8, %v5683_v18  ;;  %v866_v23 = vpop.permute.xlu1 %865  ;;  %v1874_v11 = vrot.slane %v14602_v5, 1  ;;  %v5686_v13 = vrot.slane %v13936_v19, 2 }
 0x19e   : > { %v862_v48 = vpop.permute.xlu0 %861  ;;  %vm1035_vm6 = vcmp.eq.s32.totalorder %v866_v23, %v13269_v27  ;;  %18706 = vst [vmem:[#allocation174_spill] sm:$0xff] %v14618_v49  ;;  %v5685_v24 = vsel %vm5629_vm5, %v5682_v12, %v5684_v44 }
 0x19f   : > { %18705 = vst [vmem:[#allocation173_spill] sm:$0xff] %v14608_v56  ;;  %vm1034_vm10 = vcmp.eq.s32.totalorder %v862_v48, %v13269_v27  ;;  %v14621_v43 = vshll.u32 %v14608_v56, 16  ;;  %v1875_v18 = vor.u32 %v1874_v11, %v14618_v49  ;;  %v10238_v23 = vsel %vm1035_vm6, 1.0, %v18575_v25 }
 0x1a0   : > { %v10237_v17 = vsel %vm1034_vm10, 1.0, %v18575_v25  ;;  %v14639_v11 = vshrl.u32 %v14608_v56, 16 }
 0x1a1   : > { %18707 = vst [vmem:[#allocation175_spill] sm:$0xff] %v14621_v43  ;;  %v14625_v57 = vpack.c.bf16 %v10237_v17, %v10236_v8  ;;  %v874_v1 = vpop.permute.xlu1 %873  ;;  %v1879_v5 = vrot.slane %v14621_v43, 1  ;;  %v5687_v17 = vsel %vm5629_vm5, %v5684_v44, %v5686_v13 }
 0x1a2   : > { %v870_v48 = vpop.permute.xlu0 %869  ;;  %vm1037_vm11 = vcmp.eq.s32.totalorder %v874_v1, %v13269_v27  ;;  %18709 = vst [vmem:[#allocation177_spill] sm:$0xff] %v14639_v11 }
 0x1a3   : > { %18708 = vst [vmem:[#allocation176_spill] sm:$0xff] %v14625_v57  ;;  %vm1036_vm12 = vcmp.eq.s32.totalorder %v870_v48, %v13269_v27  ;;  %v1880_v51 = vsel %vm1392_vm7, %v1875_v18, %v1879_v5  ;;  %v14642_v49 = vshll.u32 %v14625_v57, 16  ;;  %v10240_v18 = vsel %vm1037_vm11, 1.0, %v18575_v25 }
 0x1a4   : > { %11763 = vmatmul.mubr.msk.bf16.gmra.mrb[48].mxu0 %vm1945_vm8, %v5685_v24  ;;  %v10239_v8 = vsel %vm1036_vm12, 1.0, %v18575_v25  ;;  %11306 = vmatprep.mubr.msk.bf16.mxu1 %vm1945_vm8, %v1880_v51  ;;  %v1883_v48 = vor.u32 %v14639_v11, %v1879_v5  ;;  %v5688_v51 = vrot.slane %v13966_v52, 2  ;;  %v14654_v43 = vshrl.u32 %v14625_v57, 16 }
 0x1a5   : > { %18710 = vst [vmem:[#allocation178_spill] sm:$0xff] %v14642_v49  ;;  %v14644_v1 = vpack.c.bf16 %v10239_v8, %v10238_v23  ;;  %11766 = vmatprep.mubr.msk.bf16.mxu0 %vm1945_vm8, %v5687_v17  ;;  %v882_v12 = vpop.permute.xlu1 %881  ;;  %v1887_v44 = vrot.slane %v14642_v49, 1  ;;  %v5690_v5 = vrot.slane %v13987_v2, 2  ;;  %v18721_v2 = vld [vmem:[#allocation100_spill] sm:$0xff]  ;;  %vm9395_vm11 = vcmask (!%p10718_p1), 1045509  }
 0x1a6   : > { %v878_v24 = vpop.permute.xlu0 %877  ;;  %vm1039_vm13 = vcmp.eq.s32.totalorder %v882_v12, %v13269_v27  ;;  %18712 = vst [vmem:[#allocation180_spill] sm:$0xff] %v14654_v43  ;;  %v5689_v7 = vsel %vm5629_vm5, %v5686_v13, %v5688_v51  ;;  %vm9397_vm12 = vcmask (!%p10718_p1), 1046534  }
 0x1a7   : > { %18711 = vst [vmem:[#allocation179_spill] sm:$0xff] %v14644_v1  ;;  %vm1038_vm14 = vcmp.eq.s32.totalorder %v878_v24, %v13269_v27  ;;  %v14657_v23 = vshll.u32 %v14644_v1, 16  ;;  %v1888_v17 = vsel %vm1392_vm7, %v1883_v48, %v1887_v44  ;;  %v1891_v12 = vor.u32 %v14654_v43, %v1887_v44 }
 0x1a8   : > { %v10241_v8 = vsel %vm1038_vm14, 1.0, %v18575_v25  ;;  %11307 = vmatmul.mubr.msk.bf16.gmra.mrb[112].mxu1 %vm1945_vm8, %v1888_v17  ;;  %v10242_v52 = vsel %vm1039_vm13, 1.0, %v18575_v25  ;;  %v14677_v44 = vshrl.u32 %v14644_v1, 16  ;;  %vm9399_vm13 = vcmask (!%p10718_p1), 1047559  }
 0x1a9   : > { %18713 = vst [vmem:[#allocation181_spill] sm:$0xff] %v14657_v23  ;;  %v14662_v11 = vpack.c.bf16 %v10241_v8, %v10240_v18  ;;  %v890_v49 = vpop.permute.xlu1 %889  ;;  %v1895_v24 = vrot.slane %v14657_v23, 1  ;;  %v5691_v8 = vsel %vm5629_vm5, %v5688_v51, %v5690_v5  ;;  %v18718_v23 = vld [vmem:[#allocation97_spill] sm:$0xff] }
 0x1aa   : > { %v886_v19 = vpop.permute.xlu0 %885  ;;  %vm1041_vm15 = vcmp.eq.s32.totalorder %v890_v49, %v13269_v27  ;;  %18715 = vst [vmem:[#allocation183_spill] sm:$0xff] %v14677_v44 }
 0x1ab   : > { %18714 = vst [vmem:[#allocation182_spill] sm:$0xff] %v14662_v11  ;;  %vm1040_vm0 = vcmp.eq.s32.totalorder %v886_v19, %v13269_v27  ;;  %v1896_v48 = vsel %vm1392_vm7, %v1891_v12, %v1895_v24  ;;  %v14680_v17 = vshll.u32 %v14662_v11, 16  ;;  %v10244_v13 = vsel %vm1041_vm15, 1.0, %v18575_v25 }
 0x1ac   : > { %11767 = vmatmul.mubr.msk.bf16.gmra.mrb[52].mxu0 %vm1945_vm8, %v5689_v7  ;;  %v10243_v18 = vsel %vm1040_vm0, 1.0, %v18575_v25  ;;  %11310 = vmatprep.mubr.msk.bf16.mxu1 %vm1945_vm8, %v1896_v48  ;;  %v1899_v12 = vor.u32 %v14677_v44, %v1895_v24  ;;  %v5692_v48 = vrot.slane %v18718_v23, 2  ;;  %v14692_v43 = vshrl.u32 %v14662_v11, 16 }
 0x1ad   : > { %18716 = vst [vmem:[#allocation184_spill] sm:$0xff] %v14680_v17  ;;  %v14682_v49 = vpack.c.bf16 %v10243_v18, %v10242_v52  ;;  %11770 = vmatprep.mubr.msk.bf16.mxu0 %vm1945_vm8, %v5691_v8  ;;  %v898_v19 = vpop.permute.xlu1 %897  ;;  %v1903_v51 = vrot.slane %v14680_v17, 1  ;;  %v5694_v24 = vrot.slane %v18721_v2, 2 }
 0x1ae   : > { %v894_v7 = vpop.permute.xlu0 %893  ;;  %vm1043_vm3 = vcmp.eq.s32.totalorder %v898_v19, %v13269_v27  ;;  %18719 = vst [vmem:[#allocation186_spill] sm:$0xff] %v14692_v43 }
 0x1af   : > { %18717 = vst [vmem:[#allocation185_spill] sm:$0xff] %v14682_v49  ;;  %vm1042_vm4 = vcmp.eq.s32.totalorder %v894_v7, %v13269_v27  ;;  %v14695_v52 = vshll.u32 %v14682_v49, 16  ;;  %v1904_v8 = vsel %vm1392_vm7, %v1899_v12, %v1903_v51  ;;  %v1907_v19 = vor.u32 %v14692_v43, %v1903_v51  ;;  %v18739_v43 = vld [vmem:[#allocation48_spill] sm:$0xff] }
 0x1b0   : > { %v10245_v18 = vsel %vm1042_vm4, 1.0, %v18575_v25  ;;  %11311 = vmatmul.mubr.msk.bf16.gmra.mrb[116].mxu1 %vm1945_vm8, %v1904_v8  ;;  %v10246_v23 = vsel %vm1043_vm3, 1.0, %v18575_v25  ;;  %v5693_v12 = vsel %vm5629_vm5, %v5690_v5, %v5692_v48  ;;  %v5695_v51 = vsel %vm5629_vm5, %v5692_v48, %v5694_v24 }
 0x1b1   : > { %18720 = vst [vmem:[#allocation187_spill] sm:$0xff] %v14695_v52  ;;  %v14700_v44 = vpack.c.bf16 %v10245_v18, %v10244_v13  ;;  %v909_v17 = vpop.permute.xlu1 %908  ;;  %v1911_v7 = vrot.slane %v14695_v52, 1  ;;  %v14716_v8 = vshrl.u32 %v14682_v49, 16  ;;  %v5696_v5 = vrot.slane %v14035_v39, 2 }
 0x1b2   : > { %vm1045_vm6 = vcmp.eq.s32.totalorder %v909_v17, %v13269_v27  ;;  %v902_v11 = vpop.permute.xlu0 %901 }
 0x1b3   : > { %18722 = vst [vmem:[#allocation100_spill] sm:$0xff] %v14700_v44  ;;  %v10248_v1 = vsel %vm1045_vm6, 1.0, %v18575_v25  ;;  %vm1044_vm10 = vcmp.eq.s32.totalorder %v902_v11, %v13269_v27  ;;  %v1912_v13 = vsel %vm1392_vm7, %v1907_v19, %v1911_v7  ;;  %18723 = vst [vmem:[#allocation188_spill] sm:$0xff] %v14716_v8  ;;  %v14719_v17 = vshll.u32 %v14700_v44, 16 }
 0x1b4   : > { %11771 = vmatmul.mubr.msk.bf16.gmra.mrb[56].mxu0 %vm1945_vm8, %v5693_v12  ;;  %v10247_v18 = vsel %vm1044_vm10, 1.0, %v18575_v25  ;;  %11314 = vmatprep.mubr.msk.bf16.mxu1 %vm1945_vm8, %v1912_v13  ;;  %v14724_v27 = vpack.c.bf16 %v10248_v1, %v10248_v1  ;;  %v1915_v11 = vor.u32 %v14716_v8, %v1911_v7  ;;  %v14730_v48 = vshrl.u32 %v14700_v44, 16 }
 0x1b5   : > { %18724 = vst [vmem:[#allocation189_spill] sm:$0xff] %v14719_v17  ;;  %v14721_v52 = vpack.c.bf16 %v10247_v18, %v10246_v23  ;;  %11774 = vmatprep.mubr.msk.bf16.mxu0 %vm1945_vm8, %v5695_v51  ;;  %v1919_v25 = vrot.slane %v14719_v17, 1  ;;  %v5699_v23 = vrot.slane %v14083_v6, 2  ;;  %v5698_v13 = vrot.slane %v14052_v33, 2 }
 0x1b6   : > { %18726 = vst [vmem:[#allocation191_spill] sm:$0xff] %v14724_v27  ;;  %18727 = vst [vmem:[#allocation192_spill] sm:$0xff] %v14730_v48  ;;  %v14745_v51 = vshll.u32 %v14724_v27, 16  ;;  %v5697_v17 = vsel %vm5629_vm5, %v5694_v24, %v5696_v5  ;;  %v5703_v24 = vrot.slane %v14135_v30, 2 }
 0x1b7   : > { %18725 = vst [vmem:[#allocation190_spill] sm:$0xff] %v14721_v52  ;;  %v14733_v19 = vshll.u32 %v14721_v52, 16  ;;  %v1920_v12 = vsel %vm1392_vm7, %v1915_v11, %v1919_v25  ;;  %v1923_v1 = vor.u32 %v14730_v48, %v1919_v25  ;;  %v14742_v18 = vshrl.u32 %v14721_v52, 16 }
 0x1b8   : > { %11315 = vmatmul.mubr.msk.bf16.gmra.mrb[120].mxu1 %vm1945_vm8, %v1920_v12  ;;  %18730 = vst [vmem:[#allocation195_spill] sm:$0xff] %v14745_v51  ;;  %v5700_v12 = vsel %vm5629_vm5, %v5698_v13, %v5699_v23  ;;  %v5701_v48 = vrot.slane %v14109_v31, 2  ;;  %v5709_v13 = vrot.slane %v14202_v45, 2 }
 0x1b9   : > { %18728 = vst [vmem:[#allocation193_spill] sm:$0xff] %v14733_v19  ;;  %v1927_v7 = vrot.slane %v14733_v19, 1  ;;  %18729 = vst [vmem:[#allocation194_spill] sm:$0xff] %v14742_v18  ;;  %v1935_v19 = vrot.slane %v14745_v51, 1  ;;  %v18738_v51 = vld [vmem:[#allocation45_spill] sm:$0xff] }
 0x1ba   : > { %v5704_v5 = vsel %vm5629_vm5, %v5701_v48, %v5703_v24 }
 0x1bb   : > { %v1928_v11 = vsel %vm1392_vm7, %v1923_v1, %v1927_v7  ;;  %v1931_v25 = vor.u32 %v14742_v18, %v1927_v7  ;;  %v12964_v1 = vld [vmem:[%s18084_s3 + $0x30] sm:$0x1f]   ;;  %v5732_v18 = vrot.slane %v14416_v15, 2 }
 0x1bc   : > { %11775 = vmatmul.mubr.msk.bf16.gmra.mrb[60].mxu0 %vm1945_vm8, %v5697_v17  ;;  %11318 = vmatprep.mubr.msk.bf16.mxu1 %vm1945_vm8, %v1928_v11  ;;  %v5702_v17 = vsel %vm5629_vm5, %v5699_v23, %v5701_v48  ;;  %v14770_v7 = vand.u32 %v12964_v1, %v13223_v10  ;;  %v18731_v23 = vld [vmem:[#allocation15_spill] sm:$0xff]  ;;  %v5711_v11 = vrot.slane %v14224_v54, 2 }
 0x1bd   : > { %11778 = vmatprep.mubr.msk.bf16.mxu0 %vm1945_vm8, %v5700_v12  ;;  %v1936_v8 = vsel %vm1392_vm7, %v1931_v25, %v1935_v19  ;;  %v5705_v19 = vrot.slane %v14155_v35, 2  ;;  %v5713_v25 = vrot.slane %v14247_v55, 2  ;;  %vm3443_vm7 = vcmask 1046528  }
 0x1be   : > { %11972 = vmatprep.subr.bf16.mxu0 %v14770_v7  ;;  %v5712_v12 = vsel %vm5629_vm5, %v5709_v13, %v5711_v11 }
 0x1bf   : > { %v5706_v48 = vsel %vm5629_vm5, %v5703_v24, %v5705_v19  ;;  %v5716_v24 = vrot.slane %v14282_v20, 2 }
 0x1c0   : > { %11319 = vmatmul.mubr.msk.bf16.gmra.mrb[124].mxu1 %vm1945_vm8, %v1936_v8  ;;  %v5707_v8 = vrot.slane %v14174_v29, 2 }
 0x1c1   : > { %11324 = vmatprep.mubr.msk.bf16.mxu1 %vm1945_vm8, %v13285_v38 }
 0x1c2   : > { %v5708_v10 = vsel %vm5629_vm5, %v5705_v19, %v5707_v8  ;;  %v5718_v19 = vrot.slane %v14300_v50, 2 }
 0x1c4   : > { %11779 = vmatmul.mubr.msk.bf16.gmra.mrb[64].mxu0 %vm1945_vm8, %v5702_v17  ;;  %v5715_v17 = vrot.slane %v14266_v53, 2 }
 0x1c5   : > { %11782 = vmatprep.mubr.msk.bf16.mxu0 %vm1945_vm8, %v5704_v5  ;;  %v5714_v5 = vsel %vm5629_vm5, %v5711_v11, %v5713_v25  ;;  %v5724_v11 = vrot.slane %v14357_v4, 2 }
 0x1c6   : > { %v5717_v1 = vsel %vm5629_vm5, %v5715_v17, %v5716_v24  ;;  %v5726_v17 = vrot.slane %v14375_v59, 2 }
 0x1c8   : > { %11325 = vmatmul.mubr.msk.bf16.vlgmr.msra.gmra.mrb[0].mxu1 %vm1945_vm8, %v13283_v37 }
 0x1c9   : > { %11453 = vmatpush3.bf16.msra.mxu1 %v14200_v22  ;;  %11328 = vmatprep.mubr.msk.bf16.mxu1 %vm1945_vm8, %v13305_v47  ;;  %v5710_v22 = vsel %vm5629_vm5, %v5707_v8, %v5709_v13  ;;  %v5720_v8 = vrot.slane %v14319_v16, 2  ;;  %v5722_v13 = vrot.slane %v14337_v28, 2 }
 0x1ca   : > { %12112 = vmatprep.subr.bf16.mxu1 %v18731_v23 }
 0x1cb   : > { %v5723_v25 = vsel %vm5629_vm5, %v5720_v8, %v5722_v13 }
 0x1cc   : > { %11783 = vmatmul.mubr.msk.bf16.gmra.mrb[68].mxu0 %vm1945_vm8, %v5706_v48  ;;  %v5719_v48 = vsel %vm5629_vm5, %v5716_v24, %v5718_v19  ;;  %v5725_v24 = vsel %vm5629_vm5, %v5722_v13, %v5724_v11 }
 0x1cd   : > { %11786 = vmatprep.mubr.msk.bf16.mxu0 %vm1945_vm8, %v5708_v10  ;;  %v5721_v10 = vsel %vm5629_vm5, %v5718_v19, %v5720_v8  ;;  %v18735_v19 = vld [vmem:[#allocation40_spill] sm:$0xff] }
 0x1d0   : > { %11329 = vmatmul.mubr.msk.bf16.gmra.mrb[4].mxu1 %vm1945_vm8, %v13324_v63 }
 0x1d1   : > { %11332 = vmatprep.mubr.msk.bf16.mxu1 %vm1945_vm8, %v13353_v21 }
 0x1d4   : > { %11787 = vmatmul.mubr.msk.bf16.gmra.mrb[72].mxu0 %vm1945_vm8, %v5710_v22  ;;  %v18732_v22 = vld [vmem:[#allocation30_spill] sm:$0xff] }
 0x1d5   : > { %11790 = vmatprep.mubr.msk.bf16.mxu0 %vm1945_vm8, %v5712_v12  ;;  %v18733_v12 = vld [vmem:[#allocation35_spill] sm:$0xff] }
 0x1d8   : > { %11333 = vmatmul.mubr.msk.bf16.gmra.mrb[8].mxu1 %vm1945_vm8, %v13377_v40 }
 0x1d9   : > { %11336 = vmatprep.mubr.msk.bf16.mxu1 %vm1945_vm8, %v13396_v58 }
 0x1dc   : > { %11791 = vmatmul.mubr.msk.bf16.gmra.mrb[76].mxu0 %vm1945_vm8, %v5714_v5  ;;  %v5728_v5 = vrot.slane %v14396_v60, 2 }
 0x1dd   : > { %11794 = vmatprep.mubr.msk.bf16.mxu0 %vm1945_vm8, %v5717_v1  ;;  %v18734_v1 = vld [vmem:[#allocation36_spill] sm:$0xff] }
 0x1de   : > { %v5729_v8 = vsel %vm5629_vm5, %v5726_v17, %v5728_v5 }
 0x1e0   : > { %11337 = vmatmul.mubr.msk.bf16.gmra.mrb[12].mxu1 %vm1945_vm8, %v13417_v14 }
 0x1e1   : > { %11340 = vmatprep.mubr.msk.bf16.mxu1 %vm1945_vm8, %v13464_v0 }
 0x1e4   : > { %11795 = vmatmul.mubr.msk.bf16.gmra.mrb[80].mxu0 %vm1945_vm8, %v5719_v48  ;;  %v5727_v48 = vsel %vm5629_vm5, %v5724_v11, %v5726_v17 }
 0x1e5   : > { %11798 = vmatprep.mubr.msk.bf16.mxu0 %vm1945_vm8, %v5721_v10  ;;  %v18736_v10 = vld [vmem:[#allocation143_spill] sm:$0xff] }
 0x1e6   : > { %v5730_v13 = vrot.slane %v18736_v10, 2  ;;  %v18756_v10 = vld [vmem:[#allocation16_spill] sm:$0xff] }
 0x1e8   : > { %11341 = vmatmul.mubr.msk.bf16.gmra.mrb[16].mxu1 %vm1945_vm8, %v18732_v22  ;;  %v5731_v11 = vsel %vm5629_vm5, %v5728_v5, %v5730_v13  ;;  %v5741_v13 = vrot.slane %v14517_v9, 2 }
 0x1e9   : > { %11344 = vmatprep.mubr.msk.bf16.mxu1 %vm1945_vm8, %v18733_v12 }
 0x1ec   : > { %11799 = vmatmul.mubr.msk.bf16.gmra.mrb[84].mxu0 %vm1945_vm8, %v5723_v25  ;;  %v5733_v25 = vrot.slane %v14441_v26, 2 }
 0x1ed   : > { %11802 = vmatprep.mubr.msk.bf16.mxu0 %vm1945_vm8, %v5725_v24  ;;  %v18737_v24 = vld [vmem:[#allocation43_spill] sm:$0xff] }
 0x1ee   : > { %v5734_v17 = vsel %vm5629_vm5, %v5732_v18, %v5733_v25  ;;  %v5739_v18 = vrot.slane %v14497_v3, 2 }
 0x1f0   : > { %11345 = vmatmul.mubr.msk.bf16.gmra.mrb[20].mxu1 %vm1945_vm8, %v18734_v1 }
 0x1f1   : > { %11348 = vmatprep.mubr.msk.bf16.mxu1 %vm1945_vm8, %v18735_v19  ;;  %v18759_v19 = vld [vmem:[#allocation124_spill] sm:$0xff] }
 0x1f4   : > { %11803 = vmatmul.mubr.msk.bf16.gmra.mrb[88].mxu0 %vm1945_vm8, %v5727_v48  ;;  %v5735_v48 = vrot.slane %v14459_v61, 2 }
 0x1f5   : > { %11806 = vmatprep.mubr.msk.bf16.mxu0 %vm1945_vm8, %v5729_v8  ;;  %v5737_v8 = vrot.slane %v14479_v36, 2 }
 0x1f7   : > { %v5738_v5 = vsel %vm5629_vm5, %v5735_v48, %v5737_v8 }
 0x1f8   : > { %11349 = vmatmul.mubr.msk.bf16.gmra.mrb[24].mxu1 %vm1945_vm8, %v18737_v24  ;;  %v18758_v24 = vld [vmem:[#allocation18_spill] sm:$0xff] }
 0x1f9   : > { %11352 = vmatprep.mubr.msk.bf16.mxu1 %vm1945_vm8, %v18738_v51  ;;  %v5736_v51 = vsel %vm5629_vm5, %v5733_v25, %v5735_v48  ;;  %v5743_v25 = vrot.slane %v14535_v46, 2  ;;  %v5745_v48 = vrot.slane %v14555_v32, 2 }
 0x1fc   : > { %11807 = vmatmul.mubr.msk.bf16.gmra.mrb[92].mxu0 %vm1945_vm8, %v5731_v11  ;;  %v18740_v11 = vld [vmem:[#allocation56_spill] sm:$0xff] }
 0x1fd   : > { %11810 = vmatprep.mubr.msk.bf16.mxu0 %vm1945_vm8, %v5734_v17  ;;  %v5740_v17 = vsel %vm5629_vm5, %v5737_v8, %v5739_v18  ;;  %v5746_v8 = vsel %vm5629_vm5, %v5743_v25, %v5745_v48 }
 0x200   : > { %11353 = vmatmul.mubr.msk.bf16.gmra.mrb[28].mxu1 %vm1945_vm8, %v18739_v43  ;;  %v18750_v43 = vld [vmem:[#allocation87_spill] sm:$0xff] }
 0x201   : > { %11356 = vmatprep.mubr.msk.bf16.mxu1 %vm1945_vm8, %v13652_v62  ;;  %v18742_v62 = vld [vmem:[#allocation66_spill] sm:$0xff] }
 0x204   : > { %11811 = vmatmul.mubr.msk.bf16.gmra.mrb[96].mxu0 %vm1945_vm8, %v5736_v51  ;;  %v5742_v51 = vsel %vm5629_vm5, %v5739_v18, %v5741_v13  ;;  %v5747_v18 = vrot.slane %v14572_v41, 2 }
 0x205   : > { %11814 = vmatprep.mubr.msk.bf16.mxu0 %vm1945_vm8, %v5738_v5  ;;  %v18741_v5 = vld [vmem:[#allocation62_spill] sm:$0xff] }
 0x208   : > { %11357 = vmatmul.mubr.msk.bf16.gmra.mrb[32].mxu1 %vm1945_vm8, %v18740_v11  ;;  %v18744_v11 = vld [vmem:[#allocation72_spill] sm:$0xff] }
 0x209   : > { %11360 = vmatprep.mubr.msk.bf16.mxu1 %vm1945_vm8, %v13711_v42  ;;  %v5744_v42 = vsel %vm5629_vm5, %v5741_v13, %v5743_v25  ;;  %v5748_v13 = vsel %vm5629_vm5, %v5745_v48, %v5747_v18  ;;  %v5752_v25 = vrot.slane %v14625_v57, 2 }
 0x20c   : > { %11815 = vmatmul.mubr.msk.bf16.gmra.mrb[100].mxu0 %vm1945_vm8, %v5740_v17  ;;  %v5750_v17 = vrot.slane %v14608_v56, 2 }
 0x20d   : > { %11818 = vmatprep.mubr.msk.bf16.mxu0 %vm1945_vm8, %v5742_v51  ;;  %v18743_v51 = vld [vmem:[#allocation69_spill] sm:$0xff] }
 0x210   : > { %11361 = vmatmul.mubr.msk.bf16.gmra.mrb[36].mxu1 %vm1945_vm8, %v18741_v5  ;;  %v18746_v5 = vld [vmem:[#allocation74_spill] sm:$0xff] }
 0x211   : > { %11364 = vmatprep.mubr.msk.bf16.mxu1 %vm1945_vm8, %v18742_v62  ;;  %v5749_v62 = vrot.slane %v14592_v34, 2 }
 0x214   : > { %11819 = vmatmul.mubr.msk.bf16.gmra.mrb[104].mxu0 %vm1945_vm8, %v5744_v42  ;;  %v5751_v42 = vsel %vm5629_vm5, %v5749_v62, %v5750_v17  ;;  %v18748_v62 = vld [vmem:[#allocation182_spill] sm:$0xff] }
 0x215   : > { %11822 = vmatprep.mubr.msk.bf16.mxu0 %vm1945_vm8, %v5746_v8  ;;  %v18745_v8 = vld [vmem:[#allocation179_spill] sm:$0xff]  ;;  %v5756_v18 = vrot.slane %v18748_v62, 2 }
 0x216   : > { %v5754_v41 = vrot.slane %v18745_v8, 2 }
 0x218   : > { %11365 = vmatmul.mubr.msk.bf16.gmra.mrb[40].mxu1 %vm1945_vm8, %v18743_v51  ;;  %v18747_v51 = vld [vmem:[#allocation80_spill] sm:$0xff]  ;;  %v5755_v48 = vsel %vm5629_vm5, %v5752_v25, %v5754_v41 }
 0x219   : > { %11368 = vmatprep.mubr.msk.bf16.mxu1 %vm1945_vm8, %v18744_v11  ;;  %v5753_v11 = vsel %vm5629_vm5, %v5750_v17, %v5752_v25  ;;  %v5760_v17 = vrot.slane %v14700_v44, 2  ;;  %v5762_v25 = vrot.slane %v14721_v52, 2 }
 0x21c   : > { %11823 = vmatmul.mubr.msk.bf16.gmra.mrb[108].mxu0 %vm1945_vm8, %v5748_v13  ;;  %v5758_v13 = vrot.slane %v14682_v49, 2 }
 0x21d   : > { %11826 = vmatprep.mubr.msk.bf16.mxu0 %vm1945_vm8, %v5751_v42  ;;  %v18749_v42 = vld [vmem:[#allocation82_spill] sm:$0xff] }
 0x220   : > { %11369 = vmatmul.mubr.msk.bf16.gmra.mrb[44].mxu1 %vm1945_vm8, %v18746_v5  ;;  %v18752_v5 = vld [vmem:[#allocation92_spill] sm:$0xff] }
 0x221   : > { %11372 = vmatprep.mubr.msk.bf16.mxu1 %vm1945_vm8, %v18747_v51  ;;  %v5757_v51 = vsel %vm5629_vm5, %v5754_v41, %v5756_v18  ;;  %v5763_v41 = vsel %vm5629_vm5, %v5760_v17, %v5762_v25 }
 0x224   : > { %11827 = vmatmul.mubr.msk.bf16.gmra.mrb[112].mxu0 %vm1945_vm8, %v5753_v11  ;;  %v5759_v11 = vsel %vm5629_vm5, %v5756_v18, %v5758_v13  ;;  %v18753_v18 = vld [vmem:[#allocation95_spill] sm:$0xff] }
 0x225   : > { %11830 = vmatprep.mubr.msk.bf16.mxu0 %vm1945_vm8, %v5755_v48  ;;  %v18751_v48 = vld [vmem:[#allocation88_spill] sm:$0xff] }
 0x228   : > { %11373 = vmatmul.mubr.msk.bf16.gmra.mrb[48].mxu1 %vm1945_vm8, %v18749_v42  ;;  %v18755_v42 = vld [vmem:[#allocation17_spill] sm:$0xff] }
 0x229   : > { %11376 = vmatprep.mubr.msk.bf16.mxu1 %vm1945_vm8, %v18750_v43  ;;  %v5761_v43 = vsel %vm5629_vm5, %v5758_v13, %v5760_v17  ;;  %v6651_v13 = vrot.slane %v18756_v10, 3 }
 0x22c   : > { %11831 = vmatmul.mubr.msk.bf16.gmra.mrb[116].mxu0 %vm1945_vm8, %v5757_v51  ;;  %v5764_v51 = vrot.slane %v14724_v27, 2 }
 0x22d   : > { %11834 = vmatprep.mubr.msk.bf16.mxu0 %vm1945_vm8, %v5759_v11  ;;  %v18754_v11 = vld [vmem:[#allocation97_spill] sm:$0xff] }
 0x230   : > { %11377 = vmatmul.mubr.msk.bf16.gmra.mrb[52].mxu1 %vm1945_vm8, %v18751_v48  ;;  %v5765_v48 = vsel %vm5629_vm5, %v5762_v25, %v5764_v51  ;;  %v18761_v25 = vld [vmem:[#allocation21_spill] sm:$0xff]  ;;  %v18762_v51 = vld [vmem:[#allocation20_spill] sm:$0xff]  ;;  %vm9391_vm5 = vcmask (!%p10718_p1), 1043459  }
 0x231   : > { %11380 = vmatprep.mubr.msk.bf16.mxu1 %vm1945_vm8, %v18752_v5  ;;  %v6650_v5 = vrot.slane %v18755_v42, 2  ;;  %v18760_v42 = vld [vmem:[#allocation121_spill] sm:$0xff] }
 0x233   : > { %v6652_v27 = vor.u32 %v6651_v13, %v6650_v5  ;;  %v18764_v13 = vld [vmem:[#allocation22_spill] sm:$0xff] }
 0x234   : > { %11835 = vmatmul.mubr.msk.bf16.gmra.mrb[120].mxu0 %vm1945_vm8, %v5761_v43  ;;  %v18757_v43 = vld [vmem:[#allocation19_spill] sm:$0xff] }
 0x235   : > { %11838 = vmatprep.mubr.msk.bf16.mxu0 %vm1945_vm8, %v5763_v41  ;;  %v6654_v17 = vrot.slane %v18757_v43, 2  ;;  %v6655_v41 = vrot.slane %v18758_v24, 3  ;;  %v6653_v10 = vsel %vm6642_vm1, %v18760_v42, %v6652_v27  ;;  %v6659_v43 = vrot.slane %v18762_v51, 3 }
 0x238   : > { %11381 = vmatmul.mubr.msk.bf16.gmra.mrb[56].mxu1 %vm1945_vm8, %v18753_v18  ;;  %v6656_v18 = vor.u32 %v6655_v41, %v6654_v17  ;;  %v6663_v17 = vrot.slane %v18764_v13, 3 }
 0x239   : > { %11384 = vmatprep.mubr.msk.bf16.mxu1 %vm1945_vm8, %v18754_v11 }
 0x23a   : > { %v6657_v24 = vsel %vm6642_vm1, %v6652_v27, %v6656_v18 }
 0x23c   : > { %11839 = vmatmul.mubr.msk.bf16.gmra.mrb[124].mxu0 %vm1945_vm8, %v5765_v48  ;;  %v6658_v48 = vrot.slane %v18761_v25, 2  ;;  %v18766_v25 = vld [vmem:[#allocation24_spill] sm:$0xff] }
 0x23d   : > { %11844 = vmatprep.mubr.msk.bf16.mxu0 %vm1945_vm8, %v18759_v19  ;;  %v18763_v19 = vld [vmem:[#allocation23_spill] sm:$0xff]  ;;  %v6667_v51 = vrot.slane %v18766_v25, 3 }
 0x23e   : > { %v6662_v5 = vrot.slane %v18763_v19, 2  ;;  %v6660_v41 = vor.u32 %v6659_v43, %v6658_v48  ;;  %v18767_v19 = vld [vmem:[#allocation28_spill] sm:$0xff]  ;;  %v18768_v48 = vld [vmem:[#allocation27_spill] sm:$0xff] }
 0x23f   : > { %v6671_v43 = vrot.slane %v18768_v48, 3  ;;  %v18774_v48 = vld [vmem:[#allocation31_spill] sm:$0xff] }
 0x240   : > { %11385 = vmatmul.mubr.msk.bf16.gmra.mrb[60].mxu1 %vm1945_vm8, %v18721_v2  ;;  %v6661_v42 = vsel %vm6642_vm1, %v6656_v18, %v6660_v41 }
 0x241   : > { %11388 = vmatprep.mubr.msk.bf16.mxu1 %vm1945_vm8, %v14052_v33  ;;  %v6664_v33 = vor.u32 %v6663_v17, %v6662_v5  ;;  %v18769_v17 = vld [vmem:[#allocation26_spill] sm:$0xff] }
 0x244   : > { %11845 = vmatmul.mubr.msk.bf16.vlgmr.msra.gmra.mrb[0].mxu0 %vm1945_vm8, %v6653_v10  ;;  %v18765_v10 = vld [vmem:[#allocation25_spill] sm:$0xff] }
 0x245   : > { %11848 = vmatprep.mubr.msk.bf16.mxu0 %vm1945_vm8, %v6657_v24  ;;  %11973 = vmatpush3.bf16.msra.mxu0 %v14770_v7  ;;  %v6666_v27 = vrot.slane %v18765_v10, 2  ;;  %v6665_v24 = vsel %vm6642_vm1, %v6660_v41, %v6664_v33  ;;  %v6670_v7 = vrot.slane %v18767_v19, 2  ;;  %v18771_v41 = vld [vmem:[#allocation29_spill] sm:$0xff] }
 0x246   : > { %v6675_v25 = vrot.slane %v18771_v41, 3 }
 0x247   : > { %v6668_v5 = vor.u32 %v6667_v51, %v6666_v27  ;;  %v6672_v13 = vor.u32 %v6671_v43, %v6670_v7  ;;  %v18773_v51 = vld [vmem:[#allocation33_spill] sm:$0xff]  ;;  %v6678_v43 = vrot.slane %v18774_v48, 2 }
 0x248   : > { %11389 = vmatmul.mubr.msk.bf16.gmra.mrb[64].mxu1 %vm1945_vm8, %v14083_v6  ;;  %v6682_v7 = vrot.slane %v18773_v51, 3 }
 0x249   : > { %11392 = vmatprep.mubr.msk.bf16.mxu1 %vm1945_vm8, %v14109_v31  ;;  %v6669_v18 = vsel %vm6642_vm1, %v6664_v33, %v6668_v5  ;;  %v6673_v19 = vsel %vm6642_vm1, %v6668_v5, %v6672_v13 }
 0x24c   : > { %11849 = vmatmul.mubr.msk.bf16.gmra.mrb[4].mxu0 %vm1945_vm8, %v6661_v42  ;;  %v18770_v42 = vshrl.u32 %v18769_v17, 16 }
 0x24d   : > { %11852 = vmatprep.mubr.msk.bf16.mxu0 %vm1945_vm8, %v6665_v24  ;;  %v18772_v24 = vld [vmem:[#allocation34_spill] sm:$0xff] }
 0x24e   : > { %v6674_v10 = vrot.slane %v18770_v42, 2  ;;  %v6681_v27 = vrot.slane %v18772_v24, 2  ;;  %v18776_v42 = vld [vmem:[#allocation38_spill] sm:$0xff]  ;;  %v18777_v24 = vld [vmem:[#allocation37_spill] sm:$0xff] }
 0x24f   : > { %v6685_v41 = vrot.slane %v18776_v42, 2  ;;  %v6686_v51 = vrot.slane %v18777_v24, 3  ;;  %v18782_v42 = vld [vmem:[#allocation47_spill] sm:$0xff] }
 0x250   : > { %11393 = vmatmul.mubr.msk.bf16.gmra.mrb[68].mxu1 %vm1945_vm8, %v14135_v30  ;;  %v6676_v33 = vor.u32 %v6675_v25, %v6674_v10  ;;  %v6683_v31 = vor.u32 %v6682_v7, %v6681_v27  ;;  %v18779_v25 = vld [vmem:[#allocation39_spill] sm:$0xff]  ;;  %v6697_v24 = vrot.slane %v18782_v42, 2 }
 0x251   : > { %11396 = vmatprep.mubr.msk.bf16.mxu1 %vm1945_vm8, %v14155_v35  ;;  %v18775_v35 = vld [vmem:[#allocation32_spill] sm:$0xff]  ;;  %v6690_v27 = vrot.slane %v18779_v25, 3  ;;  %v6687_v7 = vor.u32 %v6686_v51, %v6685_v41  ;;  %v18783_v41 = vld [vmem:[#allocation46_spill] sm:$0xff] }
 0x252   : > { %v6679_v30 = vrot.slane %v18775_v35, 3  ;;  %v6677_v5 = vsel %vm6642_vm1, %v6672_v13, %v6676_v33  ;;  %v18778_v35 = vld [vmem:[#allocation41_spill] sm:$0xff]  ;;  %v18780_v13 = vld [vmem:[#allocation44_spill] sm:$0xff]  ;;  %v18781_v33 = vld [vmem:[#allocation42_spill] sm:$0xff]  ;;  %v6698_v51 = vrot.slane %v18783_v41, 3 }
 0x253   : > { %v6689_v10 = vrot.slane %v18778_v35, 2 }
 0x254   : > { %11853 = vmatmul.mubr.msk.bf16.gmra.mrb[8].mxu0 %vm1945_vm8, %v6669_v18  ;;  %v6680_v18 = vor.u32 %v6679_v30, %v6678_v43  ;;  %v6688_v30 = vsel %vm6642_vm1, %v6683_v31, %v6687_v7  ;;  %v6693_v43 = vrot.slane %v18780_v13, 2  ;;  %v6699_v35 = vor.u32 %v6698_v51, %v6697_v24  ;;  %v18786_v13 = vld [vmem:[#allocation54_spill] sm:$0xff] }
 0x255   : > { %11856 = vmatprep.mubr.msk.bf16.mxu0 %vm1945_vm8, %v6673_v19  ;;  %v6691_v48 = vor.u32 %v6690_v27, %v6689_v10  ;;  %v18784_v10 = vld [vmem:[#allocation51_spill] sm:$0xff]  ;;  %v18785_v27 = vld [vmem:[#allocation49_spill] sm:$0xff]  ;;  %v18788_v24 = vld [vmem:[#allocation50_spill] sm:$0xff] }
 0x256   : > { %v6684_v19 = vsel %vm6642_vm1, %v6680_v18, %v6683_v31  ;;  %v6694_v18 = vrot.slane %v18781_v33, 3  ;;  %v6701_v25 = vrot.slane %v18784_v10, 2  ;;  %v6705_v33 = vrot.slane %v18786_v13, 2  ;;  %v18793_v13 = vld [vmem:[#allocation57_spill] sm:$0xff] }
 0x257   : > { %v18789_v41 = vshrl.u32 %v18788_v24, 16 }
 0x258   : > { %11397 = vmatmul.mubr.msk.bf16.gmra.mrb[72].mxu1 %vm1945_vm8, %v14174_v29 }
 0x259   : > { %11400 = vmatprep.mubr.msk.bf16.mxu1 %vm1945_vm8, %v14202_v45  ;;  %v6709_v51 = vrot.slane %v18789_v41, 2  ;;  %v18795_v41 = vld [vmem:[#allocation64_spill] sm:$0xff] }
 0x25c   : > { %11857 = vmatmul.mubr.msk.bf16.gmra.mrb[12].mxu0 %vm1945_vm8, %v6677_v5  ;;  %v6692_v5 = vsel %vm6642_vm1, %v6687_v7, %v6691_v48  ;;  %v6702_v7 = vrot.slane %v18785_v27, 3  ;;  %v18791_v27 = vld [vmem:[#allocation60_spill] sm:$0xff] }
 0x25d   : > { %11860 = vmatprep.mubr.msk.bf16.mxu0 %vm1945_vm8, %v6684_v19  ;;  %v6695_v19 = vor.u32 %v6694_v18, %v6693_v43  ;;  %v18787_v43 = vld [vmem:[#allocation53_spill] sm:$0xff] }
 0x25e   : > { %v6706_v18 = vrot.slane %v18787_v43, 3  ;;  %v18794_v43 = vld [vmem:[#allocation58_spill] sm:$0xff] }
 0x25f   : > { %v6696_v31 = vsel %vm6642_vm1, %v6691_v48, %v6695_v19 }
 0x260   : > { %11401 = vmatmul.mubr.msk.bf16.gmra.mrb[76].mxu1 %vm1945_vm8, %v14224_v54  ;;  %v6707_v42 = vor.u32 %v6706_v18, %v6705_v33  ;;  %v6713_v33 = vrot.slane %v18793_v13, 2  ;;  %v6714_v18 = vrot.slane %v18794_v43, 3  ;;  %v18797_v13 = vld [vmem:[#allocation67_spill] sm:$0xff] }
 0x261   : > { %11404 = vmatprep.mubr.msk.bf16.mxu1 %vm1945_vm8, %v14266_v53 }
 0x264   : > { %11861 = vmatmul.mubr.msk.bf16.gmra.mrb[16].mxu0 %vm1945_vm8, %v6688_v30  ;;  %v6700_v30 = vsel %vm6642_vm1, %v6695_v19, %v6699_v35  ;;  %v18790_v19 = vld [vmem:[#allocation55_spill] sm:$0xff] }
 0x265   : > { %11864 = vmatprep.mubr.msk.bf16.mxu0 %vm1945_vm8, %v6692_v5  ;;  %v6703_v5 = vor.u32 %v6702_v7, %v6701_v25  ;;  %v6716_v25 = vrot.slane %v18791_v27, 2  ;;  %v18792_v7 = vld [vmem:[#allocation59_spill] sm:$0xff] }
 0x266   : > { %v18796_v27 = vld [vmem:[#allocation63_spill] sm:$0xff] }
 0x267   : > { %v6704_v48 = vsel %vm6642_vm1, %v6699_v35, %v6703_v5  ;;  %v6708_v10 = vsel %vm6642_vm1, %v6703_v5, %v6707_v42 }
 0x268   : > { %11405 = vmatmul.mubr.msk.bf16.gmra.mrb[80].mxu1 %vm1945_vm8, %v14282_v20 }
 0x269   : > { %11408 = vmatprep.mubr.msk.bf16.mxu1 %vm1945_vm8, %v14300_v50 }
 0x26c   : > { %11865 = vmatmul.mubr.msk.bf16.gmra.mrb[20].mxu0 %vm1945_vm8, %v6696_v31  ;;  %v6710_v31 = vrot.slane %v18790_v19, 3  ;;  %v6720_v19 = vrot.slane %v18795_v41, 2  ;;  %v18801_v41 = vld [vmem:[#allocation73_spill] sm:$0xff] }
 0x26d   : > { %11868 = vmatprep.mubr.msk.bf16.mxu0 %vm1945_vm8, %v6700_v30  ;;  %v6717_v30 = vrot.slane %v18792_v7, 3  ;;  %v6721_v7 = vrot.slane %v18796_v27, 3  ;;  %v6732_v27 = vrot.slane %v18801_v41, 2 }
 0x26e   : > { %v6711_v35 = vor.u32 %v6710_v31, %v6709_v51  ;;  %v6724_v51 = vrot.slane %v18797_v13, 2  ;;  %v18798_v31 = vld [vmem:[#allocation65_spill] sm:$0xff] }
 0x270   : > { %11409 = vmatmul.mubr.msk.bf16.gmra.mrb[84].mxu1 %vm1945_vm8, %v14319_v16  ;;  %v6712_v5 = vsel %vm6642_vm1, %v6707_v42, %v6711_v35  ;;  %v18800_v35 = vld [vmem:[#allocation68_spill] sm:$0xff] }
 0x271   : > { %11412 = vmatprep.mubr.msk.bf16.mxu1 %vm1945_vm8, %v14337_v28  ;;  %v6718_v28 = vor.u32 %v6717_v30, %v6716_v25  ;;  %v6725_v25 = vrot.slane %v18798_v31, 3  ;;  %v6722_v30 = vor.u32 %v6721_v7, %v6720_v19  ;;  %v18802_v19 = vld [vmem:[#allocation71_spill] sm:$0xff] }
 0x272   : > { %v6733_v7 = vrot.slane %v18802_v19, 3 }
 0x273   : > { %v6726_v43 = vor.u32 %v6725_v25, %v6724_v51  ;;  %v6723_v42 = vsel %vm6642_vm1, %v6718_v28, %v6722_v30  ;;  %v18803_v51 = vld [vmem:[#allocation76_spill] sm:$0xff]  ;;  %v18804_v25 = vld [vmem:[#allocation75_spill] sm:$0xff] }
 0x274   : > { %11869 = vmatmul.mubr.msk.bf16.gmra.mrb[24].mxu0 %vm1945_vm8, %v6704_v48  ;;  %v6715_v48 = vor.u32 %v6714_v18, %v6713_v33  ;;  %v18799_v33 = vld [vmem:[#allocation70_spill] sm:$0xff]  ;;  %v6734_v13 = vor.u32 %v6733_v7, %v6732_v27  ;;  %v6736_v31 = vrot.slane %v18803_v51, 2  ;;  %v18807_v27 = vld [vmem:[#allocation77_spill] sm:$0xff] }
 0x275   : > { %11872 = vmatprep.mubr.msk.bf16.mxu0 %vm1945_vm8, %v6708_v10  ;;  %v6728_v18 = vrot.slane %v18799_v33, 2  ;;  %v18805_v33 = vld [vmem:[#allocation79_spill] sm:$0xff]  ;;  %v18808_v19 = vshrl.u32 %v18807_v27, 16 }
 0x276   : > { %v6719_v10 = vsel %vm6642_vm1, %v6715_v48, %v6718_v28  ;;  %v6729_v48 = vrot.slane %v18800_v35, 3  ;;  %v6740_v35 = vrot.slane %v18805_v33, 2  ;;  %v18812_v33 = vld [vmem:[#allocation83_spill] sm:$0xff] }
 0x277   : > { %v6744_v7 = vrot.slane %v18808_v19, 2  ;;  %v18814_v19 = vld [vmem:[#allocation90_spill] sm:$0xff] }
 0x278   : > { %11413 = vmatmul.mubr.msk.bf16.gmra.mrb[88].mxu1 %vm1945_vm8, %v14357_v4 }
 0x279   : > { %11416 = vmatprep.mubr.msk.bf16.mxu1 %vm1945_vm8, %v14375_v59 }
 0x27c   : > { %11873 = vmatmul.mubr.msk.bf16.gmra.mrb[28].mxu0 %vm1945_vm8, %v6712_v5  ;;  %v6727_v5 = vsel %vm6642_vm1, %v6722_v30, %v6726_v43  ;;  %v6737_v30 = vrot.slane %v18804_v25, 3  ;;  %v18810_v25 = vld [vmem:[#allocation86_spill] sm:$0xff] }
 0x27d   : > { %11876 = vmatprep.mubr.msk.bf16.mxu0 %vm1945_vm8, %v6719_v10  ;;  %v6730_v10 = vor.u32 %v6729_v48, %v6728_v18  ;;  %v18806_v18 = vld [vmem:[#allocation78_spill] sm:$0xff] }
 0x27e   : > { %v6741_v48 = vrot.slane %v18806_v18, 3  ;;  %v18813_v18 = vld [vmem:[#allocation84_spill] sm:$0xff] }
 0x27f   : > { %v6731_v28 = vsel %vm6642_vm1, %v6726_v43, %v6730_v10 }
 0x280   : > { %11417 = vmatmul.mubr.msk.bf16.gmra.mrb[92].mxu1 %vm1945_vm8, %v14396_v60  ;;  %v6742_v41 = vor.u32 %v6741_v48, %v6740_v35  ;;  %v6748_v35 = vrot.slane %v18812_v33, 2  ;;  %v6749_v48 = vrot.slane %v18813_v18, 3  ;;  %v18816_v33 = vld [vmem:[#allocation93_spill] sm:$0xff] }
 0x281   : > { %11420 = vmatprep.mubr.msk.bf16.mxu1 %vm1945_vm8, %v14416_v15 }
 0x284   : > { %11877 = vmatmul.mubr.msk.bf16.gmra.mrb[32].mxu0 %vm1945_vm8, %v6723_v42  ;;  %v6735_v42 = vsel %vm6642_vm1, %v6730_v10, %v6734_v13  ;;  %v18809_v10 = vld [vmem:[#allocation81_spill] sm:$0xff] }
 0x285   : > { %11880 = vmatprep.mubr.msk.bf16.mxu0 %vm1945_vm8, %v6727_v5  ;;  %v6738_v5 = vor.u32 %v6737_v30, %v6736_v31  ;;  %v6751_v31 = vrot.slane %v18810_v25, 2  ;;  %v18811_v30 = vld [vmem:[#allocation85_spill] sm:$0xff] }
 0x286   : > { %v18815_v25 = vld [vmem:[#allocation89_spill] sm:$0xff] }
 0x287   : > { %v6739_v43 = vsel %vm6642_vm1, %v6734_v13, %v6738_v5  ;;  %v6743_v51 = vsel %vm6642_vm1, %v6738_v5, %v6742_v41 }
 0x288   : > { %11421 = vmatmul.mubr.msk.bf16.gmra.mrb[96].mxu1 %vm1945_vm8, %v14441_v26 }
 0x289   : > { %11424 = vmatprep.mubr.msk.bf16.mxu1 %vm1945_vm8, %v14459_v61 }
 0x28c   : > { %11881 = vmatmul.mubr.msk.bf16.gmra.mrb[36].mxu0 %vm1945_vm8, %v6731_v28  ;;  %v6745_v28 = vrot.slane %v18809_v10, 3  ;;  %v6755_v10 = vrot.slane %v18814_v19, 2  ;;  %v18820_v19 = vld [vmem:[#allocation99_spill] sm:$0xff] }
 0x28d   : > { %11884 = vmatprep.mubr.msk.bf16.mxu0 %vm1945_vm8, %v6735_v42  ;;  %v6752_v42 = vrot.slane %v18811_v30, 3  ;;  %v6756_v30 = vrot.slane %v18815_v25, 3  ;;  %v6767_v25 = vrot.slane %v18820_v19, 2 }
 0x28e   : > { %v6746_v13 = vor.u32 %v6745_v28, %v6744_v7  ;;  %v6759_v7 = vrot.slane %v18816_v33, 2  ;;  %v18817_v28 = vld [vmem:[#allocation91_spill] sm:$0xff] }
 0x290   : > { %11425 = vmatmul.mubr.msk.bf16.gmra.mrb[100].mxu1 %vm1945_vm8, %v14479_v36  ;;  %v6747_v5 = vsel %vm6642_vm1, %v6742_v41, %v6746_v13  ;;  %v18819_v13 = vld [vmem:[#allocation94_spill] sm:$0xff] }
 0x291   : > { %11428 = vmatprep.mubr.msk.bf16.mxu1 %vm1945_vm8, %v14497_v3  ;;  %v6753_v3 = vor.u32 %v6752_v42, %v6751_v31  ;;  %v6760_v31 = vrot.slane %v18817_v28, 3  ;;  %v6757_v42 = vor.u32 %v6756_v30, %v6755_v10  ;;  %v18821_v10 = vld [vmem:[#allocation98_spill] sm:$0xff] }
 0x292   : > { %v6768_v30 = vrot.slane %v18821_v10, 3 }
 0x293   : > { %v6761_v18 = vor.u32 %v6760_v31, %v6759_v7  ;;  %v6758_v41 = vsel %vm6642_vm1, %v6753_v3, %v6757_v42  ;;  %v18822_v7 = vld [vmem:[#allocation102_spill] sm:$0xff]  ;;  %v18823_v31 = vld [vmem:[#allocation101_spill] sm:$0xff] }
 0x294   : > { %11885 = vmatmul.mubr.msk.bf16.gmra.mrb[40].mxu0 %vm1945_vm8, %v6739_v43  ;;  %v6750_v43 = vor.u32 %v6749_v48, %v6748_v35  ;;  %v18818_v35 = vld [vmem:[#allocation96_spill] sm:$0xff]  ;;  %v6769_v33 = vor.u32 %v6768_v30, %v6767_v25  ;;  %v6771_v28 = vrot.slane %v18822_v7, 2  ;;  %v18826_v25 = vshrl.u32 %v14035_v39, 16  ;;  %v18827_v30 = vld [vmem:[#allocation106_spill] sm:$0xff]  ;;  %v18828_v7 = vld [vmem:[#allocation111_spill] sm:$0xff] }
 0x295   : > { %11888 = vmatprep.mubr.msk.bf16.mxu0 %vm1945_vm8, %v6743_v51  ;;  %v6763_v48 = vrot.slane %v18818_v35, 2  ;;  %v18824_v35 = vld [vmem:[#allocation105_spill] sm:$0xff] }
 0x296   : > { %v6754_v51 = vsel %vm6642_vm1, %v6750_v43, %v6753_v3  ;;  %v6764_v43 = vrot.slane %v18819_v13, 3  ;;  %v6775_v13 = vrot.slane %v18824_v35, 2  ;;  %v6779_v10 = vrot.slane %v18826_v25, 2  ;;  %v18832_v25 = vld [vmem:[#allocation114_spill] sm:$0xff] }
 0x298   : > { %11429 = vmatmul.mubr.msk.bf16.gmra.mrb[104].mxu1 %vm1945_vm8, %v14517_v9 }
 0x299   : > { %11432 = vmatprep.mubr.msk.bf16.mxu1 %vm1945_vm8, %v14535_v46 }
 0x29c   : > { %11889 = vmatmul.mubr.msk.bf16.gmra.mrb[44].mxu0 %vm1945_vm8, %v6747_v5  ;;  %v6762_v5 = vsel %vm6642_vm1, %v6757_v42, %v6761_v18  ;;  %v6772_v42 = vrot.slane %v18823_v31, 3  ;;  %v18829_v31 = vld [vmem:[#allocation109_spill] sm:$0xff] }
 0x29d   : > { %11892 = vmatprep.mubr.msk.bf16.mxu0 %vm1945_vm8, %v6754_v51  ;;  %v6765_v51 = vor.u32 %v6764_v43, %v6763_v48  ;;  %v18825_v48 = vld [vmem:[#allocation104_spill] sm:$0xff] }
 0x29e   : > { %v6776_v43 = vrot.slane %v18825_v48, 3 }
 0x29f   : > { %v6766_v3 = vsel %vm6642_vm1, %v6761_v18, %v6765_v51 }
 0x2a0   : > { %11433 = vmatmul.mubr.msk.bf16.gmra.mrb[108].mxu1 %vm1945_vm8, %v14555_v32  ;;  %v6777_v19 = vor.u32 %v6776_v43, %v6775_v13  ;;  %v18831_v13 = vld [vmem:[#allocation108_spill] sm:$0xff] }
 0x2a1   : > { %11436 = vmatprep.mubr.msk.bf16.mxu1 %vm1945_vm8, %v14592_v34  ;;  %v6784_v48 = vrot.slane %v18831_v13, 3  ;;  %v18834_v13 = vld [vmem:[#allocation117_spill] sm:$0xff]  ;;  %v18872_v34 = vld [vmem:[#allocation152_spill] sm:$0xff] }
 0x2a4   : > { %11893 = vmatmul.mubr.msk.bf16.gmra.mrb[48].mxu0 %vm1945_vm8, %v6758_v41  ;;  %v6770_v41 = vsel %vm6642_vm1, %v6765_v51, %v6769_v33  ;;  %v6780_v51 = vrot.slane %v18827_v30, 3  ;;  %v6790_v30 = vrot.slane %v18832_v25, 2 }
 0x2a5   : > { %11896 = vmatprep.mubr.msk.bf16.mxu0 %vm1945_vm8, %v6762_v5  ;;  %v6773_v5 = vor.u32 %v6772_v42, %v6771_v28  ;;  %v6786_v28 = vrot.slane %v18828_v7, 2  ;;  %v6787_v42 = vrot.slane %v18829_v31, 3  ;;  %v18833_v31 = vld [vmem:[#allocation112_spill] sm:$0xff] }
 0x2a6   : > { %v6791_v7 = vrot.slane %v18833_v31, 3 }
 0x2a7   : > { %v6774_v18 = vsel %vm6642_vm1, %v6769_v33, %v6773_v5  ;;  %v6781_v33 = vor.u32 %v6780_v51, %v6779_v10  ;;  %v6788_v43 = vor.u32 %v6787_v42, %v6786_v28  ;;  %v6794_v10 = vrot.slane %v18834_v13, 2  ;;  %v18835_v51 = vld [vmem:[#allocation115_spill] sm:$0xff]  ;;  %v18837_v13 = vld [vmem:[#allocation118_spill] sm:$0xff] }
 0x2a8   : > { %11437 = vmatmul.mubr.msk.bf16.gmra.mrb[112].mxu1 %vm1945_vm8, %v14608_v56  ;;  %v6795_v28 = vrot.slane %v18835_v51, 3  ;;  %v3444_v42 = vrot.slane %v13285_v38, 1  ;;  %v6861_v56 = vrot.slane %v18872_v34, 3 }
 0x2a9   : > { %11440 = vmatprep.mubr.msk.bf16.mxu1 %vm1945_vm8, %v14625_v57 }
 0x2ac   : > { %11897 = vmatmul.mubr.msk.bf16.gmra.mrb[52].mxu0 %vm1945_vm8, %v6766_v3  ;;  %v6778_v3 = vsel %vm6642_vm1, %v6773_v5, %v6777_v19  ;;  %v6782_v5 = vsel %vm6642_vm1, %v6777_v19, %v6781_v33  ;;  %v6792_v19 = vor.u32 %v6791_v7, %v6790_v30  ;;  %v3447_v7 = vrot.slane %v13305_v47, 1  ;;  %v18838_v30 = vld [vmem:[#allocation122_spill] sm:$0xff] }
 0x2ad   : > { %11900 = vmatprep.mubr.msk.bf16.mxu0 %vm1945_vm8, %v6770_v41  ;;  %v18830_v41 = vld [vmem:[#allocation107_spill] sm:$0xff] }
 0x2ae   : > { %v6783_v35 = vrot.slane %v18830_v41, 2 }
 0x2b0   : > { %11441 = vmatmul.mubr.msk.bf16.gmra.mrb[116].mxu1 %vm1945_vm8, %v18745_v8 }
 0x2b1   : > { %11444 = vmatprep.mubr.msk.bf16.mxu1 %vm1945_vm8, %v18748_v62  ;;  %v18870_v62 = vld [vmem:[#allocation148_spill] sm:$0xff] }
 0x2b4   : > { %11901 = vmatmul.mubr.msk.bf16.gmra.mrb[56].mxu0 %vm1945_vm8, %v6774_v18  ;;  %v6785_v18 = vor.u32 %v6784_v48, %v6783_v35  ;;  %v3445_v35 = vrot.slane %v13283_v37, 1  ;;  %v6796_v48 = vor.u32 %v6795_v28, %v6794_v10  ;;  %v6802_v10 = vrot.slane %v18838_v30, 2  ;;  %v18839_v28 = vld [vmem:[#allocation120_spill] sm:$0xff]  ;;  %v18840_v30 = vld [vmem:[#allocation125_spill] sm:$0xff] }
 0x2b5   : > { %11904 = vmatprep.mubr.msk.bf16.mxu0 %vm1945_vm8, %v6778_v3  ;;  %v6803_v25 = vrot.slane %v18839_v28, 3  ;;  %v6806_v28 = vrot.slane %v18840_v30, 2  ;;  %v18848_v30 = vld [vmem:[#allocation129_spill] sm:$0xff] }
 0x2b6   : > { %v6789_v3 = vsel %vm6642_vm1, %v6785_v18, %v6788_v43  ;;  %v3446_v33 = vsel %vm3443_vm7, %v3444_v42, %v3445_v35  ;;  %v6793_v18 = vsel %vm6642_vm1, %v6788_v43, %v6792_v19  ;;  %v6797_v31 = vsel %vm6642_vm1, %v6792_v19, %v6796_v48 }
 0x2b7   : > { %v3449_v42 = vrot.slane %v13324_v63, 1  ;;  %v3448_v43 = vsel %vm3443_vm7, %v3445_v35, %v3447_v7  ;;  %v18842_v35 = vld [vmem:[#allocation127_spill] sm:$0xff] }
 0x2b8   : > { %11445 = vmatmul.mubr.msk.bf16.gmra.mrb[120].mxu1 %vm1945_vm8, %v14682_v49 }
 0x2b9   : > { %11448 = vmatprep.mubr.msk.bf16.mxu1 %vm1945_vm8, %v14700_v44  ;;  %v18850_v44 = vld [vmem:[#allocation133_spill] sm:$0xff] }
 0x2ba   : > { %v6826_v49 = vrot.slane %v18850_v44, 3 }
 0x2bc   : > { %11905 = vmatmul.mubr.msk.bf16.gmra.mrb[60].mxu0 %vm1945_vm8, %v6782_v5  ;;  %v18836_v5 = vld [vmem:[#allocation119_spill] sm:$0xff] }
 0x2bd   : > { %11908 = vmatprep.mubr.msk.bf16.mxu0 %vm1945_vm8, %v6789_v3  ;;  %v6798_v51 = vrot.slane %v18836_v5, 2  ;;  %v6799_v3 = vrot.slane %v18837_v13, 3  ;;  %v6804_v5 = vor.u32 %v6803_v25, %v6802_v10  ;;  %v18841_v13 = vld [vmem:[#allocation123_spill] sm:$0xff]  ;;  %v3451_v25 = vrot.slane %v13353_v21, 1  ;;  %v18843_v10 = vld [vmem:[#allocation126_spill] sm:$0xff] }
 0x2c0   : > { %11449 = vmatmul.mubr.msk.bf16.gmra.mrb[124].mxu1 %vm1945_vm8, %v14721_v52 }
 0x2c1   : > { %11454 = vmatprep.mubr.msk.bf16.mxu1 %vm1945_vm8, %v3446_v33  ;;  %v6800_v33 = vor.u32 %v6799_v3, %v6798_v51  ;;  %v6810_v3 = vrot.slane %v18842_v35, 2 }
 0x2c3   : > { %v6801_v19 = vsel %vm6642_vm1, %v6796_v48, %v6800_v33  ;;  %v6805_v51 = vsel %vm6642_vm1, %v6800_v33, %v6804_v5  ;;  %v18378_v48 = vshrl.u32 %v14247_v55, 16 }
 0x2c4   : > { %11909 = vmatmul.mubr.msk.bf16.gmra.mrb[64].mxu0 %vm1945_vm8, %v6793_v18  ;;  %v3450_v18 = vsel %vm3443_vm7, %v3447_v7, %v3449_v42  ;;  %v6811_v7 = vrot.slane %v18843_v10, 3 }
 0x2c5   : > { %11912 = vmatprep.mubr.msk.bf16.mxu0 %vm1945_vm8, %v6797_v31  ;;  %v6807_v31 = vrot.slane %v18841_v13, 3  ;;  %v6814_v10 = vrot.slane %v18378_v48, 2  ;;  %v6819_v48 = vrot.slane %v18848_v30, 3 }
 0x2c6   : > { %v6812_v13 = vor.u32 %v6811_v7, %v6810_v3  ;;  %v18846_v7 = vld [vmem:[#allocation131_spill] sm:$0xff] }
 0x2c8   : > { %11455 = vmatmul.mubr.msk.bf16.vlgmr.msra.gmra.mrb[0].mxu1 %vm1945_vm8, %v3448_v43  ;;  %v6808_v43 = vor.u32 %v6807_v31, %v6806_v28  ;;  %v18845_v31 = vld [vmem:[#allocation132_spill] sm:$0xff] }
 0x2c9   : > { %12113 = vmatpush3.bf16.msra.mxu1 %v18731_v23  ;;  %11458 = vmatprep.mubr.msk.bf16.mxu1 %vm1945_vm8, %v3450_v18  ;;  %v3453_v23 = vrot.slane %v13377_v40, 1  ;;  %v3452_v18 = vsel %vm3443_vm7, %v3449_v42, %v3451_v25  ;;  %v3455_v42 = vrot.slane %v13396_v58, 1  ;;  %v6821_v3 = vrot.slane %v18845_v31, 2 }
 0x2ca   : > { %v6813_v28 = vsel %vm6642_vm1, %v6808_v43, %v6812_v13 }
 0x2cb   : > { %v3454_v33 = vsel %vm3443_vm7, %v3451_v25, %v3453_v23  ;;  %v3457_v25 = vrot.slane %v13417_v14, 1 }
 0x2cc   : > { %11913 = vmatmul.mubr.msk.bf16.gmra.mrb[68].mxu0 %vm1945_vm8, %v6801_v19  ;;  %v6809_v19 = vsel %vm6642_vm1, %v6804_v5, %v6808_v43  ;;  %v18847_v5 = vld [vmem:[#allocation130_spill] sm:$0xff] }
 0x2cd   : > { %11916 = vmatprep.mubr.msk.bf16.mxu0 %vm1945_vm8, %v6805_v51  ;;  %v18844_v51 = vld [vmem:[#allocation128_spill] sm:$0xff]  ;;  %v3458_v43 = vsel %vm3443_vm7, %v3455_v42, %v3457_v25 }
 0x2ce   : > { %v6815_v35 = vrot.slane %v18844_v51, 3  ;;  %v3456_v51 = vsel %vm3443_vm7, %v3453_v23, %v3455_v42  ;;  %v18851_v23 = vld [vmem:[#allocation137_spill] sm:$0xff] }
 0x2d0   : > { %11459 = vmatmul.mubr.msk.bf16.gmra.mrb[4].mxu1 %vm1945_vm8, %v3452_v18  ;;  %v6822_v18 = vrot.slane %v18846_v7, 3  ;;  %v6816_v41 = vor.u32 %v6815_v35, %v6814_v10  ;;  %v3459_v10 = vrot.slane %v18769_v17, 1 }
 0x2d1   : > { %11462 = vmatprep.mubr.msk.bf16.mxu1 %vm1945_vm8, %v3454_v33  ;;  %v6818_v33 = vrot.slane %v18847_v5, 2 }
 0x2d2   : > { %v6817_v7 = vsel %vm6642_vm1, %v6812_v13, %v6816_v41  ;;  %v3461_v41 = vrot.slane %v13464_v0, 1  ;;  %v3460_v42 = vsel %vm3443_vm7, %v3457_v25, %v3459_v10  ;;  %v18856_v10 = vld [vmem:[#allocation140_spill] sm:$0xff] }
 0x2d3   : > { %v6820_v31 = vor.u32 %v6819_v48, %v6818_v33  ;;  %v3462_v48 = vrot.slane %v18732_v22, 1 }
 0x2d4   : > { %11917 = vmatmul.mubr.msk.bf16.gmra.mrb[72].mxu0 %vm1945_vm8, %v6809_v19  ;;  %v6823_v19 = vor.u32 %v6822_v18, %v6821_v3  ;;  %v6829_v3 = vrot.slane %v18851_v23, 2  ;;  %v18854_v23 = vld [vmem:[#allocation138_spill] sm:$0xff] }
 0x2d5   : > { %11920 = vmatprep.mubr.msk.bf16.mxu0 %vm1945_vm8, %v6813_v28  ;;  %v18849_v28 = vld [vmem:[#allocation134_spill] sm:$0xff] }
 0x2d6   : > { %v6825_v52 = vrot.slane %v18849_v28, 2  ;;  %v6824_v35 = vsel %vm6642_vm1, %v6820_v31, %v6823_v19  ;;  %v3463_v31 = vsel %vm3443_vm7, %v3461_v41, %v3462_v48 }
 0x2d8   : > { %11463 = vmatmul.mubr.msk.bf16.gmra.mrb[8].mxu1 %vm1945_vm8, %v3456_v51  ;;  %v18852_v51 = vld [vmem:[#allocation135_spill] sm:$0xff]  ;;  %v6827_v13 = vor.u32 %v6826_v49, %v6825_v52  ;;  %v3464_v49 = vrot.slane %v18733_v12, 1  ;;  %v18855_v52 = vld [vmem:[#allocation141_spill] sm:$0xff] }
 0x2d9   : > { %11466 = vmatprep.mubr.msk.bf16.mxu1 %vm1945_vm8, %v3458_v43  ;;  %v6830_v18 = vrot.slane %v18852_v51, 3  ;;  %v18853_v43 = vld [vmem:[#allocation139_spill] sm:$0xff]  ;;  %v6837_v25 = vrot.slane %v18855_v52, 2 }
 0x2da   : > { %v6833_v51 = vrot.slane %v18853_v43, 2 }
 0x2db   : > { %v6831_v33 = vor.u32 %v6830_v18, %v6829_v3  ;;  %v6838_v3 = vrot.slane %v18856_v10, 3  ;;  %v3466_v18 = vrot.slane %v18734_v1, 1 }
 0x2dc   : > { %11921 = vmatmul.mubr.msk.bf16.gmra.mrb[76].mxu0 %vm1945_vm8, %v6817_v7  ;;  %v6828_v7 = vsel %vm6642_vm1, %v6823_v19, %v6827_v13  ;;  %v3465_v19 = vsel %vm3443_vm7, %v3462_v48, %v3464_v49  ;;  %v18860_v48 = vld [vmem:[#allocation146_spill] sm:$0xff] }
 0x2dd   : > { %11924 = vmatprep.mubr.msk.bf16.mxu0 %vm1945_vm8, %v6824_v35  ;;  %v6834_v35 = vrot.slane %v18854_v23, 3  ;;  %v6832_v44 = vsel %vm6642_vm1, %v6827_v13, %v6831_v33  ;;  %v18858_v23 = vld [vmem:[#allocation142_spill] sm:$0xff] }
 0x2de   : > { %v6842_v10 = vrot.slane %v18858_v23, 3 }
 0x2df   : > { %v6835_v41 = vor.u32 %v6834_v35, %v6833_v51  ;;  %v18859_v51 = vld [vmem:[#allocation40_spill] sm:$0xff] }
 0x2e0   : > { %11467 = vmatmul.mubr.msk.bf16.gmra.mrb[12].mxu1 %vm1945_vm8, %v3460_v42  ;;  %v6839_v42 = vor.u32 %v6838_v3, %v6837_v25  ;;  %v3468_v35 = vrot.slane %v18859_v51, 1  ;;  %v6845_v25 = vrot.slane %v18860_v48, 2  ;;  %v18861_v3 = vld [vmem:[#allocation145_spill] sm:$0xff] }
 0x2e1   : > { %11470 = vmatprep.mubr.msk.bf16.mxu1 %vm1945_vm8, %v3463_v31  ;;  %v3467_v31 = vsel %vm3443_vm7, %v3464_v49, %v3466_v18  ;;  %v6836_v13 = vsel %vm6642_vm1, %v6831_v33, %v6835_v41  ;;  %v18862_v49 = vld [vmem:[#allocation43_spill] sm:$0xff] }
 0x2e2   : > { %v18863_v33 = vld [vmem:[#allocation143_spill] sm:$0xff] }
 0x2e3   : > { %v18386_v28 = vshrl.u32 %v18863_v33, 16 }
 0x2e4   : > { %11925 = vmatmul.mubr.msk.bf16.gmra.mrb[80].mxu0 %vm1945_vm8, %v6828_v7  ;;  %v18857_v7 = vld [vmem:[#allocation144_spill] sm:$0xff] }
 0x2e5   : > { %11928 = vmatprep.mubr.msk.bf16.mxu0 %vm1945_vm8, %v6832_v44  ;;  %v6841_v52 = vrot.slane %v18857_v7, 2  ;;  %v6840_v44 = vsel %vm6642_vm1, %v6835_v41, %v6839_v42  ;;  %v3469_v7 = vsel %vm3443_vm7, %v3466_v18, %v3468_v35 }
 0x2e7   : > { %v6843_v43 = vor.u32 %v6842_v10, %v6841_v52  ;;  %v18865_v10 = vld [vmem:[#allocation45_spill] sm:$0xff] }
 0x2e8   : > { %11471 = vmatmul.mubr.msk.bf16.gmra.mrb[16].mxu1 %vm1945_vm8, %v3465_v19  ;;  %v6846_v19 = vrot.slane %v18861_v3, 3  ;;  %v6849_v3 = vrot.slane %v18386_v28, 2  ;;  %v3472_v18 = vrot.slane %v18865_v10, 1  ;;  %v6854_v28 = vrot.slane %v18870_v62, 3 }
 0x2e9   : > { %11474 = vmatprep.mubr.msk.bf16.mxu1 %vm1945_vm8, %v3467_v31  ;;  %v3470_v31 = vrot.slane %v18862_v49, 1 }
 0x2ea   : > { %v6847_v23 = vor.u32 %v6846_v19, %v6845_v25  ;;  %v18866_v25 = vld [vmem:[#allocation151_spill] sm:$0xff] }
 0x2eb   : > { %v3471_v41 = vsel %vm3443_vm7, %v3468_v35, %v3470_v31  ;;  %v6856_v19 = vrot.slane %v18866_v25, 2  ;;  %v18868_v35 = vld [vmem:[#allocation48_spill] sm:$0xff] }
 0x2ec   : > { %11929 = vmatmul.mubr.msk.bf16.gmra.mrb[84].mxu0 %vm1945_vm8, %v6836_v13  ;;  %v6844_v13 = vsel %vm6642_vm1, %v6839_v42, %v6843_v43  ;;  %v6848_v52 = vsel %vm6642_vm1, %v6843_v43, %v6847_v23  ;;  %v18869_v42 = vld [vmem:[#allocation149_spill] sm:$0xff] }
 0x2ed   : > { %11932 = vmatprep.mubr.msk.bf16.mxu0 %vm1945_vm8, %v6840_v44  ;;  %v18864_v44 = vld [vmem:[#allocation147_spill] sm:$0xff]  ;;  %v6853_v5 = vrot.slane %v18869_v42, 2  ;;  %v18884_v42 = vld [vmem:[#allocation164_spill] sm:$0xff] }
 0x2ee   : > { %v6850_v48 = vrot.slane %v18864_v44, 3  ;;  %v3473_v44 = vsel %vm3443_vm7, %v3470_v31, %v3472_v18 }
 0x2ef   : > { %v6855_v25 = vor.u32 %v6854_v28, %v6853_v5  ;;  %v18876_v28 = vld [vmem:[#allocation52_spill] sm:$0xff] }
 0x2f0   : > { %11475 = vmatmul.mubr.msk.bf16.gmra.mrb[20].mxu1 %vm1945_vm8, %v3469_v7  ;;  %v18867_v7 = vld [vmem:[#allocation150_spill] sm:$0xff]  ;;  %v6851_v8 = vor.u32 %v6850_v48, %v6849_v3  ;;  %v3476_v3 = vrot.slane %v18788_v24, 1 }
 0x2f1   : > { %11478 = vmatprep.mubr.msk.bf16.mxu1 %vm1945_vm8, %v3471_v41  ;;  %v6857_v30 = vrot.slane %v18867_v7, 3  ;;  %v3474_v41 = vrot.slane %v18868_v35, 1 }
 0x2f2   : > { %v6852_v7 = vsel %vm6642_vm1, %v6847_v23, %v6851_v8  ;;  %v3478_v8 = vrot.slane %v18876_v28, 1 }
 0x2f3   : > { %v3475_v43 = vsel %vm3443_vm7, %v3472_v18, %v3474_v41  ;;  %v18875_v18 = vld [vmem:[#allocation56_spill] sm:$0xff] }
 0x2f4   : > { %11933 = vmatmul.mubr.msk.bf16.gmra.mrb[88].mxu0 %vm1945_vm8, %v6844_v13  ;;  %v6858_v13 = vor.u32 %v6857_v30, %v6856_v19  ;;  %v18873_v30 = vld [vmem:[#allocation157_spill] sm:$0xff]  ;;  %v3479_v5 = vrot.slane %v18875_v18, 1 }
 0x2f5   : > { %11936 = vmatprep.mubr.msk.bf16.mxu0 %vm1945_vm8, %v6848_v52  ;;  %v18871_v52 = vld [vmem:[#allocation154_spill] sm:$0xff]  ;;  %v6864_v31 = vrot.slane %v18873_v30, 2  ;;  %v18877_v30 = vld [vmem:[#allocation160_spill] sm:$0xff] }
 0x2f6   : > { %v6860_v57 = vrot.slane %v18871_v52, 2  ;;  %v6859_v48 = vsel %vm6642_vm1, %v6855_v25, %v6858_v13  ;;  %v3480_v25 = vsel %vm3443_vm7, %v3478_v8, %v3479_v5  ;;  %v18878_v52 = vld [vmem:[#allocation158_spill] sm:$0xff] }
 0x2f7   : > { %v18882_v8 = vld [vmem:[#allocation62_spill] sm:$0xff] }
 0x2f8   : > { %11479 = vmatmul.mubr.msk.bf16.gmra.mrb[24].mxu1 %vm1945_vm8, %v3473_v44  ;;  %v18874_v44 = vld [vmem:[#allocation155_spill] sm:$0xff]  ;;  %v6862_v23 = vor.u32 %v6861_v56, %v6860_v57  ;;  %v18879_v56 = vld [vmem:[#allocation61_spill] sm:$0xff] }
 0x2f9   : > { %11482 = vmatprep.mubr.msk.bf16.mxu1 %vm1945_vm8, %v3475_v43  ;;  %v6865_v19 = vrot.slane %v18874_v44, 3  ;;  %v3477_v43 = vsel %vm3443_vm7, %v3474_v41, %v3476_v3  ;;  %v6868_v44 = vrot.slane %v18877_v30, 2  ;;  %v3481_v57 = vrot.slane %v18879_v56, 1  ;;  %v18880_v41 = vld [vmem:[#allocation163_spill] sm:$0xff] }
 0x2fa   : > { %v6872_v3 = vrot.slane %v18880_v41, 2 }
 0x2fb   : > { %v6866_v34 = vor.u32 %v6865_v19, %v6864_v31  ;;  %v18881_v31 = vld [vmem:[#allocation161_spill] sm:$0xff] }
 0x2fc   : > { %11937 = vmatmul.mubr.msk.bf16.gmra.mrb[92].mxu0 %vm1945_vm8, %v6852_v7  ;;  %v6863_v7 = vsel %vm6642_vm1, %v6858_v13, %v6862_v23  ;;  %v6873_v19 = vrot.slane %v18881_v31, 3  ;;  %v3482_v13 = vsel %vm3443_vm7, %v3479_v5, %v3481_v57  ;;  %v6877_v31 = vrot.slane %v18884_v42, 3  ;;  %v18886_v5 = vld [vmem:[#allocation169_spill] sm:$0xff] }
 0x2fd   : > { %11940 = vmatprep.mubr.msk.bf16.mxu0 %vm1945_vm8, %v6859_v48  ;;  %v6869_v48 = vrot.slane %v18878_v52, 3  ;;  %v6867_v62 = vsel %vm6642_vm1, %v6862_v23, %v6866_v34  ;;  %v18883_v52 = vld [vmem:[#allocation166_spill] sm:$0xff] }
 0x2fe   : > { %v6874_v30 = vor.u32 %v6873_v19, %v6872_v3  ;;  %v6876_v41 = vrot.slane %v18883_v52, 2  ;;  %v6880_v3 = vrot.slane %v18886_v5, 2  ;;  %v18887_v19 = vld [vmem:[#allocation167_spill] sm:$0xff] }
 0x300   : > { %11483 = vmatmul.mubr.msk.bf16.gmra.mrb[28].mxu1 %vm1945_vm8, %v3477_v43  ;;  %v3483_v43 = vrot.slane %v18882_v8, 1  ;;  %v6878_v32 = vor.u32 %v6877_v31, %v6876_v41  ;;  %v18891_v31 = vld [vmem:[#allocation72_spill] sm:$0xff] }
 0x301   : > { %11486 = vmatprep.mubr.msk.bf16.mxu1 %vm1945_vm8, %v3480_v25  ;;  %v6870_v25 = vor.u32 %v6869_v48, %v6868_v44  ;;  %v18885_v44 = vld [vmem:[#allocation66_spill] sm:$0xff] }
 0x302   : > { %v3485_v48 = vrot.slane %v18885_v44, 1 }
 0x303   : > { %v6871_v23 = vsel %vm6642_vm1, %v6866_v34, %v6870_v25  ;;  %v18889_v34 = vld [vmem:[#allocation168_spill] sm:$0xff] }
 0x304   : > { %11941 = vmatmul.mubr.msk.bf16.gmra.mrb[96].mxu0 %vm1945_vm8, %v6863_v7  ;;  %v3484_v7 = vsel %vm3443_vm7, %v3481_v57, %v3483_v43  ;;  %v18888_v57 = vld [vmem:[#allocation69_spill] sm:$0xff]  ;;  %v18401_v46 = vshrl.u32 %v18889_v34, 16  ;;  %v3486_v52 = vsel %vm3443_vm7, %v3483_v43, %v3485_v48  ;;  %v3489_v43 = vrot.slane %v18891_v31, 1  ;;  %v18896_v34 = vld [vmem:[#allocation172_spill] sm:$0xff] }
 0x305   : > { %11944 = vmatprep.mubr.msk.bf16.mxu0 %vm1945_vm8, %v6867_v62  ;;  %v6875_v62 = vsel %vm6642_vm1, %v6870_v25, %v6874_v30 }
 0x308   : > { %11487 = vmatmul.mubr.msk.bf16.gmra.mrb[32].mxu1 %vm1945_vm8, %v3482_v13  ;;  %v6881_v13 = vrot.slane %v18887_v19, 3  ;;  %v6884_v19 = vrot.slane %v18401_v46, 2  ;;  %v6889_v46 = vrot.slane %v18896_v34, 3 }
 0x309   : > { %11490 = vmatprep.mubr.msk.bf16.mxu1 %vm1945_vm8, %v3484_v7  ;;  %v3487_v7 = vrot.slane %v18888_v57, 1 }
 0x30a   : > { %v6882_v42 = vor.u32 %v6881_v13, %v6880_v3  ;;  %v18892_v3 = vld [vmem:[#allocation177_spill] sm:$0xff] }
 0x30b   : > { %v3488_v25 = vsel %vm3443_vm7, %v3485_v48, %v3487_v7  ;;  %v6891_v13 = vrot.slane %v18892_v3, 2  ;;  %v18894_v48 = vld [vmem:[#allocation74_spill] sm:$0xff] }
 0x30c   : > { %11945 = vmatmul.mubr.msk.bf16.gmra.mrb[100].mxu0 %vm1945_vm8, %v6871_v23  ;;  %v6879_v23 = vsel %vm6642_vm1, %v6874_v30, %v6878_v32  ;;  %v6883_v41 = vsel %vm6642_vm1, %v6878_v32, %v6882_v42  ;;  %v18895_v30 = vld [vmem:[#allocation174_spill] sm:$0xff] }
 0x30d   : > { %11948 = vmatprep.mubr.msk.bf16.mxu0 %vm1945_vm8, %v6875_v62  ;;  %v18890_v62 = vld [vmem:[#allocation170_spill] sm:$0xff]  ;;  %v6888_v57 = vrot.slane %v18895_v30, 2  ;;  %v18910_v30 = vld [vmem:[#allocation189_spill] sm:$0xff] }
 0x30e   : > { %v6885_v5 = vrot.slane %v18890_v62, 3  ;;  %v3490_v62 = vsel %vm3443_vm7, %v3487_v7, %v3489_v43 }
 0x30f   : > { %v6890_v3 = vor.u32 %v6889_v46, %v6888_v57  ;;  %v18902_v57 = vld [vmem:[#allocation80_spill] sm:$0xff] }
 0x310   : > { %11491 = vmatmul.mubr.msk.bf16.gmra.mrb[36].mxu1 %vm1945_vm8, %v3486_v52  ;;  %v18893_v52 = vld [vmem:[#allocation175_spill] sm:$0xff]  ;;  %v6886_v44 = vor.u32 %v6885_v5, %v6884_v19  ;;  %v3493_v19 = vrot.slane %v18807_v27, 1 }
 0x311   : > { %11494 = vmatprep.mubr.msk.bf16.mxu1 %vm1945_vm8, %v3488_v25  ;;  %v6892_v9 = vrot.slane %v18893_v52, 3  ;;  %v3491_v25 = vrot.slane %v18894_v48, 1  ;;  %v18898_v48 = vld [vmem:[#allocation178_spill] sm:$0xff] }
 0x312   : > { %v6887_v52 = vsel %vm6642_vm1, %v6882_v42, %v6886_v44  ;;  %v6896_v36 = vrot.slane %v18898_v48, 3  ;;  %v3495_v42 = vrot.slane %v18902_v57, 1 }
 0x313   : > { %v3492_v32 = vsel %vm3443_vm7, %v3489_v43, %v3491_v25  ;;  %v18901_v43 = vld [vmem:[#allocation82_spill] sm:$0xff] }
 0x314   : > { %11949 = vmatmul.mubr.msk.bf16.gmra.mrb[104].mxu0 %vm1945_vm8, %v6879_v23  ;;  %v6893_v23 = vor.u32 %v6892_v9, %v6891_v13  ;;  %v18899_v9 = vld [vmem:[#allocation183_spill] sm:$0xff]  ;;  %v3496_v46 = vrot.slane %v18901_v43, 1 }
 0x315   : > { %11952 = vmatprep.mubr.msk.bf16.mxu0 %vm1945_vm8, %v6883_v41  ;;  %v18897_v41 = vld [vmem:[#allocation180_spill] sm:$0xff]  ;;  %v6899_v7 = vrot.slane %v18899_v9, 2  ;;  %v18903_v9 = vld [vmem:[#allocation186_spill] sm:$0xff] }
 0x316   : > { %v6895_v31 = vrot.slane %v18897_v41, 2  ;;  %v6894_v5 = vsel %vm6642_vm1, %v6890_v3, %v6893_v23  ;;  %v3497_v3 = vsel %vm3443_vm7, %v3495_v42, %v3496_v46  ;;  %v18904_v41 = vld [vmem:[#allocation184_spill] sm:$0xff] }
 0x317   : > { %v18908_v42 = vld [vmem:[#allocation88_spill] sm:$0xff] }
 0x318   : > { %11495 = vmatmul.mubr.msk.bf16.gmra.mrb[40].mxu1 %vm1945_vm8, %v3490_v62  ;;  %v18900_v62 = vld [vmem:[#allocation181_spill] sm:$0xff]  ;;  %v6897_v44 = vor.u32 %v6896_v36, %v6895_v31  ;;  %v18905_v36 = vld [vmem:[#allocation87_spill] sm:$0xff] }
 0x319   : > { %11498 = vmatprep.mubr.msk.bf16.mxu1 %vm1945_vm8, %v3492_v32  ;;  %v6900_v13 = vrot.slane %v18900_v62, 3  ;;  %v3494_v32 = vsel %vm3443_vm7, %v3491_v25, %v3493_v19  ;;  %v6903_v62 = vrot.slane %v18903_v9, 2  ;;  %v3498_v31 = vrot.slane %v18905_v36, 1  ;;  %v18906_v25 = vld [vmem:[#allocation188_spill] sm:$0xff] }
 0x31a   : > { %v6907_v19 = vrot.slane %v18906_v25, 2 }
 0x31b   : > { %v6901_v48 = vor.u32 %v6900_v13, %v6899_v7  ;;  %v18907_v7 = vld [vmem:[#allocation187_spill] sm:$0xff] }
 0x31c   : > { %11953 = vmatmul.mubr.msk.bf16.gmra.mrb[108].mxu0 %vm1945_vm8, %v6887_v52  ;;  %v6898_v52 = vsel %vm6642_vm1, %v6893_v23, %v6897_v44  ;;  %v6908_v13 = vrot.slane %v18907_v7, 3  ;;  %v3499_v23 = vsel %vm3443_vm7, %v3496_v46, %v3498_v31  ;;  %v6912_v7 = vrot.slane %v18910_v30, 3  ;;  %v18912_v46 = vld [vmem:[#allocation194_spill] sm:$0xff] }
 0x31d   : > { %11956 = vmatprep.mubr.msk.bf16.mxu0 %vm1945_vm8, %v6894_v5  ;;  %v6904_v5 = vrot.slane %v18904_v41, 3  ;;  %v6902_v34 = vsel %vm6642_vm1, %v6897_v44, %v6901_v48  ;;  %v18909_v41 = vld [vmem:[#allocation192_spill] sm:$0xff] }
 0x31e   : > { %v6909_v9 = vor.u32 %v6908_v13, %v6907_v19  ;;  %v6911_v25 = vrot.slane %v18909_v41, 2  ;;  %v6915_v19 = vrot.slane %v18912_v46, 2  ;;  %v18913_v13 = vld [vmem:[#allocation193_spill] sm:$0xff] }
 0x320   : > { %11499 = vmatmul.mubr.msk.bf16.gmra.mrb[44].mxu1 %vm1945_vm8, %v3494_v32  ;;  %v3500_v32 = vrot.slane %v18908_v42, 1  ;;  %v6913_v42 = vor.u32 %v6912_v7, %v6911_v25  ;;  %v3506_v7 = vrot.slane %v18754_v11, 1 }
 0x321   : > { %11502 = vmatprep.mubr.msk.bf16.mxu1 %vm1945_vm8, %v3497_v3  ;;  %v6905_v3 = vor.u32 %v6904_v5, %v6903_v62  ;;  %v18911_v62 = vld [vmem:[#allocation92_spill] sm:$0xff] }
 0x322   : > { %v3502_v5 = vrot.slane %v18911_v62, 1 }
 0x323   : > { %v6906_v44 = vsel %vm6642_vm1, %v6901_v48, %v6905_v3  ;;  %v18915_v48 = vld [vmem:[#allocation191_spill] sm:$0xff] }
 0x324   : > { %11957 = vmatmul.mubr.msk.bf16.gmra.mrb[112].mxu0 %vm1945_vm8, %v6898_v52  ;;  %v3501_v52 = vsel %vm3443_vm7, %v3498_v31, %v3500_v32  ;;  %v18914_v31 = vld [vmem:[#allocation95_spill] sm:$0xff]  ;;  %v18404_v36 = vshrl.u32 %v18915_v48, 16  ;;  %v3503_v41 = vsel %vm3443_vm7, %v3500_v32, %v3502_v5 }
 0x325   : > { %11960 = vmatprep.mubr.msk.bf16.mxu0 %vm1945_vm8, %v6902_v34  ;;  %v6910_v34 = vsel %vm6642_vm1, %v6905_v3, %v6909_v9 }
 0x328   : > { %11503 = vmatmul.mubr.msk.bf16.gmra.mrb[48].mxu1 %vm1945_vm8, %v3499_v23  ;;  %v6916_v23 = vrot.slane %v18913_v13, 3  ;;  %v6919_v13 = vrot.slane %v18404_v36, 2  ;;  %v18946_v36 = vld [vmem:[#allocation111_spill] sm:$0xff] }
 0x329   : > { %11506 = vmatprep.mubr.msk.bf16.mxu1 %vm1945_vm8, %v3501_v52  ;;  %v3504_v52 = vrot.slane %v18914_v31, 1 }
 0x32a   : > { %v6917_v30 = vor.u32 %v6916_v23, %v6915_v19  ;;  %v7801_v19 = vrot.slane %v13283_v37, 3 }
 0x32b   : > { %v3505_v3 = vsel %vm3443_vm7, %v3502_v5, %v3504_v52  ;;  %v3507_v5 = vsel %vm3443_vm7, %v3504_v52, %v3506_v7  ;;  %v7803_v52 = vrot.slane %v13305_v47, 3  ;;  %v18919_v47 = vld [vmem:[#allocation113_spill] sm:$0xff] }
 0x32c   : > { %11961 = vmatmul.mubr.msk.bf16.gmra.mrb[116].mxu0 %vm1945_vm8, %v6906_v44  ;;  %v6914_v44 = vsel %vm6642_vm1, %v6909_v9, %v6913_v42  ;;  %v6918_v25 = vsel %vm6642_vm1, %v6913_v42, %v6917_v30  ;;  %v7800_v9 = vrot.slane %v13285_v38, 3  ;;  %v3513_v38 = vrot.slane %v14083_v6, 1 }
 0x32d   : > { %11964 = vmatprep.mubr.msk.bf16.mxu0 %vm1945_vm8, %v6910_v34  ;;  %v18916_v34 = vld [vmem:[#allocation195_spill] sm:$0xff] }
 0x32e   : > { %v6920_v46 = vrot.slane %v18916_v34, 3  ;;  %v18947_v34 = vld [vmem:[#allocation109_spill] sm:$0xff] }
 0x330   : > { %11507 = vmatmul.mubr.msk.bf16.gmra.mrb[52].mxu1 %vm1945_vm8, %v3503_v41  ;;  %v3508_v41 = vrot.slane %v18721_v2, 1  ;;  %v6921_v32 = vor.u32 %v6920_v46, %v6919_v13  ;;  %v3510_v46 = vrot.slane %v14035_v39, 1  ;;  %v18917_v13 = vld [vmem:[#allocation103_spill] sm:$0xff] }
 0x331   : > { %11510 = vmatprep.mubr.msk.bf16.mxu1 %vm1945_vm8, %v3505_v3  ;;  %v7802_v3 = vsel %vm2139_vm2, %v7800_v9, %v7801_v19  ;;  %v3512_v37 = vrot.slane %v18917_v13, 1 }
 0x332   : > { %v3509_v23 = vsel %vm3443_vm7, %v3506_v7, %v3508_v41  ;;  %v6922_v42 = vsel %vm6642_vm1, %v6917_v30, %v6921_v32  ;;  %v7804_v7 = vsel %vm2139_vm2, %v7801_v19, %v7803_v52  ;;  %vm9393_vm1 = vcmask (!%p10718_p1), 1044484  }
 0x333   : > { %v3514_v30 = vsel %vm3443_vm7, %v3512_v37, %v3513_v38  ;;  %v18920_v37 = vld [vmem:[#allocation116_spill] sm:$0xff] }
 0x334   : > { %11965 = vmatmul.mubr.msk.bf16.gmra.mrb[120].mxu0 %vm1945_vm8, %v6914_v44  ;;  %v3511_v44 = vsel %vm3443_vm7, %v3508_v41, %v3510_v46  ;;  %v3517_v41 = vrot.slane %v18919_v47, 1 }
 0x335   : > { %11968 = vmatprep.mubr.msk.bf16.mxu0 %vm1945_vm8, %v6918_v25  ;;  %v7805_v25 = vrot.slane %v13324_v63, 3  ;;  %v7807_v63 = vrot.slane %v13353_v21, 3  ;;  %v3521_v21 = vrot.slane %v14174_v29, 1 }
 0x337   : > { %v7806_v32 = vsel %vm2139_vm2, %v7803_v52, %v7805_v25  ;;  %v3519_v52 = vrot.slane %v18920_v37, 1 }
 0x338   : > { %11511 = vmatmul.mubr.msk.bf16.gmra.mrb[56].mxu1 %vm1945_vm8, %v3507_v5  ;;  %v18918_v5 = vld [vmem:[#allocation110_spill] sm:$0xff] }
 0x339   : > { %11514 = vmatprep.mubr.msk.bf16.mxu1 %vm1945_vm8, %v3509_v23  ;;  %v3515_v9 = vrot.slane %v18918_v5, 1 }
 0x33b   : > { %v3516_v23 = vsel %vm3443_vm7, %v3513_v38, %v3515_v9  ;;  %v3518_v19 = vsel %vm3443_vm7, %v3515_v9, %v3517_v41  ;;  %v3520_v38 = vsel %vm3443_vm7, %v3517_v41, %v3519_v52  ;;  %v7818_v41 = vrot.slane %v18732_v22, 3 }
 0x33c   : > { %11969 = vmatmul.mubr.msk.bf16.gmra.mrb[124].mxu0 %vm1945_vm8, %v6922_v42  ;;  %v7809_v42 = vrot.slane %v13377_v40, 3  ;;  %v7811_v40 = vrot.slane %v13396_v58, 3  ;;  %v3525_v58 = vrot.slane %v14224_v54, 1  ;;  %v3530_v22 = vrot.slane %v14282_v20, 1 }
 0x33d   : > { %11974 = vmatprep.mubr.msk.bf16.mxu0 %vm1945_vm8, %v7802_v3  ;;  %v7808_v3 = vsel %vm2139_vm2, %v7805_v25, %v7807_v63  ;;  %v3522_v25 = vsel %vm3443_vm7, %v3519_v52, %v3521_v21 }
 0x33e   : > { %v7810_v46 = vsel %vm2139_vm2, %v7807_v63, %v7809_v42 }
 0x340   : > { %11515 = vmatmul.mubr.msk.bf16.gmra.mrb[60].mxu1 %vm1945_vm8, %v3511_v44  ;;  %v7813_v44 = vrot.slane %v13417_v14, 3  ;;  %v7815_v14 = vrot.slane %v18769_v17, 3  ;;  %v3527_v17 = vrot.slane %v14247_v55, 1 }
 0x341   : > { %11518 = vmatprep.mubr.msk.bf16.mxu1 %vm1945_vm8, %v3514_v30  ;;  %v7812_v30 = vsel %vm2139_vm2, %v7809_v42, %v7811_v40 }
 0x342   : > { %v7816_v42 = vsel %vm2139_vm2, %v7813_v44, %v7815_v14  ;;  %v3528_v52 = vsel %vm3443_vm7, %v3525_v58, %v3527_v17  ;;  %v18921_v14 = vld [vmem:[#allocation136_spill] sm:$0xff]  ;;  %v3540_v17 = vrot.slane %v14375_v59, 1 }
 0x344   : > { %11975 = vmatmul.mubr.msk.bf16.vlgmr.msra.gmra.mrb[0].mxu0 %vm1945_vm8, %v7804_v7  ;;  %v7814_v7 = vsel %vm2139_vm2, %v7811_v40, %v7813_v44  ;;  %v3532_v44 = vrot.slane %v14300_v50, 1 }
 0x345   : > { %11978 = vmatprep.mubr.msk.bf16.mxu0 %vm1945_vm8, %v7806_v32  ;;  %v3523_v32 = vrot.slane %v14202_v45, 1 }
 0x347   : > { %v3524_v9 = vsel %vm3443_vm7, %v3521_v21, %v3523_v32  ;;  %v3526_v63 = vsel %vm3443_vm7, %v3523_v32, %v3525_v58 }
 0x348   : > { %11519 = vmatmul.mubr.msk.bf16.gmra.mrb[64].mxu1 %vm1945_vm8, %v3516_v23  ;;  %v7817_v23 = vrot.slane %v13464_v0, 3  ;;  %v7822_v0 = vrot.slane %v18734_v1, 3  ;;  %v7824_v1 = vrot.slane %v18859_v51, 3  ;;  %v3538_v51 = vrot.slane %v14357_v4, 1 }
 0x349   : > { %11522 = vmatprep.mubr.msk.bf16.mxu1 %vm1945_vm8, %v3518_v19 }
 0x34a   : > { %v7819_v19 = vsel %vm2139_vm2, %v7817_v23, %v7818_v41  ;;  %v7825_v32 = vsel %vm2139_vm2, %v7822_v0, %v7824_v1 }
 0x34c   : > { %11979 = vmatmul.mubr.msk.bf16.gmra.mrb[4].mxu0 %vm1945_vm8, %v7808_v3  ;;  %v3529_v3 = vrot.slane %v14266_v53, 1 }
 0x34d   : > { %11982 = vmatprep.mubr.msk.bf16.mxu0 %vm1945_vm8, %v7810_v46  ;;  %v7820_v46 = vrot.slane %v18733_v12, 3  ;;  %v3534_v12 = vrot.slane %v14319_v16, 1 }
 0x34e   : > { %v3531_v21 = vsel %vm3443_vm7, %v3529_v3, %v3530_v22  ;;  %v7835_v3 = vrot.slane %v18875_v18, 3  ;;  %v3547_v18 = vrot.slane %v14441_v26, 1 }
 0x34f   : > { %v7821_v40 = vsel %vm2139_vm2, %v7818_v41, %v7820_v46 }
 0x350   : > { %11523 = vmatmul.mubr.msk.bf16.gmra.mrb[68].mxu1 %vm1945_vm8, %v3520_v38  ;;  %v7823_v38 = vsel %vm2139_vm2, %v7820_v46, %v7822_v0 }
 0x351   : > { %11526 = vmatprep.mubr.msk.bf16.mxu1 %vm1945_vm8, %v3522_v25  ;;  %v3533_v25 = vsel %vm3443_vm7, %v3530_v22, %v3532_v44  ;;  %v3541_v22 = vsel %vm3443_vm7, %v3538_v51, %v3540_v17 }
 0x354   : > { %11983 = vmatmul.mubr.msk.bf16.gmra.mrb[8].mxu0 %vm1945_vm8, %v7812_v30  ;;  %v7826_v30 = vrot.slane %v18862_v49, 3  ;;  %v7828_v49 = vrot.slane %v18865_v10, 3  ;;  %v3542_v10 = vrot.slane %v14396_v60, 1 }
 0x355   : > { %11986 = vmatprep.mubr.msk.bf16.mxu0 %vm1945_vm8, %v7814_v7  ;;  %v3535_v7 = vsel %vm3443_vm7, %v3532_v44, %v3534_v12 }
 0x356   : > { %v7827_v58 = vsel %vm2139_vm2, %v7824_v1, %v7826_v30  ;;  %v3543_v46 = vsel %vm3443_vm7, %v3540_v17, %v3542_v10 }
 0x358   : > { %11527 = vmatmul.mubr.msk.bf16.gmra.mrb[72].mxu1 %vm1945_vm8, %v3524_v9  ;;  %v3536_v9 = vrot.slane %v18921_v14, 1 }
 0x359   : > { %11530 = vmatprep.mubr.msk.bf16.mxu1 %vm1945_vm8, %v3526_v63  ;;  %v7830_v63 = vrot.slane %v18868_v35, 3  ;;  %v7832_v35 = vrot.slane %v18788_v24, 3  ;;  %v3544_v24 = vrot.slane %v18863_v33, 1 }
 0x35a   : > { %v3537_v41 = vsel %vm3443_vm7, %v3534_v12, %v3536_v9  ;;  %v3539_v23 = vsel %vm3443_vm7, %v3536_v9, %v3538_v51  ;;  %v18924_v9 = vld [vmem:[#allocation69_spill] sm:$0xff] }
 0x35b   : > { %v7833_v0 = vsel %vm2139_vm2, %v7830_v63, %v7832_v35  ;;  %v3545_v44 = vsel %vm3443_vm7, %v3542_v10, %v3544_v24  ;;  %v7843_v51 = vrot.slane %v18924_v9, 3  ;;  %v18927_v10 = vld [vmem:[#allocation72_spill] sm:$0xff]  ;;  %v18929_v24 = vld [vmem:[#allocation162_spill] sm:$0xff] }
 0x35c   : > { %11987 = vmatmul.mubr.msk.bf16.gmra.mrb[12].mxu0 %vm1945_vm8, %v7816_v42  ;;  %v7829_v42 = vsel %vm2139_vm2, %v7826_v30, %v7828_v49  ;;  %v3549_v30 = vrot.slane %v14459_v61, 1  ;;  %v7845_v35 = vrot.slane %v18927_v10, 3  ;;  %v18935_v10 = vld [vmem:[#allocation88_spill] sm:$0xff] }
 0x35d   : > { %11990 = vmatprep.mubr.msk.bf16.mxu0 %vm1945_vm8, %v7819_v19  ;;  %v7831_v19 = vsel %vm2139_vm2, %v7828_v49, %v7830_v63 }
 0x360   : > { %11531 = vmatmul.mubr.msk.bf16.gmra.mrb[76].mxu1 %vm1945_vm8, %v3528_v52  ;;  %v7834_v52 = vrot.slane %v18876_v28, 3  ;;  %v7839_v28 = vrot.slane %v18882_v8, 3 }
 0x361   : > { %11534 = vmatprep.mubr.msk.bf16.mxu1 %vm1945_vm8, %v3531_v21 }
 0x362   : > { %v7836_v21 = vsel %vm2139_vm2, %v7834_v52, %v7835_v3 }
 0x364   : > { %11991 = vmatmul.mubr.msk.bf16.gmra.mrb[16].mxu0 %vm1945_vm8, %v7821_v40  ;;  %v3546_v40 = vrot.slane %v14416_v15, 1 }
 0x365   : > { %11994 = vmatprep.mubr.msk.bf16.mxu0 %vm1945_vm8, %v7823_v38  ;;  %v7837_v38 = vrot.slane %v18879_v56, 3  ;;  %v18922_v56 = vld [vmem:[#allocation153_spill] sm:$0xff] }
 0x366   : > { %v3548_v12 = vsel %vm3443_vm7, %v3546_v40, %v3547_v18  ;;  %v18930_v40 = vld [vmem:[#allocation165_spill] sm:$0xff] }
 0x367   : > { %v7838_v1 = vsel %vm2139_vm2, %v7835_v3, %v7837_v38  ;;  %v18928_v3 = vld [vmem:[#allocation74_spill] sm:$0xff] }
 0x368   : > { %11535 = vmatmul.mubr.msk.bf16.gmra.mrb[80].mxu1 %vm1945_vm8, %v3533_v25  ;;  %v7840_v25 = vsel %vm2139_vm2, %v7837_v38, %v7839_v28  ;;  %v3559_v38 = vrot.slane %v18930_v40, 1 }
 0x369   : > { %11538 = vmatprep.mubr.msk.bf16.mxu1 %vm1945_vm8, %v3535_v7  ;;  %v3551_v7 = vrot.slane %v18922_v56, 1 }
 0x36b   : > { %v3552_v49 = vsel %vm3443_vm7, %v3549_v30, %v3551_v7 }
 0x36c   : > { %11995 = vmatmul.mubr.msk.bf16.gmra.mrb[20].mxu0 %vm1945_vm8, %v7825_v32  ;;  %v18923_v32 = vld [vmem:[#allocation66_spill] sm:$0xff] }
 0x36d   : > { %11998 = vmatprep.mubr.msk.bf16.mxu0 %vm1945_vm8, %v7827_v58  ;;  %v7841_v8 = vrot.slane %v18923_v32, 3  ;;  %v3550_v58 = vsel %vm3443_vm7, %v3547_v18, %v3549_v30  ;;  %v3557_v18 = vrot.slane %v18929_v24, 1  ;;  %v18931_v32 = vld [vmem:[#allocation168_spill] sm:$0xff] }
 0x36f   : > { %v7844_v63 = vsel %vm2139_vm2, %v7841_v8, %v7843_v51 }
 0x370   : > { %11539 = vmatmul.mubr.msk.bf16.gmra.mrb[84].mxu1 %vm1945_vm8, %v3537_v41  ;;  %v7842_v41 = vsel %vm2139_vm2, %v7839_v28, %v7841_v8  ;;  %v3561_v8 = vrot.slane %v18931_v32, 1 }
 0x371   : > { %11542 = vmatprep.mubr.msk.bf16.mxu1 %vm1945_vm8, %v3539_v23  ;;  %v18925_v23 = vld [vmem:[#allocation156_spill] sm:$0xff] }
 0x374   : > { %11999 = vmatmul.mubr.msk.bf16.gmra.mrb[24].mxu0 %vm1945_vm8, %v7829_v42  ;;  %v3553_v42 = vrot.slane %v18925_v23, 1 }
 0x375   : > { %12002 = vmatprep.mubr.msk.bf16.mxu0 %vm1945_vm8, %v7831_v19  ;;  %v18926_v19 = vld [vmem:[#allocation159_spill] sm:$0xff] }
 0x376   : > { %v3555_v17 = vrot.slane %v18926_v19, 1 }
 0x378   : > { %11543 = vmatmul.mubr.msk.bf16.gmra.mrb[88].mxu1 %vm1945_vm8, %v3541_v22  ;;  %v3554_v22 = vsel %vm3443_vm7, %v3551_v7, %v3553_v42  ;;  %v3556_v52 = vsel %vm3443_vm7, %v3553_v42, %v3555_v17  ;;  %v3558_v28 = vsel %vm3443_vm7, %v3555_v17, %v3557_v18  ;;  %v3562_v17 = vsel %vm3443_vm7, %v3559_v38, %v3561_v8 }
 0x379   : > { %11546 = vmatprep.mubr.msk.bf16.mxu1 %vm1945_vm8, %v3543_v46  ;;  %v7847_v46 = vrot.slane %v18928_v3, 3 }
 0x37c   : > { %12003 = vmatmul.mubr.msk.bf16.gmra.mrb[28].mxu0 %vm1945_vm8, %v7833_v0  ;;  %v7846_v0 = vsel %vm2139_vm2, %v7843_v51, %v7845_v35 }
 0x37d   : > { %12006 = vmatprep.mubr.msk.bf16.mxu0 %vm1945_vm8, %v7836_v21  ;;  %v7848_v21 = vsel %vm2139_vm2, %v7845_v35, %v7847_v46  ;;  %v7856_v35 = vrot.slane %v18935_v10, 3 }
 0x380   : > { %11547 = vmatmul.mubr.msk.bf16.gmra.mrb[92].mxu1 %vm1945_vm8, %v3545_v44  ;;  %v7849_v44 = vrot.slane %v18807_v27, 3 }
 0x381   : > { %11550 = vmatprep.mubr.msk.bf16.mxu1 %vm1945_vm8, %v3548_v12  ;;  %v7852_v12 = vrot.slane %v18901_v43, 3 }
 0x382   : > { %v7850_v30 = vsel %vm2139_vm2, %v7847_v46, %v7849_v44 }
 0x384   : > { %12007 = vmatmul.mubr.msk.bf16.gmra.mrb[32].mxu0 %vm1945_vm8, %v7838_v1  ;;  %v3560_v1 = vsel %vm3443_vm7, %v3557_v18, %v3559_v38  ;;  %v18937_v38 = vld [vmem:[#allocation179_spill] sm:$0xff] }
 0x385   : > { %12010 = vmatprep.mubr.msk.bf16.mxu0 %vm1945_vm8, %v7840_v25  ;;  %v7851_v25 = vrot.slane %v18902_v57, 3  ;;  %v18933_v57 = vld [vmem:[#allocation171_spill] sm:$0xff]  ;;  %v3568_v44 = vrot.slane %v18937_v38, 1 }
 0x387   : > { %v7853_v27 = vsel %vm2139_vm2, %v7851_v25, %v7852_v12 }
 0x388   : > { %11551 = vmatmul.mubr.msk.bf16.gmra.mrb[96].mxu1 %vm1945_vm8, %v3550_v58  ;;  %v18932_v58 = vld [vmem:[#allocation173_spill] sm:$0xff] }
 0x389   : > { %11554 = vmatprep.mubr.msk.bf16.mxu1 %vm1945_vm8, %v3552_v49  ;;  %v3564_v9 = vrot.slane %v18932_v58, 1 }
 0x38c   : > { %12011 = vmatmul.mubr.msk.bf16.gmra.mrb[36].mxu0 %vm1945_vm8, %v7842_v41  ;;  %v3563_v41 = vrot.slane %v18933_v57, 1 }
 0x38d   : > { %12014 = vmatprep.mubr.msk.bf16.mxu0 %vm1945_vm8, %v7844_v63  ;;  %v18934_v63 = vld [vmem:[#allocation87_spill] sm:$0xff] }
 0x38e   : > { %v7854_v42 = vrot.slane %v18934_v63, 3 }
 0x390   : > { %11555 = vmatmul.mubr.msk.bf16.gmra.mrb[100].mxu1 %vm1945_vm8, %v3554_v22  ;;  %v3565_v22 = vsel %vm3443_vm7, %v3563_v41, %v3564_v9  ;;  %v7855_v3 = vsel %vm2139_vm2, %v7852_v12, %v7854_v42  ;;  %v7858_v12 = vrot.slane %v18911_v62, 3 }
 0x391   : > { %11558 = vmatprep.mubr.msk.bf16.mxu1 %vm1945_vm8, %v3556_v52  ;;  %v7857_v52 = vsel %vm2139_vm2, %v7854_v42, %v7856_v35  ;;  %v18938_v42 = vld [vmem:[#allocation182_spill] sm:$0xff] }
 0x392   : > { %v7859_v8 = vsel %vm2139_vm2, %v7856_v35, %v7858_v12  ;;  %v3570_v62 = vrot.slane %v18938_v42, 1  ;;  %v7862_v35 = vrot.slane %v18754_v11, 3 }
 0x394   : > { %12015 = vmatmul.mubr.msk.bf16.gmra.mrb[40].mxu0 %vm1945_vm8, %v7846_v0  ;;  %v18936_v0 = vld [vmem:[#allocation176_spill] sm:$0xff] }
 0x395   : > { %12018 = vmatprep.mubr.msk.bf16.mxu0 %vm1945_vm8, %v7848_v21  ;;  %v3566_v21 = vrot.slane %v18936_v0, 1 }
 0x397   : > { %v3567_v25 = vsel %vm3443_vm7, %v3564_v9, %v3566_v21 }
 0x398   : > { %11559 = vmatmul.mubr.msk.bf16.gmra.mrb[104].mxu1 %vm1945_vm8, %v3558_v28 }
 0x399   : > { %11562 = vmatprep.mubr.msk.bf16.mxu1 %vm1945_vm8, %v3560_v1 }
 0x39b   : > { %v15522_v7 = vpop.f32.mrb[0].mxu1 }
 0x39c   : > { %12019 = vmatmul.mubr.msk.bf16.gmra.mrb[44].mxu0 %vm1945_vm8, %v7850_v30  ;;  %v15527_v43 = vpop.f32.mrb[1].mxu1  ;;  %v7860_v30 = vrot.slane %v18914_v31, 3  ;;  %v18939_v31 = vld [vmem:[#allocation185_spill] sm:$0xff] }
 0x39d   : > { %12022 = vmatprep.mubr.msk.bf16.mxu0 %vm1945_vm8, %v7853_v27  ;;  %v15530_v51 = vpop.f32.mrb[2].mxu1  ;;  %v3569_v27 = vsel %vm3443_vm7, %v3566_v21, %v3568_v44 }
 0x39e   : > { %v15532_v49 = vpop.f32.mrb[3].mxu1  ;;  %v7861_v63 = vsel %vm2139_vm2, %v7858_v12, %v7860_v30  ;;  %v7863_v12 = vsel %vm2139_vm2, %v7860_v30, %v7862_v35  ;;  %v7866_v30 = vrot.slane %v14035_v39, 3 }
 0x3a0   : > { %11563 = vmatmul.mubr.msk.bf16.gmra.mrb[108].mxu1 %vm1945_vm8, %v3562_v17  ;;  %v3572_v17 = vrot.slane %v18939_v31, 1 }
 0x3a1   : > { %11566 = vmatprep.mubr.msk.bf16.mxu1 %vm1945_vm8, %v3565_v22 }
 0x3a2   : > { %v3573_v21 = vsel %vm3443_vm7, %v3570_v62, %v3572_v17 }
 0x3a3   : > { %v15543_v46 = vpop.f32.mrb[4].mxu1 }
 0x3a4   : > { %12023 = vmatmul.mubr.msk.bf16.gmra.mrb[48].mxu0 %vm1945_vm8, %v7855_v3  ;;  %v15548_v18 = vpop.f32.mrb[5].mxu1  ;;  %v3571_v3 = vsel %vm3443_vm7, %v3568_v44, %v3570_v62 }
 0x3a5   : > { %12026 = vmatprep.mubr.msk.bf16.mxu0 %vm1945_vm8, %v7857_v52  ;;  %v15551_v28 = vpop.f32.mrb[6].mxu1  ;;  %v7864_v52 = vrot.slane %v18721_v2, 3  ;;  %v18943_v2 = vld [vmem:[#allocation190_spill] sm:$0xff] }
 0x3a6   : > { %v15553_v1 = vpop.f32.mrb[7].mxu1 }
 0x3a8   : > { %11567 = vmatmul.mubr.msk.bf16.gmra.mrb[112].mxu1 %vm1945_vm8, %v3567_v25 }
 0x3a9   : > { %11570 = vmatprep.mubr.msk.bf16.mxu1 %vm1945_vm8, %v3569_v27  ;;  %v7865_v27 = vsel %vm2139_vm2, %v7862_v35, %v7864_v52 }
 0x3ab   : > { %v15563_v41 = vpop.f32.mrb[8].mxu1 }
 0x3ac   : > { %12027 = vmatmul.mubr.msk.bf16.gmra.mrb[52].mxu0 %vm1945_vm8, %v7859_v8  ;;  %v15568_v9 = vpop.f32.mrb[9].mxu1  ;;  %v18941_v8 = vld [vmem:[#allocation100_spill] sm:$0xff] }
 0x3ad   : > { %12030 = vmatprep.mubr.msk.bf16.mxu0 %vm1945_vm8, %v7861_v63  ;;  %v15571_v10 = vpop.f32.mrb[10].mxu1  ;;  %v3574_v11 = vrot.slane %v18941_v8, 1  ;;  %v3576_v63 = vrot.slane %v18943_v2, 1  ;;  %v18948_v2 = vld [vmem:[#allocation107_spill] sm:$0xff] }
 0x3ae   : > { %v15573_v22 = vpop.f32.mrb[11].mxu1  ;;  %v4605_v39 = vrot.slane %v18948_v2, 1 }
 0x3af   : > { %v3577_v35 = vsel %vm3443_vm7, %v3574_v11, %v3576_v63 }
 0x3b0   : > { %11571 = vmatmul.mubr.msk.bf16.gmra.mrb[116].mxu1 %vm1945_vm8, %v3571_v3 }
 0x3b1   : > { %11574 = vmatprep.mubr.msk.bf16.mxu1 %vm1945_vm8, %v3573_v21  ;;  %v3575_v21 = vsel %vm3443_vm7, %v3572_v17, %v3574_v11 }
 0x3b3   : > { %v15583_v25 = vpop.f32.mrb[12].mxu1 }
 0x3b4   : > { %12031 = vmatmul.mubr.msk.bf16.gmra.mrb[56].mxu0 %vm1945_vm8, %v7863_v12  ;;  %18940 = vst [vmem:[#allocation15_spill] sm:$0xff] %v15583_v25  ;;  %v15588_v44 = vpop.f32.mrb[13].mxu1  ;;  %v7869_v12 = vrot.slane %v14083_v6, 3  ;;  %v18949_v25 = vld [vmem:[#allocation108_spill] sm:$0xff] }
 0x3b5   : > { %12034 = vmatprep.mubr.msk.bf16.mxu0 %vm1945_vm8, %v7865_v27  ;;  %18942 = vst [vmem:[#allocation30_spill] sm:$0xff] %v15588_v44  ;;  %v15591_v3 = vpop.f32.mrb[14].mxu1  ;;  %v4608_v27 = vrot.slane %v18946_v36, 1  ;;  %v4609_v44 = vrot.slane %v18947_v34, 2  ;;  %v4606_v17 = vrot.slane %v18949_v25, 2  ;;  %v3578_v36 = vrot.slane %v18915_v48, 1 }
 0x3b6   : > { %18944 = vst [vmem:[#allocation35_spill] sm:$0xff] %v15591_v3  ;;  %v15593_v62 = vpop.f32.mrb[15].mxu1  ;;  %v7868_v3 = vrot.slane %v18917_v13, 3  ;;  %v7871_v25 = vrot.slane %v18918_v5, 3 }
 0x3b7   : > { %18945 = vst [vmem:[#allocation36_spill] sm:$0xff] %v15593_v62  ;;  %v7867_v62 = vsel %vm2139_vm2, %v7864_v52, %v7866_v30  ;;  %v4607_v2 = vor.u32 %v4606_v17, %v4605_v39  ;;  %v7873_v30 = vrot.slane %v18919_v47, 3 }
 0x3b8   : > { %11575 = vmatmul.mubr.msk.bf16.gmra.mrb[120].mxu1 %vm1945_vm8, %v3575_v21  ;;  %v7870_v11 = vsel %vm2139_vm2, %v7868_v3, %v7869_v12  ;;  %v4610_v21 = vor.u32 %v4609_v44, %v4608_v27  ;;  %v18955_v44 = vld [vmem:[#allocation117_spill] sm:$0xff]  ;;  %v7872_v5 = vsel %vm2139_vm2, %v7869_v12, %v7871_v25 }
 0x3b9   : > { %11578 = vmatprep.mubr.msk.bf16.mxu1 %vm1945_vm8, %v3577_v35  ;;  %v18953_v35 = vld [vmem:[#allocation114_spill] sm:$0xff]  ;;  %v4616_v27 = vrot.slane %v18955_v44, 1  ;;  %v7874_v47 = vsel %vm2139_vm2, %v7871_v25, %v7873_v30 }
 0x3ba   : > { %v4612_v3 = vrot.slane %v18953_v35, 1  ;;  %v18957_v35 = vld [vmem:[#allocation119_spill] sm:$0xff]  ;;  %v18958_v44 = vld [vmem:[#allocation118_spill] sm:$0xff] }
 0x3bb   : > { %v15608_v6 = vpop.f32.mrb[16].mxu1  ;;  %v4621_v25 = vrot.slane %v18958_v44, 2 }
 0x3bc   : > { %12035 = vmatmul.mubr.msk.bf16.gmra.mrb[60].mxu0 %vm1945_vm8, %v7867_v62  ;;  %18950 = vst [vmem:[#allocation97_spill] sm:$0xff] %v15608_v6  ;;  %v15613_v34 = vpop.f32.mrb[17].mxu1  ;;  %v3579_v62 = vsel %vm3443_vm7, %v3576_v63, %v3578_v36  ;;  %v18954_v6 = vld [vmem:[#allocation112_spill] sm:$0xff] }
 0x3bd   : > { %12038 = vmatprep.mubr.msk.bf16.mxu0 %vm1945_vm8, %v7870_v11  ;;  %18951 = vst [vmem:[#allocation17_spill] sm:$0xff] %v15613_v34  ;;  %v15615_v13 = vpop.f32.mrb[18].mxu1  ;;  %v4613_v48 = vrot.slane %v18954_v6, 2  ;;  %v4611_v11 = vsel %vm4456_vm9, %v4607_v2, %v4610_v21 }
 0x3be   : > { %18952 = vst [vmem:[#allocation16_spill] sm:$0xff] %v15615_v13  ;;  %v15617_v52 = vpop.f32.mrb[19].mxu1  ;;  %v18956_v13 = vld [vmem:[#allocation115_spill] sm:$0xff] }
 0x3bf   : > { %v4617_v34 = vrot.slane %v18956_v13, 2  ;;  %v4614_v39 = vor.u32 %v4613_v48, %v4612_v3  ;;  %v7875_v13 = vrot.slane %v18920_v37, 3  ;;  %v18959_v3 = vld [vmem:[#allocation122_spill] sm:$0xff] }
 0x3c0   : > { %11579 = vmatmul.mubr.msk.bf16.gmra.mrb[124].mxu1 %vm1945_vm8, %v3579_v62  ;;  %v7877_v62 = vrot.slane %v14174_v29, 3 }
 0x3c1   : > { %11648 = vmatprep.mubr.msk.bf16.mxu1 %vm1945_vm8, %v4611_v11  ;;  %v4618_v6 = vor.u32 %v4617_v34, %v4616_v27  ;;  %v4615_v12 = vsel %vm4456_vm9, %v4610_v21, %v4614_v39  ;;  %v4620_v11 = vrot.slane %v18957_v35, 1  ;;  %v4624_v34 = vrot.slane %v18959_v3, 1  ;;  %v18960_v27 = vld [vmem:[#allocation120_spill] sm:$0xff] }
 0x3c2   : > { %v7876_v37 = vsel %vm2139_vm2, %v7873_v30, %v7875_v13  ;;  %v7878_v29 = vsel %vm2139_vm2, %v7875_v13, %v7877_v62  ;;  %v7881_v3 = vrot.slane %v14224_v54, 3 }
 0x3c3   : > { %v15631_v63 = vpop.f32.mrb[20].mxu1  ;;  %v4619_v48 = vsel %vm4456_vm9, %v4614_v39, %v4618_v6 }
 0x3c4   : > { %12039 = vmatmul.mubr.msk.bf16.gmra.mrb[64].mxu0 %vm1945_vm8, %v7872_v5  ;;  %v15635_v17 = vpop.f32.mrb[21].mxu1  ;;  %v4625_v5 = vrot.slane %v18960_v27, 2  ;;  %v18962_v27 = vld [vmem:[#allocation125_spill] sm:$0xff] }
 0x3c5   : > { %12042 = vmatprep.mubr.msk.bf16.mxu0 %vm1945_vm8, %v7874_v47  ;;  %v15637_v36 = vpop.f32.mrb[22].mxu1  ;;  %v4622_v47 = vor.u32 %v4621_v25, %v4620_v11  ;;  %v18964_v25 = vld [vmem:[#allocation127_spill] sm:$0xff] }
 0x3c6   : > { %v15639_v2 = vpop.f32.mrb[23].mxu1  ;;  %v4626_v39 = vor.u32 %v4625_v5, %v4624_v34  ;;  %v4632_v34 = vrot.slane %v18964_v25, 1  ;;  %v18965_v5 = vld [vmem:[#allocation126_spill] sm:$0xff] }
 0x3c7   : > { %v4623_v30 = vsel %vm4456_vm9, %v4618_v6, %v4622_v47 }
 0x3c8   : > { %11649 = vmatmul.mubr.msk.bf16.vlgmr.msra.gmra.mrb[64].mxu1 %vm1945_vm8, %v4615_v12  ;;  %v4627_v11 = vsel %vm4456_vm9, %v4622_v47, %v4626_v39 }
 0x3c9   : > { %11652 = vmatprep.mubr.msk.bf16.mxu1 %vm1945_vm8, %v4619_v48  ;;  %v7879_v48 = vrot.slane %v14202_v45, 3 }
 0x3cb   : > { %v15653_v21 = vpop.f32.mrb[24].mxu1  ;;  %v7880_v45 = vsel %vm2139_vm2, %v7877_v62, %v7879_v48  ;;  %v7882_v54 = vsel %vm2139_vm2, %v7879_v48, %v7881_v3  ;;  %v18971_v48 = vld [vmem:[#allocation128_spill] sm:$0xff] }
 0x3cc   : > { %12043 = vmatmul.mubr.msk.bf16.gmra.mrb[68].mxu0 %vm1945_vm8, %v7876_v37  ;;  %18961 = vst [vmem:[#allocation19_spill] sm:$0xff] %v15653_v21  ;;  %v15657_v12 = vpop.f32.mrb[25].mxu1  ;;  %v4628_v37 = vrot.slane %v18962_v27, 1  ;;  %v18963_v21 = vld [vmem:[#allocation123_spill] sm:$0xff] }
 0x3cd   : > { %12046 = vmatprep.mubr.msk.bf16.mxu0 %vm1945_vm8, %v7878_v29  ;;  %v15659_v35 = vpop.f32.mrb[26].mxu1  ;;  %v4629_v13 = vrot.slane %v18963_v21, 2  ;;  %v4633_v29 = vrot.slane %v18965_v5, 2  ;;  %v7886_v5 = vrot.slane %v14282_v20, 3  ;;  %v18974_v20 = vld [vmem:[#allocation130_spill] sm:$0xff] }
 0x3ce   : > { %v15661_v44 = vpop.f32.mrb[27].mxu1 }
 0x3cf   : > { %v4630_v27 = vor.u32 %v4629_v13, %v4628_v37  ;;  %v4634_v47 = vor.u32 %v4633_v29, %v4632_v34  ;;  %v4639_v37 = vrot.slane %v18971_v48, 2  ;;  %v18972_v34 = vld [vmem:[#allocation132_spill] sm:$0xff] }
 0x3d0   : > { %11653 = vmatmul.mubr.msk.bf16.gmra.mrb[68].mxu1 %vm1945_vm8, %v4623_v30  ;;  %v4645_v29 = vrot.slane %v18972_v34, 1 }
 0x3d1   : > { %11656 = vmatprep.mubr.msk.bf16.mxu1 %vm1945_vm8, %v4627_v11  ;;  %v7883_v11 = vrot.slane %v14247_v55, 3  ;;  %v4631_v62 = vsel %vm4456_vm9, %v4626_v39, %v4630_v27  ;;  %v4635_v13 = vsel %vm4456_vm9, %v4630_v27, %v4634_v47 }
 0x3d3   : > { %v15675_v6 = vpop.f32.mrb[28].mxu1  ;;  %v7884_v39 = vsel %vm2139_vm2, %v7881_v3, %v7883_v11  ;;  %v7888_v11 = vrot.slane %v14300_v50, 3 }
 0x3d4   : > { %12047 = vmatmul.mubr.msk.bf16.gmra.mrb[72].mxu0 %vm1945_vm8, %v7880_v45  ;;  %18966 = vst [vmem:[#allocation18_spill] sm:$0xff] %v15675_v6  ;;  %v15679_v21 = vpop.f32.mrb[29].mxu1  ;;  %v18970_v45 = vshrl.u32 %v14247_v55, 16  ;;  %v18975_v55 = vld [vmem:[#allocation129_spill] sm:$0xff] }
 0x3d5   : > { %12050 = vmatprep.mubr.msk.bf16.mxu0 %vm1945_vm8, %v7882_v54  ;;  %18967 = vst [vmem:[#allocation124_spill] sm:$0xff] %v15679_v21  ;;  %v15681_v30 = vpop.f32.mrb[30].mxu1  ;;  %v18973_v54 = vld [vmem:[#allocation131_spill] sm:$0xff]  ;;  %v4642_v21 = vrot.slane %v18974_v20, 1  ;;  %v7889_v50 = vsel %vm2139_vm2, %v7886_v5, %v7888_v11 }
 0x3d6   : > { %18968 = vst [vmem:[#allocation121_spill] sm:$0xff] %v15681_v30  ;;  %v15683_v25 = vpop.f32.mrb[31].mxu1  ;;  %v4638_v6 = vrot.slane %v18970_v45, 1  ;;  %v4646_v30 = vrot.slane %v18973_v54, 2  ;;  %v4643_v45 = vrot.slane %v18975_v55, 2  ;;  %v18978_v55 = vld [vmem:[#allocation134_spill] sm:$0xff] }
 0x3d7   : > { %18969 = vst [vmem:[#allocation21_spill] sm:$0xff] %v15683_v25  ;;  %v7885_v25 = vrot.slane %v14266_v53, 3 }
 0x3d8   : > { %11657 = vmatmul.mubr.msk.bf16.gmra.mrb[72].mxu1 %vm1945_vm8, %v4631_v62  ;;  %v4640_v62 = vor.u32 %v4639_v37, %v4638_v6  ;;  %v4644_v3 = vor.u32 %v4643_v45, %v4642_v21 }
 0x3d9   : > { %11660 = vmatprep.mubr.msk.bf16.mxu1 %vm1945_vm8, %v4635_v13  ;;  %v7887_v27 = vsel %vm2139_vm2, %v7885_v25, %v7886_v5  ;;  %v4647_v13 = vor.u32 %v4646_v30, %v4645_v29  ;;  %v18979_v25 = vld [vmem:[#allocation133_spill] sm:$0xff] }
 0x3da   : > { %v4641_v20 = vsel %vm4456_vm9, %v4634_v47, %v4640_v62  ;;  %v4650_v6 = vrot.slane %v18979_v25, 2  ;;  %v18980_v30 = vld [vmem:[#allocation137_spill] sm:$0xff]  ;;  %v7894_v25 = vrot.slane %v14357_v4, 3 }
 0x3db   : > { %v15701_v48 = vpop.f32.mrb[32].mxu1  ;;  %v4648_v37 = vsel %vm4456_vm9, %v4644_v3, %v4647_v13  ;;  %v4653_v29 = vrot.slane %v18980_v30, 1 }
 0x3dc   : > { %12051 = vmatmul.mubr.msk.bf16.gmra.mrb[76].mxu0 %vm1945_vm8, %v7884_v39  ;;  %18976 = vst [vmem:[#allocation20_spill] sm:$0xff] %v15701_v48  ;;  %v15705_v34 = vpop.f32.mrb[33].mxu1  ;;  %v7890_v39 = vrot.slane %v14319_v16, 3  ;;  %v4649_v48 = vrot.slane %v18978_v55, 1  ;;  %v7892_v55 = vrot.slane %v18921_v14, 3 }
 0x3dd   : > { %12054 = vmatprep.mubr.msk.bf16.mxu0 %vm1945_vm8, %v7887_v27  ;;  %v15707_v54 = vpop.f32.mrb[34].mxu1  ;;  %v18981_v27 = vld [vmem:[#allocation135_spill] sm:$0xff] }
 0x3de   : > { %18977 = vst [vmem:[#allocation23_spill] sm:$0xff] %v15707_v54  ;;  %v15709_v53 = vpop.f32.mrb[35].mxu1  ;;  %v4654_v54 = vrot.slane %v18981_v27, 2  ;;  %v7891_v16 = vsel %vm2139_vm2, %v7888_v11, %v7890_v39  ;;  %v4651_v47 = vor.u32 %v4650_v6, %v4649_v48  ;;  %v18983_v27 = vld [vmem:[#allocation138_spill] sm:$0xff]  ;;  %v18984_v6 = vld [vmem:[#allocation141_spill] sm:$0xff]  ;;  %v7893_v14 = vsel %vm2139_vm2, %v7890_v39, %v7892_v55 }
 0x3df   : > { %v4658_v11 = vrot.slane %v18983_v27, 2  ;;  %v7895_v4 = vsel %vm2139_vm2, %v7892_v55, %v7894_v25 }
 0x3e0   : > { %11661 = vmatmul.mubr.msk.bf16.gmra.mrb[76].mxu1 %vm1945_vm8, %v4641_v20  ;;  %v4655_v62 = vor.u32 %v4654_v54, %v4653_v29  ;;  %v4652_v5 = vsel %vm4456_vm9, %v4647_v13, %v4651_v47  ;;  %v4661_v54 = vrot.slane %v18984_v6, 1  ;;  %v18985_v29 = vld [vmem:[#allocation140_spill] sm:$0xff]  ;;  %v7898_v6 = vrot.slane %v14396_v60, 3 }
 0x3e1   : > { %11664 = vmatprep.mubr.msk.bf16.mxu1 %vm1945_vm8, %v4648_v37  ;;  %v18982_v37 = vld [vmem:[#allocation139_spill] sm:$0xff] }
 0x3e2   : > { %v4657_v30 = vrot.slane %v18982_v37, 1  ;;  %v4656_v48 = vsel %vm4456_vm9, %v4651_v47, %v4655_v62 }
 0x3e3   : > { %v15723_v21 = vpop.f32.mrb[36].mxu1 }
 0x3e4   : > { %12055 = vmatmul.mubr.msk.bf16.gmra.mrb[80].mxu0 %vm1945_vm8, %v7889_v50  ;;  %v15727_v45 = vpop.f32.mrb[37].mxu1  ;;  %v4662_v50 = vrot.slane %v18985_v29, 2  ;;  %v18987_v29 = vld [vmem:[#allocation144_spill] sm:$0xff] }
 0x3e5   : > { %12058 = vmatprep.mubr.msk.bf16.mxu0 %vm1945_vm8, %v7891_v16  ;;  %v15729_v3 = vpop.f32.mrb[38].mxu1  ;;  %v4659_v16 = vor.u32 %v4658_v11, %v4657_v30  ;;  %v18989_v11 = vld [vmem:[#allocation146_spill] sm:$0xff] }
 0x3e6   : > { %v15731_v20 = vpop.f32.mrb[39].mxu1  ;;  %v4663_v47 = vor.u32 %v4662_v50, %v4661_v54  ;;  %v4669_v54 = vrot.slane %v18989_v11, 1  ;;  %v18990_v50 = vld [vmem:[#allocation145_spill] sm:$0xff] }
 0x3e7   : > { %v4660_v39 = vsel %vm4456_vm9, %v4655_v62, %v4659_v16 }
 0x3e8   : > { %11665 = vmatmul.mubr.msk.bf16.gmra.mrb[80].mxu1 %vm1945_vm8, %v4652_v5  ;;  %v4664_v30 = vsel %vm4456_vm9, %v4659_v16, %v4663_v47 }
 0x3e9   : > { %11668 = vmatprep.mubr.msk.bf16.mxu1 %vm1945_vm8, %v4656_v48  ;;  %v7896_v48 = vrot.slane %v14375_v59, 3 }
 0x3eb   : > { %v15745_v13 = vpop.f32.mrb[40].mxu1  ;;  %v7897_v59 = vsel %vm2139_vm2, %v7894_v25, %v7896_v48  ;;  %v7899_v60 = vsel %vm2139_vm2, %v7896_v48, %v7898_v6  ;;  %v18996_v48 = vld [vmem:[#allocation147_spill] sm:$0xff] }
 0x3ec   : > { %12059 = vmatmul.mubr.msk.bf16.gmra.mrb[84].mxu0 %vm1945_vm8, %v7893_v14  ;;  %18986 = vst [vmem:[#allocation22_spill] sm:$0xff] %v15745_v13  ;;  %v15749_v5 = vpop.f32.mrb[41].mxu1  ;;  %v4665_v14 = vrot.slane %v18987_v29, 1  ;;  %v18988_v13 = vld [vmem:[#allocation142_spill] sm:$0xff] }
 0x3ed   : > { %12062 = vmatprep.mubr.msk.bf16.mxu0 %vm1945_vm8, %v7895_v4  ;;  %v15751_v37 = vpop.f32.mrb[42].mxu1  ;;  %v4666_v55 = vrot.slane %v18988_v13, 2  ;;  %v4670_v4 = vrot.slane %v18990_v50, 2  ;;  %v7903_v50 = vrot.slane %v14441_v26, 3  ;;  %v18999_v26 = vld [vmem:[#allocation149_spill] sm:$0xff] }
 0x3ee   : > { %v15753_v27 = vpop.f32.mrb[43].mxu1 }
 0x3ef   : > { %v4667_v29 = vor.u32 %v4666_v55, %v4665_v14  ;;  %v4671_v16 = vor.u32 %v4670_v4, %v4669_v54  ;;  %v4676_v14 = vrot.slane %v18996_v48, 2  ;;  %v18997_v54 = vld [vmem:[#allocation151_spill] sm:$0xff] }
 0x3f0   : > { %11669 = vmatmul.mubr.msk.bf16.gmra.mrb[84].mxu1 %vm1945_vm8, %v4660_v39  ;;  %v4682_v4 = vrot.slane %v18997_v54, 1 }
 0x3f1   : > { %11672 = vmatprep.mubr.msk.bf16.mxu1 %vm1945_vm8, %v4664_v30  ;;  %v7900_v30 = vrot.slane %v18863_v33, 3  ;;  %v4668_v25 = vsel %vm4456_vm9, %v4663_v47, %v4667_v29  ;;  %v4672_v55 = vsel %vm4456_vm9, %v4667_v29, %v4671_v16 }
 0x3f3   : > { %v15767_v62 = vpop.f32.mrb[44].mxu1  ;;  %v7901_v47 = vsel %vm2139_vm2, %v7898_v6, %v7900_v30  ;;  %v7905_v30 = vrot.slane %v14459_v61, 3 }
 0x3f4   : > { %12063 = vmatmul.mubr.msk.bf16.gmra.mrb[88].mxu0 %vm1945_vm8, %v7897_v59  ;;  %18991 = vst [vmem:[#allocation25_spill] sm:$0xff] %v15767_v62  ;;  %v15771_v13 = vpop.f32.mrb[45].mxu1  ;;  %v18995_v59 = vshrl.u32 %v18863_v33, 16  ;;  %v19000_v33 = vld [vmem:[#allocation148_spill] sm:$0xff] }
 0x3f5   : > { %12066 = vmatprep.mubr.msk.bf16.mxu0 %vm1945_vm8, %v7899_v60  ;;  %18992 = vst [vmem:[#allocation24_spill] sm:$0xff] %v15771_v13  ;;  %v15773_v39 = vpop.f32.mrb[46].mxu1  ;;  %v18998_v60 = vld [vmem:[#allocation150_spill] sm:$0xff]  ;;  %v4679_v13 = vrot.slane %v18999_v26, 1  ;;  %v7906_v61 = vsel %vm2139_vm2, %v7903_v50, %v7905_v30 }
 0x3f6   : > { %18993 = vst [vmem:[#allocation28_spill] sm:$0xff] %v15773_v39  ;;  %v15775_v11 = vpop.f32.mrb[47].mxu1  ;;  %v4675_v62 = vrot.slane %v18995_v59, 1  ;;  %v4683_v39 = vrot.slane %v18998_v60, 2  ;;  %v4680_v59 = vrot.slane %v19000_v33, 2  ;;  %v19003_v33 = vld [vmem:[#allocation154_spill] sm:$0xff] }
 0x3f7   : > { %18994 = vst [vmem:[#allocation27_spill] sm:$0xff] %v15775_v11  ;;  %v7902_v11 = vrot.slane %v14416_v15, 3 }
 0x3f8   : > { %11673 = vmatmul.mubr.msk.bf16.gmra.mrb[88].mxu1 %vm1945_vm8, %v4668_v25  ;;  %v4677_v25 = vor.u32 %v4676_v14, %v4675_v62  ;;  %v4681_v6 = vor.u32 %v4680_v59, %v4679_v13 }
 0x3f9   : > { %11676 = vmatprep.mubr.msk.bf16.mxu1 %vm1945_vm8, %v4672_v55  ;;  %v7904_v29 = vsel %vm2139_vm2, %v7902_v11, %v7903_v50  ;;  %v4684_v55 = vor.u32 %v4683_v39, %v4682_v4  ;;  %v19004_v11 = vld [vmem:[#allocation152_spill] sm:$0xff]  ;;  %v19005_v39 = vld [vmem:[#allocation157_spill] sm:$0xff] }
 0x3fa   : > { %v4678_v26 = vsel %vm4456_vm9, %v4671_v16, %v4677_v25  ;;  %v4687_v62 = vrot.slane %v19004_v11, 2  ;;  %v4690_v4 = vrot.slane %v19005_v39, 1  ;;  %v19008_v11 = vld [vmem:[#allocation160_spill] sm:$0xff] }
 0x3fb   : > { %v15793_v48 = vpop.f32.mrb[48].mxu1  ;;  %v4685_v14 = vsel %vm4456_vm9, %v4681_v6, %v4684_v55  ;;  %v4694_v50 = vrot.slane %v19008_v11, 1 }
 0x3fc   : > { %12067 = vmatmul.mubr.msk.bf16.gmra.mrb[92].mxu0 %vm1945_vm8, %v7901_v47  ;;  %19001 = vst [vmem:[#allocation26_spill] sm:$0xff] %v15793_v48  ;;  %v15797_v54 = vpop.f32.mrb[49].mxu1  ;;  %v7907_v47 = vrot.slane %v18922_v56, 3  ;;  %v4686_v48 = vrot.slane %v19003_v33, 1  ;;  %v7909_v33 = vrot.slane %v18925_v23, 3 }
 0x3fd   : > { %12070 = vmatprep.mubr.msk.bf16.mxu0 %vm1945_vm8, %v7904_v29  ;;  %v15799_v60 = vpop.f32.mrb[50].mxu1  ;;  %v19006_v29 = vld [vmem:[#allocation155_spill] sm:$0xff] }
 0x3fe   : > { %19002 = vst [vmem:[#allocation29_spill] sm:$0xff] %v15799_v60  ;;  %v15801_v15 = vpop.f32.mrb[51].mxu1  ;;  %v4691_v60 = vrot.slane %v19006_v29, 2  ;;  %v7908_v56 = vsel %vm2139_vm2, %v7905_v30, %v7907_v47  ;;  %v4688_v16 = vor.u32 %v4687_v62, %v4686_v48  ;;  %v7911_v30 = vrot.slane %v18926_v19, 3  ;;  %v19010_v62 = vld [vmem:[#allocation163_spill] sm:$0xff] }
 0x3ff   : > { %v7910_v23 = vsel %vm2139_vm2, %v7907_v47, %v7909_v33  ;;  %v7913_v47 = vrot.slane %v18929_v24, 3 }
 0x400   : > { %11677 = vmatmul.mubr.msk.bf16.gmra.mrb[92].mxu1 %vm1945_vm8, %v4678_v26  ;;  %v4692_v25 = vor.u32 %v4691_v60, %v4690_v4  ;;  %v4689_v29 = vsel %vm4456_vm9, %v4684_v55, %v4688_v16  ;;  %v4698_v60 = vrot.slane %v19010_v62, 1  ;;  %v19011_v4 = vld [vmem:[#allocation161_spill] sm:$0xff]  ;;  %v7912_v55 = vsel %vm2139_vm2, %v7909_v33, %v7911_v30 }
 0x401   : > { %11680 = vmatprep.mubr.msk.bf16.mxu1 %vm1945_vm8, %v4685_v14  ;;  %v19009_v14 = vld [vmem:[#allocation158_spill] sm:$0xff]  ;;  %v7915_v62 = vrot.slane %v18930_v40, 3  ;;  %v19016_v33 = vld [vmem:[#allocation169_spill] sm:$0xff] }
 0x402   : > { %v4695_v39 = vrot.slane %v19009_v14, 2  ;;  %v4693_v48 = vsel %vm4456_vm9, %v4688_v16, %v4692_v25 }
 0x403   : > { %v15815_v13 = vpop.f32.mrb[52].mxu1  ;;  %v7916_v40 = vsel %vm2139_vm2, %v7913_v47, %v7915_v62 }
 0x404   : > { %12071 = vmatmul.mubr.msk.bf16.gmra.mrb[96].mxu0 %vm1945_vm8, %v7906_v61  ;;  %v15819_v59 = vpop.f32.mrb[53].mxu1  ;;  %v4699_v61 = vrot.slane %v19011_v4, 2  ;;  %v19015_v4 = vld [vmem:[#allocation164_spill] sm:$0xff] }
 0x405   : > { %12074 = vmatprep.mubr.msk.bf16.mxu0 %vm1945_vm8, %v7908_v56  ;;  %v15821_v6 = vpop.f32.mrb[54].mxu1  ;;  %v4696_v56 = vor.u32 %v4695_v39, %v4694_v50  ;;  %v19014_v50 = vld [vmem:[#allocation166_spill] sm:$0xff] }
 0x406   : > { %v15823_v26 = vpop.f32.mrb[55].mxu1  ;;  %v4700_v16 = vor.u32 %v4699_v61, %v4698_v60  ;;  %v4702_v39 = vrot.slane %v19014_v50, 1 }
 0x407   : > { %19007 = vst [vmem:[#allocation34_spill] sm:$0xff] %v15823_v26 }
 0x408   : > { %11681 = vmatmul.mubr.msk.bf16.gmra.mrb[96].mxu1 %vm1945_vm8, %v4689_v29  ;;  %v4701_v60 = vsel %vm4456_vm9, %v4696_v56, %v4700_v16 }
 0x409   : > { %11684 = vmatprep.mubr.msk.bf16.mxu1 %vm1945_vm8, %v4693_v48  ;;  %v4697_v48 = vsel %vm4456_vm9, %v4692_v25, %v4696_v56  ;;  %v7914_v25 = vsel %vm2139_vm2, %v7911_v30, %v7913_v47  ;;  %v19021_v56 = vshrl.u32 %v18931_v32, 16  ;;  %v19022_v30 = vld [vmem:[#allocation170_spill] sm:$0xff]  ;;  %v15874_v47 = vld [vmem:[%s18085_s4] ss:$0 sm:$0xff] }
 0x40b   : > { %v15837_v11 = vpop.f32.mrb[56].mxu1 }
 0x40c   : > { %12075 = vmatmul.mubr.msk.bf16.gmra.mrb[100].mxu0 %vm1945_vm8, %v7910_v23  ;;  %19012 = vst [vmem:[#allocation33_spill] sm:$0xff] %v15837_v11  ;;  %v15841_v19 = vpop.f32.mrb[57].mxu1  ;;  %v4703_v23 = vrot.slane %v19015_v4, 2  ;;  %v4706_v11 = vrot.slane %v19016_v33, 1 }
 0x40d   : > { %12078 = vmatprep.mubr.msk.bf16.mxu0 %vm1945_vm8, %v7912_v55  ;;  %v15843_v14 = vpop.f32.mrb[58].mxu1  ;;  %v19017_v55 = vld [vmem:[#allocation167_spill] sm:$0xff] }
 0x40e   : > { %v15845_v29 = vpop.f32.mrb[59].mxu1  ;;  %v4707_v26 = vrot.slane %v19017_v55, 2  ;;  %v4704_v61 = vor.u32 %v4703_v23, %v4702_v39  ;;  %v4712_v55 = vrot.slane %v19021_v56, 1 }
 0x40f   : > { %19013 = vst [vmem:[#allocation31_spill] sm:$0xff] %v15845_v29  ;;  %v19025_v29 = vld [vmem:[#allocation175_spill] sm:$0xff] }
 0x410   : > { %11685 = vmatmul.mubr.msk.bf16.gmra.mrb[100].mxu1 %vm1945_vm8, %v4697_v48  ;;  %v4708_v50 = vor.u32 %v4707_v26, %v4706_v11  ;;  %v7917_v48 = vrot.slane %v18931_v32, 3  ;;  %v4705_v23 = vsel %vm4456_vm9, %v4700_v16, %v4704_v61  ;;  %v7920_v32 = vrot.slane %v18932_v58, 3 }
 0x411   : > { %11688 = vmatprep.mubr.msk.bf16.mxu1 %vm1945_vm8, %v4701_v60  ;;  %v4713_v60 = vrot.slane %v19022_v30, 2  ;;  %v7919_v58 = vrot.slane %v18933_v57, 3 }
 0x413   : > { %v15859_v24 = vpop.f32.mrb[60].mxu1 }
 0x414   : > { %12079 = vmatmul.mubr.msk.bf16.gmra.mrb[104].mxu0 %vm1945_vm8, %v7914_v25  ;;  %19018 = vst [vmem:[#allocation32_spill] sm:$0xff] %v15859_v24  ;;  %v15863_v4 = vpop.f32.mrb[61].mxu1 }
 0x415   : > { %12082 = vmatprep.mubr.msk.bf16.mxu0 %vm1945_vm8, %v7916_v40  ;;  %19019 = vst [vmem:[#allocation38_spill] sm:$0xff] %v15863_v4  ;;  %v15866_v33 = vpop.f32.mrb[62].mxu1  ;;  %v4709_v40 = vsel %vm4456_vm9, %v4704_v61, %v4708_v50  ;;  %v19024_v4 = vld [vmem:[#allocation177_spill] sm:$0xff] }
 0x416   : > { %19020 = vst [vmem:[#allocation37_spill] sm:$0xff] %v15866_v33  ;;  %v15876_v26 = vpop.f32.mrb[63].mxu1  ;;  %v7918_v33 = vsel %vm2139_vm2, %v7915_v62, %v7917_v48  ;;  %v4719_v24 = vrot.slane %v19024_v4, 1  ;;  %v19027_v48 = vld [vmem:[#allocation174_spill] sm:$0xff] }
 0x417   : > { %v11976_v25 = vpop.f32.mrb[0].mxu0  ;;  %19023 = vst [vmem:[#allocation41_spill] sm:$0xff] %v15876_v26  ;;  %v4720_v26 = vrot.slane %v19025_v29, 2  ;;  %v4716_v4 = vrot.slane %v19027_v48, 1  ;;  %v7924_v48 = vrot.slane %v18937_v38, 3 }
 0x418   : > { %v12114_v11 = vadd.f32 %v11976_v25, %v15522_v7  ;;  %v8173_v39 = vpop.f32.mrb[1].mxu0  ;;  %11689 = vmatmul.mubr.msk.bf16.gmra.mrb[104].mxu1 %vm1945_vm8, %v4705_v23 }
 0x419   : > { %v12115_v56 = vadd.f32 %v8173_v39, %v15527_v43  ;;  %v11977_v30 = vpop.f32.mrb[2].mxu0  ;;  %11692 = vmatprep.mubr.msk.bf16.mxu1 %vm1945_vm8, %v4709_v40  ;;  %v4714_v43 = vor.u32 %v4713_v60, %v4712_v55  ;;  %v19028_v39 = vld [vmem:[#allocation172_spill] sm:$0xff] }
 0x41a   : > { %v15888_v7 = vadd.f32 %v12114_v11, %v15874_v47  ;;  %v12116_v16 = vadd.f32 %v11977_v30, %v15530_v51  ;;  %v8176_v25 = vpop.f32.mrb[3].mxu0  ;;  %v4717_v29 = vrot.slane %v19028_v39, 2  ;;  %v7921_v51 = vsel %vm2139_vm2, %v7919_v58, %v7920_v32  ;;  %v19030_v11 = vld [vmem:[#allocation178_spill] sm:$0xff] }
 0x41b   : > { %v15894_v61 = vadd.f32 %v12115_v56, %v15874_v47  ;;  %v12117_v62 = vadd.f32 %v8176_v25, %v15532_v49  ;;  %v4721_v49 = vor.u32 %v4720_v26, %v4719_v24  ;;  %v4715_v30 = vsel %vm4456_vm9, %v4708_v50, %v4714_v43  ;;  %v19031_v50 = vld [vmem:[#allocation183_spill] sm:$0xff] }
 0x41c   : > { %19026 = vst [vmem:[#allocation39_spill] sm:$0xff] %v15888_v7  ;;  %v15901_v23 = vadd.f32 %v12116_v16, %v15874_v47  ;;  %12083 = vmatmul.mubr.msk.bf16.gmra.mrb[108].mxu0 %vm1945_vm8, %v7918_v33  ;;  %v4718_v16 = vor.u32 %v4717_v29, %v4716_v4  ;;  %v7922_v33 = vrot.slane %v18936_v0, 3  ;;  %v4727_v43 = vrot.slane %v19031_v50, 1  ;;  %v19032_v4 = vld [vmem:[#allocation181_spill] sm:$0xff]  ;;  %v19033_v50 = vld [vmem:[#allocation186_spill] sm:$0xff] }
 0x41d   : > { %v15907_v55 = vadd.f32 %v12117_v62, %v15874_v47  ;;  %12086 = vmatprep.mubr.msk.bf16.mxu0 %vm1945_vm8, %v7921_v51  ;;  %v19029_v62 = vld [vmem:[#allocation180_spill] sm:$0xff]  ;;  %v4724_v51 = vrot.slane %v19030_v11, 2  ;;  %v4728_v0 = vrot.slane %v19032_v4, 2  ;;  %v4731_v4 = vrot.slane %v19033_v50, 1 }
 0x41e   : > { %v4723_v39 = vrot.slane %v19029_v62, 1  ;;  %v4722_v60 = vsel %vm4456_vm9, %v4718_v16, %v4721_v49 }
 0x41f   : > { %v11980_v56 = vpop.f32.mrb[4].mxu0 }
 0x420   : > { %v12118_v25 = vadd.f32 %v11980_v56, %v15543_v46  ;;  %v8189_v58 = vpop.f32.mrb[5].mxu0  ;;  %11693 = vmatmul.mubr.msk.bf16.gmra.mrb[108].mxu1 %vm1945_vm8, %v4715_v30  ;;  %v7923_v56 = vsel %vm2139_vm2, %v7920_v32, %v7922_v33  ;;  %v19036_v32 = vld [vmem:[#allocation187_spill] sm:$0xff]  ;;  %v19044_v30 = vld [vmem:[#allocation193_spill] sm:$0xff] }
 0x421   : > { %v12119_v24 = vadd.f32 %v8189_v58, %v15548_v18  ;;  %v11981_v26 = vpop.f32.mrb[6].mxu0  ;;  %11696 = vmatprep.mubr.msk.bf16.mxu1 %vm1945_vm8, %v4722_v60  ;;  %v4736_v50 = vrot.slane %v19036_v32, 2  ;;  %v19055_v58 = vld [vmem:[#allocation17_spill] sm:$0xff] }
 0x422   : > { %v15924_v46 = vadd.f32 %v12118_v25, %v15874_v47  ;;  %v12120_v38 = vadd.f32 %v11981_v26, %v15551_v28  ;;  %v8192_v29 = vpop.f32.mrb[7].mxu0  ;;  %v7925_v25 = vsel %vm2139_vm2, %v7922_v33, %v7924_v48  ;;  %v4725_v28 = vor.u32 %v4724_v51, %v4723_v39 }
 0x423   : > { %v15929_v11 = vadd.f32 %v12119_v24, %v15874_v47  ;;  %v12121_v18 = vadd.f32 %v8192_v29, %v15553_v1  ;;  %v4729_v1 = vor.u32 %v4728_v0, %v4727_v43  ;;  %v7926_v26 = vrot.slane %v18938_v42, 3 }
 0x424   : > { %v15935_v16 = vadd.f32 %v12120_v38, %v15874_v47  ;;  %12087 = vmatmul.mubr.msk.bf16.gmra.mrb[112].mxu0 %vm1945_vm8, %v7923_v56  ;;  %v19034_v38 = vld [vmem:[#allocation184_spill] sm:$0xff]  ;;  %v4726_v29 = vsel %vm4456_vm9, %v4721_v49, %v4725_v28 }
 0x425   : > { %v15941_v60 = vadd.f32 %v12121_v18, %v15874_v47  ;;  %12090 = vmatprep.mubr.msk.bf16.mxu0 %vm1945_vm8, %v7925_v25  ;;  %v4732_v33 = vrot.slane %v19034_v38, 2  ;;  %v7928_v18 = vrot.slane %v18939_v31, 3  ;;  %v4730_v56 = vsel %vm4456_vm9, %v4725_v28, %v4729_v1  ;;  %v19035_v25 = vld [vmem:[#allocation188_spill] sm:$0xff] }
 0x426   : > { %v4735_v42 = vrot.slane %v19035_v25, 1  ;;  %v7927_v49 = vsel %vm2139_vm2, %v7924_v48, %v7926_v26 }
 0x427   : > { %v11984_v24 = vpop.f32.mrb[8].mxu0  ;;  %v4733_v28 = vor.u32 %v4732_v33, %v4731_v4  ;;  %v19043_v4 = vld [vmem:[#allocation194_spill] sm:$0xff] }
 0x428   : > { %v12122_v39 = vadd.f32 %v11984_v24, %v15563_v41  ;;  %v8205_v51 = vpop.f32.mrb[9].mxu0  ;;  %11697 = vmatmul.mubr.msk.bf16.gmra.mrb[112].mxu1 %vm1945_vm8, %v4726_v29 }
 0x429   : > { %v12123_v43 = vadd.f32 %v8205_v51, %v15568_v9  ;;  %v11985_v0 = vpop.f32.mrb[10].mxu0  ;;  %11700 = vmatprep.mubr.msk.bf16.mxu1 %vm1945_vm8, %v4730_v56  ;;  %v19038_v56 = vld [vmem:[#allocation15_spill] sm:$0xff]  ;;  %v19041_v51 = vld [vmem:[#allocation189_spill] sm:$0xff] }
 0x42a   : > { %v15958_v38 = vadd.f32 %v12122_v39, %v15874_v47  ;;  %v12124_v41 = vadd.f32 %v11985_v0, %v15571_v10  ;;  %v8208_v24 = vpop.f32.mrb[11].mxu0  ;;  %v7929_v10 = vsel %vm2139_vm2, %v7926_v26, %v7928_v18  ;;  %v7930_v0 = vrot.slane %v18941_v8, 3 }
 0x42b   : > { %v15963_v31 = vadd.f32 %v12123_v43, %v15874_v47  ;;  %v12125_v9 = vadd.f32 %v8208_v24, %v15573_v22  ;;  %v4737_v22 = vor.u32 %v4736_v50, %v4735_v42  ;;  %v4734_v43 = vsel %vm4456_vm9, %v4729_v1, %v4733_v28 }
 0x42c   : > { %v15969_v32 = vadd.f32 %v12124_v41, %v15874_v47  ;;  %12091 = vmatmul.mubr.msk.bf16.gmra.mrb[116].mxu0 %vm1945_vm8, %v7927_v49  ;;  %v19039_v41 = vld [vmem:[#allocation190_spill] sm:$0xff]  ;;  %v19040_v49 = vld [vmem:[#allocation192_spill] sm:$0xff]  ;;  %v4740_v39 = vrot.slane %v19041_v51, 2  ;;  %v4743_v1 = vrot.slane %v19043_v4, 1  ;;  %v4744_v8 = vrot.slane %v19044_v30, 2 }
 0x42d   : > { %v15975_v29 = vadd.f32 %v12125_v9, %v15874_v47  ;;  %12094 = vmatprep.mubr.msk.bf16.mxu0 %vm1945_vm8, %v7929_v10  ;;  %v7932_v24 = vrot.slane %v19039_v41, 3  ;;  %v4739_v9 = vrot.slane %v19040_v49, 1  ;;  %v19042_v10 = vld [vmem:[#allocation30_spill] sm:$0xff]  ;;  %v4738_v48 = vsel %vm4456_vm9, %v4733_v28, %v4737_v22 }
 0x42e   : > { %19037 = vst [vmem:[#allocation44_spill] sm:$0xff] %v15969_v32 }
 0x42f   : > { %v11988_v33 = vpop.f32.mrb[12].mxu0  ;;  %v7933_v30 = vsel %vm2139_vm2, %v7930_v0, %v7932_v24 }
 0x430   : > { %v12126_v25 = vadd.f32 %v11988_v33, %v19038_v56  ;;  %v8221_v26 = vpop.f32.mrb[13].mxu0  ;;  %11701 = vmatmul.mubr.msk.bf16.gmra.mrb[116].mxu1 %vm1945_vm8, %v4734_v43  ;;  %v19046_v56 = vld [vmem:[#allocation35_spill] sm:$0xff]  ;;  %v7931_v43 = vsel %vm2139_vm2, %v7928_v18, %v7930_v0 }
 0x431   : > { %v12127_v42 = vadd.f32 %v8221_v26, %v19042_v10  ;;  %v11989_v50 = vpop.f32.mrb[14].mxu0  ;;  %11704 = vmatprep.mubr.msk.bf16.mxu1 %vm1945_vm8, %v4738_v48  ;;  %v19048_v26 = vld [vmem:[#allocation36_spill] sm:$0xff] }
 0x432   : > { %v15992_v33 = vadd.f32 %v12126_v25, %v15874_v47  ;;  %v12128_v41 = vadd.f32 %v11989_v50, %v19046_v56  ;;  %v8224_v62 = vpop.f32.mrb[15].mxu0  ;;  %v4741_v25 = vor.u32 %v4740_v39, %v4739_v9  ;;  %v19051_v56 = vld [vmem:[#allocation191_spill] sm:$0xff] }
 0x433   : > { %v15997_v51 = vadd.f32 %v12127_v42, %v15874_v47  ;;  %v12129_v49 = vadd.f32 %v8224_v62, %v19048_v26  ;;  %v4745_v62 = vor.u32 %v4744_v8, %v4743_v1  ;;  %v19052_v26 = vld [vmem:[#allocation97_spill] sm:$0xff]  ;;  %v19053_v0 = vshrl.u32 %v19051_v56, 16  ;;  %v19056_v42 = vld [vmem:[#allocation16_spill] sm:$0xff] }
 0x434   : > { %19045 = vst [vmem:[#allocation42_spill] sm:$0xff] %v15992_v33  ;;  %v16003_v4 = vadd.f32 %v12128_v41, %v15874_v47  ;;  %12095 = vmatmul.mubr.msk.bf16.gmra.mrb[120].mxu0 %vm1945_vm8, %v7931_v43  ;;  %v7934_v41 = vrot.slane %v19051_v56, 3  ;;  %v4742_v39 = vsel %vm4456_vm9, %v4737_v22, %v4741_v25 }
 0x435   : > { %19047 = vst [vmem:[#allocation47_spill] sm:$0xff] %v15997_v51  ;;  %v16009_v48 = vadd.f32 %v12129_v49, %v15874_v47  ;;  %12098 = vmatprep.mubr.msk.bf16.mxu0 %vm1945_vm8, %v7933_v30  ;;  %v4749_v9 = vrot.slane %v19053_v0, 1  ;;  %v19054_v49 = vld [vmem:[#allocation195_spill] sm:$0xff]  ;;  %v4746_v8 = vsel %vm4456_vm9, %v4741_v25, %v4745_v62 }
 0x436   : > { %19049 = vst [vmem:[#allocation46_spill] sm:$0xff] %v16003_v4  ;;  %v4750_v10 = vrot.slane %v19054_v49, 2 }
 0x437   : > { %19050 = vst [vmem:[#allocation51_spill] sm:$0xff] %v16009_v48  ;;  %v11992_v50 = vpop.f32.mrb[16].mxu0 }
 0x438   : > { %v12130_v43 = vadd.f32 %v11992_v50, %v19052_v26  ;;  %v8237_v28 = vpop.f32.mrb[17].mxu0  ;;  %11705 = vmatmul.mubr.msk.bf16.gmra.mrb[120].mxu1 %vm1945_vm8, %v4742_v39  ;;  %v4751_v25 = vor.u32 %v4750_v10, %v4749_v9 }
 0x439   : > { %v12131_v30 = vadd.f32 %v8237_v28, %v19055_v58  ;;  %v11993_v1 = vpop.f32.mrb[18].mxu0  ;;  %11708 = vmatprep.mubr.msk.bf16.mxu1 %vm1945_vm8, %v4746_v8  ;;  %v7935_v58 = vsel %vm2139_vm2, %v7932_v24, %v7934_v41  ;;  %v19068_v28 = vld [vmem:[#allocation21_spill] sm:$0xff]  ;;  %vm9082_vm2 = vcmask (!%p10718_p1), 392192  }
 0x43a   : > { %v16024_v18 = vadd.f32 %v12130_v43, %v15874_v47  ;;  %v12132_v50 = vadd.f32 %v11993_v1, %v19056_v42  ;;  %v8240_v26 = vpop.f32.mrb[19].mxu0 }
 0x43b   : > { %v16029_v22 = vadd.f32 %v12131_v30, %v15874_v47  ;;  %v12133_v56 = vadd.f32 %v8240_v26, %v15617_v52  ;;  %v4752_v30 = vsel %vm4456_vm9, %v4745_v62, %v4751_v25  ;;  %vm9389_vm9 = vcmask (!%p10718_p1), 1042434  }
 0x43c   : > { %v16035_v39 = vadd.f32 %v12132_v50, %v15874_v47  ;;  %12099 = vmatmul.mubr.msk.bf16.gmra.mrb[124].mxu0 %vm1945_vm8, %v7935_v58 }
 0x43d   : > { %19057 = vst [vmem:[#allocation49_spill] sm:$0xff] %v16029_v22  ;;  %v16040_v43 = vadd.f32 %v12133_v56, %v15874_v47 }
 0x43e   : > { %19058 = vst [vmem:[#allocation54_spill] sm:$0xff] %v16035_v39 }
 0x43f   : > { %19059 = vst [vmem:[#allocation53_spill] sm:$0xff] %v16040_v43  ;;  %v11996_v52 = vpop.f32.mrb[20].mxu0 }
 0x440   : > { %v12134_v24 = vadd.f32 %v11996_v52, %v15631_v63  ;;  %v8253_v41 = vpop.f32.mrb[21].mxu0  ;;  %11709 = vmatmul.mubr.msk.bf16.gmra.mrb[124].mxu1 %vm1945_vm8, %v4752_v30  ;;  %vm9387_vm8 = vcmask (!%p10718_p1), 1041409  }
 0x441   : > { %v12135_v1 = vadd.f32 %v8253_v41, %v15635_v17  ;;  %v11997_v8 = vpop.f32.mrb[22].mxu0  ;;  %v19064_v17 = vld [vmem:[#allocation124_spill] sm:$0xff] }
 0x442   : > { %v16049_v10 = vadd.f32 %v12134_v24, %v15874_v47  ;;  %v12136_v9 = vadd.f32 %v11997_v8, %v15637_v36  ;;  %v8256_v50 = vpop.f32.mrb[23].mxu0  ;;  %v19060_v24 = vld [vmem:[#allocation19_spill] sm:$0xff] }
 0x443   : > { %v16053_v26 = vadd.f32 %v12135_v1, %v15874_v47  ;;  %v12137_v56 = vadd.f32 %v8256_v50, %v15639_v2 }
 0x444   : > { %v16058_v62 = vadd.f32 %v12136_v9, %v15874_v47 }
 0x445   : > { %v16062_v58 = vadd.f32 %v12137_v56, %v15874_v47 }
 0x447   : > { %v12000_v52 = vpop.f32.mrb[24].mxu0 }
 0x448   : > { %v12138_v41 = vadd.f32 %v12000_v52, %v19060_v24  ;;  %v8269_v30 = vpop.f32.mrb[25].mxu0 }
 0x449   : > { %v12139_v2 = vadd.f32 %v8269_v30, %v15657_v12  ;;  %v12001_v1 = vpop.f32.mrb[26].mxu0  ;;  %v19063_v30 = vld [vmem:[#allocation18_spill] sm:$0xff] }
 0x44a   : > { %v16069_v8 = vadd.f32 %v12138_v41, %v15874_v47  ;;  %v12140_v9 = vadd.f32 %v12001_v1, %v15659_v35  ;;  %v8272_v50 = vpop.f32.mrb[27].mxu0 }
 0x44b   : > { %v16073_v56 = vadd.f32 %v12139_v2, %v15874_v47  ;;  %v12141_v25 = vadd.f32 %v8272_v50, %v15661_v44 }
 0x44c   : > { %19061 = vst [vmem:[#allocation50_spill] sm:$0xff] %v16069_v8  ;;  %v16078_v36 = vadd.f32 %v12140_v9, %v15874_v47  ;;  %v19066_v9 = vld [vmem:[#allocation121_spill] sm:$0xff] }
 0x44d   : > { %v16082_v12 = vadd.f32 %v12141_v25, %v15874_v47 }
 0x44e   : > { %19062 = vst [vmem:[#allocation55_spill] sm:$0xff] %v16078_v36  ;;  %v19108_v36 = vld [vmem:[#allocation38_spill] sm:$0xff] }
 0x44f   : > { %v12004_v41 = vpop.f32.mrb[28].mxu0 }
 0x450   : > { %v12142_v2 = vadd.f32 %v12004_v41, %v19063_v30  ;;  %v8285_v1 = vpop.f32.mrb[29].mxu0 }
 0x451   : > { %v12143_v44 = vadd.f32 %v8285_v1, %v19064_v17  ;;  %v12005_v50 = vpop.f32.mrb[30].mxu0 }
 0x452   : > { %v16089_v63 = vadd.f32 %v12142_v2, %v15874_v47  ;;  %v12144_v0 = vadd.f32 %v12005_v50, %v19066_v9  ;;  %v8288_v52 = vpop.f32.mrb[31].mxu0  ;;  %v19071_v50 = vld [vmem:[#allocation20_spill] sm:$0xff] }
 0x453   : > { %v16093_v25 = vadd.f32 %v12143_v44, %v15874_v47  ;;  %v12145_v24 = vadd.f32 %v8288_v52, %v19068_v28 }
 0x454   : > { %19065 = vst [vmem:[#allocation60_spill] sm:$0xff] %v16089_v63  ;;  %v16098_v49 = vadd.f32 %v12144_v0, %v15874_v47  ;;  %v19073_v0 = vld [vmem:[#allocation23_spill] sm:$0xff] }
 0x455   : > { %19067 = vst [vmem:[#allocation59_spill] sm:$0xff] %v16093_v25  ;;  %v16102_v17 = vadd.f32 %v12145_v24, %v15874_v47 }
 0x456   : > { %19069 = vst [vmem:[#allocation57_spill] sm:$0xff] %v16098_v49  ;;  %v19083_v49 = vld [vmem:[#allocation24_spill] sm:$0xff] }
 0x457   : > { %19070 = vst [vmem:[#allocation58_spill] sm:$0xff] %v16102_v17  ;;  %v12008_v1 = vpop.f32.mrb[32].mxu0  ;;  %v19087_v17 = vld [vmem:[#allocation27_spill] sm:$0xff] }
 0x458   : > { %v12146_v44 = vadd.f32 %v12008_v1, %v19071_v50  ;;  %v8301_v9 = vpop.f32.mrb[33].mxu0 }
 0x459   : > { %v12147_v28 = vadd.f32 %v8301_v9, %v15705_v34  ;;  %v12009_v52 = vpop.f32.mrb[34].mxu0 }
 0x45a   : > { %v16109_v35 = vadd.f32 %v12146_v44, %v15874_v47  ;;  %v12148_v42 = vadd.f32 %v12009_v52, %v19073_v0  ;;  %v8304_v41 = vpop.f32.mrb[35].mxu0 }
 0x45b   : > { %v16113_v24 = vadd.f32 %v12147_v28, %v15874_v47  ;;  %v12149_v30 = vadd.f32 %v8304_v41, %v15709_v53 }
 0x45c   : > { %19072 = vst [vmem:[#allocation64_spill] sm:$0xff] %v16109_v35  ;;  %v16118_v40 = vadd.f32 %v12148_v42, %v15874_v47 }
 0x45d   : > { %19074 = vst [vmem:[#allocation63_spill] sm:$0xff] %v16113_v24  ;;  %v16122_v34 = vadd.f32 %v12149_v30, %v15874_v47 }
 0x45f   : > { %19075 = vst [vmem:[#allocation67_spill] sm:$0xff] %v16122_v34  ;;  %v12012_v9 = vpop.f32.mrb[36].mxu0 }
 0x460   : > { %v12150_v28 = vadd.f32 %v12012_v9, %v15723_v21  ;;  %v8317_v52 = vpop.f32.mrb[37].mxu0 }
 0x461   : > { %v12151_v53 = vadd.f32 %v8317_v52, %v15727_v45  ;;  %v12013_v41 = vpop.f32.mrb[38].mxu0  ;;  %v19077_v52 = vld [vmem:[#allocation22_spill] sm:$0xff] }
 0x462   : > { %v16129_v0 = vadd.f32 %v12150_v28, %v15874_v47  ;;  %v12152_v42 = vadd.f32 %v12013_v41, %v15729_v3  ;;  %v8320_v2 = vpop.f32.mrb[39].mxu0 }
 0x463   : > { %v16133_v30 = vadd.f32 %v12151_v53, %v15874_v47  ;;  %v12153_v50 = vadd.f32 %v8320_v2, %v15731_v20 }
 0x464   : > { %v16138_v1 = vadd.f32 %v12152_v42, %v15874_v47 }
 0x465   : > { %v16142_v45 = vadd.f32 %v12153_v50, %v15874_v47 }
 0x466   : > { %19076 = vst [vmem:[#allocation65_spill] sm:$0xff] %v16138_v1 }
 0x467   : > { %v12016_v28 = vpop.f32.mrb[40].mxu0 }
 0x468   : > { %v12154_v53 = vadd.f32 %v12016_v28, %v19077_v52  ;;  %v8333_v41 = vpop.f32.mrb[41].mxu0 }
 0x469   : > { %v12155_v20 = vadd.f32 %v8333_v41, %v15749_v5  ;;  %v12017_v2 = vpop.f32.mrb[42].mxu0  ;;  %v19082_v41 = vld [vmem:[#allocation25_spill] sm:$0xff] }
 0x46a   : > { %v16149_v44 = vadd.f32 %v12154_v53, %v15874_v47  ;;  %v12156_v42 = vadd.f32 %v12017_v2, %v15751_v37  ;;  %v8336_v21 = vpop.f32.mrb[43].mxu0 }
 0x46b   : > { %v16153_v50 = vadd.f32 %v12155_v20, %v15874_v47  ;;  %v12157_v9 = vadd.f32 %v8336_v21, %v15753_v27 }
 0x46c   : > { %19078 = vst [vmem:[#allocation70_spill] sm:$0xff] %v16149_v44  ;;  %v16158_v57 = vadd.f32 %v12156_v42, %v15874_v47  ;;  %v19085_v42 = vld [vmem:[#allocation28_spill] sm:$0xff] }
 0x46d   : > { %19079 = vst [vmem:[#allocation68_spill] sm:$0xff] %v16153_v50  ;;  %v16162_v5 = vadd.f32 %v12157_v9, %v15874_v47 }
 0x46e   : > { %19080 = vst [vmem:[#allocation73_spill] sm:$0xff] %v16158_v57 }
 0x46f   : > { %19081 = vst [vmem:[#allocation71_spill] sm:$0xff] %v16162_v5  ;;  %v12020_v53 = vpop.f32.mrb[44].mxu0 }
 0x470   : > { %v12158_v20 = vadd.f32 %v12020_v53, %v19082_v41  ;;  %v8349_v2 = vpop.f32.mrb[45].mxu0 }
 0x471   : > { %v12159_v27 = vadd.f32 %v8349_v2, %v19083_v49  ;;  %v12021_v21 = vpop.f32.mrb[46].mxu0 }
 0x472   : > { %v16169_v3 = vadd.f32 %v12158_v20, %v15874_v47  ;;  %v12160_v63 = vadd.f32 %v12021_v21, %v19085_v42  ;;  %v8352_v28 = vpop.f32.mrb[47].mxu0  ;;  %v19090_v21 = vld [vmem:[#allocation26_spill] sm:$0xff] }
 0x473   : > { %v16173_v9 = vadd.f32 %v12159_v27, %v15874_v47  ;;  %v12161_v52 = vadd.f32 %v8352_v28, %v19087_v17 }
 0x474   : > { %19084 = vst [vmem:[#allocation76_spill] sm:$0xff] %v16169_v3  ;;  %v16178_v57 = vadd.f32 %v12160_v63, %v15874_v47  ;;  %v19092_v63 = vld [vmem:[#allocation29_spill] sm:$0xff] }
 0x475   : > { %19086 = vst [vmem:[#allocation75_spill] sm:$0xff] %v16173_v9  ;;  %v16182_v49 = vadd.f32 %v12161_v52, %v15874_v47  ;;  %v19104_v9 = vld [vmem:[#allocation31_spill] sm:$0xff] }
 0x476   : > { %19088 = vst [vmem:[#allocation79_spill] sm:$0xff] %v16178_v57 }
 0x477   : > { %19089 = vst [vmem:[#allocation78_spill] sm:$0xff] %v16182_v49  ;;  %v12024_v2 = vpop.f32.mrb[48].mxu0 }
 0x478   : > { %v12162_v27 = vadd.f32 %v12024_v2, %v19090_v21  ;;  %v8365_v42 = vpop.f32.mrb[49].mxu0  ;;  %v19098_v2 = vld [vmem:[#allocation34_spill] sm:$0xff] }
 0x479   : > { %v12163_v17 = vadd.f32 %v8365_v42, %v15797_v54  ;;  %v12025_v28 = vpop.f32.mrb[50].mxu0 }
 0x47a   : > { %v16189_v37 = vadd.f32 %v12162_v27, %v15874_v47  ;;  %v12164_v3 = vadd.f32 %v12025_v28, %v19092_v63  ;;  %v8368_v53 = vpop.f32.mrb[51].mxu0 }
 0x47b   : > { %v16193_v52 = vadd.f32 %v12163_v17, %v15874_v47  ;;  %v12165_v41 = vadd.f32 %v8368_v53, %v15801_v15 }
 0x47c   : > { %19091 = vst [vmem:[#allocation77_spill] sm:$0xff] %v16189_v37  ;;  %v16198_v57 = vadd.f32 %v12164_v3, %v15874_v47 }
 0x47d   : > { %19093 = vst [vmem:[#allocation81_spill] sm:$0xff] %v16193_v52  ;;  %v16202_v54 = vadd.f32 %v12165_v41, %v15874_v47 }
 0x47e   : > { %19094 = vst [vmem:[#allocation86_spill] sm:$0xff] %v16198_v57 }
 0x47f   : > { %19095 = vst [vmem:[#allocation85_spill] sm:$0xff] %v16202_v54  ;;  %v12028_v42 = vpop.f32.mrb[52].mxu0 }
 0x480   : > { %v12166_v17 = vadd.f32 %v12028_v42, %v15815_v13  ;;  %v8381_v28 = vpop.f32.mrb[53].mxu0 }
 0x481   : > { %v12167_v15 = vadd.f32 %v8381_v28, %v15819_v59  ;;  %v12029_v53 = vpop.f32.mrb[54].mxu0  ;;  %v19101_v28 = vld [vmem:[#allocation33_spill] sm:$0xff] }
 0x482   : > { %v16209_v63 = vadd.f32 %v12166_v17, %v15874_v47  ;;  %v12168_v3 = vadd.f32 %v12029_v53, %v15821_v6  ;;  %v8384_v20 = vpop.f32.mrb[55].mxu0 }
 0x483   : > { %v16213_v41 = vadd.f32 %v12167_v15, %v15874_v47  ;;  %v12169_v21 = vadd.f32 %v8384_v20, %v19098_v2 }
 0x484   : > { %19096 = vst [vmem:[#allocation83_spill] sm:$0xff] %v16209_v63  ;;  %v16218_v49 = vadd.f32 %v12168_v3, %v15874_v47 }
 0x485   : > { %19097 = vst [vmem:[#allocation84_spill] sm:$0xff] %v16213_v41  ;;  %v16222_v59 = vadd.f32 %v12169_v21, %v15874_v47 }
 0x486   : > { %19099 = vst [vmem:[#allocation90_spill] sm:$0xff] %v16218_v49 }
 0x487   : > { %19100 = vst [vmem:[#allocation89_spill] sm:$0xff] %v16222_v59  ;;  %v12032_v17 = vpop.f32.mrb[56].mxu0 }
 0x488   : > { %v12170_v15 = vadd.f32 %v12032_v17, %v19101_v28  ;;  %v8397_v53 = vpop.f32.mrb[57].mxu0  ;;  %v19112_v28 = vld [vmem:[#allocation41_spill] sm:$0xff] }
 0x489   : > { %v12171_v20 = vadd.f32 %v8397_v53, %v15841_v19  ;;  %v12033_v2 = vpop.f32.mrb[58].mxu0  ;;  %v19107_v53 = vld [vmem:[#allocation32_spill] sm:$0xff] }
 0x48a   : > { %v16229_v27 = vadd.f32 %v12170_v15, %v15874_v47  ;;  %v12172_v3 = vadd.f32 %v12033_v2, %v15843_v14  ;;  %v8400_v13 = vpop.f32.mrb[59].mxu0 }
 0x48b   : > { %v16233_v21 = vadd.f32 %v12171_v20, %v15874_v47  ;;  %v12173_v42 = vadd.f32 %v8400_v13, %v19104_v9 }
 0x48c   : > { %19102 = vst [vmem:[#allocation93_spill] sm:$0xff] %v16229_v27  ;;  %v16238_v25 = vadd.f32 %v12172_v3, %v15874_v47  ;;  %v19110_v3 = vld [vmem:[#allocation37_spill] sm:$0xff] }
 0x48d   : > { %19103 = vst [vmem:[#allocation91_spill] sm:$0xff] %v16233_v21  ;;  %v16242_v19 = vadd.f32 %v12173_v42, %v15874_v47 }
 0x48e   : > { %19105 = vst [vmem:[#allocation96_spill] sm:$0xff] %v16238_v25 }
 0x48f   : > { %19106 = vst [vmem:[#allocation94_spill] sm:$0xff] %v16242_v19  ;;  %v12036_v15 = vpop.f32.mrb[60].mxu0 }
 0x490   : > { %v12174_v20 = vadd.f32 %v12036_v15, %v19107_v53  ;;  %v8413_v2 = vpop.f32.mrb[61].mxu0 }
 0x491   : > { %v12175_v9 = vadd.f32 %v8413_v2, %v19108_v36  ;;  %v12037_v13 = vpop.f32.mrb[62].mxu0 }
 0x492   : > { %v16249_v6 = vadd.f32 %v12174_v20, %v15874_v47  ;;  %v12176_v17 = vadd.f32 %v12037_v13, %v19110_v3  ;;  %v8416_v27 = vpop.f32.mrb[63].mxu0 }
 0x493   : > { %v16253_v42 = vadd.f32 %v12175_v9, %v15874_v47  ;;  %v12177_v14 = vadd.f32 %v8416_v27, %v19112_v28 }
 0x494   : > { %19109 = vst [vmem:[#allocation99_spill] sm:$0xff] %v16249_v6  ;;  %v16258_v15 = vadd.f32 %v12176_v17, %v15874_v47 }
 0x495   : > { %19111 = vst [vmem:[#allocation98_spill] sm:$0xff] %v16253_v42  ;;  %v16262_v53 = vadd.f32 %v12177_v14, %v15874_v47 }
 0x496   : > { %19113 = vst [vmem:[#allocation102_spill] sm:$0xff] %v16258_v15 }
 0x497   : > { %19114 = vst [vmem:[#allocation101_spill] sm:$0xff] %v16262_v53  ;;  %v12040_v13 = vpop.f32.mrb[64].mxu0 }
 0x498   : > { %v8429_v9 = vpop.f32.mrb[65].mxu0 }
 0x499   : > { %v12041_v3 = vpop.f32.mrb[66].mxu0 }
 0x49a   : > { %v8432_v19 = vpop.f32.mrb[67].mxu0 }
 0x49b   : > { %v11650_v4 = vpop.f32.mrb[64].mxu1 }
 0x49c   : > { %v12178_v27 = vadd.f32 %v12040_v13, %v11650_v4  ;;  %v5246_v28 = vpop.f32.mrb[65].mxu1 }
 0x49d   : > { %v12179_v17 = vadd.f32 %v8429_v9, %v5246_v28  ;;  %v11651_v25 = vpop.f32.mrb[66].mxu1 }
 0x49e   : > { %v16272_v14 = vadd.f32 %v12178_v27, %v15874_v47  ;;  %v12180_v36 = vadd.f32 %v12041_v3, %v11651_v25  ;;  %v5249_v15 = vpop.f32.mrb[67].mxu1 }
 0x49f   : > { %v12044_v20 = vpop.f32.mrb[68].mxu0  ;;  %v16275_v2 = vadd.f32 %v12179_v17, %v15874_v47  ;;  %v12181_v6 = vadd.f32 %v8432_v19, %v5249_v15 }
 0x4a0   : > { %19115 = vst [vmem:[#allocation105_spill] sm:$0xff] %v16272_v14  ;;  %v8445_v53 = vpop.f32.mrb[69].mxu0  ;;  %v16279_v4 = vadd.f32 %v12180_v36, %v15874_v47 }
 0x4a1   : > { %19116 = vst [vmem:[#allocation104_spill] sm:$0xff] %v16275_v2  ;;  %v12045_v13 = vpop.f32.mrb[70].mxu0  ;;  %v16283_v28 = vadd.f32 %v12181_v6, %v15874_v47 }
 0x4a2   : > { %19117 = vst [vmem:[#allocation106_spill] sm:$0xff] %v16279_v4  ;;  %v8448_v27 = vpop.f32.mrb[71].mxu0 }
 0x4a3   : > { %19118 = vst [vmem:[#allocation40_spill] sm:$0xff] %v16283_v28  ;;  %v11654_v17 = vpop.f32.mrb[68].mxu1 }
 0x4a4   : > { %v12182_v44 = vadd.f32 %v12044_v20, %v11654_v17  ;;  %v5262_v19 = vpop.f32.mrb[69].mxu1 }
 0x4a5   : > { %v12183_v15 = vadd.f32 %v8445_v53, %v5262_v19  ;;  %v11655_v33 = vpop.f32.mrb[70].mxu1 }
 0x4a6   : > { %v16288_v42 = vadd.f32 %v12182_v44, %v15874_v47  ;;  %v12184_v36 = vadd.f32 %v12045_v13, %v11655_v33  ;;  %v5265_v8 = vpop.f32.mrb[71].mxu1 }
 0x4a7   : > { %v12048_v48 = vpop.f32.mrb[72].mxu0  ;;  %v16291_v9 = vadd.f32 %v12183_v15, %v15874_v47  ;;  %v12185_v6 = vadd.f32 %v8448_v27, %v5265_v8 }
 0x4a8   : > { %19119 = vst [vmem:[#allocation43_spill] sm:$0xff] %v16288_v42  ;;  %v8461_v51 = vpop.f32.mrb[73].mxu0  ;;  %v16295_v3 = vadd.f32 %v12184_v36, %v15874_v47 }
 0x4a9   : > { %19120 = vst [vmem:[#allocation143_spill] sm:$0xff] %v16291_v9  ;;  %v12049_v20 = vpop.f32.mrb[74].mxu0  ;;  %v16299_v17 = vadd.f32 %v12185_v6, %v15874_v47 }
 0x4aa   : > { %19121 = vst [vmem:[#allocation45_spill] sm:$0xff] %v16295_v3  ;;  %v8464_v44 = vpop.f32.mrb[75].mxu0 }
 0x4ab   : > { %19122 = vst [vmem:[#allocation48_spill] sm:$0xff] %v16299_v17  ;;  %v11658_v19 = vpop.f32.mrb[72].mxu1 }
 0x4ac   : > { %v12186_v15 = vadd.f32 %v12048_v48, %v11658_v19  ;;  %v5278_v8 = vpop.f32.mrb[73].mxu1 }
 0x4ad   : > { %v12187_v27 = vadd.f32 %v8461_v51, %v5278_v8  ;;  %v11659_v21 = vpop.f32.mrb[74].mxu1 }
 0x4ae   : > { %v16304_v25 = vadd.f32 %v12186_v15, %v15874_v47  ;;  %v12188_v36 = vadd.f32 %v12049_v20, %v11659_v21  ;;  %v5281_v32 = vpop.f32.mrb[75].mxu1 }
 0x4af   : > { %v12052_v42 = vpop.f32.mrb[76].mxu0  ;;  %v16307_v53 = vadd.f32 %v12187_v27, %v15874_v47  ;;  %v12189_v6 = vadd.f32 %v8464_v44, %v5281_v32 }
 0x4b0   : > { %19123 = vst [vmem:[#allocation56_spill] sm:$0xff] %v16304_v25  ;;  %v8477_v9 = vpop.f32.mrb[77].mxu0  ;;  %v16311_v13 = vadd.f32 %v12188_v36, %v15874_v47 }
 0x4b1   : > { %19124 = vst [vmem:[#allocation52_spill] sm:$0xff] %v16307_v53  ;;  %v12053_v48 = vpop.f32.mrb[78].mxu0  ;;  %v16315_v19 = vadd.f32 %v12189_v6, %v15874_v47 }
 0x4b2   : > { %19125 = vst [vmem:[#allocation61_spill] sm:$0xff] %v16311_v13  ;;  %v8480_v15 = vpop.f32.mrb[79].mxu0 }
 0x4b3   : > { %19126 = vst [vmem:[#allocation62_spill] sm:$0xff] %v16315_v19  ;;  %v11662_v8 = vpop.f32.mrb[76].mxu1 }
 0x4b4   : > { %v12190_v27 = vadd.f32 %v12052_v42, %v11662_v8  ;;  %v5294_v32 = vpop.f32.mrb[77].mxu1 }
 0x4b5   : > { %v12191_v44 = vadd.f32 %v8477_v9, %v5294_v32  ;;  %v11663_v3 = vpop.f32.mrb[78].mxu1 }
 0x4b6   : > { %v16320_v33 = vadd.f32 %v12190_v27, %v15874_v47  ;;  %v12192_v36 = vadd.f32 %v12053_v48, %v11663_v3  ;;  %v5297_v17 = vpop.f32.mrb[79].mxu1 }
 0x4b7   : > { %v12056_v25 = vpop.f32.mrb[80].mxu0  ;;  %v16323_v51 = vadd.f32 %v12191_v44, %v15874_v47  ;;  %v12193_v6 = vadd.f32 %v8480_v15, %v5297_v17 }
 0x4b8   : > { %19127 = vst [vmem:[#allocation82_spill] sm:$0xff] %v16320_v33  ;;  %v8493_v53 = vpop.f32.mrb[81].mxu0  ;;  %v16327_v20 = vadd.f32 %v12192_v36, %v15874_v47 }
 0x4b9   : > { %19128 = vst [vmem:[#allocation80_spill] sm:$0xff] %v16323_v51  ;;  %v12057_v42 = vpop.f32.mrb[82].mxu0  ;;  %v16331_v8 = vadd.f32 %v12193_v6, %v15874_v47 }
 0x4ba   : > { %19129 = vst [vmem:[#allocation92_spill] sm:$0xff] %v16327_v20  ;;  %v8496_v27 = vpop.f32.mrb[83].mxu0 }
 0x4bb   : > { %19130 = vst [vmem:[#allocation95_spill] sm:$0xff] %v16331_v8  ;;  %v11666_v32 = vpop.f32.mrb[80].mxu1 }
 0x4bc   : > { %v12194_v44 = vadd.f32 %v12056_v25, %v11666_v32  ;;  %v5310_v17 = vpop.f32.mrb[81].mxu1 }
 0x4bd   : > { %v12195_v15 = vadd.f32 %v8493_v53, %v5310_v17  ;;  %v11667_v13 = vpop.f32.mrb[82].mxu1 }
 0x4be   : > { %v16336_v21 = vadd.f32 %v12194_v44, %v15874_v47  ;;  %v12196_v36 = vadd.f32 %v12057_v42, %v11667_v13  ;;  %v5313_v19 = vpop.f32.mrb[83].mxu1 }
 0x4bf   : > { %v12060_v33 = vpop.f32.mrb[84].mxu0  ;;  %v16339_v9 = vadd.f32 %v12195_v15, %v15874_v47  ;;  %v12197_v6 = vadd.f32 %v8496_v27, %v5313_v19 }
 0x4c0   : > { %19131 = vst [vmem:[#allocation103_spill] sm:$0xff] %v16336_v21  ;;  %v8509_v51 = vpop.f32.mrb[85].mxu0  ;;  %v16343_v48 = vadd.f32 %v12196_v36, %v15874_v47 }
 0x4c1   : > { %19132 = vst [vmem:[#allocation110_spill] sm:$0xff] %v16339_v9  ;;  %v12061_v25 = vpop.f32.mrb[86].mxu0  ;;  %v16347_v32 = vadd.f32 %v12197_v6, %v15874_v47 }
 0x4c2   : > { %19133 = vst [vmem:[#allocation113_spill] sm:$0xff] %v16343_v48  ;;  %v8512_v44 = vpop.f32.mrb[87].mxu0 }
 0x4c3   : > { %19134 = vst [vmem:[#allocation116_spill] sm:$0xff] %v16347_v32  ;;  %v11670_v17 = vpop.f32.mrb[84].mxu1 }
 0x4c4   : > { %v12198_v15 = vadd.f32 %v12060_v33, %v11670_v17  ;;  %v5326_v19 = vpop.f32.mrb[85].mxu1 }
 0x4c5   : > { %v12199_v27 = vadd.f32 %v8509_v51, %v5326_v19  ;;  %v11671_v20 = vpop.f32.mrb[86].mxu1 }
 0x4c6   : > { %v16352_v3 = vadd.f32 %v12198_v15, %v15874_v47  ;;  %v12200_v36 = vadd.f32 %v12061_v25, %v11671_v20  ;;  %v5329_v21 = vpop.f32.mrb[87].mxu1 }
 0x4c7   : > { %v12064_v8 = vpop.f32.mrb[88].mxu0  ;;  %v16355_v53 = vadd.f32 %v12199_v27, %v15874_v47  ;;  %v12201_v6 = vadd.f32 %v8512_v44, %v5329_v21 }
 0x4c8   : > { %19135 = vst [vmem:[#allocation136_spill] sm:$0xff] %v16352_v3  ;;  %v8525_v9 = vpop.f32.mrb[89].mxu0  ;;  %v16359_v42 = vadd.f32 %v12200_v36, %v15874_v47 }
 0x4c9   : > { %19136 = vst [vmem:[#allocation153_spill] sm:$0xff] %v16355_v53  ;;  %v12065_v33 = vpop.f32.mrb[90].mxu0  ;;  %v16363_v17 = vadd.f32 %v12201_v6, %v15874_v47 }
 0x4ca   : > { %19137 = vst [vmem:[#allocation66_spill] sm:$0xff] %v16359_v42  ;;  %v8528_v15 = vpop.f32.mrb[91].mxu0 }
 0x4cb   : > { %19138 = vst [vmem:[#allocation69_spill] sm:$0xff] %v16363_v17  ;;  %v11674_v19 = vpop.f32.mrb[88].mxu1 }
 0x4cc   : > { %v12202_v27 = vadd.f32 %v12064_v8, %v11674_v19  ;;  %v5342_v21 = vpop.f32.mrb[89].mxu1 }
 0x4cd   : > { %v12203_v44 = vadd.f32 %v8525_v9, %v5342_v21  ;;  %v11675_v48 = vpop.f32.mrb[90].mxu1 }
 0x4ce   : > { %v16368_v13 = vadd.f32 %v12202_v27, %v15874_v47  ;;  %v12204_v36 = vadd.f32 %v12065_v33, %v11675_v48  ;;  %v5345_v32 = vpop.f32.mrb[91].mxu1 }
 0x4cf   : > { %v12068_v3 = vpop.f32.mrb[92].mxu0  ;;  %v16371_v51 = vadd.f32 %v12203_v44, %v15874_v47  ;;  %v12205_v6 = vadd.f32 %v8528_v15, %v5345_v32 }
 0x4d0   : > { %19139 = vst [vmem:[#allocation156_spill] sm:$0xff] %v16368_v13  ;;  %v8541_v53 = vpop.f32.mrb[93].mxu0  ;;  %v16375_v25 = vadd.f32 %v12204_v36, %v15874_v47 }
 0x4d1   : > { %19140 = vst [vmem:[#allocation159_spill] sm:$0xff] %v16371_v51  ;;  %v12069_v8 = vpop.f32.mrb[94].mxu0  ;;  %v16379_v19 = vadd.f32 %v12205_v6, %v15874_v47 }
 0x4d2   : > { %19141 = vst [vmem:[#allocation72_spill] sm:$0xff] %v16375_v25  ;;  %v8544_v27 = vpop.f32.mrb[95].mxu0 }
 0x4d3   : > { %19142 = vst [vmem:[#allocation74_spill] sm:$0xff] %v16379_v19  ;;  %v11678_v21 = vpop.f32.mrb[92].mxu1 }
 0x4d4   : > { %v12206_v44 = vadd.f32 %v12068_v3, %v11678_v21  ;;  %v5358_v32 = vpop.f32.mrb[93].mxu1 }
 0x4d5   : > { %v12207_v15 = vadd.f32 %v8541_v53, %v5358_v32  ;;  %v11679_v42 = vpop.f32.mrb[94].mxu1 }
 0x4d6   : > { %v16384_v20 = vadd.f32 %v12206_v44, %v15874_v47  ;;  %v12208_v36 = vadd.f32 %v12069_v8, %v11679_v42  ;;  %v5361_v17 = vpop.f32.mrb[95].mxu1 }
 0x4d7   : > { %v12072_v13 = vpop.f32.mrb[96].mxu0  ;;  %v16387_v9 = vadd.f32 %v12207_v15, %v15874_v47  ;;  %v12209_v6 = vadd.f32 %v8544_v27, %v5361_v17 }
 0x4d8   : > { %19143 = vst [vmem:[#allocation162_spill] sm:$0xff] %v16384_v20  ;;  %v8557_v51 = vpop.f32.mrb[97].mxu0  ;;  %v16391_v33 = vadd.f32 %v12208_v36, %v15874_v47 }
 0x4d9   : > { %19144 = vst [vmem:[#allocation165_spill] sm:$0xff] %v16387_v9  ;;  %v12073_v3 = vpop.f32.mrb[98].mxu0  ;;  %v16395_v21 = vadd.f32 %v12209_v6, %v15874_v47 }
 0x4da   : > { %19145 = vst [vmem:[#allocation168_spill] sm:$0xff] %v16391_v33  ;;  %v8560_v44 = vpop.f32.mrb[99].mxu0 }
 0x4db   : > { %19146 = vst [vmem:[#allocation173_spill] sm:$0xff] %v16395_v21  ;;  %v11682_v32 = vpop.f32.mrb[96].mxu1 }
 0x4dc   : > { %v12210_v15 = vadd.f32 %v12072_v13, %v11682_v32  ;;  %v5374_v17 = vpop.f32.mrb[97].mxu1  ;;  %v16409_v13 = vld [vmem:[%s18085_s4] ss:$0 sm:$0xff] }
 0x4dd   : > { %v12211_v27 = vadd.f32 %v8557_v51, %v5374_v17  ;;  %v11683_v25 = vpop.f32.mrb[98].mxu1 }
 0x4de   : > { %v16400_v48 = vadd.f32 %v12210_v15, %v15874_v47  ;;  %v12212_v36 = vadd.f32 %v12073_v3, %v11683_v25  ;;  %v5377_v19 = vpop.f32.mrb[99].mxu1 }
 0x4df   : > { %v12076_v20 = vpop.f32.mrb[100].mxu0  ;;  %v16403_v53 = vadd.f32 %v12211_v27, %v15874_v47  ;;  %v12213_v6 = vadd.f32 %v8560_v44, %v5377_v19 }
 0x4e0   : > { %19147 = vst [vmem:[#allocation171_spill] sm:$0xff] %v16400_v48  ;;  %v8573_v9 = vpop.f32.mrb[101].mxu0  ;;  %v16412_v51 = vadd.f32 %v16409_v13, %v12212_v36 }
 0x4e1   : > { %19148 = vst [vmem:[#allocation87_spill] sm:$0xff] %v16403_v53  ;;  %v12077_v32 = vpop.f32.mrb[102].mxu0  ;;  %v16416_v3 = vadd.f32 %v16409_v13, %v12213_v6 }
 0x4e2   : > { %19149 = vst [vmem:[#allocation88_spill] sm:$0xff] %v16412_v51  ;;  %v8576_v47 = vpop.f32.mrb[103].mxu0 }
 0x4e3   : > { %19150 = vst [vmem:[#allocation176_spill] sm:$0xff] %v16416_v3  ;;  %v11686_v15 = vpop.f32.mrb[100].mxu1 }
 0x4e4   : > { %v12214_v17 = vadd.f32 %v12076_v20, %v11686_v15  ;;  %v5390_v27 = vpop.f32.mrb[101].mxu1 }
 0x4e5   : > { %v12215_v8 = vadd.f32 %v8573_v9, %v5390_v27  ;;  %v11687_v42 = vpop.f32.mrb[102].mxu1 }
 0x4e6   : > { %v16421_v33 = vadd.f32 %v16409_v13, %v12214_v17  ;;  %v12216_v36 = vadd.f32 %v12077_v32, %v11687_v42  ;;  %v5393_v48 = vpop.f32.mrb[103].mxu1 }
 0x4e7   : > { %v12080_v21 = vpop.f32.mrb[104].mxu0  ;;  %v16424_v25 = vadd.f32 %v16409_v13, %v12215_v8  ;;  %v12217_v6 = vadd.f32 %v8576_v47, %v5393_v48 }
 0x4e8   : > { %19151 = vst [vmem:[#allocation179_spill] sm:$0xff] %v16421_v33  ;;  %v8589_v53 = vpop.f32.mrb[105].mxu0  ;;  %v16428_v44 = vadd.f32 %v16409_v13, %v12216_v36 }
 0x4e9   : > { %19152 = vst [vmem:[#allocation182_spill] sm:$0xff] %v16424_v25  ;;  %v12081_v20 = vpop.f32.mrb[106].mxu0  ;;  %v16432_v15 = vadd.f32 %v16409_v13, %v12217_v6 }
 0x4ea   : > { %19153 = vst [vmem:[#allocation185_spill] sm:$0xff] %v16428_v44  ;;  %v8592_v17 = vpop.f32.mrb[107].mxu0 }
 0x4eb   : > { %19154 = vst [vmem:[#allocation100_spill] sm:$0xff] %v16432_v15  ;;  %v11690_v8 = vpop.f32.mrb[104].mxu1 }
 0x4ec   : > { %v12218_v27 = vadd.f32 %v12080_v21, %v11690_v8  ;;  %v5406_v48 = vpop.f32.mrb[105].mxu1 }
 0x4ed   : > { %v12219_v47 = vadd.f32 %v8589_v53, %v5406_v48  ;;  %v11691_v51 = vpop.f32.mrb[106].mxu1 }
 0x4ee   : > { %v16437_v19 = vadd.f32 %v16409_v13, %v12218_v27  ;;  %v12220_v36 = vadd.f32 %v12081_v20, %v11691_v51  ;;  %v5409_v3 = vpop.f32.mrb[107].mxu1 }
 0x4ef   : > { %v12084_v33 = vpop.f32.mrb[108].mxu0  ;;  %v16440_v9 = vadd.f32 %v16409_v13, %v12219_v47  ;;  %v12221_v6 = vadd.f32 %v8592_v17, %v5409_v3 }
 0x4f0   : > { %19155 = vst [vmem:[#allocation111_spill] sm:$0xff] %v16437_v19  ;;  %v8605_v25 = vpop.f32.mrb[109].mxu0  ;;  %v16444_v32 = vadd.f32 %v16409_v13, %v12220_v36 }
 0x4f1   : > { %19156 = vst [vmem:[#allocation109_spill] sm:$0xff] %v16440_v9  ;;  %v12085_v21 = vpop.f32.mrb[110].mxu0  ;;  %v16448_v8 = vadd.f32 %v16409_v13, %v12221_v6 }
 0x4f2   : > { %19157 = vst [vmem:[#allocation107_spill] sm:$0xff] %v16444_v32  ;;  %v8608_v27 = vpop.f32.mrb[111].mxu0 }
 0x4f3   : > { %19158 = vst [vmem:[#allocation108_spill] sm:$0xff] %v16448_v8  ;;  %v11694_v48 = vpop.f32.mrb[108].mxu1 }
 0x4f4   : > { %v12222_v47 = vadd.f32 %v12084_v33, %v11694_v48  ;;  %v5422_v3 = vpop.f32.mrb[109].mxu1 }
 0x4f5   : > { %v12223_v17 = vadd.f32 %v8605_v25, %v5422_v3  ;;  %v11695_v44 = vpop.f32.mrb[110].mxu1 }
 0x4f6   : > { %v16453_v42 = vadd.f32 %v16409_v13, %v12222_v47  ;;  %v12224_v36 = vadd.f32 %v12085_v21, %v11695_v44  ;;  %v5425_v15 = vpop.f32.mrb[111].mxu1 }
 0x4f7   : > { %v12088_v19 = vpop.f32.mrb[112].mxu0  ;;  %v16456_v53 = vadd.f32 %v16409_v13, %v12223_v17  ;;  %v12225_v6 = vadd.f32 %v8608_v27, %v5425_v15 }
 0x4f8   : > { %19159 = vst [vmem:[#allocation114_spill] sm:$0xff] %v16453_v42  ;;  %v8621_v9 = vpop.f32.mrb[113].mxu0  ;;  %v16460_v20 = vadd.f32 %v16409_v13, %v12224_v36 }
 0x4f9   : > { %19160 = vst [vmem:[#allocation112_spill] sm:$0xff] %v16456_v53  ;;  %v12089_v33 = vpop.f32.mrb[114].mxu0  ;;  %v16464_v48 = vadd.f32 %v16409_v13, %v12225_v6 }
 0x4fa   : > { %19161 = vst [vmem:[#allocation117_spill] sm:$0xff] %v16460_v20  ;;  %v8624_v47 = vpop.f32.mrb[115].mxu0 }
 0x4fb   : > { %19162 = vst [vmem:[#allocation115_spill] sm:$0xff] %v16464_v48  ;;  %v11698_v3 = vpop.f32.mrb[112].mxu1 }
 0x4fc   : > { %v12226_v17 = vadd.f32 %v12088_v19, %v11698_v3  ;;  %v5438_v15 = vpop.f32.mrb[113].mxu1 }
 0x4fd   : > { %v12227_v27 = vadd.f32 %v8621_v9, %v5438_v15  ;;  %v11699_v32 = vpop.f32.mrb[114].mxu1 }
 0x4fe   : > { %v16469_v51 = vadd.f32 %v16409_v13, %v12226_v17  ;;  %v12228_v36 = vadd.f32 %v12089_v33, %v11699_v32  ;;  %v5441_v8 = vpop.f32.mrb[115].mxu1 }
 0x4ff   : > { %v12092_v42 = vpop.f32.mrb[116].mxu0  ;;  %v16472_v25 = vadd.f32 %v16409_v13, %v12227_v27  ;;  %v12229_v6 = vadd.f32 %v8624_v47, %v5441_v8 }
 0x500   : > { %19163 = vst [vmem:[#allocation119_spill] sm:$0xff] %v16469_v51  ;;  %v8637_v53 = vpop.f32.mrb[117].mxu0  ;;  %v16476_v21 = vadd.f32 %v16409_v13, %v12228_v36 }
 0x501   : > { %19164 = vst [vmem:[#allocation118_spill] sm:$0xff] %v16472_v25  ;;  %v12093_v19 = vpop.f32.mrb[118].mxu0  ;;  %v16480_v3 = vadd.f32 %v16409_v13, %v12229_v6 }
 0x502   : > { %19165 = vst [vmem:[#allocation122_spill] sm:$0xff] %v16476_v21  ;;  %v8640_v17 = vpop.f32.mrb[119].mxu0 }
 0x503   : > { %19166 = vst [vmem:[#allocation120_spill] sm:$0xff] %v16480_v3  ;;  %v11702_v15 = vpop.f32.mrb[116].mxu1 }
 0x504   : > { %v12230_v27 = vadd.f32 %v12092_v42, %v11702_v15  ;;  %v5454_v8 = vpop.f32.mrb[117].mxu1 }
 0x505   : > { %v12231_v47 = vadd.f32 %v8637_v53, %v5454_v8  ;;  %v11703_v20 = vpop.f32.mrb[118].mxu1 }
 0x506   : > { %v16485_v44 = vadd.f32 %v16409_v13, %v12230_v27  ;;  %v12232_v36 = vadd.f32 %v12093_v19, %v11703_v20  ;;  %v5457_v51 = vpop.f32.mrb[119].mxu1 }
 0x507   : > { %v12096_v48 = vpop.f32.mrb[120].mxu0  ;;  %v16488_v9 = vadd.f32 %v16409_v13, %v12231_v47  ;;  %v12233_v6 = vadd.f32 %v8640_v17, %v5457_v51 }
 0x508   : > { %19167 = vst [vmem:[#allocation125_spill] sm:$0xff] %v16485_v44  ;;  %v8653_v25 = vpop.f32.mrb[121].mxu0  ;;  %v16492_v33 = vadd.f32 %v16409_v13, %v12232_v36 }
 0x509   : > { %19168 = vst [vmem:[#allocation123_spill] sm:$0xff] %v16488_v9  ;;  %v12097_v42 = vpop.f32.mrb[122].mxu0  ;;  %v16496_v15 = vadd.f32 %v16409_v13, %v12233_v6 }
 0x50a   : > { %19169 = vst [vmem:[#allocation127_spill] sm:$0xff] %v16492_v33  ;;  %v8656_v27 = vpop.f32.mrb[123].mxu0 }
 0x50b   : > { %v11706_v8 = vpop.f32.mrb[120].mxu1 }
 0x50c   : > { %v12234_v47 = vadd.f32 %v12096_v48, %v11706_v8  ;;  %v5470_v51 = vpop.f32.mrb[121].mxu1 }
 0x50d   : > { %v12235_v17 = vadd.f32 %v8653_v25, %v5470_v51  ;;  %v11707_v21 = vpop.f32.mrb[122].mxu1 }
 0x50e   : > { %v16501_v32 = vadd.f32 %v16409_v13, %v12234_v47  ;;  %v12236_v36 = vadd.f32 %v12097_v42, %v11707_v21  ;;  %v5473_v3 = vpop.f32.mrb[123].mxu1 }
 0x50f   : > { %v12100_v44 = vpop.f32.mrb[124].mxu0  ;;  %v16504_v53 = vadd.f32 %v16409_v13, %v12235_v17  ;;  %v12237_v6 = vadd.f32 %v8656_v27, %v5473_v3 }
 0x510   : > { %19170 = vst [vmem:[#allocation126_spill] sm:$0xff] %v16501_v32  ;;  %v8669_v9 = vpop.f32.mrb[125].mxu0  ;;  %v16508_v19 = vadd.f32 %v16409_v13, %v12236_v36 }
 0x511   : > { %19171 = vst [vmem:[#allocation128_spill] sm:$0xff] %v16504_v53  ;;  %v12101_v48 = vpop.f32.mrb[126].mxu0  ;;  %v16512_v8 = vadd.f32 %v16409_v13, %v12237_v6 }
 0x512   : > { %19172 = vst [vmem:[#allocation132_spill] sm:$0xff] %v16508_v19  ;;  %v8672_v47 = vpop.f32.mrb[127].mxu0 }
 0x513   : > { %19173 = vst [vmem:[#allocation131_spill] sm:$0xff] %v16512_v8  ;;  %v11710_v51 = vpop.f32.mrb[124].mxu1 }
 0x514   : > { %v12238_v17 = vadd.f32 %v12100_v44, %v11710_v51  ;;  %v5486_v3 = vpop.f32.mrb[125].mxu1 }
 0x515   : > { %v12239_v27 = vadd.f32 %v8669_v9, %v5486_v3  ;;  %v11711_v33 = vpop.f32.mrb[126].mxu1  ;;  %9080 = sbr.rel (%p10718_p1) target bundleno = 1427 (0x593), region = 52  ;;  %v19182_v9 = vmax.f32 (!%p10718_p1), %v15929_v11, 0.0 }
 0x516   : > { %v16517_v20 = vadd.f32 %v16409_v13, %v12238_v17  ;;  %v12240_v36 = vadd.f32 %v12101_v48, %v11711_v33  ;;  %v5489_v32 = vpop.f32.mrb[127].mxu1  ;;  %v19179_v48 = vmax.f32 (!%p10718_p1), %v15907_v55, 0.0 }
 0x517   : > { %v16520_v25 = vadd.f32 %v16409_v13, %v12239_v27  ;;  %v12241_v6 = vadd.f32 %v8672_v47, %v5489_v32  ;;  %v19178_v32 = vmax.f32 (!%p10718_p1), %v15894_v61, 0.0  ;;  %v19181_v27 = vmax.f32 (!%p10718_p1), %v15901_v23, 0.0 }
 0x518   : > { %19174 = vst [vmem:[#allocation130_spill] sm:$0xff] %v16517_v20  ;;  %v16524_v21 = vadd.f32 %v16409_v13, %v12240_v36  ;;  %v9084_v47 = vsel (!%p10718_p1), %vm9082_vm2, %v19179_v48, -inf  ;;  %v9090_v53 = vsel (!%p10718_p1), %vm9082_vm2, %v19182_v9, -inf  ;;  %v19184_v48 = vmax.f32 (!%p10718_p1), %v16040_v43, 0.0 }
 0x519   : > { %19175 = vst [vmem:[#allocation129_spill] sm:$0xff] %v16520_v25  ;;  %v16528_v44 = vadd.f32 %v16409_v13, %v12241_v6  ;;  %v9083_v33 = vsel (!%p10718_p1), %vm9082_vm2, %v19178_v32, -inf  ;;  %v19180_v13 = vmax.f32 (!%p10718_p1), %v15888_v7, 0.0  ;;  %v9088_v36 = vsel (!%p10718_p1), %vm9082_vm2, %v19181_v27, -inf }
 0x51a   : > { %19176 = vst [vmem:[#allocation134_spill] sm:$0xff] %v16524_v21  ;;  %v9085_v3 = vmax.f32 (!%p10718_p1), %v9083_v33, %v9084_v47  ;;  %v19183_v32 = vmax.f32 (!%p10718_p1), %v16029_v22, 0.0  ;;  %v9121_v42 = vsel (!%p10718_p1), %vm9082_vm2, %v19184_v48, -inf  ;;  %v19185_v33 = vmax.f32 (!%p10718_p1), %v16024_v18, 0.0 }
 0x51b   : > { %19177 = vst [vmem:[#allocation133_spill] sm:$0xff] %v16528_v44  ;;  %v9086_v17 = vsel (!%p10718_p1), %vm9082_vm2, %v19180_v13, -inf  ;;  %v19187_v9 = vmax.f32 (!%p10718_p1), %v16035_v39, 0.0  ;;  %v19188_v43 = vmax.f32 (!%p10718_p1), %v16053_v26, 0.0  ;;  %v19191_v39 = vmax.f32 (!%p10718_p1), %v16113_v24, 0.0 }
 0x51c   : > { %v9087_v6 = vmax.f32 %v9085_v3, %v9086_v17  ;;  %v9120_v51 = vsel %vm9082_vm2, %v19183_v32, -inf  ;;  %v9123_v47 = vsel %vm9082_vm2, %v19185_v33, -inf  ;;  %v19186_v17 = vmax.f32 %v15941_v60, 0.0 }
 0x51d   : > { %v9122_v13 = vmax.f32 %v9120_v51, %v9121_v42  ;;  %v9125_v27 = vsel %vm9082_vm2, %v19187_v9, -inf  ;;  %v9127_v48 = vsel %vm9082_vm2, %v19188_v43, -inf  ;;  %v19189_v42 = vmax.f32 %v15924_v46, 0.0 }
 0x51e   : > { %v9089_v7 = vmax.f32 %v9087_v6, %v9088_v36  ;;  %v9092_v3 = vsel %vm9082_vm2, %v19186_v17, -inf  ;;  %v19190_v33 = vmax.f32 %v16062_v58, 0.0  ;;  %v9157_v9 = vsel %vm9082_vm2, %v19191_v39, -inf }
 0x51f   : > { %v9124_v32 = vmax.f32 %v9122_v13, %v9123_v47  ;;  %v9094_v51 = vsel %vm9082_vm2, %v19189_v42, -inf  ;;  %v19193_v43 = vmax.f32 %v16109_v35, 0.0  ;;  %v19195_v42 = vmax.f32 %v15935_v16, 0.0 }
 0x520   : > { %v9091_v22 = vmax.f32 %v9089_v7, %v9090_v53  ;;  %v9129_v17 = vsel %vm9082_vm2, %v19190_v33, -inf  ;;  %v19192_v7 = vmax.f32 %v16122_v34, 0.0  ;;  %v19196_v34 = vmax.f32 %v16049_v10, 0.0 }
 0x521   : > { %v9126_v6 = vmax.f32 %v9124_v32, %v9125_v27  ;;  %v19194_v27 = vmax.f32 %v16118_v40, 0.0  ;;  %v9096_v33 = vsel %vm9082_vm2, %v19195_v42, -inf  ;;  %v19197_v35 = vmax.f32 %v16133_v30, 0.0 }
 0x522   : > { %v9093_v36 = vmax.f32 %v9091_v22, %v9092_v3  ;;  %v9158_v53 = vsel %vm9082_vm2, %v19192_v7, -inf  ;;  %v9160_v22 = vsel %vm9082_vm2, %v19193_v43, -inf  ;;  %v9131_v7 = vsel %vm9082_vm2, %v19196_v34, -inf }
 0x523   : > { %v9128_v13 = vmax.f32 %v9126_v6, %v9127_v48  ;;  %v9159_v47 = vmax.f32 %v9157_v9, %v9158_v53  ;;  %v9162_v32 = vsel %vm9082_vm2, %v19194_v27, -inf  ;;  %v9164_v48 = vsel %vm9082_vm2, %v19197_v35, -inf }
 0x524   : > { %v9095_v3 = vmax.f32 %v9093_v36, %v9094_v51  ;;  %v19198_v36 = vmax.f32 %v16142_v45, 0.0  ;;  %v19199_v53 = vmax.f32 %v16193_v52, 0.0  ;;  %v19201_v34 = vmax.f32 %v16189_v37, 0.0  ;;  %v19249_v52 = vld [vmem:[#allocation116_spill] sm:$0xff] }
 0x525   : > { %v9130_v39 = vmax.f32 %v9128_v13, %v9129_v17  ;;  %v9161_v24 = vmax.f32 %v9159_v47, %v9160_v22  ;;  %v19200_v17 = vmax.f32 %v16202_v54, 0.0  ;;  %v19202_v35 = vmax.f32 %v15963_v31, 0.0 }
 0x526   : > { %v9166_v51 = vsel %vm9082_vm2, %v19198_v36, -inf  ;;  %v9097_v9 = vmax.f32 %v9095_v3, %v9096_v33  ;;  %v9194_v43 = vsel %vm9082_vm2, %v19199_v53, -inf  ;;  %v9197_v13 = vsel %vm9082_vm2, %v19201_v34, -inf }
 0x527   : > { %v9163_v6 = vmax.f32 %v9161_v24, %v9162_v32  ;;  %v9195_v22 = vsel %vm9082_vm2, %v19200_v17, -inf  ;;  %v9098_v24 = vsel %vm9082_vm2, %v19202_v35, -inf  ;;  %v9132_v47 = vmax.f32 %v9130_v39, %v9131_v7 }
 0x528   : > { %v9196_v32 = vmax.f32 %v9194_v43, %v9195_v22  ;;  %v19203_v3 = vmax.f32 %v16058_v62, 0.0  ;;  %v19204_v33 = vmax.f32 %v16129_v0, 0.0  ;;  %v19205_v53 = vmax.f32 %v16198_v57, 0.0 }
 0x529   : > { %v9165_v27 = vmax.f32 %v9163_v6, %v9164_v48  ;;  %v9099_v54 = vmax.f32 %v9097_v9, %v9098_v24  ;;  %v19206_v35 = vmax.f32 %v16138_v1, 0.0  ;;  %v19207_v7 = vmax.f32 %v16213_v41, 0.0 }
 0x52a   : > { %v9133_v42 = vsel %vm9082_vm2, %v19203_v3, -inf  ;;  %v9168_v36 = vsel %vm9082_vm2, %v19204_v33, -inf  ;;  %v9199_v17 = vsel %vm9082_vm2, %v19205_v53, -inf  ;;  %v9198_v37 = vmax.f32 %v9196_v32, %v9197_v13 }
 0x52b   : > { %v9167_v34 = vmax.f32 %v9165_v27, %v9166_v51  ;;  %v9170_v39 = vsel %vm9082_vm2, %v19206_v35, -inf  ;;  %v9201_v48 = vsel %vm9082_vm2, %v19207_v7, -inf  ;;  %v19208_v6 = vmax.f32 %v15975_v29, 0.0 }
 0x52c   : > { %v9134_v22 = vmax.f32 %v9132_v47, %v9133_v42  ;;  %v9200_v33 = vmax.f32 %v9198_v37, %v9199_v17  ;;  %v19209_v53 = vmax.f32 %v16073_v56, 0.0  ;;  %v19210_v9 = vmax.f32 %v16222_v59, 0.0 }
 0x52d   : > { %v9100_v43 = vsel %vm9082_vm2, %v19208_v6, -inf  ;;  %v9169_v3 = vmax.f32 %v9167_v34, %v9168_v36  ;;  %v19211_v27 = vmax.f32 %v16153_v50, 0.0  ;;  %v19212_v6 = vmax.f32 %v16209_v63, 0.0 }
 0x52e   : > { %v9135_v51 = vsel %vm9082_vm2, %v19209_v53, -inf  ;;  %v9203_v13 = vsel %vm9082_vm2, %v19210_v9, -inf  ;;  %v9202_v35 = vmax.f32 %v9200_v33, %v9201_v48  ;;  %v9101_v7 = vmax.f32 %v9099_v54, %v9100_v43 }
 0x52f   : > { %v9171_v24 = vmax.f32 %v9169_v3, %v9170_v39  ;;  %v9172_v32 = vsel %vm9082_vm2, %v19211_v27, -inf  ;;  %v9205_v47 = vsel %vm9082_vm2, %v19212_v6, -inf  ;;  %v19213_v37 = vmax.f32 %v16275_v2, 0.0  ;;  %v19223_v2 = vld [vmem:[#allocation91_spill] sm:$0xff] }
 0x530   : > { %v19214_v36 = vmax.f32 %v16283_v28, 0.0  ;;  %v19215_v34 = vmax.f32 %v15958_v38, 0.0  ;;  %v9136_v3 = vmax.f32 %v9134_v22, %v9135_v51  ;;  %v9204_v53 = vmax.f32 %v9202_v35, %v9203_v13 }
 0x531   : > { %v9231_v42 = vsel %vm9082_vm2, %v19213_v37, -inf  ;;  %v19216_v54 = vmax.f32 %v16272_v14, 0.0  ;;  %v19217_v43 = vmax.f32 %v16082_v12, 0.0  ;;  %v9173_v9 = vmax.f32 %v9171_v24, %v9172_v32 }
 0x532   : > { %v9232_v17 = vsel %vm9082_vm2, %v19214_v36, -inf  ;;  %v9102_v39 = vsel %vm9082_vm2, %v19215_v34, -inf  ;;  %v19218_v27 = vmax.f32 %v16218_v49, 0.0  ;;  %v19219_v36 = vmax.f32 %v16162_v5, 0.0  ;;  %v19265_v5 = vld [vmem:[#allocation113_spill] sm:$0xff] }
 0x533   : > { %v9234_v48 = vsel %vm9082_vm2, %v19216_v54, -inf  ;;  %v9137_v33 = vsel %vm9082_vm2, %v19217_v43, -inf  ;;  %v9233_v37 = vmax.f32 %v9231_v42, %v9232_v17  ;;  %v9206_v22 = vmax.f32 %v9204_v53, %v9205_v47  ;;  %v19221_v54 = vld [vmem:[#allocation44_spill] sm:$0xff]  ;;  %v19225_v17 = vld [vmem:[#allocation143_spill] sm:$0xff] }
 0x534   : > { %v9207_v6 = vsel %vm9082_vm2, %v19218_v27, -inf  ;;  %v9174_v34 = vsel %vm9082_vm2, %v19219_v36, -inf  ;;  %v19220_v51 = vmax.f32 %v16279_v4, 0.0  ;;  %v9103_v35 = vmax.f32 %v9101_v7, %v9102_v39  ;;  %v19227_v53 = vld [vmem:[#allocation47_spill] sm:$0xff]  ;;  %v19229_v7 = vld [vmem:[#allocation50_spill] sm:$0xff] }
 0x535   : > { %v19222_v14 = vmax.f32 %v19221_v54, 0.0  ;;  %v9235_v24 = vmax.f32 %v9233_v37, %v9234_v48  ;;  %v9138_v32 = vmax.f32 %v9136_v3, %v9137_v33  ;;  %v9208_v28 = vmax.f32 %v9206_v22, %v9207_v6  ;;  %v19231_v3 = vld [vmem:[#allocation51_spill] sm:$0xff]  ;;  %v19233_v6 = vld [vmem:[#allocation42_spill] sm:$0xff] }
 0x536   : > { %v9236_v13 = vsel %vm9082_vm2, %v19220_v51, -inf  ;;  %v19224_v27 = vmax.f32 %v19223_v2, 0.0  ;;  %v19226_v49 = vmax.f32 %v19225_v17, 0.0  ;;  %v19228_v36 = vmax.f32 %v19227_v53, 0.0  ;;  %v19237_v53 = vld [vmem:[#allocation48_spill] sm:$0xff]  ;;  %v19239_v4 = vld [vmem:[#allocation46_spill] sm:$0xff] }
 0x537   : > { %v9104_v43 = vsel %vm9082_vm2, %v19222_v14, -inf  ;;  %v19230_v39 = vmax.f32 %v19229_v7, 0.0  ;;  %v9175_v14 = vmax.f32 %v9173_v9, %v9174_v34  ;;  %v9237_v48 = vmax.f32 %v9235_v24, %v9236_v13  ;;  %v19241_v34 = vld [vmem:[#allocation55_spill] sm:$0xff] }
 0x538   : > { %v9209_v42 = vsel %vm9082_vm2, %v19224_v27, -inf  ;;  %v9238_v47 = vsel %vm9082_vm2, %v19226_v49, -inf  ;;  %v9106_v51 = vsel %vm9082_vm2, %v19228_v36, -inf  ;;  %v19232_v33 = vmax.f32 %v19231_v3, 0.0  ;;  %v19235_v27 = vld [vmem:[#allocation70_spill] sm:$0xff] }
 0x539   : > { %v9139_v54 = vsel %vm9082_vm2, %v19230_v39, -inf  ;;  %v19234_v37 = vmax.f32 %v19233_v6, 0.0  ;;  %v19236_v49 = vmax.f32 %v19235_v27, 0.0  ;;  %v19238_v36 = vmax.f32 %v19237_v53, 0.0  ;;  %v19243_v27 = vld [vmem:[#allocation94_spill] sm:$0xff]  ;;  %v19245_v53 = vld [vmem:[#allocation43_spill] sm:$0xff] }
 0x53a   : > { %v9108_v2 = vsel %vm9082_vm2, %v19232_v33, -inf  ;;  %v19240_v39 = vmax.f32 %v19239_v4, 0.0  ;;  %v19242_v13 = vmax.f32 %v19241_v34, 0.0  ;;  %v9210_v3 = vmax.f32 %v9208_v28, %v9209_v42  ;;  %v19253_v42 = vld [vmem:[#allocation58_spill] sm:$0xff] }
 0x53b   : > { %v9110_v22 = vsel %vm9082_vm2, %v19234_v37, -inf  ;;  %v9176_v17 = vsel %vm9082_vm2, %v19236_v49, -inf  ;;  %v9240_v7 = vsel %vm9082_vm2, %v19238_v36, -inf  ;;  %v9239_v33 = vmax.f32 %v9237_v48, %v9238_v47  ;;  %v19257_v48 = vld [vmem:[#allocation45_spill] sm:$0xff] }
 0x53c   : > { %v16693_v9 = vsel %vm9082_vm2, %v19240_v39, -inf  ;;  %v9141_v24 = vsel %vm9082_vm2, %v19242_v13, -inf  ;;  %v9105_v6 = vmax.f32 %v9103_v35, %v9104_v43  ;;  %v9140_v37 = vmax.f32 %v9138_v32, %v9139_v54  ;;  %v19247_v39 = vld [vmem:[#allocation110_spill] sm:$0xff]  ;;  %v19251_v35 = vld [vmem:[#allocation59_spill] sm:$0xff]  ;;  %v19255_v54 = vld [vmem:[#allocation73_spill] sm:$0xff] }
 0x53d   : > { %v19244_v63 = vmax.f32 %v19243_v27, 0.0  ;;  %v19246_v59 = vmax.f32 %v19245_v53, 0.0  ;;  %v9177_v4 = vmax.f32 %v9175_v14, %v9176_v17  ;;  %v9241_v41 = vmax.f32 %v9239_v33, %v9240_v7  ;;  %v19259_v27 = vld [vmem:[#allocation103_spill] sm:$0xff] }
 0x53e   : > { %v19248_v57 = vmax.f32 %v19247_v39, 0.0  ;;  %v19250_v13 = vmax.f32 %v19249_v52, 0.0  ;;  %v19252_v43 = vmax.f32 %v19251_v35, 0.0  ;;  %v19258_v17 = vmax.f32 %v19257_v48, 0.0  ;;  %v19261_v35 = vld [vmem:[#allocation93_spill] sm:$0xff] }
 0x53f   : > { %v9211_v49 = vsel %vm9082_vm2, %v19244_v63, -inf  ;;  %v9242_v36 = vsel %vm9082_vm2, %v19246_v59, -inf  ;;  %v19254_v63 = vmax.f32 %v19253_v42, 0.0  ;;  %v19256_v59 = vmax.f32 %v19255_v54, 0.0 }
 0x540   : > { %v9268_v34 = vsel %vm9082_vm2, %v19248_v57, -inf  ;;  %v9269_v28 = vsel %vm9082_vm2, %v19250_v13, -inf  ;;  %v9143_v32 = vsel %vm9082_vm2, %v19252_v43, -inf  ;;  %v9244_v57 = vsel %vm9082_vm2, %v19258_v17, -inf }
 0x541   : > { %v9145_v47 = vsel %vm9082_vm2, %v19254_v63, -inf  ;;  %v9178_v14 = vsel %vm9082_vm2, %v19256_v59, -inf  ;;  %v9212_v7 = vmax.f32 %v9210_v3, %v9211_v49  ;;  %v9243_v52 = vmax.f32 %v9241_v41, %v9242_v36  ;;  %v19263_v63 = vld [vmem:[#allocation52_spill] sm:$0xff] }
 0x542   : > { %v9270_v33 = vmax.f32 %v9268_v34, %v9269_v28  ;;  %v19260_v53 = vmax.f32 %v19259_v27, 0.0  ;;  %v9107_v13 = vmax.f32 %v9105_v6, %v9106_v51  ;;  %v19262_v43 = vmax.f32 %v19261_v35, 0.0  ;;  %v19267_v34 = vld [vmem:[#allocation60_spill] sm:$0xff]  ;;  %v19269_v6 = vld [vmem:[#allocation75_spill] sm:$0xff]  ;;  %v19271_v35 = vld [vmem:[#allocation62_spill] sm:$0xff] }
 0x543   : > { %v19264_v54 = vmax.f32 %v19263_v63, 0.0  ;;  %v19266_v48 = vmax.f32 %v19265_v5, 0.0  ;;  %v9142_v3 = vmax.f32 %v9140_v37, %v9141_v24  ;;  %v9179_v41 = vmax.f32 %v9177_v4, %v9178_v14  ;;  %v19275_v24 = vld [vmem:[#allocation57_spill] sm:$0xff] }
 0x544   : > { %v9271_v39 = vsel %vm9082_vm2, %v19260_v53, -inf  ;;  %v9213_v42 = vsel %vm9082_vm2, %v19262_v43, -inf  ;;  %v9245_v49 = vmax.f32 %v9243_v52, %v9244_v57  ;;  %v19268_v28 = vmax.f32 %v19267_v34, 0.0 }
 0x545   : > { %v9246_v59 = vsel %vm9082_vm2, %v19264_v54, -inf  ;;  %v9273_v17 = vsel %vm9082_vm2, %v19266_v48, -inf  ;;  %v9272_v36 = vmax.f32 %v9270_v33, %v9271_v39  ;;  %v19270_v27 = vmax.f32 %v19269_v6, 0.0  ;;  %v19273_v54 = vld [vmem:[#allocation153_spill] sm:$0xff]  ;;  %v19277_v39 = vld [vmem:[#allocation96_spill] sm:$0xff] }
 0x546   : > { %v9147_v51 = vsel %vm9082_vm2, %v19268_v28, -inf  ;;  %v19272_v43 = vmax.f32 %v19271_v35, 0.0  ;;  %v19274_v5 = vmax.f32 %v19273_v54, 0.0  ;;  %v19276_v37 = vmax.f32 %v19275_v24, 0.0  ;;  %v19279_v6 = vld [vmem:[#allocation56_spill] sm:$0xff] }
 0x547   : > { %v9180_v53 = vsel %vm9082_vm2, %v19270_v27, -inf  ;;  %v9214_v14 = vmax.f32 %v9212_v7, %v9213_v42  ;;  %v9247_v57 = vmax.f32 %v9245_v49, %v9246_v59  ;;  %v9274_v52 = vmax.f32 %v9272_v36, %v9273_v17  ;;  %v19283_v7 = vld [vmem:[#allocation78_spill] sm:$0xff]  ;;  %v19287_v49 = vld [vmem:[#allocation79_spill] sm:$0xff] }
 0x548   : > { %v9248_v63 = vsel %vm9082_vm2, %v19272_v43, -inf  ;;  %v9275_v48 = vsel %vm9082_vm2, %v19274_v5, -inf  ;;  %v9149_v4 = vsel %vm9082_vm2, %v19276_v37, -inf  ;;  %v9109_v33 = vmax.f32 %v9107_v13, %v9108_v2  ;;  %v19281_v43 = vld [vmem:[#allocation69_spill] sm:$0xff]  ;;  %v19285_v13 = vld [vmem:[#allocation76_spill] sm:$0xff] }
 0x549   : > { %v19278_v34 = vmax.f32 %v19277_v39, 0.0  ;;  %v19280_v27 = vmax.f32 %v19279_v6, 0.0  ;;  %v19282_v54 = vmax.f32 %v19281_v43, 0.0  ;;  %v9144_v50 = vmax.f32 %v9142_v3, %v9143_v32 }
 0x54a   : > { %v9181_v24 = vmax.f32 %v9179_v41, %v9180_v53  ;;  %v9249_v1 = vmax.f32 %v9247_v57, %v9248_v63  ;;  %v9276_v37 = vmax.f32 %v9274_v52, %v9275_v48  ;;  %v19284_v42 = vmax.f32 %v19283_v7, 0.0  ;;  %v19291_v41 = vld [vmem:[#allocation61_spill] sm:$0xff]  ;;  %v19293_v52 = vld [vmem:[#allocation98_spill] sm:$0xff] }
 0x54b   : > { %v9215_v28 = vsel %vm9082_vm2, %v19278_v34, -inf  ;;  %v9250_v35 = vsel %vm9082_vm2, %v19280_v27, -inf  ;;  %v9277_v5 = vsel %vm9082_vm2, %v19282_v54, -inf  ;;  %v19286_v59 = vmax.f32 %v19285_v13, 0.0  ;;  %v19289_v34 = vld [vmem:[#allocation136_spill] sm:$0xff]  ;;  %v19295_v7 = vld [vmem:[#allocation101_spill] sm:$0xff] }
 0x54c   : > { %v9182_v2 = vsel %vm9082_vm2, %v19284_v42, -inf  ;;  %v19288_v36 = vmax.f32 %v19287_v49, 0.0  ;;  %v19290_v6 = vmax.f32 %v19289_v34, 0.0  ;;  %v9216_v32 = vmax.f32 %v9214_v14, %v9215_v28  ;;  %v19299_v28 = vld [vmem:[#allocation80_spill] sm:$0xff] }
 0x54d   : > { %v9184_v17 = vsel %vm9082_vm2, %v19286_v59, -inf  ;;  %v9251_v3 = vmax.f32 %v9249_v1, %v9250_v35  ;;  %v19292_v53 = vmax.f32 %v19291_v41, 0.0  ;;  %v9278_v48 = vmax.f32 %v9276_v37, %v9277_v5  ;;  %v19297_v59 = vld [vmem:[#allocation66_spill] sm:$0xff]  ;;  %v19303_v41 = vld [vmem:[#allocation87_spill] sm:$0xff] }
 0x54e   : > { %v9186_v39 = vsel %vm9082_vm2, %v19288_v36, -inf  ;;  %v9279_v27 = vsel %vm9082_vm2, %v19290_v6, -inf  ;;  %v9111_v57 = vmax.f32 %v9109_v33, %v9110_v22  ;;  %v19294_v43 = vmax.f32 %v19293_v52, 0.0  ;;  %v19301_v33 = vld [vmem:[#allocation159_spill] sm:$0xff] }
 0x54f   : > { %v9252_v63 = vsel %vm9082_vm2, %v19292_v53, -inf  ;;  %v19296_v42 = vmax.f32 %v19295_v7, 0.0  ;;  %v19298_v49 = vmax.f32 %v19297_v59, 0.0  ;;  %v9146_v14 = vmax.f32 %v9144_v50, %v9145_v47 }
 0x550   : > { %v9217_v54 = vsel %vm9082_vm2, %v19294_v43, -inf  ;;  %v9183_v1 = vmax.f32 %v9181_v24, %v9182_v2  ;;  %v19300_v35 = vmax.f32 %v19299_v28, 0.0  ;;  %v9280_v5 = vmax.f32 %v9278_v48, %v9279_v27  ;;  %v19305_v43 = vld [vmem:[#allocation176_spill] sm:$0xff]  ;;  %v19307_v2 = vld [vmem:[#allocation171_spill] sm:$0xff]  ;;  %v19311_v28 = vld [vmem:[#allocation74_spill] sm:$0xff] }
 0x551   : > { %v9219_v13 = vsel %vm9082_vm2, %v19296_v42, -inf  ;;  %v9281_v36 = vsel %vm9082_vm2, %v19298_v49, -inf  ;;  %v9253_v22 = vmax.f32 %v9251_v3, %v9252_v63  ;;  %v19302_v37 = vmax.f32 %v19301_v33, 0.0  ;;  %v19309_v63 = vld [vmem:[#allocation99_spill] sm:$0xff] }
 0x552   : > { %v9254_v34 = vsel %vm9082_vm2, %v19300_v35, -inf  ;;  %v19304_v53 = vmax.f32 %v19303_v41, 0.0  ;;  %v19306_v7 = vmax.f32 %v19305_v43, 0.0  ;;  %v9218_v50 = vmax.f32 %v9216_v32, %v9217_v54 }
 0x553   : > { %v9283_v6 = vsel %vm9082_vm2, %v19302_v37, -inf  ;;  %v9282_v47 = vmax.f32 %v9280_v5, %v9281_v36  ;;  %v19308_v59 = vmax.f32 %v19307_v2, 0.0  ;;  %v9113_v3 = vmax.f32 %v9111_v57, %v16693_v9  ;;  %v19313_v37 = vld [vmem:[#allocation88_spill] sm:$0xff]  ;;  %v19315_v36 = vld [vmem:[#allocation102_spill] sm:$0xff] }
 0x554   : > { %v9305_v52 = vsel %vm9082_vm2, %v19304_v53, -inf  ;;  %v9306_v42 = vsel %vm9082_vm2, %v19306_v7, -inf  ;;  %v19310_v48 = vmax.f32 %v19309_v63, 0.0  ;;  %v19312_v35 = vmax.f32 %v19311_v28, 0.0  ;;  %v19317_v7 = vld [vmem:[#allocation156_spill] sm:$0xff] }
 0x555   : > { %v9307_v24 = vmax.f32 %v9305_v52, %v9306_v42  ;;  %v9308_v27 = vsel %vm9082_vm2, %v19308_v59, -inf  ;;  %v19314_v41 = vmax.f32 %v19313_v37, 0.0  ;;  %v9148_v54 = vmax.f32 %v9146_v14, %v9147_v51  ;;  %v19319_v59 = vld [vmem:[#allocation182_spill] sm:$0xff] }
 0x556   : > { %v9221_v49 = vsel %vm9082_vm2, %v19310_v48, -inf  ;;  %v9285_v33 = vsel %vm9082_vm2, %v19312_v35, -inf  ;;  %v19316_v5 = vmax.f32 %v19315_v36, 0.0  ;;  %v9284_v52 = vmax.f32 %v9282_v47, %v9283_v6  ;;  %v19321_v35 = vld [vmem:[#allocation95_spill] sm:$0xff]  ;;  %v19323_v6 = vld [vmem:[#allocation82_spill] sm:$0xff] }
 0x557   : > { %v9310_v32 = vsel %vm9082_vm2, %v19314_v41, -inf  ;;  %v9309_v43 = vmax.f32 %v9307_v24, %v9308_v27  ;;  %v9185_v9 = vmax.f32 %v9183_v1, %v9184_v17  ;;  %v9255_v57 = vmax.f32 %v9253_v22, %v9254_v34  ;;  %v19325_v1 = vld [vmem:[#allocation72_spill] sm:$0xff] }
 0x558   : > { %v9223_v53 = vsel %vm9082_vm2, %v19316_v5, -inf  ;;  %v19318_v42 = vmax.f32 %v19317_v7, 0.0  ;;  %v19320_v63 = vmax.f32 %v19319_v59, 0.0  ;;  %v9220_v28 = vmax.f32 %v9218_v50, %v9219_v13  ;;  %v19327_v24 = vld [vmem:[#allocation100_spill] sm:$0xff]  ;;  %v19331_v59 = vld [vmem:[#allocation165_spill] sm:$0xff] }
 0x559   : > { %v19322_v37 = vmax.f32 %v19321_v35, 0.0  ;;  %v9286_v14 = vmax.f32 %v9284_v52, %v9285_v33  ;;  %v9311_v41 = vmax.f32 %v9309_v43, %v9310_v32  ;;  %v9114_v36 = vrot.slane %v9113_v3, 4  ;;  %v19329_v50 = vld [vmem:[#allocation92_spill] sm:$0xff] }
 0x55a   : > { %v9287_v2 = vsel %vm9082_vm2, %v19318_v42, -inf  ;;  %v9312_v48 = vsel %vm9082_vm2, %v19320_v63, -inf  ;;  %v19324_v47 = vmax.f32 %v19323_v6, 0.0  ;;  %v19326_v34 = vmax.f32 %v19325_v1, 0.0 }
 0x55b   : > { %v9256_v51 = vsel %vm9082_vm2, %v19322_v37, -inf  ;;  %v19328_v27 = vmax.f32 %v19327_v24, 0.0  ;;  %v9150_v13 = vmax.f32 %v9148_v54, %v9149_v4  ;;  %v19330_v7 = vmax.f32 %v19329_v50, 0.0  ;;  %v19333_v37 = vld [vmem:[#allocation179_spill] sm:$0xff]  ;;  %v19335_v4 = vld [vmem:[#allocation118_spill] sm:$0xff]  ;;  %v19337_v50 = vld [vmem:[#allocation173_spill] sm:$0xff] }
 0x55c   : > { %v9258_v17 = vsel %vm9082_vm2, %v19324_v47, -inf  ;;  %v9289_v22 = vsel %vm9082_vm2, %v19326_v34, -inf  ;;  %v9288_v33 = vmax.f32 %v9286_v14, %v9287_v2  ;;  %v9313_v32 = vmax.f32 %v9311_v41, %v9312_v48 }
 0x55d   : > { %v9314_v5 = vsel %vm9082_vm2, %v19328_v27, -inf  ;;  %v9260_v42 = vsel %vm9082_vm2, %v19330_v7, -inf  ;;  %v9187_v52 = vmax.f32 %v9185_v9, %v9186_v39  ;;  %v9257_v43 = vmax.f32 %v9255_v57, %v9256_v51  ;;  %v19339_v9 = vld [vmem:[#allocation185_spill] sm:$0xff]  ;;  %v19341_v51 = vld [vmem:[#allocation120_spill] sm:$0xff]  ;;  %v19343_v7 = vld [vmem:[#allocation119_spill] sm:$0xff] }
 0x55e   : > { %v19332_v63 = vmax.f32 %v19331_v59, 0.0  ;;  %v19334_v6 = vmax.f32 %v19333_v37, 0.0  ;;  %v9222_v1 = vmax.f32 %v9220_v28, %v9221_v49  ;;  %v9290_v34 = vmax.f32 %v9288_v33, %v9289_v22 }
 0x55f   : > { %v9315_v24 = vmax.f32 %v9313_v32, %v9314_v5  ;;  %v19336_v54 = vmax.f32 %v19335_v4, 0.0  ;;  %v19338_v2 = vmax.f32 %v19337_v50, 0.0  ;;  %v19340_v57 = vmax.f32 %v19339_v9, 0.0  ;;  %v19347_v4 = vld [vmem:[#allocation109_spill] sm:$0xff] }
 0x560   : > { %v9291_v35 = vsel %vm9082_vm2, %v19332_v63, -inf  ;;  %v9316_v47 = vsel %vm9082_vm2, %v19334_v6, -inf  ;;  %v19342_v14 = vmax.f32 %v19341_v51, 0.0  ;;  %v19344_v49 = vmax.f32 %v19343_v7, 0.0  ;;  %v19345_v63 = vld [vmem:[#allocation162_spill] sm:$0xff] }
 0x561   : > { %v9342_v27 = vsel %vm9082_vm2, %v19336_v54, -inf  ;;  %v9293_v39 = vsel %vm9082_vm2, %v19338_v2, -inf  ;;  %v9318_v48 = vsel %vm9082_vm2, %v19340_v57, -inf  ;;  %v9151_v22 = vrot.slane %v9150_v13, 4  ;;  %v19349_v2 = vld [vmem:[#allocation122_spill] sm:$0xff] }
 0x562   : > { %v9343_v41 = vsel %vm9082_vm2, %v19342_v14, -inf  ;;  %v9345_v28 = vsel %vm9082_vm2, %v19344_v49, -inf  ;;  %v9292_v5 = vmax.f32 %v9290_v34, %v9291_v35  ;;  %v9317_v33 = vmax.f32 %v9315_v24, %v9316_v47  ;;  %v19351_v34 = vld [vmem:[#allocation108_spill] sm:$0xff]  ;;  %v19353_v24 = vld [vmem:[#allocation123_spill] sm:$0xff] }
 0x563   : > { %v9344_v32 = vmax.f32 %v9342_v27, %v9343_v41  ;;  %v9259_v59 = vmax.f32 %v9257_v43, %v9258_v17  ;;  %v19346_v37 = vmax.f32 %v19345_v63, 0.0  ;;  %v19348_v54 = vmax.f32 %v19347_v4, 0.0 }
 0x564   : > { %v19350_v9 = vmax.f32 %v19349_v2, 0.0  ;;  %v9224_v51 = vmax.f32 %v9222_v1, %v9223_v53  ;;  %v9294_v14 = vmax.f32 %v9292_v5, %v9293_v39  ;;  %v9319_v7 = vmax.f32 %v9317_v33, %v9318_v48  ;;  %v19357_v39 = vld [vmem:[#allocation111_spill] sm:$0xff] }
 0x565   : > { %v9295_v6 = vsel %vm9082_vm2, %v19346_v37, -inf  ;;  %v9320_v50 = vsel %vm9082_vm2, %v19348_v54, -inf  ;;  %v9346_v49 = vmax.f32 %v9344_v32, %v9345_v28  ;;  %v9115_v35 = vmax.f32 %v9113_v3, %v9114_v36 }
 0x566   : > { %v9347_v57 = vsel %vm9082_vm2, %v19350_v9, -inf  ;;  %v9188_v47 = vrot.slane %v9187_v52, 4  ;;  %v19352_v17 = vmax.f32 %v19351_v34, 0.0  ;;  %v19354_v27 = vmax.f32 %v19353_v24, 0.0  ;;  %v19355_v9 = vld [vmem:[#allocation168_spill] sm:$0xff] }
 0x567   : > { %v9152_v63 = vmax.f32 %v9150_v13, %v9151_v22  ;;  %v9296_v37 = vmax.f32 %v9294_v14, %v9295_v6  ;;  %v9321_v4 = vmax.f32 %v9319_v7, %v9320_v50  ;;  %v9348_v54 = vmax.f32 %v9346_v49, %v9347_v57  ;;  %v19360_v6 = vld [vmem:[#allocation107_spill] sm:$0xff] }
 0x568   : > { %v9322_v43 = vsel %vm9082_vm2, %v19352_v17, -inf  ;;  %v9349_v41 = vsel %vm9082_vm2, %v19354_v27, -inf  ;;  %v9261_v2 = vmax.f32 %v9259_v59, %v9260_v42  ;;  %v19356_v53 = vmax.f32 %v19355_v9, 0.0  ;;  %v19362_v59 = vld [vmem:[#allocation125_spill] sm:$0xff]  ;;  %v19364_v27 = vld [vmem:[#allocation112_spill] sm:$0xff] }
 0x569   : > { %v19358_v3 = vmax.f32 %v19357_v39, 0.0  ;;  %v19359_v48 = vmax.f32 %v16496_v15, 0.0  ;;  %v9225_v5 = vrot.slane %v9224_v51, 4  ;;  %v9323_v33 = vmax.f32 %v9321_v4, %v9322_v43 }
 0x56a   : > { %v9297_v1 = vsel %vm9082_vm2, %v19356_v53, -inf  ;;  %v9350_v32 = vmax.f32 %v9348_v54, %v9349_v41  ;;  %v9116_v13 = vrot.slane %v9115_v35, 2  ;;  %v9189_v22 = vmax.f32 %v9187_v52, %v9188_v47  ;;  %v19366_v41 = vld [vmem:[#allocation127_spill] sm:$0xff] }
 0x56b   : > { %v9324_v36 = vsel %vm9082_vm2, %v19358_v3, -inf  ;;  %v9351_v28 = vsel %vm9082_vm2, %v19359_v48, -inf  ;;  %v19361_v50 = vmax.f32 %v19360_v6, 0.0  ;;  %v19363_v57 = vmax.f32 %v19362_v59, 0.0  ;;  %v19368_v48 = vld [vmem:[#allocation115_spill] sm:$0xff] }
 0x56c   : > { %v9153_v7 = vrot.slane %v9152_v63, 2  ;;  %v9298_v49 = vmax.f32 %v9296_v37, %v9297_v1  ;;  %v9325_v34 = vmax.f32 %v9323_v33, %v9324_v36  ;;  %v9352_v17 = vmax.f32 %v9350_v32, %v9351_v28  ;;  %v19370_v1 = vld [vmem:[#allocation128_spill] sm:$0xff] }
 0x56d   : > { %v9326_v42 = vsel %vm9082_vm2, %v19361_v50, -inf  ;;  %v9353_v14 = vsel %vm9082_vm2, %v19363_v57, -inf  ;;  %v9262_v24 = vrot.slane %v9261_v2, 4  ;;  %v19365_v9 = vmax.f32 %v19364_v27, 0.0  ;;  %v19372_v27 = vld [vmem:[#allocation114_spill] sm:$0xff] }
 0x56e   : > { %v19367_v4 = vmax.f32 %v19366_v41, 0.0  ;;  %v9226_v47 = vmax.f32 %v9224_v51, %v9225_v5  ;;  %v9327_v54 = vmax.f32 %v9325_v34, %v9326_v42  ;;  %v9354_v53 = vmax.f32 %v9352_v17, %v9353_v14  ;;  %v19375_v41 = vld [vmem:[#allocation117_spill] sm:$0xff] }
 0x56f   : > { %v9328_v43 = vsel %vm9082_vm2, %v19365_v9, -inf  ;;  %v9117_v39 = vmax.f32 %v9115_v35, %v9116_v13  ;;  %v9190_v3 = vrot.slane %v9189_v22, 2  ;;  %v19369_v6 = vmax.f32 %v19368_v48, 0.0 }
 0x570   : > { %v9355_v52 = vsel %vm9082_vm2, %v19367_v4, -inf  ;;  %v19371_v36 = vmax.f32 %v19370_v1, 0.0  ;;  %v9154_v33 = vmax.f32 %v9152_v63, %v9153_v7  ;;  %v9299_v32 = vrot.slane %v9298_v49, 4  ;;  %v19377_v7 = vld [vmem:[#allocation126_spill] sm:$0xff] }
 0x571   : > { %v9330_v37 = vsel %vm9082_vm2, %v19369_v6, -inf  ;;  %v9329_v50 = vmax.f32 %v9327_v54, %v9328_v43  ;;  %v9356_v59 = vmax.f32 %v9354_v53, %v9355_v52  ;;  %v9263_v57 = vmax.f32 %v9261_v2, %v9262_v24 }
 0x572   : > { %v9357_v28 = vsel %vm9082_vm2, %v19371_v36, -inf  ;;  %v19373_v9 = vmax.f32 %v19372_v27, 0.0  ;;  %v19374_v35 = vmax.f32 %v16512_v8, 0.0  ;;  %v9227_v13 = vrot.slane %v9226_v47, 2 }
 0x573   : > { %v9331_v42 = vmax.f32 %v9329_v50, %v9330_v37  ;;  %v9358_v14 = vmax.f32 %v9356_v59, %v9357_v28  ;;  %v9118_v34 = vrot.slane %v9117_v39, 1  ;;  %v9191_v17 = vmax.f32 %v9189_v22, %v9190_v3 }
 0x574   : > { %v9332_v51 = vsel %vm9082_vm2, %v19373_v9, -inf  ;;  %v9359_v5 = vsel %vm9082_vm2, %v19374_v35, -inf  ;;  %v19376_v4 = vmax.f32 %v19375_v41, 0.0  ;;  %v19378_v43 = vmax.f32 %v19377_v7, 0.0 }
 0x575   : > { %v9155_v24 = vrot.slane %v9154_v33, 1  ;;  %v9300_v52 = vmax.f32 %v9298_v49, %v9299_v32  ;;  %v9333_v54 = vmax.f32 %v9331_v42, %v9332_v51  ;;  %v9360_v53 = vmax.f32 %v9358_v14, %v9359_v5 }
 0x576   : > { %v9334_v63 = vsel %vm9082_vm2, %v19376_v4, -inf  ;;  %v9361_v2 = vsel %vm9082_vm2, %v19378_v43, -inf  ;;  %v9264_v48 = vrot.slane %v9263_v57, 2  ;;  %v19379_v6 = vmax.f32 %v16508_v19, 0.0 }
 0x577   : > { %v9228_v1 = vmax.f32 %v9226_v47, %v9227_v13  ;;  %v9335_v36 = vmax.f32 %v9333_v54, %v9334_v63  ;;  %v9362_v22 = vmax.f32 %v9360_v53, %v9361_v2  ;;  %v9119_v3 = vmax.f32 %v9117_v39, %v9118_v34 }
 0x578   : > { %v9363_v37 = vsel %vm9082_vm2, %v19379_v6, -inf  ;;  %v9192_v28 = vrot.slane %v9191_v17, 1  ;;  %v19380_v50 = vmax.f32 %v16520_v25, 0.0  ;;  %v9156_v27 = vmax.f32 %v9154_v33, %v9155_v24 }
 0x579   : > { %v9301_v9 = vrot.slane %v9300_v52, 2  ;;  %v9336_v35 = vrot.slane %v9335_v36, 4  ;;  %v9364_v49 = vmax.f32 %v9362_v22, %v9363_v37  ;;  %v9265_v32 = vmax.f32 %v9263_v57, %v9264_v48 }
 0x57a   : > { %v9365_v59 = vsel %vm9082_vm2, %v19380_v50, -inf  ;;  %v19381_v51 = vmax.f32 %v16528_v44, 0.0  ;;  %v9229_v42 = vrot.slane %v9228_v1, 1  ;;  %v9193_v14 = vmax.f32 %v9191_v17, %v9192_v28 }
 0x57b   : > { %v9337_v47 = vmax.f32 %v9335_v36, %v9336_v35  ;;  %v9366_v13 = vmax.f32 %v9364_v49, %v9365_v59  ;;  %v19382_v39 = vmax.f32 %v16517_v20, 0.0  ;;  %v9302_v41 = vmax.f32 %v9300_v52, %v9301_v9  ;;  %v9081_v49 = vld [vmem:[#allocation2] sm:$0xff] }
 0x57c   : > { %v9367_v5 = vsel %vm9082_vm2, %v19381_v51, -inf  ;;  %v9388_v63 = vsel %vm9387_vm8, %v9156_v27, %v9119_v3  ;;  %v9266_v7 = vrot.slane %v9265_v32, 1  ;;  %v19383_v57 = vmax.f32 %v16524_v21, 0.0 }
 0x57d   : > { %v9369_v34 = vsel %vm9082_vm2, %v19382_v39, -inf  ;;  %v9338_v33 = vrot.slane %v9337_v47, 2  ;;  %v9368_v4 = vmax.f32 %v9366_v13, %v9367_v5  ;;  %v9230_v2 = vmax.f32 %v9228_v1, %v9229_v42 }
 0x57e   : > { %v9371_v43 = vsel %vm9082_vm2, %v19383_v57, -inf  ;;  %v9390_v53 = vsel %vm9389_vm9, %v9193_v14, %v9388_v63  ;;  %v9303_v17 = vrot.slane %v9302_v41, 1  ;;  %v9267_v6 = vmax.f32 %v9265_v32, %v9266_v7 }
 0x57f   : > { %v9370_v24 = vmax.f32 %v9368_v4, %v9369_v34  ;;  %v9339_v54 = vmax.f32 %v9337_v47, %v9338_v33  ;;  %v9392_v36 = vsel %vm9391_vm5, %v9230_v2, %v9390_v53 }
 0x580   : > { %v9304_v22 = vmax.f32 %v9302_v41, %v9303_v17  ;;  %v9394_v3 = vsel %vm9393_vm1, %v9267_v6, %v9392_v36 }
 0x581   : > { %v9372_v48 = vmax.f32 %v9370_v24, %v9371_v43  ;;  %v9340_v52 = vrot.slane %v9339_v54, 1 }
 0x582   : > { %v9396_v9 = vsel %vm9395_vm11, %v9304_v22, %v9394_v3 }
 0x583   : > { %v9373_v37 = vrot.slane %v9372_v48, 4  ;;  %v9341_v59 = vmax.f32 %v9339_v54, %v9340_v52 }
 0x585   : > { %v9374_v28 = vmax.f32 %v9372_v48, %v9373_v37  ;;  %v9398_v35 = vsel %vm9397_vm12, %v9341_v59, %v9396_v9 }
 0x587   : > { %v9375_v50 = vrot.slane %v9374_v28, 2 }
 0x589   : > { %v9376_v27 = vmax.f32 %v9374_v28, %v9375_v50 }
 0x58b   : > { %v9377_v1 = vrot.slane %v9376_v27, 1 }
 0x58d   : > { %v9378_v51 = vmax.f32 %v9376_v27, %v9377_v1 }
 0x58f   : > { %v9400_v5 = vsel %vm9399_vm13, %v9378_v51, %v9398_v35 }
 0x590   : > { %v9402_v32 = vmax.f32 %v9081_v49, %v9400_v5 }
 0x592   : > { %9403 = vst.msk [vmem:[#allocation2] sm:$0xff] %vm9082_vm2, %v9402_v32 }
 0x593 PF: > { %p10719_p2 = scmp.le.s32.totalorder %s16269_s19, %s13192_s21 }
 0x595   : > { %9407 = sbr.rel (%p10719_p2) target bundleno = 1652 (0x674), region = 56 }
 0x59c   : > { %v19384_v42 = vld [vmem:[#allocation14_spill] sm:$0xff]  ;;  %v9426_v33 = vstv %s10731_s13  ;;  %v9443_v22 = vstv %s13192_s21  ;;  %v19385_v5 = vmov 0 }
 0x59d   : > { %v9411_v47 = vadd.s32 8, %v19384_v42  ;;  %v9412_v13 = vadd.s32 16, %v19384_v42  ;;  %v9413_v14 = vadd.s32 24, %v19384_v42  ;;  %v9414_v39 = vadd.s32 32, %v19384_v42 }
 0x59e   : > { %v9415_v34 = vadd.s32 40, %v19384_v42  ;;  %v9416_v41 = vadd.s32 48, %v19384_v42  ;;  %v9417_v4 = vadd.s32 56, %v19384_v42  ;;  %v9418_v63 = vadd.s32 64, %v19384_v42 }
 0x59f   : > { %v9419_v7 = vadd.s32 72, %v19384_v42  ;;  %v9420_v57 = vadd.s32 80, %v19384_v42  ;;  %v9421_v43 = vadd.s32 88, %v19384_v42  ;;  %v9422_v2 = vadd.s32 96, %v19384_v42 }
 0x5a0   : > { %v9423_v24 = vadd.s32 104, %v19384_v42  ;;  %v9424_v54 = vadd.s32 112, %v19384_v42  ;;  %v9425_v53 = vadd.s32 120, %v19384_v42  ;;  %v9427_v17 = vadd.s32 %v9426_v33, %v19384_v42 }
 0x5a1   : > { %v9428_v48 = vadd.s32 %v9426_v33, %v9411_v47  ;;  %v9429_v6 = vadd.s32 %v9426_v33, %v9412_v13  ;;  %v9430_v37 = vadd.s32 %v9426_v33, %v9413_v14  ;;  %v9431_v36 = vadd.s32 %v9426_v33, %v9414_v39 }
 0x5a2   : > { %v9432_v52 = vadd.s32 %v9426_v33, %v9415_v34  ;;  %v9433_v28 = vadd.s32 %v9426_v33, %v9416_v41  ;;  %v9434_v3 = vadd.s32 %v9426_v33, %v9417_v4  ;;  %v9435_v50 = vadd.s32 %v9426_v33, %v9418_v63 }
 0x5a3   : > { %v9436_v59 = vadd.s32 %v9426_v33, %v9419_v7  ;;  %v9437_v27 = vadd.s32 %v9426_v33, %v9420_v57  ;;  %v9438_v9 = vadd.s32 %v9426_v33, %v9421_v43  ;;  %v9439_v1 = vadd.s32 %v9426_v33, %v9422_v2 }
 0x5a4   : > { %v9440_v35 = vadd.s32 %v9426_v33, %v9423_v24  ;;  %v9441_v49 = vadd.s32 %v9426_v33, %v9424_v54  ;;  %v9442_v51 = vadd.s32 %v9426_v33, %v9425_v53  ;;  %vm16943_vm14 = vcmp.lt.s32.totalorder %v9427_v17, %v9443_v22 }
 0x5a5   : > { %v19386_v5 = vsel %vm16943_vm14, 4294967295, %v19385_v5  ;;  %vm16947_vm15 = vcmp.lt.s32.totalorder %v9428_v48, %v9443_v22  ;;  %vm16951_vm0 = vcmp.lt.s32.totalorder %v9429_v6, %v9443_v22  ;;  %v19389_v42 = vmov 0  ;;  %v19421_v48 = vld [vmem:[#allocation39_spill] sm:$0xff] }
 0x5a6   : > { %v19390_v42 = vsel %vm16951_vm0, 4294967295, %v19389_v42  ;;  %vm16955_vm3 = vcmp.lt.s32.totalorder %v9430_v37, %v9443_v22  ;;  %v19391_v47 = vmov 0  ;;  %vm16959_vm4 = vcmp.lt.s32.totalorder %v9431_v36, %v9443_v22 }
 0x5a7   : > { %v19392_v47 = vsel %vm16955_vm3, 4294967295, %v19391_v47  ;;  %v19393_v13 = vmov 0  ;;  %vm16963_vm6 = vcmp.lt.s32.totalorder %v9432_v52, %v9443_v22  ;;  %vm16967_vm10 = vcmp.lt.s32.totalorder %v9433_v28, %v9443_v22 }
 0x5a8   : > { %v19394_v13 = vsel %vm16959_vm4, 4294967295, %v19393_v13  ;;  %vm16971_vm7 = vcmp.lt.s32.totalorder %v9434_v3, %v9443_v22  ;;  %vm16975_vm2 = vcmp.lt.s32.totalorder %v9435_v50, %v9443_v22  ;;  %vm16979_vm8 = vcmp.lt.s32.totalorder %v9436_v59, %v9443_v22 }
 0x5a9   : > { %vm16983_vm9 = vcmp.lt.s32.totalorder %v9437_v27, %v9443_v22  ;;  %vm16987_vm5 = vcmp.lt.s32.totalorder %v9438_v9, %v9443_v22  ;;  %vm16991_vm1 = vcmp.lt.s32.totalorder %v9439_v1, %v9443_v22  ;;  %v19409_v7 = vmov 0  ;;  %v19432_v1 = vld [vmem:[#allocation44_spill] sm:$0xff] }
 0x5aa   : > { %v19410_v7 = vsel %vm16991_vm1, 4294967295, %v19409_v7  ;;  %vm16995_vm11 = vcmp.lt.s32.totalorder %v9440_v35, %v9443_v22  ;;  %v19411_v57 = vmov 0  ;;  %vm16999_vm12 = vcmp.lt.s32.totalorder %v9441_v49, %v9443_v22  ;;  %v19435_v49 = vld [vmem:[#allocation47_spill] sm:$0xff] }
 0x5ab   : > { %v19412_v57 = vsel %vm16995_vm11, 4294967295, %v19411_v57  ;;  %v19413_v43 = vmov 0  ;;  %vm17003_vm13 = vcmp.lt.s32.totalorder %v9442_v51, %v9443_v22  ;;  %v19416_v2 = vmov 0 }
 0x5ac   : > { %v19414_v43 = vsel %vm16999_vm12, 4294967295, %v19413_v43  ;;  %v19417_v2 = vsel %vm17003_vm13, 4294967295, %v19416_v2  ;;  %v19419_v24 = vmax.f32 %v15894_v61, 0.0  ;;  %v19420_v53 = vmax.f32 %v15907_v55, 0.0 }
 0x5ad   : > { %19415 = vst [vmem:[#allocation196_spill] sm:$0xff] %v19414_v43  ;;  %19418 = vst [vmem:[#allocation197_spill] sm:$0xff] %v19417_v2  ;;  %v19422_v6 = vmax.f32 %v19421_v48, 0.0  ;;  %v19423_v36 = vmax.f32 %v15901_v23, 0.0  ;;  %v19424_v52 = vmax.f32 %v15929_v11, 0.0  ;;  %v19425_v22 = vmax.f32 %v15941_v60, 0.0 }
 0x5ae   : > { %v17011_v54 = vsel %vm16943_vm14, %v19419_v24, -inf  ;;  %v17017_v17 = vsel %vm16947_vm15, %v19420_v53, -inf  ;;  %v19426_v3 = vmax.f32 %v15924_v46, 0.0  ;;  %v19427_v50 = vmax.f32 %v15935_v16, 0.0  ;;  %v19438_v24 = vld [vmem:[#allocation51_spill] sm:$0xff]  ;;  %v19441_v48 = vld [vmem:[#allocation42_spill] sm:$0xff] }
 0x5af   : > { %v17023_v37 = vsel %vm16951_vm0, %v19422_v6, -inf  ;;  %v17029_v61 = vsel %vm16955_vm3, %v19423_v36, -inf  ;;  %v17035_v55 = vsel %vm16959_vm4, %v19424_v52, -inf  ;;  %v17041_v28 = vsel %vm16963_vm6, %v19425_v22, -inf  ;;  %v19444_v52 = vld [vmem:[#allocation46_spill] sm:$0xff] }
 0x5b0   : > { %v17047_v23 = vsel %vm16967_vm10, %v19426_v3, -inf  ;;  %v17053_v11 = vsel %vm16971_vm7, %v19427_v50, -inf  ;;  %v19428_v59 = vmax.f32 %v15963_v31, 0.0  ;;  %v19429_v27 = vmax.f32 %v15975_v29, 0.0  ;;  %v19447_v50 = vld [vmem:[#allocation49_spill] sm:$0xff] }
 0x5b1   : > { %v19430_v9 = vmax.f32 %v15958_v38, 0.0  ;;  %v19433_v35 = vmax.f32 %v19432_v1, 0.0  ;;  %v19436_v51 = vmax.f32 %v19435_v49, 0.0  ;;  %v19439_v53 = vmax.f32 %v19438_v24, 0.0  ;;  %v19452_v24 = vld [vmem:[#allocation54_spill] sm:$0xff] }
 0x5b2   : > { %v17059_v60 = vsel %vm16975_vm2, %v19428_v59, -inf  ;;  %v17065_v46 = vsel %vm16979_vm8, %v19429_v27, -inf  ;;  %v19442_v6 = vmax.f32 %v19441_v48, 0.0  ;;  %v19445_v22 = vmax.f32 %v19444_v52, 0.0 }
 0x5b3   : > { %v17071_v16 = vsel %vm16983_vm9, %v19430_v9, -inf  ;;  %v17077_v31 = vsel %vm16987_vm5, %v19433_v35, -inf  ;;  %v17083_v29 = vsel %vm16991_vm1, %v19436_v51, -inf  ;;  %v17089_v38 = vsel %vm16995_vm11, %v19439_v53, -inf  ;;  %v19449_v9 = vld [vmem:[#allocation53_spill] sm:$0xff] }
 0x5b4   : > { %19431 = vst [vmem:[#allocation198_spill] sm:$0xff] %v17071_v16  ;;  %19434 = vst [vmem:[#allocation199_spill] sm:$0xff] %v17077_v31  ;;  %v17095_v36 = vsel %vm16999_vm12, %v19442_v6, -inf  ;;  %v17101_v3 = vsel %vm17003_vm13, %v19445_v22, -inf  ;;  %v19448_v59 = vmax.f32 %v19447_v50, 0.0  ;;  %v19450_v1 = vmax.f32 %v19449_v9, 0.0 }
 0x5b5   : > { %19437 = vst [vmem:[#allocation200_spill] sm:$0xff] %v17083_v29  ;;  %19440 = vst [vmem:[#allocation201_spill] sm:$0xff] %v17089_v38  ;;  %v19451_v49 = vmax.f32 %v16024_v18, 0.0  ;;  %v19453_v53 = vmax.f32 %v19452_v24, 0.0  ;;  %v19454_v6 = vmax.f32 %v16053_v26, 0.0  ;;  %v19455_v22 = vmax.f32 %v16062_v58, 0.0 }
 0x5b6   : > { %19443 = vst [vmem:[#allocation202_spill] sm:$0xff] %v17095_v36  ;;  %19446 = vst [vmem:[#allocation203_spill] sm:$0xff] %v17101_v3  ;;  %v17107_v27 = vsel %vm16943_vm14, %v19448_v59, -inf  ;;  %v17113_v35 = vsel %vm16947_vm15, %v19450_v1, -inf  ;;  %v19456_v50 = vmax.f32 %v16049_v10, 0.0  ;;  %v19457_v9 = vmax.f32 %v16058_v62, 0.0 }
 0x5b7   : > { %v17119_v51 = vsel %vm16951_vm0, %v19451_v49, -inf  ;;  %v17125_v48 = vsel %vm16955_vm3, %v19453_v53, -inf  ;;  %v17131_v52 = vsel %vm16959_vm4, %v19454_v6, -inf  ;;  %v17137_v18 = vsel %vm16963_vm6, %v19455_v22, -inf  ;;  %v19461_v24 = vld [vmem:[#allocation50_spill] sm:$0xff]  ;;  %v19464_v6 = vld [vmem:[#allocation55_spill] sm:$0xff] }
 0x5b8   : > { %v17143_v59 = vsel %vm16967_vm10, %v19456_v50, -inf  ;;  %v17149_v26 = vsel %vm16971_vm7, %v19457_v9, -inf  ;;  %v19458_v1 = vmax.f32 %v16073_v56, 0.0  ;;  %v19459_v49 = vmax.f32 %v16082_v12, 0.0  ;;  %v19467_v50 = vld [vmem:[#allocation59_spill] sm:$0xff] }
 0x5b9   : > { %v19462_v53 = vmax.f32 %v19461_v24, 0.0  ;;  %v19465_v22 = vmax.f32 %v19464_v6, 0.0  ;;  %v19468_v9 = vmax.f32 %v19467_v50, 0.0 }
 0x5ba   : > { %v17155_v58 = vsel %vm16975_vm2, %v19458_v1, -inf  ;;  %v17161_v10 = vsel %vm16979_vm8, %v19459_v49, -inf  ;;  %v19470_v1 = vld [vmem:[#allocation58_spill] sm:$0xff] }
 0x5bb   : > { %19460 = vst [vmem:[#allocation204_spill] sm:$0xff] %v17161_v10  ;;  %v17167_v62 = vsel %vm16983_vm9, %v19462_v53, -inf  ;;  %v17173_v56 = vsel %vm16987_vm5, %v19465_v22, -inf  ;;  %v17179_v12 = vsel %vm16991_vm1, %v19468_v9, -inf  ;;  %v19471_v49 = vmax.f32 %v19470_v1, 0.0  ;;  %v19473_v53 = vld [vmem:[#allocation60_spill] sm:$0xff] }
 0x5bc   : > { %19463 = vst [vmem:[#allocation205_spill] sm:$0xff] %v17167_v62  ;;  %19466 = vst [vmem:[#allocation206_spill] sm:$0xff] %v17173_v56  ;;  %v19474_v21 = vmax.f32 %v19473_v53, 0.0  ;;  %v19476_v22 = vld [vmem:[#allocation57_spill] sm:$0xff]  ;;  %v19479_v9 = vld [vmem:[#allocation63_spill] sm:$0xff] }
 0x5bd   : > { %19469 = vst [vmem:[#allocation207_spill] sm:$0xff] %v17179_v12  ;;  %v17185_v24 = vsel %vm16995_vm11, %v19471_v49, -inf  ;;  %v19477_v20 = vmax.f32 %v19476_v22, 0.0  ;;  %v19480_v44 = vmax.f32 %v19479_v9, 0.0  ;;  %v19481_v49 = vld [vmem:[#allocation67_spill] sm:$0xff] }
 0x5be   : > { %19472 = vst [vmem:[#allocation208_spill] sm:$0xff] %v17185_v24  ;;  %v17191_v6 = vsel %vm16999_vm12, %v19474_v21, -inf  ;;  %v19482_v25 = vmax.f32 %v19481_v49, 0.0  ;;  %v19483_v21 = vld [vmem:[#allocation64_spill] sm:$0xff] }
 0x5bf   : > { %19475 = vst [vmem:[#allocation209_spill] sm:$0xff] %v17191_v6  ;;  %v17197_v50 = vsel %vm17003_vm13, %v19477_v20, -inf  ;;  %v17203_v1 = vsel %vm16943_vm14, %v19480_v44, -inf  ;;  %v19484_v19 = vmax.f32 %v19483_v21, 0.0  ;;  %v19485_v20 = vmax.f32 %v16118_v40, 0.0 }
 0x5c0   : > { %19478 = vst [vmem:[#allocation210_spill] sm:$0xff] %v17197_v50  ;;  %v17209_v53 = vsel %vm16947_vm15, %v19482_v25, -inf  ;;  %v19486_v44 = vmax.f32 %v16133_v30, 0.0  ;;  %v19487_v25 = vmax.f32 %v16142_v45, 0.0 }
 0x5c1   : > { %v17215_v22 = vsel %vm16951_vm0, %v19484_v19, -inf  ;;  %v17221_v9 = vsel %vm16955_vm3, %v19485_v20, -inf  ;;  %v19488_v19 = vmax.f32 %v16129_v0, 0.0  ;;  %v19489_v20 = vld [vmem:[#allocation65_spill] sm:$0xff] }
 0x5c2   : > { %v17227_v49 = vsel %vm16959_vm4, %v19486_v44, -inf  ;;  %v17233_v21 = vsel %vm16963_vm6, %v19487_v25, -inf  ;;  %v19490_v8 = vmax.f32 %v19489_v20, 0.0  ;;  %v19491_v44 = vld [vmem:[#allocation68_spill] sm:$0xff]  ;;  %v19493_v25 = vld [vmem:[#allocation71_spill] sm:$0xff] }
 0x5c3   : > { %v17239_v40 = vsel %vm16967_vm10, %v19488_v19, -inf  ;;  %v19492_v50 = vmax.f32 %v19491_v44, 0.0  ;;  %v19494_v6 = vmax.f32 %v19493_v25, 0.0  ;;  %v19496_v19 = vld [vmem:[#allocation70_spill] sm:$0xff] }
 0x5c4   : > { %v17245_v30 = vsel %vm16971_vm7, %v19490_v8, -inf  ;;  %v19497_v24 = vmax.f32 %v19496_v19, 0.0  ;;  %v19499_v8 = vld [vmem:[#allocation73_spill] sm:$0xff] }
 0x5c5   : > { %v17251_v45 = vsel %vm16975_vm2, %v19492_v50, -inf  ;;  %v17257_v0 = vsel %vm16979_vm8, %v19494_v6, -inf  ;;  %v19500_v12 = vmax.f32 %v19499_v8, 0.0  ;;  %v19502_v50 = vld [vmem:[#allocation75_spill] sm:$0xff]  ;;  %v19505_v6 = vld [vmem:[#allocation78_spill] sm:$0xff] }
 0x5c6   : > { %19495 = vst [vmem:[#allocation211_spill] sm:$0xff] %v17257_v0  ;;  %v17263_v20 = vsel %vm16983_vm9, %v19497_v24, -inf  ;;  %v19503_v56 = vmax.f32 %v19502_v50, 0.0  ;;  %v19506_v3 = vmax.f32 %v19505_v6, 0.0  ;;  %v19508_v24 = vld [vmem:[#allocation76_spill] sm:$0xff] }
 0x5c7   : > { %19498 = vst [vmem:[#allocation212_spill] sm:$0xff] %v17263_v20  ;;  %v17269_v44 = vsel %vm16987_vm5, %v19500_v12, -inf  ;;  %v19509_v20 = vmax.f32 %v19508_v24, 0.0  ;;  %v19511_v12 = vld [vmem:[#allocation79_spill] sm:$0xff] }
 0x5c8   : > { %19501 = vst [vmem:[#allocation213_spill] sm:$0xff] %v17269_v44  ;;  %v17275_v25 = vsel %vm16991_vm1, %v19503_v56, -inf  ;;  %v17281_v19 = vsel %vm16995_vm11, %v19506_v3, -inf  ;;  %v19512_v44 = vmax.f32 %v19511_v12, 0.0  ;;  %v19514_v56 = vld [vmem:[#allocation81_spill] sm:$0xff] }
 0x5c9   : > { %19504 = vst [vmem:[#allocation214_spill] sm:$0xff] %v17275_v25  ;;  %19507 = vst [vmem:[#allocation215_spill] sm:$0xff] %v17281_v19  ;;  %v17287_v8 = vsel %vm16999_vm12, %v19509_v20, -inf  ;;  %v19515_v25 = vmax.f32 %v19514_v56, 0.0  ;;  %v19516_v3 = vld [vmem:[#allocation85_spill] sm:$0xff] }
 0x5ca   : > { %19510 = vst [vmem:[#allocation216_spill] sm:$0xff] %v17287_v8  ;;  %v17293_v50 = vsel %vm17003_vm13, %v19512_v44, -inf  ;;  %v19517_v19 = vmax.f32 %v19516_v3, 0.0  ;;  %v19518_v20 = vld [vmem:[#allocation77_spill] sm:$0xff]  ;;  %v19520_v44 = vld [vmem:[#allocation86_spill] sm:$0xff] }
 0x5cb   : > { %19513 = vst [vmem:[#allocation217_spill] sm:$0xff] %v17293_v50  ;;  %v17299_v6 = vsel %vm16943_vm14, %v19515_v25, -inf  ;;  %v19519_v8 = vmax.f32 %v19518_v20, 0.0  ;;  %v19521_v50 = vmax.f32 %v19520_v44, 0.0  ;;  %v19522_v25 = vld [vmem:[#allocation84_spill] sm:$0xff] }
 0x5cc   : > { %v17305_v24 = vsel %vm16947_vm15, %v19517_v19, -inf  ;;  %v19523_v36 = vmax.f32 %v19522_v25, 0.0  ;;  %v19524_v19 = vld [vmem:[#allocation89_spill] sm:$0xff] }
 0x5cd   : > { %v17311_v12 = vsel %vm16951_vm0, %v19519_v8, -inf  ;;  %v17317_v56 = vsel %vm16955_vm3, %v19521_v50, -inf  ;;  %v19525_v38 = vmax.f32 %v19524_v19, 0.0  ;;  %v19526_v8 = vld [vmem:[#allocation83_spill] sm:$0xff]  ;;  %v19528_v50 = vld [vmem:[#allocation90_spill] sm:$0xff] }
 0x5ce   : > { %v17323_v3 = vsel %vm16959_vm4, %v19523_v36, -inf  ;;  %v19527_v62 = vmax.f32 %v19526_v8, 0.0  ;;  %v19529_v29 = vmax.f32 %v19528_v50, 0.0  ;;  %v19531_v36 = vld [vmem:[#allocation91_spill] sm:$0xff] }
 0x5cf   : > { %v17329_v20 = vsel %vm16963_vm6, %v19525_v38, -inf  ;;  %v19532_v31 = vmax.f32 %v19531_v36, 0.0  ;;  %v19534_v38 = vld [vmem:[#allocation94_spill] sm:$0xff] }
 0x5d0   : > { %v17335_v44 = vsel %vm16967_vm10, %v19527_v62, -inf  ;;  %v17341_v25 = vsel %vm16971_vm7, %v19529_v29, -inf  ;;  %v19535_v0 = vmax.f32 %v19534_v38, 0.0  ;;  %v19537_v62 = vld [vmem:[#allocation93_spill] sm:$0xff]  ;;  %v19540_v29 = vld [vmem:[#allocation96_spill] sm:$0xff] }
 0x5d1   : > { %19530 = vst [vmem:[#allocation218_spill] sm:$0xff] %v17341_v25  ;;  %v17347_v19 = vsel %vm16975_vm2, %v19532_v31, -inf  ;;  %v19538_v10 = vmax.f32 %v19537_v62, 0.0  ;;  %v19541_v25 = vmax.f32 %v19540_v29, 0.0  ;;  %v19543_v31 = vld [vmem:[#allocation98_spill] sm:$0xff] }
 0x5d2   : > { %19533 = vst [vmem:[#allocation219_spill] sm:$0xff] %v17347_v19  ;;  %v17353_v8 = vsel %vm16979_vm8, %v19535_v0, -inf  ;;  %v19544_v19 = vmax.f32 %v19543_v31, 0.0  ;;  %v19546_v0 = vld [vmem:[#allocation101_spill] sm:$0xff] }
 0x5d3   : > { %19536 = vst [vmem:[#allocation220_spill] sm:$0xff] %v17353_v8  ;;  %v17359_v50 = vsel %vm16983_vm9, %v19538_v10, -inf  ;;  %v17365_v36 = vsel %vm16987_vm5, %v19541_v25, -inf  ;;  %v19547_v8 = vmax.f32 %v19546_v0, 0.0  ;;  %v19549_v10 = vld [vmem:[#allocation99_spill] sm:$0xff]  ;;  %v19552_v25 = vld [vmem:[#allocation102_spill] sm:$0xff] }
 0x5d4   : > { %19539 = vst [vmem:[#allocation221_spill] sm:$0xff] %v17359_v50  ;;  %19542 = vst [vmem:[#allocation222_spill] sm:$0xff] %v17365_v36  ;;  %v17371_v38 = vsel %vm16991_vm1, %v19544_v19, -inf  ;;  %v19550_v50 = vmax.f32 %v19549_v10, 0.0  ;;  %v19553_v36 = vmax.f32 %v19552_v25, 0.0  ;;  %v19555_v19 = vld [vmem:[#allocation104_spill] sm:$0xff] }
 0x5d5   : > { %19545 = vst [vmem:[#allocation223_spill] sm:$0xff] %v17371_v38  ;;  %v17377_v62 = vsel %vm16995_vm11, %v19547_v8, -inf  ;;  %v19556_v38 = vmax.f32 %v19555_v19, 0.0  ;;  %v19558_v8 = vld [vmem:[#allocation40_spill] sm:$0xff] }
 0x5d6   : > { %19548 = vst [vmem:[#allocation224_spill] sm:$0xff] %v17377_v62  ;;  %v17383_v29 = vsel %vm16999_vm12, %v19550_v50, -inf  ;;  %v17389_v31 = vsel %vm17003_vm13, %v19553_v36, -inf  ;;  %v19559_v62 = vmax.f32 %v19558_v8, 0.0  ;;  %v19561_v50 = vld [vmem:[#allocation105_spill] sm:$0xff]  ;;  %v19564_v36 = vld [vmem:[#allocation106_spill] sm:$0xff] }
 0x5d7   : > { %19551 = vst [vmem:[#allocation225_spill] sm:$0xff] %v17383_v29  ;;  %19554 = vst [vmem:[#allocation226_spill] sm:$0xff] %v17389_v31  ;;  %v17395_v0 = vsel %vm16943_vm14, %v19556_v38, -inf  ;;  %v19562_v29 = vmax.f32 %v19561_v50, 0.0  ;;  %v19565_v31 = vmax.f32 %v19564_v36, 0.0  ;;  %v19567_v38 = vld [vmem:[#allocation143_spill] sm:$0xff] }
 0x5d8   : > { %19557 = vst [vmem:[#allocation227_spill] sm:$0xff] %v17395_v0  ;;  %v17401_v10 = vsel %vm16947_vm15, %v19559_v62, -inf  ;;  %v19568_v16 = vmax.f32 %v19567_v38, 0.0  ;;  %v19570_v62 = vld [vmem:[#allocation48_spill] sm:$0xff] }
 0x5d9   : > { %19560 = vst [vmem:[#allocation228_spill] sm:$0xff] %v17401_v10  ;;  %v17407_v25 = vsel %vm16951_vm0, %v19562_v29, -inf  ;;  %v17413_v19 = vsel %vm16955_vm3, %v19565_v31, -inf  ;;  %v19571_v10 = vmax.f32 %v19570_v62, 0.0  ;;  %v19573_v29 = vld [vmem:[#allocation43_spill] sm:$0xff]  ;;  %v19576_v31 = vld [vmem:[#allocation45_spill] sm:$0xff] }
 0x5da   : > { %19563 = vst [vmem:[#allocation229_spill] sm:$0xff] %v17407_v25  ;;  %19566 = vst [vmem:[#allocation230_spill] sm:$0xff] %v17413_v19  ;;  %v17419_v8 = vsel %vm16959_vm4, %v19568_v16, -inf  ;;  %v19574_v25 = vmax.f32 %v19573_v29, 0.0  ;;  %v19577_v19 = vmax.f32 %v19576_v31, 0.0  ;;  %v19579_v16 = vld [vmem:[#allocation52_spill] sm:$0xff] }
 0x5db   : > { %19569 = vst [vmem:[#allocation231_spill] sm:$0xff] %v17419_v8  ;;  %v17425_v50 = vsel %vm16963_vm6, %v19571_v10, -inf  ;;  %v19580_v8 = vmax.f32 %v19579_v16, 0.0  ;;  %v19582_v10 = vld [vmem:[#allocation62_spill] sm:$0xff] }
 0x5dc   : > { %19572 = vst [vmem:[#allocation232_spill] sm:$0xff] %v17425_v50  ;;  %v17431_v36 = vsel %vm16967_vm10, %v19574_v25, -inf  ;;  %v17437_v38 = vsel %vm16971_vm7, %v19577_v19, -inf  ;;  %v19583_v50 = vmax.f32 %v19582_v10, 0.0  ;;  %v19585_v25 = vld [vmem:[#allocation56_spill] sm:$0xff]  ;;  %v19588_v19 = vld [vmem:[#allocation61_spill] sm:$0xff] }
 0x5dd   : > { %19575 = vst [vmem:[#allocation233_spill] sm:$0xff] %v17431_v36  ;;  %19578 = vst [vmem:[#allocation234_spill] sm:$0xff] %v17437_v38  ;;  %v17443_v62 = vsel %vm16975_vm2, %v19580_v8, -inf  ;;  %v19586_v36 = vmax.f32 %v19585_v25, 0.0  ;;  %v19589_v38 = vmax.f32 %v19588_v19, 0.0  ;;  %v19591_v8 = vld [vmem:[#allocation80_spill] sm:$0xff] }
 0x5de   : > { %19581 = vst [vmem:[#allocation235_spill] sm:$0xff] %v17443_v62  ;;  %v17449_v29 = vsel %vm16979_vm8, %v19583_v50, -inf  ;;  %v19592_v62 = vmax.f32 %v19591_v8, 0.0  ;;  %v19594_v50 = vld [vmem:[#allocation95_spill] sm:$0xff] }
 0x5df   : > { %19584 = vst [vmem:[#allocation236_spill] sm:$0xff] %v17449_v29  ;;  %v17455_v31 = vsel %vm16983_vm9, %v19586_v36, -inf  ;;  %v17461_v16 = vsel %vm16987_vm5, %v19589_v38, -inf  ;;  %v19595_v29 = vmax.f32 %v19594_v50, 0.0  ;;  %v19597_v36 = vld [vmem:[#allocation82_spill] sm:$0xff]  ;;  %v19600_v38 = vld [vmem:[#allocation92_spill] sm:$0xff] }
 0x5e0   : > { %19587 = vst [vmem:[#allocation237_spill] sm:$0xff] %v17455_v31  ;;  %19590 = vst [vmem:[#allocation238_spill] sm:$0xff] %v17461_v16  ;;  %v17467_v10 = vsel %vm16991_vm1, %v19592_v62, -inf  ;;  %v19598_v31 = vmax.f32 %v19597_v36, 0.0  ;;  %v19601_v16 = vmax.f32 %v19600_v38, 0.0  ;;  %v19603_v62 = vld [vmem:[#allocation110_spill] sm:$0xff] }
 0x5e1   : > { %19593 = vst [vmem:[#allocation239_spill] sm:$0xff] %v17467_v10  ;;  %v17473_v25 = vsel %vm16995_vm11, %v19595_v29, -inf  ;;  %v19604_v10 = vmax.f32 %v19603_v62, 0.0  ;;  %v19606_v29 = vld [vmem:[#allocation116_spill] sm:$0xff] }
 0x5e2   : > { %19596 = vst [vmem:[#allocation240_spill] sm:$0xff] %v17473_v25  ;;  %v17479_v19 = vsel %vm16999_vm12, %v19598_v31, -inf  ;;  %v17485_v8 = vsel %vm17003_vm13, %v19601_v16, -inf  ;;  %v19607_v25 = vmax.f32 %v19606_v29, 0.0  ;;  %v19609_v31 = vld [vmem:[#allocation103_spill] sm:$0xff]  ;;  %vm19612_vm13 = vcmask 392192  }
 0x5e3   : > { %19599 = vst [vmem:[#allocation241_spill] sm:$0xff] %v17479_v19  ;;  %19602 = vst [vmem:[#allocation242_spill] sm:$0xff] %v17485_v8  ;;  %v17491_v50 = vsel %vm16943_vm14, %v19604_v10, -inf  ;;  %v19610_v19 = vmax.f32 %v19609_v31, 0.0  ;;  %v9590_v16 = vsel %vm19612_vm13, %v17011_v54, -inf  ;;  %v19615_v29 = vld [vmem:[#allocation113_spill] sm:$0xff] }
 0x5e4   : > { %19605 = vst [vmem:[#allocation243_spill] sm:$0xff] %v17491_v50  ;;  %v17497_v36 = vsel %vm16947_vm15, %v19607_v25, -inf  ;;  %vm19613_vm12 = vmmov %vm19612_vm13  ;;  %v19616_v8 = vmax.f32 %v19615_v29, 0.0  ;;  %v19618_v31 = vld [vmem:[#allocation153_spill] sm:$0xff] }
 0x5e5   : > { %19608 = vst [vmem:[#allocation244_spill] sm:$0xff] %v17497_v36  ;;  %v17503_v38 = vsel %vm16951_vm0, %v19610_v19, -inf  ;;  %v9591_v62 = vsel %vm19613_vm12, %v17017_v17, -inf  ;;  %vm19614_vm14 = vmmov %vm19613_vm12  ;;  %v19619_v36 = vmax.f32 %v19618_v31, 0.0 }
 0x5e6   : > { %19611 = vst [vmem:[#allocation245_spill] sm:$0xff] %v17503_v38  ;;  %v9593_v10 = vsel %vm19614_vm14, %v17023_v37, -inf  ;;  %v17515_v25 = vsel %vm16955_vm3, %v19616_v8, -inf  ;;  %v19621_v38 = vld [vmem:[#allocation69_spill] sm:$0xff]  ;;  %v9592_v50 = vmax.f32 %v9590_v16, %v9591_v62  ;;  %v19623_v37 = vld [vmem:[#allocation136_spill] sm:$0xff]  ;;  %v19626_v8 = vld [vmem:[#allocation66_spill] sm:$0xff] }
 0x5e7   : > { %19617 = vst [vmem:[#allocation246_spill] sm:$0xff] %v17515_v25  ;;  %v17521_v19 = vsel %vm16959_vm4, %v19619_v36, -inf  ;;  %v19622_v54 = vmax.f32 %v19621_v38, 0.0  ;;  %v19624_v0 = vmax.f32 %v19623_v37, 0.0  ;;  %v19627_v25 = vmax.f32 %v19626_v8, 0.0  ;;  %v19629_v36 = vld [vmem:[#allocation159_spill] sm:$0xff]  ;;  %vm19632_vm14 = vmmov %vm19613_vm12 }
 0x5e8   : > { %19620 = vst [vmem:[#allocation247_spill] sm:$0xff] %v17521_v19  ;;  %v19630_v19 = vmax.f32 %v19629_v36, 0.0  ;;  %v9595_v16 = vsel %vm19632_vm14, %v17029_v61, -inf  ;;  %v19633_v62 = vld [vmem:[#allocation74_spill] sm:$0xff]  ;;  %v19635_v37 = vld [vmem:[#allocation156_spill] sm:$0xff]  ;;  %v19641_v61 = vld [vmem:[#allocation165_spill] sm:$0xff] }
 0x5e9   : > { %v17527_v17 = vsel %vm16963_vm6, %v19622_v54, -inf  ;;  %v17533_v29 = vsel %vm16967_vm10, %v19624_v0, -inf  ;;  %v17539_v31 = vsel %vm16971_vm7, %v19627_v25, -inf  ;;  %v19634_v54 = vmax.f32 %v19633_v62, 0.0  ;;  %v19638_v36 = vld [vmem:[#allocation72_spill] sm:$0xff]  ;;  %vm19644_vm13 = vmmov %vm19613_vm12 }
 0x5ea   : > { %19625 = vst [vmem:[#allocation248_spill] sm:$0xff] %v17533_v29  ;;  %19628 = vst [vmem:[#allocation249_spill] sm:$0xff] %v17539_v31  ;;  %v17545_v38 = vsel %vm16975_vm2, %v19630_v19, -inf  ;;  %v19636_v8 = vmax.f32 %v19635_v37, 0.0  ;;  %v19639_v31 = vmax.f32 %v19638_v36, 0.0  ;;  %v19642_v29 = vmax.f32 %v19641_v61, 0.0 }
 0x5eb   : > { %19631 = vst [vmem:[#allocation250_spill] sm:$0xff] %v17545_v38  ;;  %v17553_v0 = vsel %vm16979_vm8, %v19634_v54, -inf  ;;  %v9594_v38 = vmax.f32 %v9592_v50, %v9593_v10  ;;  %v9597_v54 = vsel %vm19613_vm12, %v17035_v55, -inf  ;;  %v9627_v37 = vsel %vm19644_vm13, %v17107_v27, -inf  ;;  %vm19645_vm14 = vmmov %vm19613_vm12  ;;  %v19646_v36 = vld [vmem:[#allocation173_spill] sm:$0xff]  ;;  %v19650_v61 = vld [vmem:[#allocation162_spill] sm:$0xff] }
 0x5ec   : > { %v17559_v25 = vsel %vm16983_vm9, %v19636_v8, -inf  ;;  %v17565_v19 = vsel %vm16987_vm5, %v19639_v31, -inf  ;;  %v17571_v62 = vsel %vm16991_vm1, %v19642_v29, -inf  ;;  %v9628_v8 = vsel %vm19645_vm14, %v17113_v35, -inf  ;;  %vm19649_vm1 = vmmov %vm19613_vm12  ;;  %v19654_v27 = vld [vmem:[#allocation168_spill] sm:$0xff] }
 0x5ed   : > { %19637 = vst [vmem:[#allocation251_spill] sm:$0xff] %v17559_v25  ;;  %19640 = vst [vmem:[#allocation252_spill] sm:$0xff] %v17565_v19  ;;  %v19647_v25 = vmax.f32 %v19646_v36, 0.0  ;;  %v9596_v10 = vmax.f32 %v9594_v38, %v9595_v16  ;;  %v9629_v31 = vmax.f32 %v9627_v37, %v9628_v8  ;;  %v9630_v29 = vsel %vm19649_vm1, %v17119_v51, -inf  ;;  %v19660_v16 = vld [vmem:[#allocation87_spill] sm:$0xff] }
 0x5ee   : > { %19643 = vst [vmem:[#allocation253_spill] sm:$0xff] %v17571_v62  ;;  %v19651_v62 = vmax.f32 %v19650_v61, 0.0  ;;  %vm19652_vm12 = vnez %v19414_v43  ;;  %v19655_v19 = vmax.f32 %v19654_v27, 0.0  ;;  %vm19656_vm13 = vnez %v19417_v2  ;;  %vm19658_vm14 = vmmov %vm19649_vm1  ;;  %v19665_v27 = vld [vmem:[#allocation171_spill] sm:$0xff] }
 0x5ef   : > { %v17583_v50 = vsel %vm16995_vm11, %v19647_v25, -inf  ;;  %v9599_v25 = vsel %vm19658_vm14, %v17041_v28, -inf  ;;  %vm19659_vm11 = vmmov %vm19649_vm1  ;;  %v19661_v51 = vmax.f32 %v19660_v16, 0.0  ;;  %vm19662_vm1 = vnez %v19386_v5 }
 0x5f0   : > { %19648 = vst [vmem:[#allocation254_spill] sm:$0xff] %v17583_v50  ;;  %v17591_v55 = vsel %vm19652_vm12, %v19651_v62, -inf  ;;  %v17597_v35 = vsel %vm19656_vm13, %v19655_v19, -inf  ;;  %v9632_v38 = vsel %vm19659_vm11, %v17125_v48, -inf  ;;  %v19663_v62 = vld [vmem:[#allocation176_spill] sm:$0xff]  ;;  %v9598_v19 = vmax.f32 %v9596_v10, %v9597_v54  ;;  %vm19673_vm14 = vmmov %vm19659_vm11 }
 0x5f1   : > { %19653 = vst [vmem:[#allocation255_spill] sm:$0xff] %v17591_v55  ;;  %19657 = vst [vmem:[#allocation256_spill] sm:$0xff] %v17597_v35  ;;  %v17607_v37 = vsel %vm19662_vm1, %v19661_v51, -inf  ;;  %v19664_v8 = vmax.f32 %v19663_v62, 0.0  ;;  %v9631_v61 = vmax.f32 %v9629_v31, %v9630_v29  ;;  %v19666_v35 = vmax.f32 %v19665_v27, 0.0  ;;  %v19667_v48 = vld [vmem:[#allocation88_spill] sm:$0xff] }
 0x5f2   : > { %v19668_v16 = vmax.f32 %v19667_v48, 0.0  ;;  %v19669_v55 = vld [vmem:[#allocation182_spill] sm:$0xff]  ;;  %v9634_v54 = vsel %vm19659_vm11, %v17131_v52, -inf  ;;  %v19671_v10 = vld [vmem:[#allocation100_spill] sm:$0xff]  ;;  %v9601_v27 = vsel %vm19673_vm14, %v17047_v23, -inf  ;;  %v19681_v23 = vld [vmem:[#allocation185_spill] sm:$0xff] }
 0x5f3   : > { %v17613_v36 = vsel %vm16947_vm15, %v19664_v8, -inf  ;;  %v17619_v28 = vsel %vm16951_vm0, %v19666_v35, -inf  ;;  %v19670_v62 = vmax.f32 %v19669_v55, 0.0  ;;  %v19672_v31 = vmax.f32 %v19671_v10, 0.0  ;;  %v19678_v10 = vld [vmem:[#allocation179_spill] sm:$0xff] }
 0x5f4   : > { %v17625_v51 = vsel %vm16955_vm3, %v19668_v16, -inf  ;;  %v9600_v35 = vmax.f32 %v9598_v19, %v9599_v25  ;;  %v9633_v48 = vmax.f32 %v9631_v61, %v9632_v38  ;;  %vm19674_vm3 = vmmov %vm19659_vm11  ;;  %v19682_v38 = vmax.f32 %v19681_v23, 0.0  ;;  %v19684_v61 = vld [vmem:[#allocation109_spill] sm:$0xff] }
 0x5f5   : > { %v17631_v8 = vsel %vm16959_vm4, %v19670_v62, -inf  ;;  %v17639_v29 = vsel %vm16963_vm6, %v19672_v31, -inf  ;;  %v9636_v55 = vsel %vm19674_vm3, %v17137_v18, -inf  ;;  %vm19675_vm4 = vmmov %vm19674_vm3  ;;  %v19679_v31 = vmax.f32 %v19678_v10, 0.0 }
 0x5f6   : > { %v9664_v16 = vsel %vm19675_vm4, %v17203_v1, -inf  ;;  %vm19676_vm0 = vmmov %vm19674_vm3  ;;  %v17661_v18 = vsel %vm16971_vm7, %v19682_v38, -inf  ;;  %v9635_v19 = vmax.f32 %v9633_v48, %v9634_v54  ;;  %v19685_v50 = vmax.f32 %v19684_v61, 0.0  ;;  %v19688_v38 = vld [vmem:[#allocation111_spill] sm:$0xff] }
 0x5f7   : > { %v9665_v52 = vsel %vm19676_vm0, %v17209_v53, -inf  ;;  %vm19677_vm11 = vmmov %vm19676_vm0  ;;  %v17655_v25 = vsel %vm16967_vm10, %v19679_v31, -inf  ;;  %19683 = vst [vmem:[#allocation258_spill] sm:$0xff] %v17661_v18  ;;  %v9669_v23 = vsel %vm19676_vm0, %v17221_v9, -inf  ;;  %v19689_v18 = vmax.f32 %v19688_v38, 0.0 }
 0x5f8   : > { %v9667_v62 = vsel %vm19677_vm11, %v17215_v22, -inf  ;;  %19680 = vst [vmem:[#allocation257_spill] sm:$0xff] %v17655_v25  ;;  %v9666_v1 = vmax.f32 %v9664_v16, %v9665_v52  ;;  %v17667_v53 = vsel %vm16975_vm2, %v19685_v50, -inf  ;;  %v19686_v22 = vld [vmem:[#allocation108_spill] sm:$0xff]  ;;  %v9602_v25 = vmax.f32 %v9600_v35, %v9601_v27  ;;  %vm19690_vm3 = vmmov %vm19676_vm0  ;;  %v19691_v52 = vld [vmem:[#allocation107_spill] sm:$0xff] }
 0x5f9   : > { %v19687_v10 = vmax.f32 %v19686_v22, 0.0  ;;  %v17681_v54 = vsel %vm16983_vm9, %v19689_v18, -inf  ;;  %v9603_v50 = vsel %vm19690_vm3, %v17053_v11, -inf  ;;  %v9637_v48 = vmax.f32 %v9635_v19, %v9636_v55  ;;  %v19693_v35 = vld [vmem:[#allocation112_spill] sm:$0xff]  ;;  %vm19696_vm14 = vmmov %vm19676_vm0  ;;  %v19698_v55 = vld [vmem:[#allocation115_spill] sm:$0xff] }
 0x5fa   : > { %v9668_v16 = vmax.f32 %v9666_v1, %v9667_v62  ;;  %v19692_v61 = vmax.f32 %v19691_v52, 0.0  ;;  %v19694_v27 = vmax.f32 %v19693_v35, 0.0  ;;  %vm19695_vm4 = vnez %v19410_v7  ;;  %vm19697_vm11 = vmmov %vm19676_vm0  ;;  %v19701_v1 = vld [vmem:[#allocation114_spill] sm:$0xff] }
 0x5fb   : > { %v17673_v31 = vsel %vm16979_vm8, %v19687_v10, -inf  ;;  %v9638_v18 = vsel %vm19696_vm14, %v17143_v59, -inf  ;;  %v9671_v11 = vsel %vm19697_vm11, %v17227_v49, -inf  ;;  %v19699_v62 = vmax.f32 %v19698_v55, 0.0  ;;  %vm19703_vm14 = vmmov %vm19690_vm3 }
 0x5fc   : > { %v17689_v22 = vsel %vm16987_vm5, %v19692_v61, -inf  ;;  %v17695_v9 = vsel %vm19695_vm4, %v19694_v27, -inf  ;;  %vm19700_vm0 = vnez %v19412_v57  ;;  %v19702_v10 = vmax.f32 %v19701_v1, 0.0  ;;  %vm19704_vm11 = vmmov %vm19690_vm3 }
 0x5fd   : > { %v17705_v19 = vsel %vm19700_vm0, %v19699_v62, -inf  ;;  %v9670_v52 = vmax.f32 %v9668_v16, %v9669_v23  ;;  %v9673_v61 = vsel %vm19690_vm3, %v17233_v21, -inf  ;;  %v9604_v59 = vmax.f32 %v9602_v25, %v9603_v50  ;;  %vm19705_vm0 = vmmov %vm19690_vm3  ;;  %v19707_v23 = vld [vmem:[#allocation117_spill] sm:$0xff]  ;;  %v19711_v25 = vld [vmem:[#allocation118_spill] sm:$0xff] }
 0x5fe   : > { %v17711_v38 = vsel %vm19652_vm12, %v19702_v10, -inf  ;;  %v9701_v49 = vsel %vm19703_vm14, %v17299_v6, -inf  ;;  %v9702_v35 = vsel %vm19704_vm11, %v17305_v24, -inf  ;;  %v9704_v27 = vsel %vm19705_vm0, %v17311_v12, -inf  ;;  %vm19706_vm4 = vmmov %vm19705_vm0 }
 0x5ff   : > { %v9605_v55 = vsel %vm19706_vm4, %v17059_v60, -inf  ;;  %v9639_v62 = vmax.f32 %v9637_v48, %v9638_v18  ;;  %v9672_v1 = vmax.f32 %v9670_v52, %v9671_v11  ;;  %v9703_v10 = vmax.f32 %v9701_v49, %v9702_v35  ;;  %vm19709_vm3 = vmmov %vm19705_vm0  ;;  %v19713_v48 = vld [vmem:[#allocation120_spill] sm:$0xff]  ;;  %v19715_v49 = vld [vmem:[#allocation119_spill] sm:$0xff] }
 0x600   : > { %v19708_v16 = vmax.f32 %v19707_v23, 0.0  ;;  %v9640_v6 = vsel %vm19709_vm3, %v17149_v26, -inf  ;;  %vm19710_vm14 = vmmov %vm19705_vm0  ;;  %v9706_v12 = vsel %vm19705_vm0, %v17317_v56, -inf  ;;  %v19712_v60 = vmax.f32 %v19711_v25, 0.0 }
 0x601   : > { %v9675_v24 = vsel %vm19710_vm14, %v17239_v40, -inf  ;;  %v19714_v18 = vmax.f32 %v19713_v48, 0.0  ;;  %v9674_v52 = vmax.f32 %v9672_v1, %v9673_v61  ;;  %v9705_v26 = vmax.f32 %v9703_v10, %v9704_v27  ;;  %vm19718_vm11 = vmmov %vm19705_vm0  ;;  %v19721_v27 = vld [vmem:[#allocation122_spill] sm:$0xff]  ;;  %v19724_v10 = vld [vmem:[#allocation123_spill] sm:$0xff] }
 0x602   : > { %v17727_v21 = vsel %vm19656_vm13, %v19708_v16, -inf  ;;  %v17739_v50 = vsel %vm19662_vm1, %v19712_v60, -inf  ;;  %v19716_v35 = vmax.f32 %v19715_v49, 0.0  ;;  %vm19717_vm4 = vnez %v19390_v42  ;;  %vm19719_vm1 = vmmov %vm19705_vm0  ;;  %v19731_v60 = vld [vmem:[#allocation227_spill] sm:$0xff]  ;;  %v19733_v48 = vld [vmem:[#allocation228_spill] sm:$0xff] }
 0x603   : > { %v17745_v11 = vsel %vm16947_vm15, %v19714_v18, -inf  ;;  %v9606_v56 = vmax.f32 %v9604_v59, %v9605_v55  ;;  %v9677_v5 = vsel %vm19718_vm11, %v17245_v30, -inf  ;;  %v9708_v23 = vsel %vm19719_vm1, %v17323_v3, -inf  ;;  %vm19720_vm3 = vmmov %vm19705_vm0 }
 0x604   : > { %v17751_v40 = vsel %vm19717_vm4, %v19716_v35, -inf  ;;  %v9607_v32 = vsel %vm19720_vm3, %v17065_v46, -inf  ;;  %v9641_v16 = vmax.f32 %v9639_v62, %v9640_v6  ;;  %v9676_v25 = vmax.f32 %v9674_v52, %v9675_v24  ;;  %vm19727_vm4 = vmmov %vm19705_vm0 }
 0x605   : > { %v9707_v61 = vmax.f32 %v9705_v26, %v9706_v12  ;;  %v19722_v1 = vmax.f32 %v19721_v27, 0.0  ;;  %vm19723_vm15 = vnez %v19392_v47  ;;  %v19725_v59 = vmax.f32 %v19724_v10, 0.0  ;;  %vm19729_vm11 = vmmov %vm19705_vm0  ;;  %v19737_v26 = vld [vmem:[#allocation229_spill] sm:$0xff]  ;;  %v19744_v27 = vld [vmem:[#allocation211_spill] sm:$0xff] }
 0x606   : > { %vm19726_vm14 = vnez %v19394_v13  ;;  %v9642_v3 = vsel %vm19705_vm0, %v17155_v58, -inf  ;;  %v9710_v46 = vsel %vm19727_vm4, %v17329_v20, -inf  ;;  %v19728_v55 = vmax.f32 %v16496_v15, 0.0  ;;  %vm19730_vm1 = vmmov %vm19705_vm0  ;;  %v19735_v15 = vld [vmem:[#allocation198_spill] sm:$0xff] }
 0x607   : > { %v17763_v42 = vsel %vm19723_vm15, %v19722_v1, -inf  ;;  %v17769_v30 = vsel %vm19726_vm14, %v19725_v59, -inf  ;;  %v9678_v47 = vmax.f32 %v9676_v25, %v9677_v5  ;;  %v9679_v6 = vsel %vm19729_vm11, %v17251_v45, -inf  ;;  %vm19732_vm3 = vmmov %vm19705_vm0  ;;  %v19739_v45 = vld [vmem:[#allocation204_spill] sm:$0xff]  ;;  %v19740_v5 = vld [vmem:[#allocation218_spill] sm:$0xff] }
 0x608   : > { %v17779_v62 = vsel %vm16963_vm6, %v19728_v55, -inf  ;;  %v9709_v24 = vmax.f32 %v9707_v61, %v9708_v23  ;;  %v9608_v13 = vmax.f32 %v9606_v56, %v9607_v32  ;;  %v9712_v12 = vsel %vm19730_vm1, %v17335_v44, -inf  ;;  %vm19734_vm15 = vmmov %vm19705_vm0  ;;  %v19742_v32 = vld [vmem:[#allocation125_spill] sm:$0xff]  ;;  %v19746_v10 = vld [vmem:[#allocation230_spill] sm:$0xff] }
 0x609   : > { %v9738_v58 = vsel %vm19732_vm3, %v19731_v60, -inf  ;;  %v9739_v20 = vsel %vm19734_vm15, %v19733_v48, -inf  ;;  %vm19736_vm14 = vmmov %vm19705_vm0  ;;  %v9643_v18 = vmax.f32 %v9641_v16, %v9642_v3  ;;  %v9644_v35 = vsel %vm19705_vm0, %v19739_v45, -inf  ;;  %v19748_v3 = vld [vmem:[#allocation127_spill] sm:$0xff]  ;;  %v19758_v45 = vld [vmem:[#allocation205_spill] sm:$0xff] }
 0x60a   : > { %v9609_v14 = vsel %vm19736_vm14, %v19735_v15, -inf  ;;  %v9711_v52 = vmax.f32 %v9709_v24, %v9710_v46  ;;  %vm19738_vm6 = vmmov %vm19705_vm0  ;;  %v9680_v56 = vmax.f32 %v9678_v47, %v9679_v6  ;;  %v9740_v23 = vmax.f32 %v9738_v58, %v9739_v20  ;;  %v19750_v6 = vld [vmem:[#allocation199_spill] sm:$0xff] }
 0x60b   : > { %v9741_v49 = vsel %vm19738_vm6, %v19737_v26, -inf  ;;  %vm19741_vm4 = vmmov %vm19705_vm0  ;;  %v19743_v25 = vmax.f32 %v19742_v32, 0.0  ;;  %v19749_v46 = vmax.f32 %v19748_v3, 0.0  ;;  %v9610_v47 = vmax.f32 %v9608_v13, %v9609_v14  ;;  %v19752_v48 = vld [vmem:[#allocation219_spill] sm:$0xff]  ;;  %v19760_v14 = vld [vmem:[#allocation201_spill] sm:$0xff] }
 0x60c   : > { %v9714_v44 = vsel %vm19741_vm4, %v19740_v5, -inf  ;;  %vm19745_vm11 = vmmov %vm19705_vm0  ;;  %v9713_v1 = vmax.f32 %v9711_v52, %v9712_v12  ;;  %v9742_v39 = vmax.f32 %v9740_v23, %v9741_v49  ;;  %v9645_v60 = vmax.f32 %v9643_v18, %v9644_v35  ;;  %v19754_v12 = vld [vmem:[#allocation231_spill] sm:$0xff]  ;;  %v19756_v52 = vld [vmem:[#allocation200_spill] sm:$0xff] }
 0x60d   : > { %v17801_v61 = vsel %vm16967_vm10, %v19743_v25, -inf  ;;  %v9681_v16 = vsel %vm19745_vm11, %v19744_v27, -inf  ;;  %vm19747_vm1 = vmmov %vm19705_vm0  ;;  %v17811_v55 = vsel %vm16971_vm7, %v19749_v46, -inf  ;;  %v19762_v49 = vld [vmem:[#allocation202_spill] sm:$0xff]  ;;  %v19763_v35 = vld [vmem:[#allocation212_spill] sm:$0xff]  ;;  %v9841_v63 = vsel %vm19705_vm0, %v17727_v21, -inf }
 0x60e   : > { %v9743_v59 = vsel %vm19747_vm1, %v19746_v10, -inf  ;;  %vm19751_vm3 = vmmov %vm19705_vm0  ;;  %v9715_v58 = vmax.f32 %v9713_v1, %v9714_v44  ;;  %v9682_v5 = vmax.f32 %v9680_v56, %v9681_v16  ;;  %v9617_v18 = vsel %vm19705_vm0, %v19762_v49, -inf  ;;  %v19765_v23 = vld [vmem:[#allocation232_spill] sm:$0xff]  ;;  %v19767_v27 = vld [vmem:[#allocation203_spill] sm:$0xff] }
 0x60f   : > { %v9611_v24 = vsel %vm19751_vm3, %v19750_v6, -inf  ;;  %vm19753_vm10 = vmmov %vm19705_vm0  ;;  %v9744_v13 = vmax.f32 %v9742_v39, %v9743_v59  ;;  %v19769_v10 = vld [vmem:[#allocation206_spill] sm:$0xff]  ;;  %v19771_v6 = vld [vmem:[#allocation220_spill] sm:$0xff] }
 0x610   : > { %v9716_v20 = vsel %vm19753_vm10, %v19752_v48, -inf  ;;  %vm19755_vm15 = vmmov %vm19705_vm0  ;;  %v9612_v3 = vmax.f32 %v9610_v47, %v9611_v24  ;;  %v19773_v48 = vld [vmem:[#allocation233_spill] sm:$0xff] }
 0x611   : > { %v9745_v15 = vsel %vm19755_vm15, %v19754_v12, -inf  ;;  %vm19757_vm14 = vmmov %vm19705_vm0  ;;  %v9717_v16 = vmax.f32 %v9715_v58, %v9716_v20  ;;  %v19781_v20 = vld [vmem:[#allocation208_spill] sm:$0xff]  ;;  %v19782_v24 = vld [vmem:[#allocation213_spill] sm:$0xff] }
 0x612   : > { %v9613_v26 = vsel %vm19757_vm14, %v19756_v52, -inf  ;;  %vm19759_vm6 = vmmov %vm19705_vm0  ;;  %v9746_v59 = vmax.f32 %v9744_v13, %v9745_v15  ;;  %v9652_v47 = vsel %vm19705_vm0, %v19781_v20, -inf  ;;  %v19784_v15 = vld [vmem:[#allocation234_spill] sm:$0xff] }
 0x613   : > { %v9646_v34 = vsel %vm19759_vm6, %v19758_v45, -inf  ;;  %vm19761_vm7 = vmmov %vm19705_vm0 }
 0x614   : > { %v9615_v32 = vsel %vm19761_vm7, %v19760_v14, -inf  ;;  %vm19764_vm4 = vmmov %vm19705_vm0  ;;  %v9647_v46 = vmax.f32 %v9645_v60, %v9646_v34  ;;  %v19775_v14 = vld [vmem:[#allocation243_spill] sm:$0xff] }
 0x615   : > { %v9683_v44 = vsel %vm19764_vm4, %v19763_v35, -inf  ;;  %vm19766_vm11 = vmmov %vm19705_vm0  ;;  %v19777_v35 = vld [vmem:[#allocation244_spill] sm:$0xff] }
 0x616   : > { %v9747_v25 = vsel %vm19766_vm11, %v19765_v23, -inf  ;;  %vm19768_vm1 = vmmov %vm19705_vm0  ;;  %v9684_v52 = vmax.f32 %v9682_v5, %v9683_v44 }
 0x617   : > { %v17833_v1 = vsel %vm19768_vm1, %v19767_v27, -inf  ;;  %vm19770_vm3 = vmmov %vm19705_vm0  ;;  %v9748_v45 = vmax.f32 %v9746_v59, %v9747_v25  ;;  %v19779_v27 = vld [vmem:[#allocation207_spill] sm:$0xff]  ;;  %v19786_v25 = vld [vmem:[#allocation245_spill] sm:$0xff]  ;;  %v9614_v59 = vmax.f32 %v9612_v3, %v9613_v26 }
 0x618   : > { %v9648_v56 = vsel %vm19770_vm3, %v19769_v10, -inf  ;;  %vm19772_vm10 = vmmov %vm19705_vm0  ;;  %v19798_v26 = vld [vmem:[#allocation236_spill] sm:$0xff] }
 0x619   : > { %v9718_v39 = vsel %vm19772_vm10, %v19771_v6, -inf  ;;  %vm19774_vm15 = vmmov %vm19705_vm0  ;;  %v19788_v6 = vld [vmem:[#allocation221_spill] sm:$0xff] }
 0x61a   : > { %v9749_v12 = vsel %vm19774_vm15, %v19773_v48, -inf  ;;  %vm19776_vm14 = vmmov %vm19705_vm0  ;;  %v9719_v5 = vmax.f32 %v9717_v16, %v9718_v39  ;;  %v19794_v16 = vld [vmem:[#allocation209_spill] sm:$0xff] }
 0x61b   : > { %v9775_v49 = vsel %vm19776_vm14, %v19775_v14, -inf  ;;  %vm19778_vm6 = vmmov %vm19705_vm0  ;;  %v9750_v13 = vmax.f32 %v9748_v45, %v9749_v12  ;;  %v19790_v14 = vld [vmem:[#allocation235_spill] sm:$0xff]  ;;  %v19796_v12 = vld [vmem:[#allocation214_spill] sm:$0xff] }
 0x61c   : > { %v9776_v23 = vsel %vm19778_vm6, %v19777_v35, -inf  ;;  %vm19780_vm7 = vmmov %vm19705_vm0 }
 0x61d   : > { %v9650_v58 = vsel %vm19780_vm7, %v19779_v27, -inf  ;;  %vm19783_vm4 = vmmov %vm19705_vm0  ;;  %v9777_v44 = vmax.f32 %v9775_v49, %v9776_v23  ;;  %v19792_v27 = vld [vmem:[#allocation246_spill] sm:$0xff]  ;;  %v19800_v49 = vld [vmem:[#allocation247_spill] sm:$0xff] }
 0x61e   : > { %v9685_v60 = vsel %vm19783_vm4, %v19782_v24, -inf  ;;  %vm19785_vm11 = vmmov %vm19705_vm0  ;;  %v9649_v24 = vmax.f32 %v9647_v46, %v9648_v56  ;;  %v9782_v23 = vsel %vm19705_vm0, %v19800_v49, -inf  ;;  %v19808_v49 = vld [vmem:[#allocation215_spill] sm:$0xff] }
 0x61f   : > { %v9751_v34 = vsel %vm19785_vm11, %v19784_v15, -inf  ;;  %vm19787_vm1 = vmmov %vm19705_vm0  ;;  %v9686_v2 = vmax.f32 %v9684_v52, %v9685_v60  ;;  %v9616_v52 = vmax.f32 %v9614_v59, %v9615_v32  ;;  %v19803_v60 = vld [vmem:[#allocation222_spill] sm:$0xff]  ;;  %v19812_v32 = vld [vmem:[#allocation217_spill] sm:$0xff] }
 0x620   : > { %v9778_v10 = vsel %vm19787_vm1, %v19786_v25, -inf  ;;  %vm19789_vm3 = vmmov %vm19705_vm0  ;;  %v9752_v43 = vmax.f32 %v9750_v13, %v9751_v34  ;;  %v19801_v25 = vld [vmem:[#allocation210_spill] sm:$0xff]  ;;  %v19805_v13 = vld [vmem:[#allocation237_spill] sm:$0xff] }
 0x621   : > { %v9720_v48 = vsel %vm19789_vm3, %v19788_v6, -inf  ;;  %vm19791_vm10 = vmmov %vm19705_vm0  ;;  %v9779_v15 = vmax.f32 %v9777_v44, %v9778_v10 }
 0x622   : > { %v9753_v35 = vsel %vm19791_vm10, %v19790_v14, -inf  ;;  %vm19793_vm15 = vmmov %vm19705_vm0  ;;  %v9721_v14 = vmax.f32 %v9719_v5, %v9720_v48  ;;  %v19810_v5 = vld [vmem:[#allocation216_spill] sm:$0xff] }
 0x623   : > { %v9780_v20 = vsel %vm19793_vm15, %v19792_v27, -inf  ;;  %vm19795_vm14 = vmmov %vm19705_vm0  ;;  %v9754_v56 = vmax.f32 %v9752_v43, %v9753_v35  ;;  %v9651_v27 = vmax.f32 %v9649_v24, %v9650_v58  ;;  %v19814_v48 = vld [vmem:[#allocation248_spill] sm:$0xff]  ;;  %v9618_v58 = vmax.f32 %v9616_v52, %v9617_v18  ;;  %v19818_v24 = vld [vmem:[#allocation223_spill] sm:$0xff] }
 0x624   : > { %v9654_v39 = vsel %vm19795_vm14, %v19794_v16, -inf  ;;  %vm19797_vm6 = vmmov %vm19705_vm0  ;;  %v9781_v46 = vmax.f32 %v9779_v15, %v9780_v20 }
 0x625   : > { %v9687_v45 = vsel %vm19797_vm6, %v19796_v12, -inf  ;;  %vm19799_vm7 = vmmov %vm19705_vm0 }
 0x626   : > { %v9755_v3 = vsel %vm19799_vm7, %v19798_v26, -inf  ;;  %vm19802_vm4 = vmmov %vm19705_vm0  ;;  %v9688_v16 = vmax.f32 %v9686_v2, %v9687_v45  ;;  %v9783_v26 = vmax.f32 %v9781_v46, %v9782_v23  ;;  %v9724_v45 = vsel %vm19705_vm0, %v19818_v24, -inf }
 0x627   : > { %v9656_v6 = vsel %vm19802_vm4, %v19801_v25, -inf  ;;  %vm19804_vm11 = vmmov %vm19705_vm0  ;;  %v9756_v12 = vmax.f32 %v9754_v56, %v9755_v3  ;;  %v19819_v3 = vld [vmem:[#allocation224_spill] sm:$0xff]  ;;  %v19821_v56 = vld [vmem:[#allocation249_spill] sm:$0xff] }
 0x628   : > { %v9722_v34 = vsel %vm19804_vm11, %v19803_v60, -inf  ;;  %vm19806_vm1 = vmmov %vm19705_vm0  ;;  %v19816_v60 = vld [vmem:[#allocation238_spill] sm:$0xff] }
 0x629   : > { %v9757_v44 = vsel %vm19806_vm1, %v19805_v13, -inf  ;;  %vm19807_vm3 = vmmov %vm19705_vm0  ;;  %v9723_v20 = vmax.f32 %v9721_v14, %v9722_v34  ;;  %v9653_v13 = vmax.f32 %v9651_v27, %v9652_v47  ;;  %v9620_v27 = vmax.f32 %v9618_v58, %v17833_v1 }
 0x62a   : > { %v9784_v10 = vsel %vm19807_vm3, %v17527_v17, -inf  ;;  %vm19809_vm10 = vmmov %vm19705_vm0  ;;  %v9758_v15 = vmax.f32 %v9756_v12, %v9757_v44  ;;  %v19825_v12 = vld [vmem:[#allocation250_spill] sm:$0xff] }
 0x62b   : > { %v9689_v25 = vsel %vm19809_vm10, %v19808_v49, -inf  ;;  %vm19811_vm15 = vmmov %vm19705_vm0  ;;  %v9785_v2 = vmax.f32 %v9783_v26, %v9784_v10  ;;  %v9725_v26 = vmax.f32 %v9723_v20, %v9724_v45 }
 0x62c   : > { %v9691_v43 = vsel %vm19811_vm15, %v19810_v5, -inf  ;;  %vm19813_vm14 = vmmov %vm19705_vm0  ;;  %v9690_v49 = vmax.f32 %v9688_v16, %v9689_v25  ;;  %v19823_v5 = vld [vmem:[#allocation239_spill] sm:$0xff]  ;;  %v19830_v16 = vld [vmem:[#allocation225_spill] sm:$0xff] }
 0x62d   : > { %v9693_v59 = vsel %vm19813_vm14, %v19812_v32, -inf  ;;  %vm19815_vm6 = vmmov %vm19705_vm0 }
 0x62e   : > { %v9786_v35 = vsel %vm19815_vm6, %v19814_v48, -inf  ;;  %vm19817_vm7 = vmmov %vm19705_vm0 }
 0x62f   : > { %v9759_v17 = vsel %vm19817_vm7, %v19816_v60, -inf  ;;  %vm19820_vm4 = vmmov %vm19705_vm0  ;;  %v9787_v34 = vmax.f32 %v9785_v2, %v9786_v35  ;;  %v19833_v60 = vld [vmem:[#allocation226_spill] sm:$0xff]  ;;  %v9692_v2 = vmax.f32 %v9690_v49, %v9691_v43 }
 0x630   : > { %v9726_v23 = vsel %vm19820_vm4, %v19819_v3, -inf  ;;  %vm19822_vm11 = vmmov %vm19705_vm0  ;;  %v9760_v44 = vmax.f32 %v9758_v15, %v9759_v17  ;;  %v9655_v15 = vmax.f32 %v9653_v13, %v9654_v39  ;;  %v19838_v3 = vld [vmem:[#allocation240_spill] sm:$0xff]  ;;  %v9621_v39 = vrot.slane %v9620_v27, 4 }
 0x631   : > { %v9788_v46 = vsel %vm19822_vm11, %v19821_v56, -inf  ;;  %vm19824_vm1 = vmmov %vm19705_vm0  ;;  %v9727_v45 = vmax.f32 %v9725_v26, %v9726_v23  ;;  %v19849_v26 = vld [vmem:[#allocation257_spill] sm:$0xff] }
 0x632   : > { %v9761_v14 = vsel %vm19824_vm1, %v19823_v5, -inf  ;;  %vm19826_vm3 = vmmov %vm19705_vm0  ;;  %v9789_v32 = vmax.f32 %v9787_v34, %v9788_v46  ;;  %v19840_v46 = vld [vmem:[#allocation241_spill] sm:$0xff]  ;;  %v19842_v5 = vld [vmem:[#allocation252_spill] sm:$0xff] }
 0x633   : > { %v9790_v10 = vsel %vm19826_vm3, %v19825_v12, -inf  ;;  %vm19827_vm10 = vmmov %vm19705_vm0  ;;  %v9762_v24 = vmax.f32 %v9760_v44, %v9761_v14  ;;  %v9657_v14 = vmax.f32 %v9655_v15, %v9656_v6  ;;  %v19845_v34 = vld [vmem:[#allocation242_spill] sm:$0xff]  ;;  %v9694_v12 = vmax.f32 %v9692_v2, %v9693_v59 }
 0x634   : > { %v9812_v18 = vsel %vm19827_vm10, %v17607_v37, -inf  ;;  %vm19828_vm15 = vmmov %vm19705_vm0  ;;  %v9817_v37 = vsel %vm19705_vm0, %v17625_v51, -inf  ;;  %v9791_v20 = vmax.f32 %v9789_v32, %v9790_v10  ;;  %v9823_v32 = vsel %vm19705_vm0, %v19849_v26, -inf  ;;  %v19851_v6 = vld [vmem:[#allocation254_spill] sm:$0xff] }
 0x635   : > { %v9813_v52 = vsel %vm19828_vm15, %v17613_v36, -inf  ;;  %vm19829_vm14 = vmmov %vm19705_vm0 }
 0x636   : > { %v9814_v48 = vmax.f32 %v9812_v18, %v9813_v52  ;;  %v9815_v47 = vsel %vm19829_vm14, %v17619_v28, -inf  ;;  %vm19831_vm6 = vmmov %vm19705_vm0  ;;  %v19835_v28 = vld [vmem:[#allocation251_spill] sm:$0xff]  ;;  %v19847_v18 = vld [vmem:[#allocation253_spill] sm:$0xff] }
 0x637   : > { %v9728_v25 = vsel %vm19831_vm6, %v19830_v16, -inf  ;;  %vm19832_vm7 = vmmov %vm19705_vm0 }
 0x638   : > { %v9792_v35 = vsel %vm19832_vm7, %v17553_v0, -inf  ;;  %vm19834_vm4 = vmmov %vm19705_vm0  ;;  %v9816_v17 = vmax.f32 %v9814_v48, %v9815_v47  ;;  %v9729_v48 = vmax.f32 %v9727_v45, %v9728_v25 }
 0x639   : > { %v9730_v36 = vsel %vm19834_vm4, %v19833_v60, -inf  ;;  %vm19836_vm11 = vmmov %vm19705_vm0  ;;  %v9793_v56 = vmax.f32 %v9791_v20, %v9792_v35  ;;  %v9658_v20 = vrot.slane %v9657_v14, 4 }
 0x63a   : > { %v9794_v1 = vsel %vm19836_vm11, %v19835_v28, -inf  ;;  %vm19837_vm1 = vmmov %vm19705_vm0  ;;  %v9818_v51 = vmax.f32 %v9816_v17, %v9817_v37  ;;  %v19853_v37 = vld [vmem:[#allocation258_spill] sm:$0xff]  ;;  %v19857_v28 = vld [vmem:[#allocation255_spill] sm:$0xff]  ;;  %v9731_v45 = vmax.f32 %v9729_v48, %v9730_v36 }
 0x63b   : > { %v9819_v58 = vsel %vm19837_vm1, %v17631_v8, -inf  ;;  %vm19839_vm3 = vmmov %vm19705_vm0  ;;  %v9795_v23 = vmax.f32 %v9793_v56, %v9794_v1  ;;  %v9622_v56 = vmax.f32 %v9620_v27, %v9621_v39  ;;  %v19866_v39 = vld [vmem:[#allocation128_spill] sm:$0xff]  ;;  %v19870_v48 = vld [vmem:[#allocation131_spill] sm:$0xff] }
 0x63c   : > { %v9763_v0 = vsel %vm19839_vm3, %v19838_v3, -inf  ;;  %vm19841_vm10 = vmmov %vm19705_vm0  ;;  %v9820_v44 = vmax.f32 %v9818_v51, %v9819_v58 }
 0x63d   : > { %v9765_v13 = vsel %vm19841_vm10, %v19840_v46, -inf  ;;  %vm19843_vm15 = vmmov %vm19705_vm0  ;;  %v9764_v10 = vmax.f32 %v9762_v24, %v9763_v0  ;;  %v9856_v46 = vsel %vm19705_vm0, %v17769_v30, -inf  ;;  %v9732_v30 = vrot.slane %v9731_v45, 4 }
 0x63e   : > { %v9796_v43 = vsel %vm19843_vm15, %v19842_v5, -inf  ;;  %vm19844_vm14 = vmmov %vm19705_vm0 }
 0x63f   : > { %v9821_v49 = vsel %vm19844_vm14, %v17639_v29, -inf  ;;  %vm19846_vm6 = vmmov %vm19705_vm0  ;;  %v9797_v47 = vmax.f32 %v9795_v23, %v9796_v43  ;;  %v9766_v24 = vmax.f32 %v9764_v10, %v9765_v13  ;;  %v9659_v13 = vmax.f32 %v9657_v14, %v9658_v20 }
 0x640   : > { %v9767_v8 = vsel %vm19846_vm6, %v19845_v34, -inf  ;;  %vm19848_vm7 = vmmov %vm19705_vm0  ;;  %v9822_v16 = vmax.f32 %v9820_v44, %v9821_v49  ;;  %v19862_v34 = vld [vmem:[#allocation256_spill] sm:$0xff]  ;;  %v19867_v23 = vmax.f32 %v19866_v39, 0.0  ;;  %v9623_v10 = vrot.slane %v9622_v56, 2  ;;  %v19890_v39 = vld [vmem:[#allocation130_spill] sm:$0xff] }
 0x641   : > { %v9798_v52 = vsel %vm19848_vm7, %v19847_v18, -inf  ;;  %vm19850_vm4 = vmmov %vm19705_vm0 }
 0x642   : > { %v9849_v29 = vsel %vm19850_vm4, %v17739_v50, -inf  ;;  %vm19852_vm11 = vmmov %vm19705_vm0  ;;  %v9799_v17 = vmax.f32 %v9797_v47, %v9798_v52  ;;  %v9824_v25 = vmax.f32 %v9822_v16, %v9823_v32  ;;  %v19871_v47 = vmax.f32 %v19870_v48, 0.0 }
 0x643   : > { %v9800_v35 = vsel %vm19852_vm11, %v19851_v6, -inf  ;;  %vm19854_vm1 = vmmov %vm19705_vm0 }
 0x644   : > { %v9825_v15 = vsel %vm19854_vm1, %v19853_v37, -inf  ;;  %vm19855_vm3 = vmmov %vm19705_vm0  ;;  %v9801_v3 = vmax.f32 %v9799_v17, %v9800_v35  ;;  %v9581_v41 = vsel %vm16979_vm8, %v19871_v47, -inf  ;;  %v9733_v35 = vmax.f32 %v9731_v45, %v9732_v30 }
 0x645   : > { %v9850_v59 = vsel %vm19855_vm3, %v17745_v11, -inf  ;;  %vm19856_vm10 = vmmov %vm19705_vm0  ;;  %v9826_v11 = vmax.f32 %v9824_v25, %v9825_v15 }
 0x646   : > { %v9852_v60 = vsel %vm19856_vm10, %v17751_v40, -inf  ;;  %v9851_v2 = vmax.f32 %v9849_v29, %v9850_v59  ;;  %vm19858_vm15 = vmmov %vm19705_vm0  ;;  %v9695_v40 = vrot.slane %v9694_v12, 4  ;;  %v9624_v59 = vmax.f32 %v9622_v56, %v9623_v10 }
 0x647   : > { %v9802_v50 = vsel %vm19858_vm15, %v19857_v28, -inf  ;;  %vm19859_vm14 = vmmov %vm19705_vm0 }
 0x648   : > { %v9827_v1 = vsel %vm19859_vm14, %v17667_v53, -inf  ;;  %vm19860_vm6 = vmmov %vm19705_vm0  ;;  %v9853_v0 = vmax.f32 %v9851_v2, %v9852_v60  ;;  %v9803_v5 = vmax.f32 %v9801_v3, %v9802_v50  ;;  %v9768_v53 = vmax.f32 %v9766_v24, %v9767_v8 }
 0x649   : > { %v9854_v58 = vsel %vm19860_vm6, %v17763_v42, -inf  ;;  %vm19861_vm7 = vmmov %vm19705_vm0  ;;  %v9828_v43 = vmax.f32 %v9826_v11, %v9827_v1  ;;  %v9696_v18 = vmax.f32 %v9694_v12, %v9695_v40  ;;  %v9734_v3 = vrot.slane %v9733_v35, 2 }
 0x64a   : > { %v9829_v51 = vsel %vm19861_vm7, %v17673_v31, -inf  ;;  %v9855_v49 = vmax.f32 %v9853_v0, %v9854_v58  ;;  %vm19863_vm4 = vmmov %vm19705_vm0  ;;  %v9580_v31 = vsel %vm16975_vm2, %v19867_v23, -inf  ;;  %v9769_v16 = vrot.slane %v9768_v53, 4  ;;  %v19882_v58 = vld [vmem:[#allocation129_spill] sm:$0xff] }
 0x64b   : > { %v9804_v42 = vsel %vm19863_vm4, %v19862_v34, -inf  ;;  %vm19864_vm11 = vmmov %vm19705_vm0  ;;  %v9830_v14 = vmax.f32 %v9828_v43, %v9829_v51  ;;  %v9697_v60 = vrot.slane %v9696_v18, 2  ;;  %v19883_v45 = vmax.f32 %v19882_v58, 0.0 }
 0x64c   : > { %v9831_v36 = vsel %vm19864_vm11, %v17681_v54, -inf  ;;  %vm19865_vm1 = vmmov %vm19705_vm0  ;;  %v9857_v44 = vmax.f32 %v9855_v49, %v9856_v46  ;;  %v9660_v54 = vrot.slane %v9659_v13, 2  ;;  %v9805_v26 = vmax.f32 %v9803_v5, %v9804_v42 }
 0x64d   : > { %v9858_v27 = vsel %vm19865_vm1, %v17779_v62, -inf  ;;  %vm19868_vm3 = vmmov %vm19705_vm0  ;;  %v9832_v32 = vmax.f32 %v9830_v14, %v9831_v36  ;;  %v9770_v28 = vmax.f32 %v9768_v53, %v9769_v16  ;;  %vm19884_vm7 = vnez %v19410_v7  ;;  %v19887_v53 = vld [vmem:[#allocation133_spill] sm:$0xff] }
 0x64e   : > { %v9833_v8 = vsel %vm19868_vm3, %v17689_v22, -inf  ;;  %vm19869_vm10 = vmmov %vm19705_vm0  ;;  %v9859_v62 = vmax.f32 %v9857_v44, %v9858_v27  ;;  %v19874_v22 = vld [vmem:[#allocation126_spill] sm:$0xff]  ;;  %v9661_v17 = vmax.f32 %v9659_v13, %v9660_v54  ;;  %v9625_v56 = vrot.slane %v9624_v59, 1 }
 0x64f   : > { %v9860_v52 = vsel %vm19869_vm10, %v17801_v61, -inf  ;;  %vm19872_vm2 = vmmov %vm19705_vm0  ;;  %v19875_v6 = vmax.f32 %v19874_v22, 0.0  ;;  %v9834_v37 = vmax.f32 %v9832_v32, %v9833_v8  ;;  %v9698_v40 = vmax.f32 %v9696_v18, %v9697_v60 }
 0x650   : > { %v9835_v29 = vsel %vm19872_vm2, %v17695_v9, -inf  ;;  %vm19873_vm15 = vmmov %vm19705_vm0  ;;  %v9861_v15 = vmax.f32 %v9859_v62, %v9860_v52  ;;  %v9806_v9 = vrot.slane %v9805_v26, 4  ;;  %v9662_v46 = vrot.slane %v9661_v17, 1 }
 0x651   : > { %v9862_v12 = vsel %vm19873_vm15, %v17811_v55, -inf  ;;  %v9582_v61 = vsel %vm16983_vm9, %v19875_v6, -inf  ;;  %vm19876_vm14 = vmmov %vm19705_vm0  ;;  %v9836_v25 = vmax.f32 %v9834_v37, %v9835_v29  ;;  %v19878_v55 = vld [vmem:[#allocation132_spill] sm:$0xff]  ;;  %v9771_v43 = vrot.slane %v9770_v28, 2 }
 0x652   : > { %v9837_v33 = vsel %vm19876_vm14, %v17705_v19, -inf  ;;  %vm19877_vm8 = vmmov %vm19705_vm0  ;;  %v9863_v2 = vmax.f32 %v9861_v15, %v9862_v12  ;;  %v19879_v24 = vmax.f32 %v19878_v55, 0.0  ;;  %v9584_v19 = vsel %vm19884_vm7, %v19883_v45, -inf }
 0x653   : > { %v9864_v20 = vsel %vm19877_vm8, %v9580_v31, -inf  ;;  %vm19880_vm9 = vmmov %vm19705_vm0  ;;  %v9838_v11 = vmax.f32 %v9836_v25, %v9837_v33  ;;  %v9807_v13 = vmax.f32 %v9805_v26, %v9806_v9  ;;  %v19888_v7 = vmax.f32 %v19887_v53, 0.0  ;;  %v19895_v26 = vld [vmem:[#allocation134_spill] sm:$0xff] }
 0x654   : > { %v9583_v4 = vsel %vm16987_vm5, %v19879_v24, -inf  ;;  %v9839_v50 = vsel %vm19880_vm9, %v17711_v38, -inf  ;;  %vm19881_vm6 = vmmov %vm19705_vm0  ;;  %v9865_v0 = vmax.f32 %v9863_v2, %v9864_v20  ;;  %vm19889_vm11 = vnez %v19412_v57 }
 0x655   : > { %v9866_v1 = vsel %vm19881_vm6, %v9581_v41, -inf  ;;  %vm19885_vm5 = vmmov %vm19705_vm0  ;;  %v9840_v38 = vmax.f32 %v9838_v11, %v9839_v50  ;;  %v9585_v34 = vsel %vm19889_vm11, %v19888_v7, -inf  ;;  %v9735_v42 = vmax.f32 %v9733_v35, %v9734_v3 }
 0x656   : > { %v9868_v51 = vsel %vm19885_vm5, %v9582_v61, -inf  ;;  %v9867_v5 = vmax.f32 %v9865_v0, %v9866_v1  ;;  %vm19886_vm4 = vmmov %vm19705_vm0  ;;  %v19891_v23 = vmax.f32 %v19890_v39, 0.0  ;;  %v9626_v30 = vmax.f32 %v9624_v59, %v9625_v56  ;;  %v9588_v0 = vld [vmem:[#allocation2] sm:$0xff] }
 0x657   : > { %v9870_v49 = vsel %vm19886_vm4, %v9583_v4, -inf  ;;  %v9842_v36 = vmax.f32 %v9840_v38, %v9841_v63  ;;  %v9699_v14 = vrot.slane %v9698_v40, 1  ;;  %vm19893_vm1 = vmmov %vm19705_vm0  ;;  %v9663_v10 = vmax.f32 %v9661_v17, %v9662_v46 }
 0x658   : > { %v9869_v27 = vmax.f32 %v9867_v5, %v9868_v51  ;;  %v9586_v31 = vsel %vm19652_vm12, %v19891_v23, -inf  ;;  %v9872_v44 = vsel %vm19893_vm1, %v9584_v19, -inf  ;;  %v9808_v18 = vrot.slane %v9807_v13, 2  ;;  %vm19894_vm3 = vmmov %vm19705_vm0 }
 0x659   : > { %v9843_v8 = vrot.slane %v9842_v36, 4  ;;  %v9772_v54 = vmax.f32 %v9770_v28, %v9771_v43  ;;  %v9874_v57 = vsel %vm19894_vm3, %v9585_v34, -inf  ;;  %vm9894_vm10 = vcmask 1041409   ;;  %vm19898_vm12 = vmmov %vm19705_vm0 }
 0x65a   : > { %v9871_v52 = vmax.f32 %v9869_v27, %v9870_v49  ;;  %v19896_v32 = vmax.f32 %v19895_v26, 0.0  ;;  %v9736_v47 = vrot.slane %v9735_v42, 1  ;;  %v9700_v29 = vmax.f32 %v9698_v40, %v9699_v14  ;;  %vm19899_vm15 = vmmov %vm19705_vm0 }
 0x65b   : > { %v9844_v41 = vmax.f32 %v9842_v36, %v9843_v8  ;;  %v9876_v12 = vsel %vm19898_vm12, %v9586_v31, -inf  ;;  %vm9896_vm2 = vcmask 1042434   ;;  %v9809_v22 = vmax.f32 %v9807_v13, %v9808_v18  ;;  %vm19900_vm7 = vmmov %vm19705_vm0 }
 0x65c   : > { %v9587_v48 = vsel %vm19656_vm13, %v19896_v32, -inf  ;;  %v9873_v16 = vmax.f32 %v9871_v52, %v9872_v44  ;;  %v9895_v35 = vsel %vm9894_vm10, %v9663_v10, %v9626_v30  ;;  %v9773_v37 = vrot.slane %v9772_v54, 1 }
 0x65d   : > { %v9845_v6 = vrot.slane %v9844_v41, 2  ;;  %v9878_v15 = vsel %vm19899_vm15, %v9587_v48, -inf  ;;  %v9737_v59 = vmax.f32 %v9735_v42, %v9736_v47  ;;  %v9897_v20 = vsel %vm9896_vm2, %v9700_v29, %v9895_v35 }
 0x65e   : > { %v9875_v61 = vmax.f32 %v9873_v16, %v9874_v57  ;;  %vm9898_vm14 = vcmask 1043459   ;;  %v9810_v17 = vrot.slane %v9809_v22, 1  ;;  %v9774_v25 = vmax.f32 %v9772_v54, %v9773_v37 }
 0x65f   : > { %v9846_v33 = vmax.f32 %v9844_v41, %v9845_v6  ;;  %v9899_v55 = vsel %vm9898_vm14, %v9737_v59, %v9897_v20  ;;  %vm9900_vm13 = vcmask 1044484   ;;  %vm9902_vm8 = vcmask 1045509  }
 0x660   : > { %v9877_v60 = vmax.f32 %v9875_v61, %v9876_v12  ;;  %v9811_v4 = vmax.f32 %v9809_v22, %v9810_v17  ;;  %v9901_v50 = vsel %vm9900_vm13, %v9774_v25, %v9899_v55  ;;  %vm9904_vm9 = vcmask 1046534  }
 0x661   : > { %v9847_v24 = vrot.slane %v9846_v33, 1  ;;  %vm9906_vm6 = vcmask 1047559  }
 0x662   : > { %v9879_v9 = vmax.f32 %v9877_v60, %v9878_v15  ;;  %v9903_v19 = vsel %vm9902_vm8, %v9811_v4, %v9901_v50 }
 0x663   : > { %v9848_v58 = vmax.f32 %v9846_v33, %v9847_v24 }
 0x664   : > { %v9880_v2 = vrot.slane %v9879_v9, 4 }
 0x665   : > { %v9905_v11 = vsel %vm9904_vm9, %v9848_v58, %v9903_v19 }
 0x666   : > { %v9881_v28 = vmax.f32 %v9879_v9, %v9880_v2 }
 0x668   : > { %v9882_v1 = vrot.slane %v9881_v28, 2 }
 0x66a   : > { %v9883_v45 = vmax.f32 %v9881_v28, %v9882_v1 }
 0x66c   : > { %v9884_v3 = vrot.slane %v9883_v45, 1 }
 0x66e   : > { %v9885_v56 = vmax.f32 %v9883_v45, %v9884_v3 }
 0x670   : > { %v9907_v40 = vsel %vm9906_vm6, %v9885_v56, %v9905_v11 }
 0x671   : > { %v9909_v63 = vmax.f32 %v9588_v0, %v9907_v40 }
 0x673   : > { %9910 = vst.msk [vmem:[#allocation2] sm:$0xff] %vm19900_vm7, %v9909_v63 }
 0x674 PF: > { %p10721_p4 = scmp.ne.s32.totalorder %s13049_s29, 1 }
 0x675   : > { %v12968_v51 = vld [vmem:[%s18086_s5] sm:$0xff] (!%p10721_p4)   ;;  %v13070_v46 = vmov (!%p10721_p4), 0.0   ;;  %v12969_v13 = vld [vmem:[%s18086_s5 + $0x8] sm:$0xff] (!%p10721_p4)   ;;  %vm13071_vm0 = vmmov (!%p10721_p4), 0   ;;  %v12970_v38 = vld [vmem:[%s18086_s5 + $0x10] sm:$0xff] (!%p10721_p4)   ;;  %vm9948_vm5 = vcmask (!%p10721_p4), 392192  }
 0x676   : > { %9914 = sbr.rel (%p10721_p4) target bundleno = 1881 (0x759), region = 60  ;;  %12102 = vmatprep.subr.bf16.mxu0 (!%p10721_p4), %v13070_v46  ;;  %12108 = vmatprep.mubr.msk.bf16.mxu0 (!%p10721_p4), %vm13071_vm0, %v13070_v46  ;;  %v10722_v49 = vld [vmem:[%s18087_s6] ss:$0 sm:$0xff] (!%p10721_p4)  ;;  %vm9992_vm4 = vcmask (!%p10721_p4), 261120  }
 0x677   : > { %12103 = vmatpush3.bf16.msra.mxu0 (!%p10721_p4), %v12968_v51 }
 0x678   : > { %12104 = vmatprep.subr.bf16.mxu0 (!%p10721_p4), %v13070_v46 }
 0x67a   : > { %v9915_v5 = vld [vmem:[#allocation2] sm:$0xff] (!%p10721_p4) }
 0x67b   : > { %12105 = vmatpush3.bf16.msra.mxu0 (!%p10721_p4), %v12969_v13  ;;  %v9916_v43 = vpack.c.bf16 (!%p10721_p4), %v9915_v5, %v9915_v5 }
 0x67c   : > { %12106 = vmatprep.subr.bf16.mxu0 (!%p10721_p4), %v13070_v46 }
 0x67f   : > { %12107 = vmatpush3.bf16.msra.mxu0 %v12970_v38 }
 0x682   : > { %12109 = vmatmul.mubr.msk.bf16.vlgmr.msra.gmra.mrb[0].mxu0 %vm9948_vm5, %v9916_v43 }
 0x755   : > { %v9986_v53 = vpop.f32.mrb[0].mxu0 }
 0x756   : > { %v9987_v7 = vadd.f32 %v10722_v49, %v9986_v53  ;;  %v12110_v34 = vpop.f32.mrb[1].mxu0 }
 0x757   : > { %v9989_v42 = vpop.f32.mrb[2].mxu0 }
 0x758   : > { %9993 = vst.msk [vmem:[%s289_s28] sm:$0xff] %vm9992_vm4, %v9987_v7  ;;  %v12111_v36 = vpop.f32.mrb[3].mxu0 }
 0x759 PF: > { %s10728_s16 = sshll.u32 %s13053_s30, 7  ;;  %s10008_s13 = sshll.u32 %s289_s28, 4  ;;  %s10009_s13 = int_to_ptr.vmem [resolvable:$true] %s10008_s13 }
 0x75a   : > { %s18030_s9 = scalar_lea.hbm %s18088_s7, %s10728_s16  ;;  %s19901_s19 = sand.u32 1, %s13041_s27  }
 0x75b   : > { %s9995_s22 = scalar_lea.sflag [#allocation6], %s19901_s19  ;;  %s12971_s23 = scalar_lea.vmem %s10009_s13, 128 }
 0x75c   : > { %p12972_p5 = scmp.ne.s32.totalorder %s10009_s13, %s12971_s23  ;;  %s13072_s21 = smov [#allocation5]  }
 0x75d   : > { %s12975_s24 = sshll.u32 %s13072_s21, 4  ;;  %s12976_s24 = int_to_ptr.vmem [resolvable:$false] %s12975_s24 }
 0x75e   : > { %p12973_p6 = pnand %p12972_p5, %p13165_p3  ;;  %s12977_s25 = scalar_lea.vmem %s12976_s24, 256 }
 0x75f   : > { %p12978_p8 = scmp.lt.s32.totalorder %s10009_s13, %s12976_s24  ;;  %p12979_p10 = scmp.lt.s32.totalorder %s12977_s25, %s12971_s23 }
 0x760   : > { %p12974_p7 = pneg %p12973_p6 }
 0x761   : > { %p12980_p11 = por %p12979_p10, %p12978_p8 }
 0x763   : > { %p12981_p12 = pnand %p12980_p11, %p12974_p7 }
 0x765   : > { %12984 = shalt.err (!%p12981_p12)
}
 0x766   : > { %s12985_s28 = scalar_lea.hbm %s18030_s9, 128  ;;  %s12989_s0 = scalar_lea.hbm %s18088_s7, 256 }
 0x767   : > { %p12986_p13 = scmp.ne.s32.totalorder %s18030_s9, %s12985_s28  ;;  %p12990_p2 = scmp.lt.u32.totalorder %s18030_s9, %s18088_s7 }
 0x768   : > { %p12991_p4 = scmp.lt.u32.totalorder %s12989_s0, %s12985_s28  ;;  %p12993_p6 = scmp.lt.u32.totalorder %s12985_s28, %s18030_s9 }
 0x769   : > { %p12987_p0 = pnand %p12986_p13, %p13165_p3 }
 0x76a   : > { %p12992_p5 = por %p12991_p4, %p12990_p2 }
 0x76b   : > { %p12988_p1 = pneg %p12987_p0 }
 0x76c   : > { %p12994_p7 = por %p12993_p6, %p12992_p5 }
 0x76e   : > { %p12995_p8 = pnand %p12994_p7, %p12988_p1 }
 0x770   : > { %12998 = shalt.err (!%p12995_p8)
}
 0x771   : > { %12882 = dma.vmem_to_hbm [thread:$0]  (%p13165_p3), %s10009_s13, 128, %s18030_s9, %s9995_s22  }
 0x772 PF: > { %p12888_p10 = scmp.ge.s32.totalorder %s13065_s10, 2  ;;  %s10020_s29 = sand.u32 1, %s13037_s26  }
 0x773   : > { %s10021_s18 = scalar_lea.sflag [#allocation6], %s10020_s29 }
 0x774   : > { %p12885_p11 = pnand %p12888_p10, %p13175_p9 }
 0x776   : > { %13032 = dma.done.wait (!%p12885_p11), %s10021_s18, 128  }
 0x777   : > { %13034 = vsyncadd (!%p12885_p11), %s10021_s18, 4294967168  ;;  %s21_s10 = sadd.s32 1, %s13065_s10   ;;  %s19902_s16 = sld [smem:[#allocation8_spill]] }
 0x778   : > { %p18_p12 = scmp.ge.s32.totalorder %s21_s10, 6   ;;  %s19903_s28 = sld [smem:[#allocation13_spill]] }
 0x779   : > { %s19904_s29 = sld [smem:[#allocation9_spill]]  ;;  %s19905_s30 = sld [smem:[#allocation10_spill]] }
 0x77a   : > { %s19906_s8 = sld [smem:[#allocation11_spill]]  ;;  %s19907_s9 = sld [smem:[#allocation12_spill]] }
 0x77b   : > { %s19908_s26 = smov %s13041_s27  ;;  %20 = sbr.rel (!%p18_p12) target bundleno = 7 (0x7), region = 104 }
 0x77d   : > { %s19909_s27 = smov %s19902_s16 }
 0x782   :  { %10026 = vsyncpa [#allocation6], 1 }
 0x783   :  { %10028 = vsyncpa [#allocation6 + $0x1], 1 }

</bundles_post_ra>
